<compile_context>
chip_gen: v5e
topology: v5e:2x2
jax: 0.10.0
libtpu: 0.0.40
codegen_flags: <defaults>
</compile_context>

<pallas_src>
import functools

import jax
import jax.numpy as jnp
from jax.experimental import pallas as pl
from jax.experimental.pallas import tpu as pltpu


def _round_up(x, m):
    return (x + m - 1) // m * m


# ---------------------------------------------------------------------------
# Kernel 1: single-block GEMM with fused bias + ReLU (grid = (1,)).
# Used for both conv-as-im2col GEMMs: K fits in one block, so there is no
# K loop, no accumulator scratch and no pl.when phases.
# ---------------------------------------------------------------------------
def _gemm_bias_relu_kernel(x_ref, w_ref, b_ref, o_ref, *, relu):
    acc = jnp.dot(x_ref[...], w_ref[...], preferred_element_type=jnp.float32)
    acc = acc + b_ref[...]                      # (M, N) + (1, N) broadcast, f32
    if relu:
        acc = jnp.maximum(acc, 0.0)
    o_ref[...] = acc.astype(o_ref.dtype)


def gemm_bias_relu(x, w, b, *, relu=True, out_dtype=jnp.bfloat16,
                   vmem_limit_bytes=4 * 1024 * 1024):
    """y = act(x @ w + b), whole problem as one block (tiny conv GEMMs)."""
    M, K = x.shape
    Kw, N = w.shape
    assert K == Kw and b.shape == (1, N)
    return pl.pallas_call(
        functools.partial(_gemm_bias_relu_kernel, relu=relu),
        out_shape=jax.ShapeDtypeStruct((M, N), out_dtype),
        grid_spec=pltpu.PrefetchScalarGridSpec(
            num_scalar_prefetch=0,
            grid=(1,),
            in_specs=[
                pl.BlockSpec((M, K), lambda i: (0, 0)),
                pl.BlockSpec((K, N), lambda i: (0, 0)),
                pl.BlockSpec((1, N), lambda i: (0, 0)),
            ],
            out_specs=pl.BlockSpec((M, N), lambda i: (0, 0)),
        ),
        compiler_params=pltpu.CompilerParams(
            dimension_semantics=("arbitrary",),
            vmem_limit_bytes=vmem_limit_bytes,
        ),
    )(x, w, b)


# ---------------------------------------------------------------------------
# Kernel 2: fused head.
#   step j:  h_j   = relu(x @ w3[:, j*tn:(j+1)*tn] + b3_j)      (tm, tn)  f32
#            out_j = h_j.bf16 @ w4[j*tn:(j+1)*tn, :]            (tm, 128) f32
# Per-block partial logits are written to distinct output blocks, so the grid
# axis is genuinely "parallel" (v7x megacore splits the w3 stream); the caller
# sums the 4 partials and adds b4 in one tiny XLA op.  h never touches HBM.
# ---------------------------------------------------------------------------
def _fused_head_kernel(x_ref, w3_ref, b3_ref, w4_ref, o_ref):
    h = jnp.dot(x_ref[...], w3_ref[...], preferred_element_type=jnp.float32)
    h = jnp.maximum(h + b3_ref[...], 0.0)
    o_ref[...] = jnp.dot(h.astype(jnp.bfloat16), w4_ref[...],
                         preferred_element_type=jnp.float32)


def fused_head(feats, w3, b3, w4, *, tn=512):
    Mp, K = feats.shape
    Kw, N = w3.shape
    Nw, NOP = w4.shape
    assert K == Kw and Nw == N and b3.shape == (1, N) and N % tn == 0
    n_blocks = N // tn

    parts = pl.pallas_call(
        _fused_head_kernel,
        out_shape=jax.ShapeDtypeStruct((n_blocks * Mp, NOP), jnp.float32),
        grid_spec=pltpu.PrefetchScalarGridSpec(
            num_scalar_prefetch=0,
            grid=(n_blocks,),
            in_specs=[
                pl.BlockSpec((Mp, K), lambda j: (0, 0)),     # activations (resident)
                pl.BlockSpec((K, tn), lambda j: (0, j)),     # w3 chunk (streamed)
                pl.BlockSpec((1, tn), lambda j: (0, j)),     # b3 chunk
                pl.BlockSpec((tn, NOP), lambda j: (j, 0)),   # w4 chunk
            ],
            out_specs=pl.BlockSpec((Mp, NOP), lambda j: (j, 0)),
        ),
        compiler_params=pltpu.CompilerParams(
            dimension_semantics=("parallel",),
            vmem_limit_bytes=20 * 1024 * 1024,   # ~11.8 MiB actually used
        ),
    )(feats, w3, b3, w4)
    return parts.reshape(n_blocks, Mp, NOP)


# ---------------------------------------------------------------------------
# im2col glue (plain JAX): column order (kh, kw, c_in) -- a single concat,
# no transpose; the matching weight layout is folded at init.
# ---------------------------------------------------------------------------
def im2col_nhwc(x_nhwc, kh, kw, stride):
    B, H, W, C = x_nhwc.shape
    oh = (H - kh) // stride + 1
    ow = (W - kw) // stride + 1
    cols = []
    for di in range(kh):
        for dj in range(kw):
            cols.append(
                x_nhwc[:, di:di + stride * oh:stride, dj:dj + stride * ow:stride, :]
            )
    patches = jnp.concatenate(cols, axis=-1)          # (B, oh, ow, kh*kw*C)
    return patches.reshape(B * oh * ow, kh * kw * C), oh, ow


# ---------------------------------------------------------------------------
# Full MLP forward (dropout = identity, eval semantics).
# ---------------------------------------------------------------------------
def mlp_forward(x_nchw, params, *, output_layer):
    B = x_nchw.shape[0]
    x = jnp.transpose(x_nchw, (0, 2, 3, 1)).astype(jnp.bfloat16)   # NHWC bf16

    # Conv1: 3 -> 16, k=4, s=2, fused ReLU (single-block GEMM, bf16 out).
    p1, oh1, ow1 = im2col_nhwc(x, 4, 4, 2)                         # (B*14*14, 48)
    y1 = gemm_bias_relu(p1, params["w1"], params["b1"])
    y1 = y1.reshape(B, oh1, ow1, 16)

    # Conv2: 16 -> 32, k=2, s=1, fused ReLU (single-block GEMM, bf16 out).
    p2, oh2, ow2 = im2col_nhwc(y1, 2, 2, 1)                        # (B*13*13, 64)
    y2 = gemm_bias_relu(p2, params["w2"], params["b2"])            # (B*169, 32)

    # Flatten in NHWC (h, w, c) order; w3's rows were permuted at init from
    # PyTorch's NCHW-flatten order, so no runtime transpose is needed.
    feats = y2.reshape(B, oh2 * ow2 * 32)                          # (B, 5408) bf16

    # Pad batch once to a sublane multiple for the fused head.
    Mp = _round_up(B, 8)
    if Mp != B:
        feats = jnp.pad(feats, ((0, Mp - B), (0, 0)))

    # Linear(5408->2048)+ReLU fused with Linear(2048->out): per-block partial
    # logits, summed + bias in one tiny XLA op.  Padded batch rows carry
    # relu(bias) garbage and are sliced off here.
    parts = fused_head(feats, params["w3"], params["b3"], params["w4"])
    out = parts.sum(axis=0) + params["b4"]                         # (Mp, 128) f32
    return out[:B, :output_layer]

# TODO(synk): Dropout layers are identity here (inference mode); training-mode
# dropout would need pltpu.prng_seed/prng_random_bits masks fused in-kernel.


def init_params(key, output_layer):
    """All layout folding / padding / dtype casts are done ONCE here."""
    ks = jax.random.split(key, 8)
    scale = 0.05
    n_out_pad = _round_up(output_layer, 128)

    # Conv weights generated in PyTorch layout (out, in, kh, kw), folded once
    # into (kh, kw, c_in) x c_out matmul matrices matching the im2col order.
    w1_t = scale * jax.random.normal(ks[0], (16, 3, 4, 4), jnp.float32)
    w1 = jnp.transpose(w1_t, (2, 3, 1, 0)).reshape(48, 16).astype(jnp.bfloat16)
    b1 = scale * jax.random.normal(ks[1], (1, 16), jnp.float32)

    w2_t = scale * jax.random.normal(ks[2], (32, 16, 2, 2), jnp.float32)
    w2 = jnp.transpose(w2_t, (2, 3, 1, 0)).reshape(64, 32).astype(jnp.bfloat16)
    b2 = scale * jax.random.normal(ks[3], (1, 32), jnp.float32)

    # Linear(5408 -> 2048): PyTorch weight (2048, 5408) whose input index is
    # the NCHW flatten c*169 + h*13 + w.  Store transposed (in, out) with rows
    # permuted once to the NHWC flatten order (h*13 + w)*32 + c produced by
    # the conv stage -> no runtime transpose in the forward pass.
    w3_t = scale * jax.random.normal(ks[4], (2048, 32 * 13 * 13), jnp.float32)
    idx = jnp.arange(13 * 13 * 32)
    hh = idx // (13 * 32)
    ww = (idx // 32) % 13
    cc = idx % 32
    torch_row = cc * (13 * 13) + hh * 13 + ww
    w3 = w3_t.T[torch_row, :].astype(jnp.bfloat16)                 # (5408, 2048)
    b3 = scale * jax.random.normal(ks[5], (1, 2048), jnp.float32)

    # Linear(2048 -> outputLayer): padded once to 128 output lanes.
    w4_t = scale * jax.random.normal(ks[6], (output_layer, 2048), jnp.float32)
    b4_t = scale * jax.random.normal(ks[7], (1, output_layer), jnp.float32)
    w4 = jnp.zeros((2048, n_out_pad), jnp.bfloat16).at[:, :output_layer].set(
        w4_t.T.astype(jnp.bfloat16))
    b4 = jnp.zeros((1, n_out_pad), jnp.float32).at[:, :output_layer].set(b4_t)

    return dict(w1=w1, b1=b1, w2=w2, b2=b2, w3=w3, b3=b3, w4=w4, b4=b4)


if __name__ == "__main__":
    key = jax.random.PRNGKey(0)
    k_x, k_p = jax.random.split(key)

    output_layer = 4
    batch = 2
    # Input must be (B, 3, 30, 30) so the conv stack yields 32 x 13 x 13.
    x = jax.random.normal(k_x, (batch, 3, 30, 30), jnp.float32)
    params = init_params(k_p, output_layer)

    fwd = jax.jit(functools.partial(mlp_forward, output_layer=output_layer))
    out = jax.block_until_ready(fwd(x, params))
    assert out.shape == (batch, output_layer)
    assert bool(jnp.all(jnp.isfinite(out)))
    print("KERNEL_OK")
</pallas_src>

<mosaic_0001>
module attributes {stable_mosaic.version = 11 : i64} {
  func.func @_gemm_bias_relu_kernel(%arg0: i32, %arg1: memref<392x48xbf16, #tpu.memory_space<vmem>>, %arg2: memref<48x16xbf16, #tpu.memory_space<vmem>>, %arg3: memref<1x16xf32, #tpu.memory_space<vmem>>, %arg4: memref<392x16xbf16, #tpu.memory_space<vmem>>) attributes {dimension_semantics = [#tpu.dimension_semantics<arbitrary>], iteration_bounds = array<i64: 1>, scalar_prefetch = 0 : i64, scratch_operands = 0 : i64, tpu.core_type = #tpu.core_type<tc>, window_params = [{pipeline_mode = #tpu.pipeline_mode<synchronous>, transform_indices = @transform_0, window_bounds = array<i64: 392, 48>}, {pipeline_mode = #tpu.pipeline_mode<synchronous>, transform_indices = @transform_1, window_bounds = array<i64: 48, 16>}, {pipeline_mode = #tpu.pipeline_mode<synchronous>, transform_indices = @transform_2, window_bounds = array<i64: 1, 16>}, {pipeline_mode = #tpu.pipeline_mode<synchronous>, transform_indices = @transform_3, window_bounds = array<i64: 392, 16>}]} {
    %c0 = arith.constant 0 : index
    %c0_0 = arith.constant 0 : index
    %0 = vector.load %arg1[%c0, %c0_0] : memref<392x48xbf16, #tpu.memory_space<vmem>>, vector<392x48xbf16>
    %c0_1 = arith.constant 0 : index
    %c0_2 = arith.constant 0 : index
    %1 = vector.load %arg2[%c0_1, %c0_2] : memref<48x16xbf16, #tpu.memory_space<vmem>>, vector<48x16xbf16>
    %cst = arith.constant dense<0.000000e+00> : vector<392x16xf32>
    %2 = tpu.matmul %0, %1, %cst {dimension_numbers = #tpu.dot_dimension_numbers<[1], [0], [0], [1], [0, 0, 1, 1], [], []>} : vector<392x48xbf16>, vector<48x16xbf16>, vector<392x16xf32> -> vector<392x16xf32>
    %c0_3 = arith.constant 0 : index
    %c0_4 = arith.constant 0 : index
    %3 = vector.load %arg3[%c0_3, %c0_4] : memref<1x16xf32, #tpu.memory_space<vmem>>, vector<1x16xf32>
    %4 = vector.broadcast %3 : vector<1x16xf32> to vector<392x16xf32>
    %5 = arith.addf %2, %4 : vector<392x16xf32>
    %cst_5 = arith.constant 0.000000e+00 : f32
    %6 = vector.broadcast %cst_5 : f32 to vector<392x16xf32>
    %7 = arith.maximumf %5, %6 : vector<392x16xf32>
    %8 = arith.truncf %7 : vector<392x16xf32> to vector<392x16xbf16>
    %c0_6 = arith.constant 0 : index
    %c0_7 = arith.constant 0 : index
    %9 = vector.load %arg4[%c0_6, %c0_7] : memref<392x16xbf16, #tpu.memory_space<vmem>>, vector<392x16xbf16>
    tpu.vector_store %arg4[%c0_6, %c0_7], %8 {strides = array<i32>} : memref<392x16xbf16, #tpu.memory_space<vmem>>, vector<392x16xbf16>,
    return
  }
  func.func @transform_0(%arg0: i32) -> (i32, i32) {
    %c0_i32 = arith.constant 0 : i32
    %c0_i32_0 = arith.constant 0 : i32
    %c0_i32_1 = arith.constant 0 : i32
    return %c0_i32, %c0_i32_0 : i32, i32
  }
  func.func @transform_1(%arg0: i32) -> (i32, i32) {
    %c0_i32 = arith.constant 0 : i32
    %c0_i32_0 = arith.constant 0 : i32
    %c0_i32_1 = arith.constant 0 : i32
    return %c0_i32, %c0_i32_0 : i32, i32
  }
  func.func @transform_2(%arg0: i32) -> (i32, i32) {
    %c0_i32 = arith.constant 0 : i32
    %c0_i32_0 = arith.constant 0 : i32
    %c0_i32_1 = arith.constant 0 : i32
    return %c0_i32, %c0_i32_0 : i32, i32
  }
  func.func @transform_3(%arg0: i32) -> (i32, i32) {
    %c0_i32 = arith.constant 0 : i32
    %c0_i32_0 = arith.constant 0 : i32
    %c0_i32_1 = arith.constant 0 : i32
    return %c0_i32, %c0_i32_0 : i32, i32
  }
}

module attributes {stable_mosaic.version = 11 : i64} {
  func.func @_gemm_bias_relu_kernel(%arg0: i32, %arg1: memref<338x64xbf16, #tpu.memory_space<vmem>>, %arg2: memref<64x32xbf16, #tpu.memory_space<vmem>>, %arg3: memref<1x32xf32, #tpu.memory_space<vmem>>, %arg4: memref<338x32xbf16, #tpu.memory_space<vmem>>) attributes {dimension_semantics = [#tpu.dimension_semantics<arbitrary>], iteration_bounds = array<i64: 1>, scalar_prefetch = 0 : i64, scratch_operands = 0 : i64, tpu.core_type = #tpu.core_type<tc>, window_params = [{pipeline_mode = #tpu.pipeline_mode<synchronous>, transform_indices = @transform_0, window_bounds = array<i64: 338, 64>}, {pipeline_mode = #tpu.pipeline_mode<synchronous>, transform_indices = @transform_1, window_bounds = array<i64: 64, 32>}, {pipeline_mode = #tpu.pipeline_mode<synchronous>, transform_indices = @transform_2, window_bounds = array<i64: 1, 32>}, {pipeline_mode = #tpu.pipeline_mode<synchronous>, transform_indices = @transform_3, window_bounds = array<i64: 338, 32>}]} {
    %c0 = arith.constant 0 : index
    %c0_0 = arith.constant 0 : index
    %0 = vector.load %arg1[%c0, %c0_0] : memref<338x64xbf16, #tpu.memory_space<vmem>>, vector<338x64xbf16>
    %c0_1 = arith.constant 0 : index
    %c0_2 = arith.constant 0 : index
    %1 = vector.load %arg2[%c0_1, %c0_2] : memref<64x32xbf16, #tpu.memory_space<vmem>>, vector<64x32xbf16>
    %cst = arith.constant dense<0.000000e+00> : vector<338x32xf32>
    %2 = tpu.matmul %0, %1, %cst {dimension_numbers = #tpu.dot_dimension_numbers<[1], [0], [0], [1], [0, 0, 1, 1], [], []>} : vector<338x64xbf16>, vector<64x32xbf16>, vector<338x32xf32> -> vector<338x32xf32>
    %c0_3 = arith.constant 0 : index
    %c0_4 = arith.constant 0 : index
    %3 = vector.load %arg3[%c0_3, %c0_4] : memref<1x32xf32, #tpu.memory_space<vmem>>, vector<1x32xf32>
    %4 = vector.broadcast %3 : vector<1x32xf32> to vector<338x32xf32>
    %5 = arith.addf %2, %4 : vector<338x32xf32>
    %cst_5 = arith.constant 0.000000e+00 : f32
    %6 = vector.broadcast %cst_5 : f32 to vector<338x32xf32>
    %7 = arith.maximumf %5, %6 : vector<338x32xf32>
    %8 = arith.truncf %7 : vector<338x32xf32> to vector<338x32xbf16>
    %c0_6 = arith.constant 0 : index
    %c0_7 = arith.constant 0 : index
    %9 = vector.load %arg4[%c0_6, %c0_7] : memref<338x32xbf16, #tpu.memory_space<vmem>>, vector<338x32xbf16>
    tpu.vector_store %arg4[%c0_6, %c0_7], %8 {strides = array<i32>} : memref<338x32xbf16, #tpu.memory_space<vmem>>, vector<338x32xbf16>,
    return
  }
  func.func @transform_0(%arg0: i32) -> (i32, i32) {
    %c0_i32 = arith.constant 0 : i32
    %c0_i32_0 = arith.constant 0 : i32
    %c0_i32_1 = arith.constant 0 : i32
    return %c0_i32, %c0_i32_0 : i32, i32
  }
  func.func @transform_1(%arg0: i32) -> (i32, i32) {
    %c0_i32 = arith.constant 0 : i32
    %c0_i32_0 = arith.constant 0 : i32
    %c0_i32_1 = arith.constant 0 : i32
    return %c0_i32, %c0_i32_0 : i32, i32
  }
  func.func @transform_2(%arg0: i32) -> (i32, i32) {
    %c0_i32 = arith.constant 0 : i32
    %c0_i32_0 = arith.constant 0 : i32
    %c0_i32_1 = arith.constant 0 : i32
    return %c0_i32, %c0_i32_0 : i32, i32
  }
  func.func @transform_3(%arg0: i32) -> (i32, i32) {
    %c0_i32 = arith.constant 0 : i32
    %c0_i32_0 = arith.constant 0 : i32
    %c0_i32_1 = arith.constant 0 : i32
    return %c0_i32, %c0_i32_0 : i32, i32
  }
}

module attributes {stable_mosaic.version = 11 : i64} {
  func.func @_fused_head_kernel(%arg0: i32, %arg1: memref<8x5408xbf16, #tpu.memory_space<vmem>>, %arg2: memref<5408x512xbf16, #tpu.memory_space<vmem>>, %arg3: memref<1x512xf32, #tpu.memory_space<vmem>>, %arg4: memref<512x128xbf16, #tpu.memory_space<vmem>>, %arg5: memref<8x128xf32, #tpu.memory_space<vmem>>) attributes {dimension_semantics = [#tpu.dimension_semantics<parallel>], iteration_bounds = array<i64: 4>, scalar_prefetch = 0 : i64, scratch_operands = 0 : i64, tpu.core_type = #tpu.core_type<tc>, window_params = [{pipeline_mode = #tpu.pipeline_mode<synchronous>, transform_indices = @transform_0, window_bounds = array<i64: 8, 5408>}, {transform_indices = @transform_1, window_bounds = array<i64: 5408, 512>}, {transform_indices = @transform_2, window_bounds = array<i64: 1, 512>}, {transform_indices = @transform_3, window_bounds = array<i64: 512, 128>}, {transform_indices = @transform_4, window_bounds = array<i64: 8, 128>}]} {
    %c0 = arith.constant 0 : index
    %c0_0 = arith.constant 0 : index
    %0 = vector.load %arg1[%c0, %c0_0] : memref<8x5408xbf16, #tpu.memory_space<vmem>>, vector<8x5408xbf16>
    %c0_1 = arith.constant 0 : index
    %c0_2 = arith.constant 0 : index
    %1 = vector.load %arg2[%c0_1, %c0_2] : memref<5408x512xbf16, #tpu.memory_space<vmem>>, vector<5408x512xbf16>
    %cst = arith.constant dense<0.000000e+00> : vector<8x512xf32>
    %2 = tpu.matmul %0, %1, %cst {dimension_numbers = #tpu.dot_dimension_numbers<[1], [0], [0], [1], [0, 0, 1, 1], [], []>} : vector<8x5408xbf16>, vector<5408x512xbf16>, vector<8x512xf32> -> vector<8x512xf32>
    %c0_3 = arith.constant 0 : index
    %c0_4 = arith.constant 0 : index
    %3 = vector.load %arg3[%c0_3, %c0_4] : memref<1x512xf32, #tpu.memory_space<vmem>>, vector<1x512xf32>
    %4 = vector.broadcast %3 : vector<1x512xf32> to vector<8x512xf32>
    %5 = arith.addf %2, %4 : vector<8x512xf32>
    %cst_5 = arith.constant 0.000000e+00 : f32
    %6 = vector.broadcast %cst_5 : f32 to vector<8x512xf32>
    %7 = arith.maximumf %5, %6 : vector<8x512xf32>
    %8 = arith.truncf %7 : vector<8x512xf32> to vector<8x512xbf16>
    %c0_6 = arith.constant 0 : index
    %c0_7 = arith.constant 0 : index
    %9 = vector.load %arg4[%c0_6, %c0_7] : memref<512x128xbf16, #tpu.memory_space<vmem>>, vector<512x128xbf16>
    %cst_8 = arith.constant dense<0.000000e+00> : vector<8x128xf32>
    %10 = tpu.matmul %8, %9, %cst_8 {dimension_numbers = #tpu.dot_dimension_numbers<[1], [0], [0], [1], [0, 0, 1, 1], [], []>} : vector<8x512xbf16>, vector<512x128xbf16>, vector<8x128xf32> -> vector<8x128xf32>
    %c0_9 = arith.constant 0 : index
    %c0_10 = arith.constant 0 : index
    %11 = vector.load %arg5[%c0_9, %c0_10] : memref<8x128xf32, #tpu.memory_space<vmem>>, vector<8x128xf32>
    tpu.vector_store %arg5[%c0_9, %c0_10], %10 {strides = array<i32>} : memref<8x128xf32, #tpu.memory_space<vmem>>, vector<8x128xf32>,
    return
  }
  func.func @transform_0(%arg0: i32) -> (i32, i32) {
    %c0_i32 = arith.constant 0 : i32
    %c0_i32_0 = arith.constant 0 : i32
    %c0_i32_1 = arith.constant 0 : i32
    return %c0_i32, %c0_i32_0 : i32, i32
  }
  func.func @transform_1(%arg0: i32) -> (i32, i32) {
    %c0_i32 = arith.constant 0 : i32
    %c0_i32_0 = arith.constant 0 : i32
    return %c0_i32, %arg0 : i32, i32
  }
  func.func @transform_2(%arg0: i32) -> (i32, i32) {
    %c0_i32 = arith.constant 0 : i32
    %c0_i32_0 = arith.constant 0 : i32
    return %c0_i32, %arg0 : i32, i32
  }
  func.func @transform_3(%arg0: i32) -> (i32, i32) {
    %c0_i32 = arith.constant 0 : i32
    %c0_i32_0 = arith.constant 0 : i32
    return %arg0, %c0_i32 : i32, i32
  }
  func.func @transform_4(%arg0: i32) -> (i32, i32) {
    %c0_i32 = arith.constant 0 : i32
    %c0_i32_0 = arith.constant 0 : i32
    return %arg0, %c0_i32 : i32, i32
  }
}

</mosaic_0001>

<bundles_post_ra>
// kernel: mlp_forward.3
= control target key start
LH: loop header
LB: loop body
LE: loop exit
PB: predicated region body
PF: predicated region fallthrough
CT: control target
= control target key end

     0   :  { %8 = vsyncpa [#allocation3], 0  ;;  %s788_s15 = smov [#allocation2]   ;;  %s1168_s0 = inlined_call_operand.vmem [shape: bf16[392,48], index: 0, kind: input, shape index: {}]   ;;  %s1169_s1 = inlined_call_operand.vmem [shape: bf16[48,16], index: 1, kind: input, shape index: {}]   ;;  %s1170_s2 = inlined_call_operand.hbm [shape: f32[1,16], index: 2, kind: input, shape index: {}]   ;;  %s1171_s3 = inlined_call_operand.vmem [shape: bf16[392,16], index: 3, kind: output, shape index: {}]  }
   0x1   :  { %s18_s14 = sshll.u32 %s1170_s2, 4  ;;  %s20_s16 = sshll.u32 %s788_s15, 4  ;;  %s19_s14 = int_to_ptr.hbm [resolvable:$true] %s18_s14  ;;  %s21_s16 = int_to_ptr.vmem [resolvable:$true] %s20_s16 }
   0x2   :  { %23 = dma.hbm_to_vmem [thread:$0]  %s19_s14, 16, %s21_s16, [#allocation3]  }
   0x3   :  { %786 = dma.done.wait [#allocation3], 16  }
   0x4   :  { %787 = vsyncadd [#allocation3], 4294967280  ;;  %v750_v0 = vld [vmem:[%s1169_s1 + $0x10] sm:$0xff]  ;;  %v749_v1 = vld [vmem:[%s1169_s1 + $0x8] sm:$0xff]  ;;  %vm229_vm0 = vcmask 392192   ;;  %vm536_vm1 = vcmask 125952  }
   0x5   :  { %751 = vmatpush.bf16.msra.mxu1 %v750_v0  ;;  %752 = vmatpush.bf16.msra.mxu2 %v750_v0  ;;  %v748_v2 = vld [vmem:[%s1169_s1] sm:$0xff]  ;;  %v730_v3 = vld [vmem:[%s1168_s0 + $0x30] sm:$0xff]  ;;  %v737_v4 = vld [vmem:[%s1168_s0 + $0x68] sm:$0xff] }
   0x6   :  { %310 = vmatpush.bf16.msra.mxu0 %v750_v0  ;;  %753 = vmatpush.bf16.msra.mxu3 %v750_v0  ;;  %v724_v5 = vld [vmem:[%s1168_s0] sm:$0xff]  ;;  %v731_v7 = vld [vmem:[%s1168_s0 + $0x38] sm:$0xff]  ;;  %v738_v8 = vld [vmem:[%s1168_s0 + $0x70] sm:$0xff] }
   0x7   :  { %v744_v6 = vld [vmem:[%s1168_s0 + $0xa0] sm:$0xff]  ;;  %v725_v9 = vld [vmem:[%s1168_s0 + $0x8] sm:$0xff]  ;;  %v739_v12 = vld [vmem:[%s1168_s0 + $0x78] sm:$0xff] }
   0x8   :  { %v745_v10 = vld [vmem:[%s1168_s0 + $0xa8] sm:$0xff]  ;;  %v732_v11 = vld [vmem:[%s1168_s0 + $0x40] sm:$0xff]  ;;  %v726_v13 = vld [vmem:[%s1168_s0 + $0x10] sm:$0xff] }
   0x9   :  { %754 = vmatpush.bf16.msra.mxu1 %v749_v1  ;;  %755 = vmatpush.bf16.msra.mxu2 %v749_v1  ;;  %v746_v14 = vld [vmem:[%s1168_s0 + $0xb0] sm:$0xff]  ;;  %v733_v15 = vld [vmem:[%s1168_s0 + $0x48] sm:$0xff]  ;;  %v740_v16 = vld [vmem:[%s1168_s0 + $0x80] sm:$0xff] }
   0xa   :  { %311 = vmatpush.bf16.msra.mxu0 %v749_v1  ;;  %756 = vmatpush.bf16.msra.mxu3 %v749_v1  ;;  %v727_v17 = vld [vmem:[%s1168_s0 + $0x18] sm:$0xff]  ;;  %v77_v19 = vld [vmem:[%s1168_s0 + $0xc0] sm:$0xf]  ;;  %v734_v21 = vld [vmem:[%s1168_s0 + $0x50] sm:$0xff] }
   0xb   :  { %v747_v18 = vld [vmem:[%s1168_s0 + $0xb8] sm:$0xff]  ;;  %v185_v20 = vunpack.c.l.b16 %v77_v19  ;;  %v741_v22 = vld [vmem:[%s1168_s0 + $0x88] sm:$0xff]  ;;  %v728_v23 = vld [vmem:[%s1168_s0 + $0x20] sm:$0xff] }
   0xc   :  { %v735_v25 = vld [vmem:[%s1168_s0 + $0x58] sm:$0xff]  ;;  %v742_v26 = vld [vmem:[%s1168_s0 + $0x90] sm:$0xff]  ;;  %v729_v27 = vld [vmem:[%s1168_s0 + $0x28] sm:$0xff] }
   0xd   :  { %757 = vmatpush.bf16.msra.mxu1 %v748_v2  ;;  %758 = vmatpush.bf16.msra.mxu2 %v748_v2  ;;  %v210_v24 = vpack.c.b16 %v185_v20, %v185_v20  ;;  %v736_v28 = vld [vmem:[%s1168_s0 + $0x60] sm:$0xff]  ;;  %v743_v29 = vld [vmem:[%s1168_s0 + $0x98] sm:$0xff] }
   0xe   :  { %312 = vmatpush.bf16.msra.mxu0 %v748_v2  ;;  %759 = vmatpush.bf16.msra.mxu3 %v748_v2  ;;  %v921_v30 = vld [vmem:[#allocation2] ss:$0 sm:$0xff] }
  0x10   :  { %705 = vmatmul.msk.bf16.vlgmr.msra.gmra.mxu1 %vm229_vm0, %v730_v3  ;;  %712 = vmatmul.msk.bf16.vlgmr.msra.gmra.mxu2 %vm229_vm0, %v737_v4 }
  0x11   :  { %699 = vmatmul.msk.bf16.vlgmr.msra.gmra.mxu0 %vm229_vm0, %v724_v5  ;;  %719 = vmatmul.msk.bf16.vlgmr.msra.gmra.mxu3 %vm229_vm0, %v744_v6 }
  0x20   :  { %706 = vmatmul.msk.bf16.gmra.mxu1 %vm229_vm0, %v731_v7  ;;  %713 = vmatmul.msk.bf16.gmra.mxu2 %vm229_vm0, %v738_v8 }
  0x21   :  { %700 = vmatmul.msk.bf16.gmra.mxu0 %vm229_vm0, %v725_v9  ;;  %720 = vmatmul.msk.bf16.gmra.mxu3 %vm229_vm0, %v745_v10 }
  0x30   :  { %707 = vmatmul.msk.bf16.gmra.mxu1 %vm229_vm0, %v732_v11  ;;  %714 = vmatmul.msk.bf16.gmra.mxu2 %vm229_vm0, %v739_v12 }
  0x31   :  { %701 = vmatmul.msk.bf16.gmra.mxu0 %vm229_vm0, %v726_v13  ;;  %721 = vmatmul.msk.bf16.gmra.mxu3 %vm229_vm0, %v746_v14 }
  0x40   :  { %708 = vmatmul.msk.bf16.gmra.mxu1 %vm229_vm0, %v733_v15  ;;  %715 = vmatmul.msk.bf16.gmra.mxu2 %vm229_vm0, %v740_v16 }
  0x41   :  { %702 = vmatmul.msk.bf16.gmra.mxu0 %vm229_vm0, %v727_v17  ;;  %722 = vmatmul.msk.bf16.gmra.mxu3 %vm229_vm0, %v747_v18 }
  0x50   :  { %709 = vmatmul.msk.bf16.gmra.mxu1 %vm229_vm0, %v734_v21  ;;  %716 = vmatmul.msk.bf16.gmra.mxu2 %vm229_vm0, %v741_v22 }
  0x51   :  { %703 = vmatmul.msk.bf16.gmra.mxu0 %vm229_vm0, %v728_v23  ;;  %723 = vmatmul.msk.bf16.gmra.mxu3 %vm229_vm0, %v210_v24 }
  0x60   :  { %710 = vmatmul.msk.bf16.gmra.mxu1 %vm229_vm0, %v735_v25  ;;  %717 = vmatmul.msk.bf16.gmra.mxu2 %vm229_vm0, %v742_v26 }
  0x61   :  { %704 = vmatmul.msk.bf16.gmra.mxu0 %vm229_vm0, %v729_v27 }
  0x70   :  { %711 = vmatmul.msk.bf16.gmra.mxu1 %vm229_vm0, %v736_v28  ;;  %718 = vmatmul.msk.bf16.gmra.mxu2 %vm229_vm0, %v743_v29 }
  0x8d   :  { %v344_v31 = vpop.f32.mrf.mxu1 }
  0x8e   :  { %v345_v32 = vadd.f32 %v921_v30, %v344_v31  ;;  %v314_v33 = vpop.f32.mrf.mxu0 }
  0x8f   :  { %v315_v34 = vadd.f32 %v921_v30, %v314_v33 }
  0x90   :  { %v450_v35 = vmax.f32 %v345_v32, 0.0 }
  0x91   :  { %v438_v36 = vmax.f32 %v315_v34, 0.0 }
  0x92   :  { %v499_v37 = vpack.c.bf16 %v450_v35, %v450_v35 }
  0x93   :  { %v379_v38 = vpop.f32.mrf.mxu2  ;;  %v487_v39 = vpack.c.bf16 %v438_v36, %v438_v36 }
  0x94   :  { %549 = vst.msk [vmem:[%s1171_s3 + $0x30] sm:$0xf] %vm536_vm1, %v499_v37  ;;  %v380_v40 = vadd.f32 %v921_v30, %v379_v38  ;;  %v414_v41 = vpop.f32.mrf.mxu3 }
  0x95   :  { %v346_v42 = vpop.f32.mrf.mxu1  ;;  %537 = vst.msk [vmem:[%s1171_s3] sm:$0xf] %vm536_vm1, %v487_v39  ;;  %v415_v43 = vadd.f32 %v921_v30, %v414_v41 }
  0x96   :  { %v464_v44 = vmax.f32 %v380_v40, 0.0  ;;  %v347_v45 = vadd.f32 %v921_v30, %v346_v42  ;;  %v316_v46 = vpop.f32.mrf.mxu0 }
  0x97   :  { %v317_v47 = vadd.f32 %v921_v30, %v316_v46  ;;  %v478_v48 = vmax.f32 %v415_v43, 0.0 }
  0x98   :  { %v513_v49 = vpack.c.bf16 %v464_v44, %v464_v44  ;;  %v451_v50 = vmax.f32 %v347_v45, 0.0 }
  0x99   :  { %v439_v51 = vmax.f32 %v317_v47, 0.0  ;;  %v527_v52 = vpack.c.bf16 %v478_v48, %v478_v48 }
  0x9a   :  { %563 = vst.msk [vmem:[%s1171_s3 + $0x68] sm:$0xf] %vm536_vm1, %v513_v49  ;;  %v500_v53 = vpack.c.bf16 %v451_v50, %v451_v50 }
  0x9b   :  { %v381_v54 = vpop.f32.mrf.mxu2  ;;  %v488_v55 = vpack.c.bf16 %v439_v51, %v439_v51  ;;  %577 = vst.msk [vmem:[%s1171_s3 + $0xa0] sm:$0xf] %vm536_vm1, %v527_v52 }
  0x9c   :  { %550 = vst.msk [vmem:[%s1171_s3 + $0x34] sm:$0xf] %vm536_vm1, %v500_v53  ;;  %v382_v56 = vadd.f32 %v921_v30, %v381_v54  ;;  %v416_v57 = vpop.f32.mrf.mxu3 }
  0x9d   :  { %v349_v58 = vpop.f32.mrf.mxu1  ;;  %538 = vst.msk [vmem:[%s1171_s3 + $0x4] sm:$0xf] %vm536_vm1, %v488_v55  ;;  %v417_v59 = vadd.f32 %v921_v30, %v416_v57 }
  0x9e   :  { %v465_v60 = vmax.f32 %v382_v56, 0.0  ;;  %v350_v61 = vadd.f32 %v921_v30, %v349_v58  ;;  %v319_v62 = vpop.f32.mrf.mxu0 }
  0x9f   :  { %v320_v63 = vadd.f32 %v921_v30, %v319_v62  ;;  %v479_v0 = vmax.f32 %v417_v59, 0.0 }
  0xa0   :  { %v514_v1 = vpack.c.bf16 %v465_v60, %v465_v60  ;;  %v452_v2 = vmax.f32 %v350_v61, 0.0 }
  0xa1   :  { %v440_v3 = vmax.f32 %v320_v63, 0.0  ;;  %v528_v4 = vpack.c.bf16 %v479_v0, %v479_v0 }
  0xa2   :  { %564 = vst.msk [vmem:[%s1171_s3 + $0x6c] sm:$0xf] %vm536_vm1, %v514_v1  ;;  %v501_v5 = vpack.c.bf16 %v452_v2, %v452_v2 }
  0xa3   :  { %v384_v6 = vpop.f32.mrf.mxu2  ;;  %v489_v7 = vpack.c.bf16 %v440_v3, %v440_v3  ;;  %578 = vst.msk [vmem:[%s1171_s3 + $0xa4] sm:$0xf] %vm536_vm1, %v528_v4 }
  0xa4   :  { %551 = vst.msk [vmem:[%s1171_s3 + $0x38] sm:$0xf] %vm536_vm1, %v501_v5  ;;  %v385_v8 = vadd.f32 %v921_v30, %v384_v6  ;;  %v419_v9 = vpop.f32.mrf.mxu3 }
  0xa5   :  { %v351_v10 = vpop.f32.mrf.mxu1  ;;  %539 = vst.msk [vmem:[%s1171_s3 + $0x8] sm:$0xf] %vm536_vm1, %v489_v7  ;;  %v420_v11 = vadd.f32 %v921_v30, %v419_v9 }
  0xa6   :  { %v466_v12 = vmax.f32 %v385_v8, 0.0  ;;  %v352_v13 = vadd.f32 %v921_v30, %v351_v10  ;;  %v321_v14 = vpop.f32.mrf.mxu0 }
  0xa7   :  { %v322_v15 = vadd.f32 %v921_v30, %v321_v14  ;;  %v480_v16 = vmax.f32 %v420_v11, 0.0 }
  0xa8   :  { %v515_v17 = vpack.c.bf16 %v466_v12, %v466_v12  ;;  %v453_v18 = vmax.f32 %v352_v13, 0.0 }
  0xa9   :  { %v441_v19 = vmax.f32 %v322_v15, 0.0  ;;  %v529_v20 = vpack.c.bf16 %v480_v16, %v480_v16 }
  0xaa   :  { %565 = vst.msk [vmem:[%s1171_s3 + $0x70] sm:$0xf] %vm536_vm1, %v515_v17  ;;  %v502_v21 = vpack.c.bf16 %v453_v18, %v453_v18 }
  0xab   :  { %v386_v22 = vpop.f32.mrf.mxu2  ;;  %v490_v23 = vpack.c.bf16 %v441_v19, %v441_v19  ;;  %579 = vst.msk [vmem:[%s1171_s3 + $0xa8] sm:$0xf] %vm536_vm1, %v529_v20 }
  0xac   :  { %552 = vst.msk [vmem:[%s1171_s3 + $0x3c] sm:$0xf] %vm536_vm1, %v502_v21  ;;  %v387_v24 = vadd.f32 %v921_v30, %v386_v22  ;;  %v421_v25 = vpop.f32.mrf.mxu3 }
  0xad   :  { %v354_v26 = vpop.f32.mrf.mxu1  ;;  %540 = vst.msk [vmem:[%s1171_s3 + $0xc] sm:$0xf] %vm536_vm1, %v490_v23  ;;  %v422_v27 = vadd.f32 %v921_v30, %v421_v25 }
  0xae   :  { %v467_v28 = vmax.f32 %v387_v24, 0.0  ;;  %v355_v29 = vadd.f32 %v921_v30, %v354_v26  ;;  %v324_v31 = vpop.f32.mrf.mxu0 }
  0xaf   :  { %v325_v32 = vadd.f32 %v921_v30, %v324_v31  ;;  %v481_v33 = vmax.f32 %v422_v27, 0.0 }
  0xb0   :  { %v516_v34 = vpack.c.bf16 %v467_v28, %v467_v28  ;;  %v454_v35 = vmax.f32 %v355_v29, 0.0 }
  0xb1   :  { %v442_v36 = vmax.f32 %v325_v32, 0.0  ;;  %v530_v37 = vpack.c.bf16 %v481_v33, %v481_v33 }
  0xb2   :  { %566 = vst.msk [vmem:[%s1171_s3 + $0x74] sm:$0xf] %vm536_vm1, %v516_v34  ;;  %v503_v38 = vpack.c.bf16 %v454_v35, %v454_v35 }
  0xb3   :  { %v389_v39 = vpop.f32.mrf.mxu2  ;;  %v491_v40 = vpack.c.bf16 %v442_v36, %v442_v36  ;;  %580 = vst.msk [vmem:[%s1171_s3 + $0xac] sm:$0xf] %vm536_vm1, %v530_v37 }
  0xb4   :  { %553 = vst.msk [vmem:[%s1171_s3 + $0x40] sm:$0xf] %vm536_vm1, %v503_v38  ;;  %v390_v41 = vadd.f32 %v921_v30, %v389_v39  ;;  %v424_v42 = vpop.f32.mrf.mxu3 }
  0xb5   :  { %v356_v43 = vpop.f32.mrf.mxu1  ;;  %541 = vst.msk [vmem:[%s1171_s3 + $0x10] sm:$0xf] %vm536_vm1, %v491_v40  ;;  %v425_v44 = vadd.f32 %v921_v30, %v424_v42 }
  0xb6   :  { %v468_v45 = vmax.f32 %v390_v41, 0.0  ;;  %v357_v46 = vadd.f32 %v921_v30, %v356_v43  ;;  %v326_v47 = vpop.f32.mrf.mxu0 }
  0xb7   :  { %v327_v48 = vadd.f32 %v921_v30, %v326_v47  ;;  %v482_v49 = vmax.f32 %v425_v44, 0.0 }
  0xb8   :  { %v517_v50 = vpack.c.bf16 %v468_v45, %v468_v45  ;;  %v455_v51 = vmax.f32 %v357_v46, 0.0 }
  0xb9   :  { %v443_v52 = vmax.f32 %v327_v48, 0.0  ;;  %v531_v53 = vpack.c.bf16 %v482_v49, %v482_v49 }
  0xba   :  { %567 = vst.msk [vmem:[%s1171_s3 + $0x78] sm:$0xf] %vm536_vm1, %v517_v50  ;;  %v504_v54 = vpack.c.bf16 %v455_v51, %v455_v51 }
  0xbb   :  { %v391_v55 = vpop.f32.mrf.mxu2  ;;  %v492_v56 = vpack.c.bf16 %v443_v52, %v443_v52  ;;  %581 = vst.msk [vmem:[%s1171_s3 + $0xb0] sm:$0xf] %vm536_vm1, %v531_v53 }
  0xbc   :  { %554 = vst.msk [vmem:[%s1171_s3 + $0x44] sm:$0xf] %vm536_vm1, %v504_v54  ;;  %v392_v57 = vadd.f32 %v921_v30, %v391_v55  ;;  %v426_v58 = vpop.f32.mrf.mxu3 }
  0xbd   :  { %v359_v59 = vpop.f32.mrf.mxu1  ;;  %542 = vst.msk [vmem:[%s1171_s3 + $0x14] sm:$0xf] %vm536_vm1, %v492_v56  ;;  %v427_v60 = vadd.f32 %v921_v30, %v426_v58 }
  0xbe   :  { %v469_v61 = vmax.f32 %v392_v57, 0.0  ;;  %v360_v62 = vadd.f32 %v921_v30, %v359_v59  ;;  %v329_v63 = vpop.f32.mrf.mxu0 }
  0xbf   :  { %v330_v0 = vadd.f32 %v921_v30, %v329_v63  ;;  %v483_v1 = vmax.f32 %v427_v60, 0.0 }
  0xc0   :  { %v518_v2 = vpack.c.bf16 %v469_v61, %v469_v61  ;;  %v456_v3 = vmax.f32 %v360_v62, 0.0 }
  0xc1   :  { %v444_v4 = vmax.f32 %v330_v0, 0.0  ;;  %v532_v5 = vpack.c.bf16 %v483_v1, %v483_v1 }
  0xc2   :  { %568 = vst.msk [vmem:[%s1171_s3 + $0x7c] sm:$0xf] %vm536_vm1, %v518_v2  ;;  %v505_v6 = vpack.c.bf16 %v456_v3, %v456_v3 }
  0xc3   :  { %v394_v7 = vpop.f32.mrf.mxu2  ;;  %v493_v8 = vpack.c.bf16 %v444_v4, %v444_v4  ;;  %582 = vst.msk [vmem:[%s1171_s3 + $0xb4] sm:$0xf] %vm536_vm1, %v532_v5 }
  0xc4   :  { %555 = vst.msk [vmem:[%s1171_s3 + $0x48] sm:$0xf] %vm536_vm1, %v505_v6  ;;  %v395_v9 = vadd.f32 %v921_v30, %v394_v7  ;;  %v429_v10 = vpop.f32.mrf.mxu3 }
  0xc5   :  { %v361_v11 = vpop.f32.mrf.mxu1  ;;  %543 = vst.msk [vmem:[%s1171_s3 + $0x18] sm:$0xf] %vm536_vm1, %v493_v8  ;;  %v430_v12 = vadd.f32 %v921_v30, %v429_v10 }
  0xc6   :  { %v470_v13 = vmax.f32 %v395_v9, 0.0  ;;  %v362_v14 = vadd.f32 %v921_v30, %v361_v11  ;;  %v331_v15 = vpop.f32.mrf.mxu0 }
  0xc7   :  { %v332_v16 = vadd.f32 %v921_v30, %v331_v15  ;;  %v484_v17 = vmax.f32 %v430_v12, 0.0 }
  0xc8   :  { %v519_v18 = vpack.c.bf16 %v470_v13, %v470_v13  ;;  %v457_v19 = vmax.f32 %v362_v14, 0.0 }
  0xc9   :  { %v445_v20 = vmax.f32 %v332_v16, 0.0  ;;  %v533_v21 = vpack.c.bf16 %v484_v17, %v484_v17 }
  0xca   :  { %569 = vst.msk [vmem:[%s1171_s3 + $0x80] sm:$0xf] %vm536_vm1, %v519_v18  ;;  %v506_v22 = vpack.c.bf16 %v457_v19, %v457_v19 }
  0xcb   :  { %v396_v23 = vpop.f32.mrf.mxu2  ;;  %v494_v24 = vpack.c.bf16 %v445_v20, %v445_v20  ;;  %583 = vst.msk [vmem:[%s1171_s3 + $0xb8] sm:$0xf] %vm536_vm1, %v533_v21 }
  0xcc   :  { %556 = vst.msk [vmem:[%s1171_s3 + $0x4c] sm:$0xf] %vm536_vm1, %v506_v22  ;;  %v397_v25 = vadd.f32 %v921_v30, %v396_v23  ;;  %v431_v26 = vpop.f32.mrf.mxu3 }
  0xcd   :  { %v364_v27 = vpop.f32.mrf.mxu1  ;;  %544 = vst.msk [vmem:[%s1171_s3 + $0x1c] sm:$0xf] %vm536_vm1, %v494_v24  ;;  %v432_v28 = vadd.f32 %v921_v30, %v431_v26 }
  0xce   :  { %v471_v29 = vmax.f32 %v397_v25, 0.0  ;;  %v365_v31 = vadd.f32 %v921_v30, %v364_v27  ;;  %v334_v32 = vpop.f32.mrf.mxu0 }
  0xcf   :  { %v335_v33 = vadd.f32 %v921_v30, %v334_v32  ;;  %v485_v34 = vmax.f32 %v432_v28, 0.0 }
  0xd0   :  { %v520_v35 = vpack.c.bf16 %v471_v29, %v471_v29  ;;  %v458_v36 = vmax.f32 %v365_v31, 0.0 }
  0xd1   :  { %v446_v37 = vmax.f32 %v335_v33, 0.0  ;;  %v534_v38 = vpack.c.bf16 %v485_v34, %v485_v34 }
  0xd2   :  { %570 = vst.msk [vmem:[%s1171_s3 + $0x84] sm:$0xf] %vm536_vm1, %v520_v35  ;;  %v507_v39 = vpack.c.bf16 %v458_v36, %v458_v36 }
  0xd3   :  { %v399_v40 = vpop.f32.mrf.mxu2  ;;  %v495_v41 = vpack.c.bf16 %v446_v37, %v446_v37  ;;  %584 = vst.msk [vmem:[%s1171_s3 + $0xbc] sm:$0xf] %vm536_vm1, %v534_v38 }
  0xd4   :  { %557 = vst.msk [vmem:[%s1171_s3 + $0x50] sm:$0xf] %vm536_vm1, %v507_v39  ;;  %v400_v42 = vadd.f32 %v921_v30, %v399_v40  ;;  %v434_v43 = vpop.f32.mrf.mxu3 }
  0xd5   :  { %v366_v44 = vpop.f32.mrf.mxu1  ;;  %545 = vst.msk [vmem:[%s1171_s3 + $0x20] sm:$0xf] %vm536_vm1, %v495_v41  ;;  %v435_v45 = vadd.f32 %v921_v30, %v434_v43 }
  0xd6   :  { %v472_v46 = vmax.f32 %v400_v42, 0.0  ;;  %v367_v47 = vadd.f32 %v921_v30, %v366_v44  ;;  %v336_v48 = vpop.f32.mrf.mxu0 }
  0xd7   :  { %v337_v49 = vadd.f32 %v921_v30, %v336_v48  ;;  %v486_v50 = vmax.f32 %v435_v45, 0.0 }
  0xd8   :  { %v521_v51 = vpack.c.bf16 %v472_v46, %v472_v46  ;;  %v459_v52 = vmax.f32 %v367_v47, 0.0 }
  0xd9   :  { %v447_v53 = vmax.f32 %v337_v49, 0.0  ;;  %v535_v54 = vpack.c.bf16 %v486_v50, %v486_v50 }
  0xda   :  { %571 = vst.msk [vmem:[%s1171_s3 + $0x88] sm:$0xf] %vm536_vm1, %v521_v51  ;;  %v508_v55 = vpack.c.bf16 %v459_v52, %v459_v52 }
  0xdb   :  { %v401_v56 = vpop.f32.mrf.mxu2  ;;  %v496_v57 = vpack.c.bf16 %v447_v53, %v447_v53  ;;  %585 = vst.msk [vmem:[%s1171_s3 + $0xc0] sm:$0xf] %vm536_vm1, %v535_v54 }
  0xdc   :  { %558 = vst.msk [vmem:[%s1171_s3 + $0x54] sm:$0xf] %vm536_vm1, %v508_v55  ;;  %v402_v58 = vadd.f32 %v921_v30, %v401_v56  ;;  %v436_v59 = vpop.f32.mrf.mxu3 }
  0xdd   :  { %v369_v60 = vpop.f32.mrf.mxu1  ;;  %546 = vst.msk [vmem:[%s1171_s3 + $0x24] sm:$0xf] %vm536_vm1, %v496_v57 }
  0xde   :  { %v473_v61 = vmax.f32 %v402_v58, 0.0  ;;  %v370_v62 = vadd.f32 %v921_v30, %v369_v60  ;;  %v339_v63 = vpop.f32.mrf.mxu0 }
  0xdf   :  { %v340_v0 = vadd.f32 %v921_v30, %v339_v63 }
  0xe0   :  { %v522_v1 = vpack.c.bf16 %v473_v61, %v473_v61  ;;  %v460_v2 = vmax.f32 %v370_v62, 0.0 }
  0xe1   :  { %v448_v3 = vmax.f32 %v340_v0, 0.0 }
  0xe2   :  { %572 = vst.msk [vmem:[%s1171_s3 + $0x8c] sm:$0xf] %vm536_vm1, %v522_v1  ;;  %v509_v4 = vpack.c.bf16 %v460_v2, %v460_v2 }
  0xe3   :  { %v404_v5 = vpop.f32.mrf.mxu2  ;;  %v497_v6 = vpack.c.bf16 %v448_v3, %v448_v3 }
  0xe4   :  { %559 = vst.msk [vmem:[%s1171_s3 + $0x58] sm:$0xf] %vm536_vm1, %v509_v4  ;;  %v405_v7 = vadd.f32 %v921_v30, %v404_v5 }
  0xe5   :  { %v371_v8 = vpop.f32.mrf.mxu1  ;;  %547 = vst.msk [vmem:[%s1171_s3 + $0x28] sm:$0xf] %vm536_vm1, %v497_v6 }
  0xe6   :  { %v474_v9 = vmax.f32 %v405_v7, 0.0  ;;  %v372_v10 = vadd.f32 %v921_v30, %v371_v8  ;;  %v341_v11 = vpop.f32.mrf.mxu0 }
  0xe7   :  { %v342_v12 = vadd.f32 %v921_v30, %v341_v11 }
  0xe8   :  { %v523_v13 = vpack.c.bf16 %v474_v9, %v474_v9  ;;  %v461_v14 = vmax.f32 %v372_v10, 0.0 }
  0xe9   :  { %v449_v15 = vmax.f32 %v342_v12, 0.0 }
  0xea   :  { %573 = vst.msk [vmem:[%s1171_s3 + $0x90] sm:$0xf] %vm536_vm1, %v523_v13  ;;  %v510_v16 = vpack.c.bf16 %v461_v14, %v461_v14 }
  0xeb   :  { %v406_v17 = vpop.f32.mrf.mxu2  ;;  %v498_v18 = vpack.c.bf16 %v449_v15, %v449_v15 }
  0xec   :  { %560 = vst.msk [vmem:[%s1171_s3 + $0x5c] sm:$0xf] %vm536_vm1, %v510_v16  ;;  %v407_v19 = vadd.f32 %v921_v30, %v406_v17 }
  0xed   :  { %v374_v20 = vpop.f32.mrf.mxu1  ;;  %548 = vst.msk [vmem:[%s1171_s3 + $0x2c] sm:$0xf] %vm536_vm1, %v498_v18 }
  0xee   :  { %v475_v21 = vmax.f32 %v407_v19, 0.0  ;;  %v375_v22 = vadd.f32 %v921_v30, %v374_v20 }
  0xf0   :  { %v524_v23 = vpack.c.bf16 %v475_v21, %v475_v21  ;;  %v462_v24 = vmax.f32 %v375_v22, 0.0 }
  0xf2   :  { %574 = vst.msk [vmem:[%s1171_s3 + $0x94] sm:$0xf] %vm536_vm1, %v524_v23  ;;  %v511_v25 = vpack.c.bf16 %v462_v24, %v462_v24 }
  0xf3   :  { %v409_v26 = vpop.f32.mrf.mxu2 }
  0xf4   :  { %561 = vst.msk [vmem:[%s1171_s3 + $0x60] sm:$0xf] %vm536_vm1, %v511_v25  ;;  %v410_v27 = vadd.f32 %v921_v30, %v409_v26 }
  0xf5   :  { %v376_v28 = vpop.f32.mrf.mxu1 }
  0xf6   :  { %v476_v29 = vmax.f32 %v410_v27, 0.0  ;;  %v377_v31 = vadd.f32 %v921_v30, %v376_v28 }
  0xf8   :  { %v525_v32 = vpack.c.bf16 %v476_v29, %v476_v29  ;;  %v463_v33 = vmax.f32 %v377_v31, 0.0 }
  0xfa   :  { %575 = vst.msk [vmem:[%s1171_s3 + $0x98] sm:$0xf] %vm536_vm1, %v525_v32  ;;  %v512_v34 = vpack.c.bf16 %v463_v33, %v463_v33 }
  0xfb   :  { %v411_v35 = vpop.f32.mrf.mxu2 }
  0xfc   :  { %562 = vst.msk [vmem:[%s1171_s3 + $0x64] sm:$0xf] %vm536_vm1, %v512_v34  ;;  %v412_v36 = vadd.f32 %v921_v30, %v411_v35 }
  0xfe   :  { %v477_v37 = vmax.f32 %v412_v36, 0.0 }
 0x100   :  { %v526_v38 = vpack.c.bf16 %v477_v37, %v477_v37 }
 0x102   :  { %576 = vst.msk [vmem:[%s1171_s3 + $0x9c] sm:$0xf] %vm536_vm1, %v526_v38 }
 0x103   :  { %590 = vsyncpa [#allocation3], 1 }

// kernel: mlp_forward.4
= control target key start
LH: loop header
LB: loop body
LE: loop exit
PB: predicated region body
PF: predicated region fallthrough
CT: control target
= control target key end

     0   :  { %8 = vsyncpa [#allocation3], 0  ;;  %s724_s15 = smov [#allocation2]   ;;  %s1064_s0 = inlined_call_operand.vmem [shape: bf16[338,64], index: 0, kind: input, shape index: {}]   ;;  %s1065_s1 = inlined_call_operand.vmem [shape: bf16[64,32], index: 1, kind: input, shape index: {}]   ;;  %s1066_s2 = inlined_call_operand.hbm [shape: f32[1,32], index: 2, kind: input, shape index: {}]   ;;  %s1067_s3 = inlined_call_operand.vmem [shape: bf16[338,32], index: 3, kind: output, shape index: {}]  }
   0x1   :  { %s18_s14 = sshll.u32 %s1066_s2, 4  ;;  %s20_s16 = sshll.u32 %s724_s15, 4  ;;  %s19_s14 = int_to_ptr.hbm [resolvable:$true] %s18_s14  ;;  %s21_s16 = int_to_ptr.vmem [resolvable:$true] %s20_s16 }
   0x2   :  { %23 = dma.hbm_to_vmem [thread:$0]  %s19_s14, 16, %s21_s16, [#allocation3]  }
   0x3   :  { %722 = dma.done.wait [#allocation3], 16  }
   0x4   :  { %723 = vsyncadd [#allocation3], 4294967280  ;;  %v683_v0 = vld [vmem:[%s1065_s1 + $0x18] sm:$0xff]  ;;  %v682_v1 = vld [vmem:[%s1065_s1 + $0x10] sm:$0xff]  ;;  %vm216_vm0 = vcmask 523264   ;;  %vm487_vm1 = vcmask 257024  }
   0x5   :  { %684 = vmatpush.bf16.msra.mxu1 %v683_v0  ;;  %685 = vmatpush.bf16.msra.mxu2 %v683_v0  ;;  %v681_v2 = vld [vmem:[%s1065_s1 + $0x8] sm:$0xff]  ;;  %v680_v3 = vld [vmem:[%s1065_s1] sm:$0xff]  ;;  %v670_v5 = vld [vmem:[%s1064_s0 + $0x58] sm:$0xff]  ;;  %vm530_vm2 = vcmask 253952  }
   0x6   :  { %287 = vmatpush.bf16.msra.mxu0 %v683_v0  ;;  %686 = vmatpush.bf16.msra.mxu3 %v683_v0  ;;  %v664_v4 = vld [vmem:[%s1064_s0 + $0x28] sm:$0xff]  ;;  %v659_v6 = vld [vmem:[%s1064_s0] sm:$0xff]  ;;  %v665_v8 = vld [vmem:[%s1064_s0 + $0x30] sm:$0xff] }
   0x7   :  { %v676_v7 = vld [vmem:[%s1064_s0 + $0x88] sm:$0xff]  ;;  %v671_v9 = vld [vmem:[%s1064_s0 + $0x60] sm:$0xff]  ;;  %v677_v11 = vld [vmem:[%s1064_s0 + $0x90] sm:$0xff] }
   0x8   :  { %v660_v10 = vld [vmem:[%s1064_s0 + $0x8] sm:$0xff]  ;;  %v666_v12 = vld [vmem:[%s1064_s0 + $0x38] sm:$0xff]  ;;  %v661_v14 = vld [vmem:[%s1064_s0 + $0x10] sm:$0xff] }
   0x9   :  { %687 = vmatpush.bf16.msra.mxu1 %v682_v1  ;;  %688 = vmatpush.bf16.msra.mxu2 %v682_v1  ;;  %v672_v13 = vld [vmem:[%s1064_s0 + $0x68] sm:$0xff]  ;;  %v678_v15 = vld [vmem:[%s1064_s0 + $0x98] sm:$0xff]  ;;  %v667_v16 = vld [vmem:[%s1064_s0 + $0x40] sm:$0xff] }
   0xa   :  { %288 = vmatpush.bf16.msra.mxu0 %v682_v1  ;;  %689 = vmatpush.bf16.msra.mxu3 %v682_v1  ;;  %v673_v17 = vld [vmem:[%s1064_s0 + $0x70] sm:$0xff]  ;;  %v662_v18 = vld [vmem:[%s1064_s0 + $0x18] sm:$0xff]  ;;  %v679_v19 = vld [vmem:[%s1064_s0 + $0xa0] sm:$0xff] }
   0xb   :  { %v71_v20 = vld [vmem:[%s1064_s0 + $0xa8] sm:$0x1]  ;;  %v674_v23 = vld [vmem:[%s1064_s0 + $0x78] sm:$0xff]  ;;  %v663_v24 = vld [vmem:[%s1064_s0 + $0x20] sm:$0xff] }
   0xc   :  { %v169_v21 = vunpack.c.l.b16 %v71_v20  ;;  %v668_v22 = vld [vmem:[%s1064_s0 + $0x48] sm:$0xff]  ;;  %v669_v26 = vld [vmem:[%s1064_s0 + $0x50] sm:$0xff]  ;;  %v675_v27 = vld [vmem:[%s1064_s0 + $0x80] sm:$0xff] }
   0xd   :  { %690 = vmatpush.bf16.msra.mxu1 %v681_v2  ;;  %691 = vmatpush.bf16.msra.mxu2 %v681_v2  ;;  %v848_v28 = vld [vmem:[#allocation2] ss:$0 sm:$0xff] }
   0xe   :  { %289 = vmatpush.bf16.msra.mxu0 %v681_v2  ;;  %692 = vmatpush.bf16.msra.mxu3 %v681_v2  ;;  %v191_v25 = vpack.c.b16 %v169_v21, %v169_v21 }
  0x11   :  { %693 = vmatpush.bf16.msra.mxu1 %v680_v3  ;;  %694 = vmatpush.bf16.msra.mxu2 %v680_v3 }
  0x12   :  { %290 = vmatpush.bf16.msra.mxu0 %v680_v3  ;;  %695 = vmatpush.bf16.msra.mxu3 %v680_v3 }
  0x14   :  { %642 = vmatmul.msk.bf16.vlgmr.msra.gmra.mxu1 %vm216_vm0, %v664_v4  ;;  %648 = vmatmul.msk.bf16.vlgmr.msra.gmra.mxu2 %vm216_vm0, %v670_v5 }
  0x15   :  { %637 = vmatmul.msk.bf16.vlgmr.msra.gmra.mxu0 %vm216_vm0, %v659_v6  ;;  %654 = vmatmul.msk.bf16.vlgmr.msra.gmra.mxu3 %vm216_vm0, %v676_v7 }
  0x24   :  { %643 = vmatmul.msk.bf16.gmra.mxu1 %vm216_vm0, %v665_v8  ;;  %649 = vmatmul.msk.bf16.gmra.mxu2 %vm216_vm0, %v671_v9 }
  0x25   :  { %638 = vmatmul.msk.bf16.gmra.mxu0 %vm216_vm0, %v660_v10  ;;  %655 = vmatmul.msk.bf16.gmra.mxu3 %vm216_vm0, %v677_v11 }
  0x34   :  { %644 = vmatmul.msk.bf16.gmra.mxu1 %vm216_vm0, %v666_v12  ;;  %650 = vmatmul.msk.bf16.gmra.mxu2 %vm216_vm0, %v672_v13 }
  0x35   :  { %639 = vmatmul.msk.bf16.gmra.mxu0 %vm216_vm0, %v661_v14  ;;  %656 = vmatmul.msk.bf16.gmra.mxu3 %vm216_vm0, %v678_v15 }
  0x44   :  { %645 = vmatmul.msk.bf16.gmra.mxu1 %vm216_vm0, %v667_v16  ;;  %651 = vmatmul.msk.bf16.gmra.mxu2 %vm216_vm0, %v673_v17 }
  0x45   :  { %640 = vmatmul.msk.bf16.gmra.mxu0 %vm216_vm0, %v662_v18  ;;  %657 = vmatmul.msk.bf16.gmra.mxu3 %vm216_vm0, %v679_v19 }
  0x54   :  { %646 = vmatmul.msk.bf16.gmra.mxu1 %vm216_vm0, %v668_v22  ;;  %652 = vmatmul.msk.bf16.gmra.mxu2 %vm216_vm0, %v674_v23 }
  0x55   :  { %641 = vmatmul.msk.bf16.gmra.mxu0 %vm216_vm0, %v663_v24  ;;  %658 = vmatmul.msk.bf16.gmra.mxu3 %vm216_vm0, %v191_v25 }
  0x64   :  { %647 = vmatmul.msk.bf16.gmra.mxu1 %vm216_vm0, %v669_v26  ;;  %653 = vmatmul.msk.bf16.gmra.mxu2 %vm216_vm0, %v675_v27 }
  0x91   :  { %v317_v29 = vpop.f32.mrf.mxu1 }
  0x92   :  { %v318_v30 = vadd.f32 %v848_v28, %v317_v29  ;;  %v292_v31 = vpop.f32.mrf.mxu0 }
  0x93   :  { %v293_v32 = vadd.f32 %v848_v28, %v292_v31 }
  0x94   :  { %v411_v33 = vmax.f32 %v318_v30, 0.0 }
  0x95   :  { %v401_v34 = vmax.f32 %v293_v32, 0.0 }
  0x96   :  { %v454_v35 = vpack.c.bf16 %v411_v33, %v411_v33 }
  0x97   :  { %v347_v36 = vpop.f32.mrf.mxu2  ;;  %v444_v37 = vpack.c.bf16 %v401_v34, %v401_v34 }
  0x98   :  { %498 = vst.msk [vmem:[%s1067_s3 + $0x28] sm:$0xf] %vm487_vm1, %v454_v35  ;;  %v348_v38 = vadd.f32 %v848_v28, %v347_v36  ;;  %v377_v39 = vpop.f32.mrf.mxu3 }
  0x99   :  { %v319_v40 = vpop.f32.mrf.mxu1  ;;  %488 = vst.msk [vmem:[%s1067_s3] sm:$0xf] %vm487_vm1, %v444_v37  ;;  %v378_v41 = vadd.f32 %v848_v28, %v377_v39 }
  0x9a   :  { %v423_v42 = vmax.f32 %v348_v38, 0.0  ;;  %v320_v43 = vadd.f32 %v848_v28, %v319_v40  ;;  %v294_v44 = vpop.f32.mrf.mxu0 }
  0x9b   :  { %v435_v45 = vmax.f32 %v378_v41, 0.0  ;;  %v295_v46 = vadd.f32 %v848_v28, %v294_v44 }
  0x9c   :  { %v466_v47 = vpack.c.bf16 %v423_v42, %v423_v42  ;;  %v412_v48 = vmax.f32 %v320_v43, 0.0 }
  0x9d   :  { %v478_v49 = vpack.c.bf16 %v435_v45, %v435_v45  ;;  %v402_v50 = vmax.f32 %v295_v46, 0.0 }
  0x9e   :  { %510 = vst.msk [vmem:[%s1067_s3 + $0x58] sm:$0xf] %vm487_vm1, %v466_v47  ;;  %v455_v51 = vpack.c.bf16 %v412_v48, %v412_v48 }
  0x9f   :  { %v349_v52 = vpop.f32.mrf.mxu2  ;;  %522 = vst.msk [vmem:[%s1067_s3 + $0x88] sm:$0xf] %vm487_vm1, %v478_v49  ;;  %v445_v53 = vpack.c.bf16 %v402_v50, %v402_v50 }
  0xa0   :  { %499 = vst.msk [vmem:[%s1067_s3 + $0x2c] sm:$0xf] %vm487_vm1, %v455_v51  ;;  %v350_v54 = vadd.f32 %v848_v28, %v349_v52  ;;  %v379_v55 = vpop.f32.mrf.mxu3 }
  0xa1   :  { %v322_v56 = vpop.f32.mrf.mxu1  ;;  %489 = vst.msk [vmem:[%s1067_s3 + $0x4] sm:$0xf] %vm487_vm1, %v445_v53  ;;  %v380_v57 = vadd.f32 %v848_v28, %v379_v55 }
  0xa2   :  { %v424_v58 = vmax.f32 %v350_v54, 0.0  ;;  %v323_v59 = vadd.f32 %v848_v28, %v322_v56  ;;  %v297_v60 = vpop.f32.mrf.mxu0 }
  0xa3   :  { %v436_v61 = vmax.f32 %v380_v57, 0.0  ;;  %v298_v62 = vadd.f32 %v848_v28, %v297_v60 }
  0xa4   :  { %v467_v63 = vpack.c.bf16 %v424_v58, %v424_v58  ;;  %v413_v0 = vmax.f32 %v323_v59, 0.0 }
  0xa5   :  { %v479_v1 = vpack.c.bf16 %v436_v61, %v436_v61  ;;  %v403_v2 = vmax.f32 %v298_v62, 0.0 }
  0xa6   :  { %511 = vst.msk [vmem:[%s1067_s3 + $0x5c] sm:$0xf] %vm487_vm1, %v467_v63  ;;  %v456_v3 = vpack.c.bf16 %v413_v0, %v413_v0 }
  0xa7   :  { %v352_v4 = vpop.f32.mrf.mxu2  ;;  %523 = vst.msk [vmem:[%s1067_s3 + $0x8c] sm:$0xf] %vm487_vm1, %v479_v1  ;;  %v446_v5 = vpack.c.bf16 %v403_v2, %v403_v2 }
  0xa8   :  { %500 = vst.msk [vmem:[%s1067_s3 + $0x30] sm:$0xf] %vm487_vm1, %v456_v3  ;;  %v353_v6 = vadd.f32 %v848_v28, %v352_v4  ;;  %v382_v7 = vpop.f32.mrf.mxu3 }
  0xa9   :  { %v324_v8 = vpop.f32.mrf.mxu1  ;;  %490 = vst.msk [vmem:[%s1067_s3 + $0x8] sm:$0xf] %vm487_vm1, %v446_v5  ;;  %v383_v9 = vadd.f32 %v848_v28, %v382_v7 }
  0xaa   :  { %v425_v10 = vmax.f32 %v353_v6, 0.0  ;;  %v325_v11 = vadd.f32 %v848_v28, %v324_v8  ;;  %v299_v12 = vpop.f32.mrf.mxu0 }
  0xab   :  { %v437_v13 = vmax.f32 %v383_v9, 0.0  ;;  %v300_v14 = vadd.f32 %v848_v28, %v299_v12 }
  0xac   :  { %v468_v15 = vpack.c.bf16 %v425_v10, %v425_v10  ;;  %v414_v16 = vmax.f32 %v325_v11, 0.0 }
  0xad   :  { %v480_v17 = vpack.c.bf16 %v437_v13, %v437_v13  ;;  %v404_v18 = vmax.f32 %v300_v14, 0.0 }
  0xae   :  { %512 = vst.msk [vmem:[%s1067_s3 + $0x60] sm:$0xf] %vm487_vm1, %v468_v15  ;;  %v457_v19 = vpack.c.bf16 %v414_v16, %v414_v16 }
  0xaf   :  { %v354_v20 = vpop.f32.mrf.mxu2  ;;  %524 = vst.msk [vmem:[%s1067_s3 + $0x90] sm:$0xf] %vm487_vm1, %v480_v17  ;;  %v447_v21 = vpack.c.bf16 %v404_v18, %v404_v18 }
  0xb0   :  { %501 = vst.msk [vmem:[%s1067_s3 + $0x34] sm:$0xf] %vm487_vm1, %v457_v19  ;;  %v355_v22 = vadd.f32 %v848_v28, %v354_v20  ;;  %v384_v23 = vpop.f32.mrf.mxu3 }
  0xb1   :  { %v327_v24 = vpop.f32.mrf.mxu1  ;;  %491 = vst.msk [vmem:[%s1067_s3 + $0xc] sm:$0xf] %vm487_vm1, %v447_v21  ;;  %v385_v25 = vadd.f32 %v848_v28, %v384_v23 }
  0xb2   :  { %v426_v26 = vmax.f32 %v355_v22, 0.0  ;;  %v328_v27 = vadd.f32 %v848_v28, %v327_v24  ;;  %v302_v29 = vpop.f32.mrf.mxu0 }
  0xb3   :  { %v438_v30 = vmax.f32 %v385_v25, 0.0  ;;  %v303_v31 = vadd.f32 %v848_v28, %v302_v29 }
  0xb4   :  { %v469_v32 = vpack.c.bf16 %v426_v26, %v426_v26  ;;  %v415_v33 = vmax.f32 %v328_v27, 0.0 }
  0xb5   :  { %v481_v34 = vpack.c.bf16 %v438_v30, %v438_v30  ;;  %v405_v35 = vmax.f32 %v303_v31, 0.0 }
  0xb6   :  { %513 = vst.msk [vmem:[%s1067_s3 + $0x64] sm:$0xf] %vm487_vm1, %v469_v32  ;;  %v458_v36 = vpack.c.bf16 %v415_v33, %v415_v33 }
  0xb7   :  { %v357_v37 = vpop.f32.mrf.mxu2  ;;  %525 = vst.msk [vmem:[%s1067_s3 + $0x94] sm:$0xf] %vm487_vm1, %v481_v34  ;;  %v448_v38 = vpack.c.bf16 %v405_v35, %v405_v35 }
  0xb8   :  { %502 = vst.msk [vmem:[%s1067_s3 + $0x38] sm:$0xf] %vm487_vm1, %v458_v36  ;;  %v358_v39 = vadd.f32 %v848_v28, %v357_v37  ;;  %v387_v40 = vpop.f32.mrf.mxu3 }
  0xb9   :  { %v329_v41 = vpop.f32.mrf.mxu1  ;;  %492 = vst.msk [vmem:[%s1067_s3 + $0x10] sm:$0xf] %vm487_vm1, %v448_v38  ;;  %v388_v42 = vadd.f32 %v848_v28, %v387_v40 }
  0xba   :  { %v427_v43 = vmax.f32 %v358_v39, 0.0  ;;  %v330_v44 = vadd.f32 %v848_v28, %v329_v41  ;;  %v304_v45 = vpop.f32.mrf.mxu0 }
  0xbb   :  { %v439_v46 = vmax.f32 %v388_v42, 0.0  ;;  %v305_v47 = vadd.f32 %v848_v28, %v304_v45 }
  0xbc   :  { %v470_v48 = vpack.c.bf16 %v427_v43, %v427_v43  ;;  %v416_v49 = vmax.f32 %v330_v44, 0.0 }
  0xbd   :  { %v482_v50 = vpack.c.bf16 %v439_v46, %v439_v46  ;;  %v406_v51 = vmax.f32 %v305_v47, 0.0 }
  0xbe   :  { %514 = vst.msk [vmem:[%s1067_s3 + $0x68] sm:$0xf] %vm487_vm1, %v470_v48  ;;  %v459_v52 = vpack.c.bf16 %v416_v49, %v416_v49 }
  0xbf   :  { %v359_v53 = vpop.f32.mrf.mxu2  ;;  %526 = vst.msk [vmem:[%s1067_s3 + $0x98] sm:$0xf] %vm487_vm1, %v482_v50  ;;  %v449_v54 = vpack.c.bf16 %v406_v51, %v406_v51 }
  0xc0   :  { %503 = vst.msk [vmem:[%s1067_s3 + $0x3c] sm:$0xf] %vm487_vm1, %v459_v52  ;;  %v360_v55 = vadd.f32 %v848_v28, %v359_v53  ;;  %v389_v56 = vpop.f32.mrf.mxu3 }
  0xc1   :  { %v332_v57 = vpop.f32.mrf.mxu1  ;;  %493 = vst.msk [vmem:[%s1067_s3 + $0x14] sm:$0xf] %vm487_vm1, %v449_v54  ;;  %v390_v58 = vadd.f32 %v848_v28, %v389_v56 }
  0xc2   :  { %v428_v59 = vmax.f32 %v360_v55, 0.0  ;;  %v333_v60 = vadd.f32 %v848_v28, %v332_v57  ;;  %v307_v61 = vpop.f32.mrf.mxu0 }
  0xc3   :  { %v440_v62 = vmax.f32 %v390_v58, 0.0  ;;  %v308_v63 = vadd.f32 %v848_v28, %v307_v61 }
  0xc4   :  { %v471_v0 = vpack.c.bf16 %v428_v59, %v428_v59  ;;  %v417_v1 = vmax.f32 %v333_v60, 0.0 }
  0xc5   :  { %v483_v2 = vpack.c.bf16 %v440_v62, %v440_v62  ;;  %v407_v3 = vmax.f32 %v308_v63, 0.0 }
  0xc6   :  { %515 = vst.msk [vmem:[%s1067_s3 + $0x6c] sm:$0xf] %vm487_vm1, %v471_v0  ;;  %v460_v4 = vpack.c.bf16 %v417_v1, %v417_v1 }
  0xc7   :  { %v362_v5 = vpop.f32.mrf.mxu2  ;;  %527 = vst.msk [vmem:[%s1067_s3 + $0x9c] sm:$0xf] %vm487_vm1, %v483_v2  ;;  %v450_v6 = vpack.c.bf16 %v407_v3, %v407_v3 }
  0xc8   :  { %504 = vst.msk [vmem:[%s1067_s3 + $0x40] sm:$0xf] %vm487_vm1, %v460_v4  ;;  %v363_v7 = vadd.f32 %v848_v28, %v362_v5  ;;  %v392_v8 = vpop.f32.mrf.mxu3 }
  0xc9   :  { %v334_v9 = vpop.f32.mrf.mxu1  ;;  %494 = vst.msk [vmem:[%s1067_s3 + $0x18] sm:$0xf] %vm487_vm1, %v450_v6  ;;  %v393_v10 = vadd.f32 %v848_v28, %v392_v8 }
  0xca   :  { %v429_v11 = vmax.f32 %v363_v7, 0.0  ;;  %v335_v12 = vadd.f32 %v848_v28, %v334_v9  ;;  %v309_v13 = vpop.f32.mrf.mxu0 }
  0xcb   :  { %v441_v14 = vmax.f32 %v393_v10, 0.0  ;;  %v310_v15 = vadd.f32 %v848_v28, %v309_v13 }
  0xcc   :  { %v472_v16 = vpack.c.bf16 %v429_v11, %v429_v11  ;;  %v418_v17 = vmax.f32 %v335_v12, 0.0 }
  0xcd   :  { %v484_v18 = vpack.c.bf16 %v441_v14, %v441_v14  ;;  %v408_v19 = vmax.f32 %v310_v15, 0.0 }
  0xce   :  { %516 = vst.msk [vmem:[%s1067_s3 + $0x70] sm:$0xf] %vm487_vm1, %v472_v16  ;;  %v461_v20 = vpack.c.bf16 %v418_v17, %v418_v17 }
  0xcf   :  { %v364_v21 = vpop.f32.mrf.mxu2  ;;  %528 = vst.msk [vmem:[%s1067_s3 + $0xa0] sm:$0xf] %vm487_vm1, %v484_v18  ;;  %v451_v22 = vpack.c.bf16 %v408_v19, %v408_v19 }
  0xd0   :  { %505 = vst.msk [vmem:[%s1067_s3 + $0x44] sm:$0xf] %vm487_vm1, %v461_v20  ;;  %v365_v23 = vadd.f32 %v848_v28, %v364_v21  ;;  %v394_v24 = vpop.f32.mrf.mxu3 }
  0xd1   :  { %v337_v25 = vpop.f32.mrf.mxu1  ;;  %495 = vst.msk [vmem:[%s1067_s3 + $0x1c] sm:$0xf] %vm487_vm1, %v451_v22  ;;  %v395_v26 = vadd.f32 %v848_v28, %v394_v24 }
  0xd2   :  { %v430_v27 = vmax.f32 %v365_v23, 0.0  ;;  %v338_v29 = vadd.f32 %v848_v28, %v337_v25  ;;  %v312_v30 = vpop.f32.mrf.mxu0 }
  0xd3   :  { %v442_v31 = vmax.f32 %v395_v26, 0.0  ;;  %v313_v32 = vadd.f32 %v848_v28, %v312_v30 }
  0xd4   :  { %v473_v33 = vpack.c.bf16 %v430_v27, %v430_v27  ;;  %v419_v34 = vmax.f32 %v338_v29, 0.0 }
  0xd5   :  { %v485_v35 = vpack.c.bf16 %v442_v31, %v442_v31  ;;  %v409_v36 = vmax.f32 %v313_v32, 0.0 }
  0xd6   :  { %517 = vst.msk [vmem:[%s1067_s3 + $0x74] sm:$0xf] %vm487_vm1, %v473_v33  ;;  %v462_v37 = vpack.c.bf16 %v419_v34, %v419_v34 }
  0xd7   :  { %v367_v38 = vpop.f32.mrf.mxu2  ;;  %529 = vst.msk [vmem:[%s1067_s3 + $0xa4] sm:$0xf] %vm487_vm1, %v485_v35  ;;  %v452_v39 = vpack.c.bf16 %v409_v36, %v409_v36 }
  0xd8   :  { %506 = vst.msk [vmem:[%s1067_s3 + $0x48] sm:$0xf] %vm487_vm1, %v462_v37  ;;  %v368_v40 = vadd.f32 %v848_v28, %v367_v38  ;;  %v397_v41 = vpop.f32.mrf.mxu3 }
  0xd9   :  { %v339_v42 = vpop.f32.mrf.mxu1  ;;  %496 = vst.msk [vmem:[%s1067_s3 + $0x20] sm:$0xf] %vm487_vm1, %v452_v39  ;;  %v398_v43 = vadd.f32 %v848_v28, %v397_v41 }
  0xda   :  { %v431_v44 = vmax.f32 %v368_v40, 0.0  ;;  %v340_v45 = vadd.f32 %v848_v28, %v339_v42  ;;  %v314_v46 = vpop.f32.mrf.mxu0 }
  0xdb   :  { %v443_v47 = vmax.f32 %v398_v43, 0.0  ;;  %v315_v48 = vadd.f32 %v848_v28, %v314_v46 }
  0xdc   :  { %v474_v49 = vpack.c.bf16 %v431_v44, %v431_v44  ;;  %v420_v50 = vmax.f32 %v340_v45, 0.0 }
  0xdd   :  { %v486_v51 = vpack.c.bf16 %v443_v47, %v443_v47  ;;  %v410_v52 = vmax.f32 %v315_v48, 0.0 }
  0xde   :  { %518 = vst.msk [vmem:[%s1067_s3 + $0x78] sm:$0xf] %vm487_vm1, %v474_v49  ;;  %v463_v53 = vpack.c.bf16 %v420_v50, %v420_v50 }
  0xdf   :  { %v369_v54 = vpop.f32.mrf.mxu2  ;;  %531 = vst.msk [vmem:[%s1067_s3 + $0xa8] sm:$0x1] %vm530_vm2, %v486_v51  ;;  %v453_v55 = vpack.c.bf16 %v410_v52, %v410_v52 }
  0xe0   :  { %507 = vst.msk [vmem:[%s1067_s3 + $0x4c] sm:$0xf] %vm487_vm1, %v463_v53  ;;  %v370_v56 = vadd.f32 %v848_v28, %v369_v54  ;;  %v399_v57 = vpop.f32.mrf.mxu3 }
  0xe1   :  { %v342_v58 = vpop.f32.mrf.mxu1  ;;  %497 = vst.msk [vmem:[%s1067_s3 + $0x24] sm:$0xf] %vm487_vm1, %v453_v55 }
  0xe2   :  { %v432_v59 = vmax.f32 %v370_v56, 0.0  ;;  %v343_v60 = vadd.f32 %v848_v28, %v342_v58 }
  0xe4   :  { %v475_v61 = vpack.c.bf16 %v432_v59, %v432_v59  ;;  %v421_v62 = vmax.f32 %v343_v60, 0.0 }
  0xe6   :  { %519 = vst.msk [vmem:[%s1067_s3 + $0x7c] sm:$0xf] %vm487_vm1, %v475_v61  ;;  %v464_v63 = vpack.c.bf16 %v421_v62, %v421_v62 }
  0xe7   :  { %v372_v0 = vpop.f32.mrf.mxu2 }
  0xe8   :  { %508 = vst.msk [vmem:[%s1067_s3 + $0x50] sm:$0xf] %vm487_vm1, %v464_v63  ;;  %v373_v1 = vadd.f32 %v848_v28, %v372_v0 }
  0xe9   :  { %v344_v2 = vpop.f32.mrf.mxu1 }
  0xea   :  { %v433_v3 = vmax.f32 %v373_v1, 0.0  ;;  %v345_v4 = vadd.f32 %v848_v28, %v344_v2 }
  0xec   :  { %v476_v5 = vpack.c.bf16 %v433_v3, %v433_v3  ;;  %v422_v6 = vmax.f32 %v345_v4, 0.0 }
  0xee   :  { %520 = vst.msk [vmem:[%s1067_s3 + $0x80] sm:$0xf] %vm487_vm1, %v476_v5  ;;  %v465_v7 = vpack.c.bf16 %v422_v6, %v422_v6 }
  0xef   :  { %v374_v8 = vpop.f32.mrf.mxu2 }
  0xf0   :  { %509 = vst.msk [vmem:[%s1067_s3 + $0x54] sm:$0xf] %vm487_vm1, %v465_v7  ;;  %v375_v9 = vadd.f32 %v848_v28, %v374_v8 }
  0xf2   :  { %v434_v10 = vmax.f32 %v375_v9, 0.0 }
  0xf4   :  { %v477_v11 = vpack.c.bf16 %v434_v10, %v434_v10 }
  0xf6   :  { %521 = vst.msk [vmem:[%s1067_s3 + $0x84] sm:$0xf] %vm487_vm1, %v477_v11 }
  0xf7   :  { %536 = vsyncpa [#allocation3], 1 }

// kernel: mlp_forward.5
= control target key start
LH: loop header
LB: loop body
LE: loop exit
PB: predicated region body
PF: predicated region fallthrough
CT: control target
= control target key end

     0   :  { %s21778_s0 = inlined_call_operand.vmem [shape: bf16[8,5408], index: 0, kind: input, shape index: {}]   ;;  %s21779_s1 = inlined_call_operand.hbm [shape: bf16[5408,2048], index: 1, kind: input, shape index: {}]   ;;  %s21780_s2 = inlined_call_operand.hbm [shape: f32[1,2048], index: 2, kind: input, shape index: {}]   ;;  %s21781_s3 = inlined_call_operand.hbm [shape: bf16[2048,128], index: 3, kind: input, shape index: {}]   ;;  %s21782_s4 = inlined_call_operand.vmem [shape: f32[32,128], index: 4, kind: output, shape index: {}]  }
   0x1   :  { %21806 = sst [smem:[#allocation23_spill]] %s21779_s1 }
   0x2   :  { %9 = vsyncpa [#allocation3], 0 }
   0x3   :  { %11 = vsyncpa [#allocation3 + $0x1], 0 }
   0x4   :  { %12 = vsyncpa [#allocation5], 0 }
   0x5   :  { %14 = vsyncpa [#allocation5 + $0x1], 0  ;;  %s18420_s15 = smov 0   ;;  %s18422_s16 = smov 0  }
   0x6   :  { %s18424_s17 = smov 0   ;;  %s18426_s18 = smov 0  }
   0x7 LB: > { %s18439_s19 = sadd.s32 4294967295, %s18388_s18   ;;  %s18442_s20 = sadd.s32 1, %s18388_s18   ;;  %s18388_s18 = sphi %s18426_s18, %s21850_s18   ;;  %s18384_s17 = sphi %s18424_s17, %s21849_s17   ;;  %s18380_s16 = sphi %s18422_s16, %s21848_s16   ;;  %s18376_s15 = sphi %s18420_s15, %s21847_s15  }
   0x8   : > { %s45_s21 = ssub.s32 %s18388_s18, %s18442_s20  ;;  %s48_s22 = sadd.s32 1, %s18384_s17 }
   0x9   : > { %p46_p0 = scmp.eq.s32.totalorder %s45_s21, 0  ;;  %p55_p1 = scmp.ne.s32.totalorder %s18384_s17, %s18380_s16 }
   0xa   : > { %p56_p2 = scmp.eq.s32.totalorder %s18388_s18, 0  ;;  %p61_p3 = scmp.ne.s32.totalorder %s18380_s16, %s18376_s15 }
   0xb   : > { %s18452_s23 = scalar_select %p46_p0, %s18384_s17, %s48_s22  }
   0xc   : > { %p57_p4 = por %p56_p2, %p55_p1  ;;  %p62_p5 = scmp.eq.s32.totalorder %s18439_s19, 0 }
   0xd   : > { %p18219_p6 = scmp.lt.s32.totalorder %s18388_s18, 4  ;;  %s18461_s25 = sand.u32 1, %s18384_s17  }
   0xe   : > { %p18456_p7 = por %p62_p5, %p61_p3  ;;  %s18201_s26 = smul.u32 10816, %s18461_s25 }
   0xf   : > { %p18464_p8 = pnand %p18219_p6, %p57_p4  ;;  %s188_s28 = sand.u32 1, %s18388_s18  }
  0x10   : > { %s11264_s29 = sshll.u32 %s18461_s25, 2  ;;  %s11265_s30 = sshll.u32 %s18388_s18, 2 }
  0x11   : > { %s196_s7 = scalar_lea.hbm %s21780_s2, %s11265_s30  ;;  %s192_s8 = scalar_lea.vmem [#allocation4], %s11264_s29 }
  0x12   : > { %s200_s9 = sshll.u32 %s192_s8, 4  ;;  %s198_s10 = sshll.u32 %s196_s7, 4  ;;  %s201_s9 = int_to_ptr.vmem [resolvable:$true] %s200_s9  ;;  %s199_s10 = int_to_ptr.hbm [resolvable:$true] %s198_s10 }
  0x13   : > { %s18475_s12 = scalar_lea.sflag [#allocation5], %s188_s28  ;;  %s18260_s13 = sshra.s32 %s199_s10, 4  ;;  %s18261_s13 = int_to_ptr.hbm [resolvable:$true] %s18260_s13 }
  0x14   : > { %s18262_s14 = scalar_lea.hbm %s18261_s13, 4  ;;  %p18264_p10 = pneg %p18464_p8 }
  0x15   : > { %p18263_p9 = scmp.ne.s32.totalorder %s18261_s13, %s18262_s14  ;;  %s18267_s22 = scalar_lea.hbm %s21780_s2, 16 }
  0x16   : > { %p18268_p13 = scmp.lt.s32.totalorder %s18261_s13, %s21780_s2  ;;  %p18269_p0 = scmp.lt.s32.totalorder %s18267_s22, %s18262_s14 }
  0x17   : > { %p18265_p11 = pnand %p18264_p10, %p18263_p9 }
  0x18   : > { %p18270_p1 = por %p18269_p0, %p18268_p13 }
  0x19   : > { %p18266_p12 = pneg %p18265_p11 }
  0x1b   : > { %p18271_p2 = pnand %p18270_p1, %p18266_p12 }
  0x1d   : > { %18274 = shalt.err (!%p18271_p2)
}
  0x1e   : > { %18215 = dma.hbm_to_vmem [thread:$0]  (!%p18464_p8), %s199_s10, 64, %s201_s9, %s18475_s12  }
  0x1f   : > { %p11269_p3 = scmp.ge.s32.totalorder %s18388_s18, 1  ;;  %p227_p4 = scmp.lt.s32.totalorder %s18388_s18, 5 }
  0x20   : > { %s16815_s5 = sshll.u32 %s18388_s18, 4  ;;  %s21810_s1 = sld [smem:[#allocation23_spill]] }
  0x21   : > { %p18493_p5 = pnand %p11269_p3, %p227_p4  ;;  %s170_s13 = scalar_lea.vmem [#allocation2], %s18201_s26 }
  0x22   : > { %s178_s14 = sshll.u32 %s170_s13, 4  ;;  %s167_s21 = scalar_lea.sflag [#allocation3], %s18461_s25  ;;  %s179_s14 = int_to_ptr.vmem [resolvable:$true] %s178_s14 }
  0x26   : > { %s175_s8 = scalar_lea.hbm %s21810_s1, %s16815_s5  ;;  %s18297_s30 = scalar_lea.hbm %s21810_s1, 43264 }
  0x27   : > { %s176_s15 = sshll.u32 %s175_s8, 4  ;;  %s177_s15 = int_to_ptr.hbm [resolvable:$true] %s176_s15 }
  0x28   : > { %s18290_s9 = sshra.s32 %s177_s15, 4  ;;  %s18291_s9 = int_to_ptr.hbm [resolvable:$true] %s18290_s9 }
  0x29   : > { %s18292_s10 = scalar_lea.hbm %s18291_s9, 10816  ;;  %p18298_p12 = scmp.lt.s32.totalorder %s18291_s9, %s21810_s1 }
  0x2a   : > { %p18293_p6 = scmp.ne.s32.totalorder %s18291_s9, %s18292_s10  ;;  %p18299_p13 = scmp.lt.s32.totalorder %s18297_s30, %s18292_s10 }
  0x2c   : > { %p18295_p9 = pnand %p18293_p6, %p18264_p10  ;;  %p18300_p0 = por %p18299_p13, %p18298_p12 }
  0x2e   : > { %p18296_p11 = pneg %p18295_p9 }
  0x30   : > { %p18301_p1 = pnand %p18300_p0, %p18296_p11 }
  0x32   : > { %18304 = shalt.err (!%p18301_p1)
}
  0x33   : > { %s18390_s26 = smov 1024   ;;  %s18391_s7 = smov 256  }
  0x34   : > { %s18392_s8 = smov 16   ;;  %s16816_s13 = sshll.u32 %s18388_s18, 8 }
  0x35   : > { %18212 = dma.hbm_to_vmem [thread:$0]  (!%p18464_p8), %s177_s15, 173056, %s179_s14, %s167_s21, %s18390_s26, %s18391_s7, %s18392_s8  }
  0x36   : > { %s216_s11 = scalar_lea.hbm %s21781_s3, %s16816_s13  ;;  %s21811_s5 = sshll.u32 %s18461_s25, 8 }
  0x37   : > { %s211_s9 = scalar_lea.vmem [#allocation6], %s21811_s5  ;;  %s217_s30 = sshll.u32 %s216_s11, 4  ;;  %s218_s30 = int_to_ptr.hbm [resolvable:$true] %s217_s30 }
  0x38   : > { %s219_s10 = sshll.u32 %s211_s9, 4  ;;  %s18320_s6 = sshra.s32 %s218_s30, 4  ;;  %s220_s10 = int_to_ptr.vmem [resolvable:$true] %s219_s10  ;;  %s18321_s6 = int_to_ptr.hbm [resolvable:$true] %s18320_s6 }
  0x39   : > { %s18322_s1 = scalar_lea.hbm %s18321_s6, 256  ;;  %s18327_s15 = scalar_lea.hbm %s21781_s3, 1024 }
  0x3a   : > { %p18323_p2 = scmp.ne.s32.totalorder %s18321_s6, %s18322_s1  ;;  %p18328_p6 = scmp.lt.s32.totalorder %s18321_s6, %s21781_s3 }
  0x3b   : > { %p18329_p9 = scmp.lt.s32.totalorder %s18327_s15, %s18322_s1 }
  0x3c   : > { %p18325_p3 = pnand %p18323_p2, %p18264_p10 }
  0x3d   : > { %p18330_p11 = por %p18329_p9, %p18328_p6 }
  0x3e   : > { %p18326_p4 = pneg %p18325_p3 }
  0x40   : > { %p18331_p12 = pnand %p18330_p11, %p18326_p4 }
  0x42   : > { %18334 = shalt.err (!%p18331_p12)
}
  0x43   : > { %s18393_s25 = smov 64   ;;  %s18394_s11 = smov 4  }
  0x44   : > { %18218 = dma.hbm_to_vmem [thread:$0]  (!%p18464_p8), %s218_s30, 4096, %s220_s10, %s18475_s12, %s18393_s25, %s18393_s25, %s18394_s11  }
  0x45   : > { %231 = sbr.rel (%p18493_p5) target bundleno = 1723 (0x6bb), region = 36 }
  0x4a   : > { %s18536_s7 = sand.u32 1, %s18380_s16  }
  0x4b   : > { %s18202_s8 = smul.u32 10816, %s18536_s7  ;;  %s234_s1 = scalar_lea.sflag [#allocation3], %s18536_s7 }
  0x4d   : > { %s18540_s13 = scalar_lea.vmem [#allocation2], %s18202_s8 }
  0x4e   : > { %18367 = dma.done.wait (%p18456_p7), %s234_s1, 173056  }
  0x4f   : > { %18369 = vsyncadd (%p18456_p7), %s234_s1, 4294794240  ;;  %s243_s27 = sand.u32 1, %s18439_s19   ;;  %s11270_s12 = sshll.u32 %s18536_s7, 2 }
  0x50   : > { %s244_s28 = scalar_lea.sflag [#allocation5], %s243_s27  ;;  %s18548_s22 = scalar_lea.vmem [#allocation4], %s11270_s12 }
  0x51   : > { %18371 = dma.done.wait (%p18456_p7), %s244_s28, 4160  }
  0x52   : > { %18373 = vsyncadd (%p18456_p7), %s244_s28, 4294963136  ;;  %v11387_v0 = vld [vmem:[%s18540_s13 + $0xe0] sm:$0xf]  ;;  %v16847_v1 = vld [vmem:[%s18540_s13 + $0xec] sm:$0xf0]  ;;  %vm8594_vm0 = vcmask 261120  }
  0x53   : > { %v11515_v2 = vld [vmem:[%s18540_s13 + $0x1e0] sm:$0xf]  ;;  %v11388_v3 = vor.u32 %v16847_v1, %v11387_v0  ;;  %v16879_v4 = vld [vmem:[%s18540_s13 + $0x1ec] sm:$0xf0]  ;;  %p295_p7 = scmp.lt.s32.totalorder %s18439_s19, 3 }
  0x54   : > { %v11643_v5 = vld [vmem:[%s18540_s13 + $0x2e0] sm:$0xf]  ;;  %v16911_v6 = vld [vmem:[%s18540_s13 + $0x2ec] sm:$0xf0]  ;;  %v11516_v7 = vor.u32 %v16879_v4, %v11515_v2 }
  0x55   : > { %v11644_v8 = vor.u32 %v16911_v6, %v11643_v5  ;;  %v11771_v9 = vld [vmem:[%s18540_s13 + $0x3e0] sm:$0xf]  ;;  %v16943_v10 = vld [vmem:[%s18540_s13 + $0x3ec] sm:$0xf0]  ;;  %8598 = vmatpush.bf16.msra.mxu0 %v11388_v3  ;;  %s21852_s19 = smov (!%p295_p7, %s18439_s19), 3 }
  0x56   : > { %v11371_v11 = vld [vmem:[%s18540_s13 + $0xc0] sm:$0xf]  ;;  %v11772_v12 = vor.u32 %v16943_v10, %v11771_v9  ;;  %v16843_v13 = vld [vmem:[%s18540_s13 + $0xcc] sm:$0xf0]  ;;  %8611 = vmatpush.bf16.msra.mxu1 %v11516_v7 }
  0x57   : > { %v11499_v14 = vld [vmem:[%s18540_s13 + $0x1c0] sm:$0xf]  ;;  %v16875_v15 = vld [vmem:[%s18540_s13 + $0x1cc] sm:$0xf0]  ;;  %8624 = vmatpush.bf16.msra.mxu2 %v11644_v8  ;;  %v11372_v16 = vor.u32 %v16843_v13, %v11371_v11 }
  0x58   : > { %v11500_v17 = vor.u32 %v16875_v15, %v11499_v14  ;;  %v11627_v18 = vld [vmem:[%s18540_s13 + $0x2c0] sm:$0xf]  ;;  %v16907_v19 = vld [vmem:[%s18540_s13 + $0x2cc] sm:$0xf0]  ;;  %8637 = vmatpush.bf16.msra.mxu3 %v11772_v12 }
  0x59   : > { %v11755_v20 = vld [vmem:[%s18540_s13 + $0x3c0] sm:$0xf]  ;;  %v11628_v21 = vor.u32 %v16907_v19, %v11627_v18  ;;  %v16939_v22 = vld [vmem:[%s18540_s13 + $0x3cc] sm:$0xf0]  ;;  %8599 = vmatpush.bf16.msra.mxu0 %v11372_v16 }
  0x5a   : > { %v11355_v23 = vld [vmem:[%s18540_s13 + $0xa0] sm:$0xf]  ;;  %v16839_v24 = vld [vmem:[%s18540_s13 + $0xac] sm:$0xf0]  ;;  %v11756_v25 = vor.u32 %v16939_v22, %v11755_v20  ;;  %8612 = vmatpush.bf16.msra.mxu1 %v11500_v17 }
  0x5b   : > { %v11483_v26 = vld [vmem:[%s18540_s13 + $0x1a0] sm:$0xf]  ;;  %v16871_v27 = vld [vmem:[%s18540_s13 + $0x1ac] sm:$0xf0]  ;;  %v11356_v29 = vor.u32 %v16839_v24, %v11355_v23  ;;  %8625 = vmatpush.bf16.msra.mxu2 %v11628_v21 }
  0x5c   : > { %v11611_v28 = vld [vmem:[%s18540_s13 + $0x2a0] sm:$0xf]  ;;  %v16903_v30 = vld [vmem:[%s18540_s13 + $0x2ac] sm:$0xf0]  ;;  %v11484_v33 = vor.u32 %v16871_v27, %v11483_v26  ;;  %8638 = vmatpush.bf16.msra.mxu3 %v11756_v25 }
  0x5d   : > { %v11739_v31 = vld [vmem:[%s18540_s13 + $0x3a0] sm:$0xf]  ;;  %v16935_v32 = vld [vmem:[%s18540_s13 + $0x3ac] sm:$0xf0]  ;;  %v11612_v34 = vor.u32 %v16903_v30, %v11611_v28  ;;  %8600 = vmatpush.bf16.msra.mxu0 %v11356_v29 }
  0x5e   : > { %v11339_v35 = vld [vmem:[%s18540_s13 + $0x80] sm:$0xf]  ;;  %v16835_v36 = vld [vmem:[%s18540_s13 + $0x8c] sm:$0xf0]  ;;  %v11740_v38 = vor.u32 %v16935_v32, %v11739_v31  ;;  %8613 = vmatpush.bf16.msra.mxu1 %v11484_v33 }
  0x5f   : > { %v11467_v37 = vld [vmem:[%s18540_s13 + $0x180] sm:$0xf]  ;;  %v16867_v39 = vld [vmem:[%s18540_s13 + $0x18c] sm:$0xf0]  ;;  %v11340_v44 = vor.u32 %v16835_v36, %v11339_v35  ;;  %8626 = vmatpush.bf16.msra.mxu2 %v11612_v34 }
  0x60   : > { %v11595_v40 = vld [vmem:[%s18540_s13 + $0x280] sm:$0xf]  ;;  %v16899_v41 = vld [vmem:[%s18540_s13 + $0x28c] sm:$0xf0]  ;;  %v11468_v45 = vor.u32 %v16867_v39, %v11467_v37  ;;  %8639 = vmatpush.bf16.msra.mxu3 %v11740_v38 }
  0x61   : > { %v11723_v42 = vld [vmem:[%s18540_s13 + $0x380] sm:$0xf]  ;;  %v16931_v43 = vld [vmem:[%s18540_s13 + $0x38c] sm:$0xf0]  ;;  %v11596_v46 = vor.u32 %v16899_v41, %v11595_v40  ;;  %8601 = vmatpush.bf16.msra.mxu0 %v11340_v44 }
  0x62   : > { %v11323_v47 = vld [vmem:[%s18540_s13 + $0x60] sm:$0xf]  ;;  %v16831_v48 = vld [vmem:[%s18540_s13 + $0x6c] sm:$0xf0]  ;;  %v11724_v50 = vor.u32 %v16931_v43, %v11723_v42  ;;  %8614 = vmatpush.bf16.msra.mxu1 %v11468_v45 }
  0x63   : > { %v11451_v49 = vld [vmem:[%s18540_s13 + $0x160] sm:$0xf]  ;;  %v16863_v51 = vld [vmem:[%s18540_s13 + $0x16c] sm:$0xf0]  ;;  %v11324_v56 = vor.u32 %v16831_v48, %v11323_v47  ;;  %8627 = vmatpush.bf16.msra.mxu2 %v11596_v46 }
  0x64   : > { %v11579_v52 = vld [vmem:[%s18540_s13 + $0x260] sm:$0xf]  ;;  %v16895_v53 = vld [vmem:[%s18540_s13 + $0x26c] sm:$0xf0]  ;;  %v11452_v57 = vor.u32 %v16863_v51, %v11451_v49  ;;  %8640 = vmatpush.bf16.msra.mxu3 %v11724_v50 }
  0x65   : > { %v11707_v54 = vld [vmem:[%s18540_s13 + $0x360] sm:$0xf]  ;;  %v16927_v55 = vld [vmem:[%s18540_s13 + $0x36c] sm:$0xf0]  ;;  %v11580_v58 = vor.u32 %v16895_v53, %v11579_v52  ;;  %8602 = vmatpush.bf16.msra.mxu0 %v11324_v56 }
  0x66   : > { %v11307_v59 = vld [vmem:[%s18540_s13 + $0x40] sm:$0xf]  ;;  %v16827_v60 = vld [vmem:[%s18540_s13 + $0x4c] sm:$0xf0]  ;;  %v11708_v62 = vor.u32 %v16927_v55, %v11707_v54  ;;  %8615 = vmatpush.bf16.msra.mxu1 %v11452_v57 }
  0x67   : > { %v11435_v61 = vld [vmem:[%s18540_s13 + $0x140] sm:$0xf]  ;;  %v16859_v63 = vld [vmem:[%s18540_s13 + $0x14c] sm:$0xf0]  ;;  %v11308_v4 = vor.u32 %v16827_v60, %v11307_v59  ;;  %8628 = vmatpush.bf16.msra.mxu2 %v11580_v58  ;;  %v301_v59 = vld [vmem:[%s21778_s0 + $0x8] sm:$0xff] }
  0x68   : > { %v11563_v0 = vld [vmem:[%s18540_s13 + $0x240] sm:$0xf]  ;;  %v16891_v1 = vld [vmem:[%s18540_s13 + $0x24c] sm:$0xf0]  ;;  %v11436_v5 = vor.u32 %v16859_v63, %v11435_v61  ;;  %8641 = vmatpush.bf16.msra.mxu3 %v11708_v62  ;;  %v1708_v63 = vunpack.c.l.b16 %v301_v59 }
  0x69   : > { %v11691_v2 = vld [vmem:[%s18540_s13 + $0x340] sm:$0xf]  ;;  %v16923_v3 = vld [vmem:[%s18540_s13 + $0x34c] sm:$0xf0]  ;;  %v11564_v6 = vor.u32 %v16891_v1, %v11563_v0  ;;  %8603 = vmatpush.bf16.msra.mxu0 %v11308_v4  ;;  %v1709_v1 = vunpack.c.h.b16 %v301_v59 }
  0x6a   : > { %v11291_v7 = vld [vmem:[%s18540_s13 + $0x20] sm:$0xf]  ;;  %v16823_v8 = vld [vmem:[%s18540_s13 + $0x2c] sm:$0xf0]  ;;  %v11692_v10 = vor.u32 %v16923_v3, %v11691_v2  ;;  %8616 = vmatpush.bf16.msra.mxu1 %v11436_v5 }
  0x6b   : > { %v11419_v9 = vld [vmem:[%s18540_s13 + $0x120] sm:$0xf]  ;;  %v16855_v11 = vld [vmem:[%s18540_s13 + $0x12c] sm:$0xf0]  ;;  %v11292_v16 = vor.u32 %v16823_v8, %v11291_v7  ;;  %8629 = vmatpush.bf16.msra.mxu2 %v11564_v6  ;;  %v18648_v7 = vpack.c.b16 %v1708_v63, %v1708_v63  ;;  %v18650_v8 = vpack.c.b16 %v1709_v1, %v1709_v1 }
  0x6c   : > { %v11547_v12 = vld [vmem:[%s18540_s13 + $0x220] sm:$0xf]  ;;  %v16887_v13 = vld [vmem:[%s18540_s13 + $0x22c] sm:$0xf0]  ;;  %v11420_v19 = vor.u32 %v16855_v11, %v11419_v9  ;;  %8642 = vmatpush.bf16.msra.mxu3 %v11692_v10 }
  0x6d   : > { %v11675_v14 = vld [vmem:[%s18540_s13 + $0x320] sm:$0xf]  ;;  %v16919_v15 = vld [vmem:[%s18540_s13 + $0x32c] sm:$0xf0]  ;;  %v11548_v20 = vor.u32 %v16887_v13, %v11547_v12  ;;  %8604 = vmatpush.bf16.msra.mxu0 %v11292_v16  ;;  %21812 = vst [vmem:[#allocation9_spill] sm:$0xff] %v18650_v8 }
  0x6e   : > { %v11275_v17 = vld [vmem:[%s18540_s13] sm:$0xf]  ;;  %v16819_v18 = vld [vmem:[%s18540_s13 + $0xc] sm:$0xf0]  ;;  %v11676_v24 = vor.u32 %v16919_v15, %v11675_v14  ;;  %8617 = vmatpush.bf16.msra.mxu1 %v11420_v19 }
  0x6f   : > { %v11403_v21 = vld [vmem:[%s18540_s13 + $0x100] sm:$0xf]  ;;  %v16851_v22 = vld [vmem:[%s18540_s13 + $0x10c] sm:$0xf0]  ;;  %v11276_v31 = vor.u32 %v16819_v18, %v11275_v17  ;;  %8630 = vmatpush.bf16.msra.mxu2 %v11548_v20 }
  0x70   : > { %v11531_v23 = vld [vmem:[%s18540_s13 + $0x200] sm:$0xf]  ;;  %v16883_v25 = vld [vmem:[%s18540_s13 + $0x20c] sm:$0xf0]  ;;  %v11404_v35 = vor.u32 %v16851_v22, %v11403_v21  ;;  %8643 = vmatpush.bf16.msra.mxu3 %v11676_v24 }
  0x71   : > { %v11659_v26 = vld [vmem:[%s18540_s13 + $0x300] sm:$0xf]  ;;  %v16915_v27 = vld [vmem:[%s18540_s13 + $0x30c] sm:$0xf0]  ;;  %v11532_v36 = vor.u32 %v16883_v25, %v11531_v23  ;;  %8605 = vmatpush.bf16.msra.mxu0 %v11276_v31 }
  0x72   : > { %v11899_v28 = vld [vmem:[%s18540_s13 + $0x4e0] sm:$0xf]  ;;  %v16975_v29 = vld [vmem:[%s18540_s13 + $0x4ec] sm:$0xf0]  ;;  %v11660_v39 = vor.u32 %v16915_v27, %v11659_v26  ;;  %8618 = vmatpush.bf16.msra.mxu1 %v11404_v35 }
  0x73   : > { %v12027_v30 = vld [vmem:[%s18540_s13 + $0x5e0] sm:$0xf]  ;;  %v17007_v32 = vld [vmem:[%s18540_s13 + $0x5ec] sm:$0xf0]  ;;  %v11900_v40 = vor.u32 %v16975_v29, %v11899_v28  ;;  %8631 = vmatpush.bf16.msra.mxu2 %v11532_v36 }
  0x74   : > { %v12155_v33 = vld [vmem:[%s18540_s13 + $0x6e0] sm:$0xf]  ;;  %v17039_v34 = vld [vmem:[%s18540_s13 + $0x6ec] sm:$0xf0]  ;;  %v12028_v41 = vor.u32 %v17007_v32, %v12027_v30  ;;  %8644 = vmatpush.bf16.msra.mxu3 %v11660_v39 }
  0x75   : > { %v12283_v37 = vld [vmem:[%s18540_s13 + $0x7e0] sm:$0xf]  ;;  %v17071_v38 = vld [vmem:[%s18540_s13 + $0x7ec] sm:$0xf0]  ;;  %v12156_v42 = vor.u32 %v17039_v34, %v12155_v33  ;;  %8650 = vmatpush.bf16.msrb.mxu0 %v11900_v40 }
  0x76   : > { %v11883_v43 = vld [vmem:[%s18540_s13 + $0x4c0] sm:$0xf]  ;;  %v16971_v44 = vld [vmem:[%s18540_s13 + $0x4cc] sm:$0xf0]  ;;  %v12284_v46 = vor.u32 %v17071_v38, %v12283_v37  ;;  %8663 = vmatpush.bf16.msrb.mxu1 %v12028_v41  ;;  %8632 = vmatmul.bf16.vlgmr.msra.gmra.mxu2 %v18648_v7 }
  0x77   : > { %v12011_v45 = vld [vmem:[%s18540_s13 + $0x5c0] sm:$0xf]  ;;  %v17003_v47 = vld [vmem:[%s18540_s13 + $0x5cc] sm:$0xf0]  ;;  %v11884_v52 = vor.u32 %v16971_v44, %v11883_v43  ;;  %8676 = vmatpush.bf16.msrb.mxu2 %v12156_v42  ;;  %8645 = vmatmul.bf16.vlgmr.msra.gmra.mxu3 %v18650_v8 }
  0x78   : > { %v12139_v48 = vld [vmem:[%s18540_s13 + $0x6c0] sm:$0xf]  ;;  %v17035_v49 = vld [vmem:[%s18540_s13 + $0x6cc] sm:$0xf0]  ;;  %v12012_v55 = vor.u32 %v17003_v47, %v12011_v45  ;;  %8689 = vmatpush.bf16.msrb.mxu3 %v12284_v46 }
  0x79   : > { %v12267_v50 = vld [vmem:[%s18540_s13 + $0x7c0] sm:$0xf]  ;;  %v17067_v51 = vld [vmem:[%s18540_s13 + $0x7cc] sm:$0xf0]  ;;  %v12140_v56 = vor.u32 %v17035_v49, %v12139_v48  ;;  %8651 = vmatpush.bf16.msrb.mxu0 %v11884_v52 }
  0x7a   : > { %v11867_v53 = vld [vmem:[%s18540_s13 + $0x4a0] sm:$0xf]  ;;  %v16967_v54 = vld [vmem:[%s18540_s13 + $0x4ac] sm:$0xf0]  ;;  %v12268_v60 = vor.u32 %v17067_v51, %v12267_v50  ;;  %8664 = vmatpush.bf16.msrb.mxu1 %v12012_v55 }
  0x7b   : > { %v11995_v57 = vld [vmem:[%s18540_s13 + $0x5a0] sm:$0xf]  ;;  %v16999_v58 = vld [vmem:[%s18540_s13 + $0x5ac] sm:$0xf0]  ;;  %v11868_v6 = vor.u32 %v16967_v54, %v11867_v53  ;;  %8677 = vmatpush.bf16.msrb.mxu2 %v12140_v56 }
  0x7c   : > { %v12123_v61 = vld [vmem:[%s18540_s13 + $0x6a0] sm:$0xf]  ;;  %v17031_v62 = vld [vmem:[%s18540_s13 + $0x6ac] sm:$0xf0]  ;;  %v11996_v9 = vor.u32 %v16999_v58, %v11995_v57  ;;  %8690 = vmatpush.bf16.msrb.mxu3 %v12268_v60 }
  0x7d   : > { %v300_v0 = vld [vmem:[%s21778_s0] sm:$0xff]  ;;  %v17063_v3 = vld [vmem:[%s18540_s13 + $0x7ac] sm:$0xf0]  ;;  %v12124_v10 = vor.u32 %v17031_v62, %v12123_v61  ;;  %8652 = vmatpush.bf16.msrb.mxu0 %v11868_v6 }
  0x7e   : > { %v12251_v2 = vld [vmem:[%s18540_s13 + $0x7a0] sm:$0xf]  ;;  %v1706_v4 = vunpack.c.l.b16 %v300_v0  ;;  %v1707_v5 = vunpack.c.h.b16 %v300_v0  ;;  %v16963_v12 = vld [vmem:[%s18540_s13 + $0x48c] sm:$0xf0]  ;;  %8665 = vmatpush.bf16.msrb.mxu1 %v11996_v9 }
  0x7f   : > { %v11851_v11 = vld [vmem:[%s18540_s13 + $0x480] sm:$0xf]  ;;  %v12252_v15 = vor.u32 %v17063_v3, %v12251_v2  ;;  %v16995_v16 = vld [vmem:[%s18540_s13 + $0x58c] sm:$0xf0]  ;;  %8678 = vmatpush.bf16.msrb.mxu2 %v12124_v10  ;;  %v303_v3 = vld [vmem:[%s21778_s0 + $0x18] sm:$0xff] }
  0x80   : > { %v11979_v13 = vld [vmem:[%s18540_s13 + $0x580] sm:$0xf]  ;;  %v18655_v14 = vpack.c.b16 %v1706_v4, %v1706_v4  ;;  %v17027_v18 = vld [vmem:[%s18540_s13 + $0x68c] sm:$0xf0]  ;;  %v18661_v19 = vpack.c.b16 %v1707_v5, %v1707_v5  ;;  %v11852_v22 = vor.u32 %v16963_v12, %v11851_v11 }
  0x81   : > { %v12107_v17 = vld [vmem:[%s18540_s13 + $0x680] sm:$0xf]  ;;  %v17059_v21 = vld [vmem:[%s18540_s13 + $0x78c] sm:$0xf0]  ;;  %v11980_v23 = vor.u32 %v16995_v16, %v11979_v13  ;;  %8691 = vmatpush.bf16.msrb.mxu3 %v12252_v15 }
  0x82   : > { %v12235_v20 = vld [vmem:[%s18540_s13 + $0x780] sm:$0xf]  ;;  %8606 = vmatmul.bf16.vlgmr.msra.gmra.mxu0 %v18655_v14  ;;  %8619 = vmatmul.bf16.vlgmr.msra.gmra.mxu1 %v18661_v19  ;;  %v12108_v24 = vor.u32 %v17027_v18, %v12107_v17  ;;  %v16959_v26 = vld [vmem:[%s18540_s13 + $0x46c] sm:$0xf0]  ;;  %v1712_v18 = vunpack.c.l.b16 %v303_v3 }
  0x83   : > { %v11835_v25 = vld [vmem:[%s18540_s13 + $0x460] sm:$0xf]  ;;  %v12236_v28 = vor.u32 %v17059_v21, %v12235_v20  ;;  %v16991_v29 = vld [vmem:[%s18540_s13 + $0x56c] sm:$0xf0]  ;;  %8653 = vmatpush.bf16.msrb.mxu0 %v11852_v22  ;;  %8666 = vmatpush.bf16.msrb.mxu1 %v11980_v23 }
  0x84   : > { %v11963_v27 = vld [vmem:[%s18540_s13 + $0x560] sm:$0xf]  ;;  %v17023_v31 = vld [vmem:[%s18540_s13 + $0x66c] sm:$0xf0]  ;;  %v11836_v34 = vor.u32 %v16959_v26, %v11835_v25  ;;  %8679 = vmatpush.bf16.msrb.mxu2 %v12108_v24  ;;  %v1713_v25 = vunpack.c.h.b16 %v303_v3 }
  0x85   : > { %v12091_v30 = vld [vmem:[%s18540_s13 + $0x660] sm:$0xf]  ;;  %v17055_v33 = vld [vmem:[%s18540_s13 + $0x76c] sm:$0xf0]  ;;  %v11964_v35 = vor.u32 %v16991_v29, %v11963_v27  ;;  %8692 = vmatpush.bf16.msrb.mxu3 %v12236_v28 }
  0x86   : > { %v12219_v32 = vld [vmem:[%s18540_s13 + $0x760] sm:$0xf]  ;;  %v12092_v36 = vor.u32 %v17023_v31, %v12091_v30  ;;  %v16955_v38 = vld [vmem:[%s18540_s13 + $0x44c] sm:$0xf0] }
  0x87   : > { %v11819_v37 = vld [vmem:[%s18540_s13 + $0x440] sm:$0xf]  ;;  %v12220_v40 = vor.u32 %v17055_v33, %v12219_v32  ;;  %v16987_v41 = vld [vmem:[%s18540_s13 + $0x54c] sm:$0xf0]  ;;  %8654 = vmatpush.bf16.msrb.mxu0 %v11836_v34  ;;  %8667 = vmatpush.bf16.msrb.mxu1 %v11964_v35 }
  0x88   : > { %v11947_v39 = vld [vmem:[%s18540_s13 + $0x540] sm:$0xf]  ;;  %v17019_v43 = vld [vmem:[%s18540_s13 + $0x64c] sm:$0xf0]  ;;  %v11820_v46 = vor.u32 %v16955_v38, %v11819_v37  ;;  %8680 = vmatpush.bf16.msrb.mxu2 %v12092_v36  ;;  %v18720_v38 = vpack.c.b16 %v1712_v18, %v1712_v18 }
  0x89   : > { %v12075_v42 = vld [vmem:[%s18540_s13 + $0x640] sm:$0xf]  ;;  %v17051_v45 = vld [vmem:[%s18540_s13 + $0x74c] sm:$0xf0]  ;;  %v11948_v47 = vor.u32 %v16987_v41, %v11947_v39  ;;  %8693 = vmatpush.bf16.msrb.mxu3 %v12220_v40 }
  0x8a   : > { %v12203_v44 = vld [vmem:[%s18540_s13 + $0x740] sm:$0xf]  ;;  %v12076_v48 = vor.u32 %v17019_v43, %v12075_v42  ;;  %v16951_v50 = vld [vmem:[%s18540_s13 + $0x42c] sm:$0xf0]  ;;  %v18726_v42 = vpack.c.b16 %v1713_v25, %v1713_v25 }
  0x8b   : > { %v11803_v49 = vld [vmem:[%s18540_s13 + $0x420] sm:$0xf]  ;;  %v12204_v52 = vor.u32 %v17051_v45, %v12203_v44  ;;  %v16983_v53 = vld [vmem:[%s18540_s13 + $0x52c] sm:$0xf0]  ;;  %8655 = vmatpush.bf16.msrb.mxu0 %v11820_v46  ;;  %8668 = vmatpush.bf16.msrb.mxu1 %v11948_v47 }
  0x8c   : > { %v11931_v51 = vld [vmem:[%s18540_s13 + $0x520] sm:$0xf]  ;;  %v17015_v55 = vld [vmem:[%s18540_s13 + $0x62c] sm:$0xf0]  ;;  %v11804_v59 = vor.u32 %v16951_v50, %v11803_v49  ;;  %8681 = vmatpush.bf16.msrb.mxu2 %v12076_v48 }
  0x8d   : > { %v12059_v54 = vld [vmem:[%s18540_s13 + $0x620] sm:$0xf]  ;;  %v17047_v57 = vld [vmem:[%s18540_s13 + $0x72c] sm:$0xf0]  ;;  %v11932_v63 = vor.u32 %v16983_v53, %v11931_v51  ;;  %8694 = vmatpush.bf16.msrb.mxu3 %v12204_v52 }
  0x8e   : > { %v12187_v56 = vld [vmem:[%s18540_s13 + $0x720] sm:$0xf]  ;;  %v16947_v60 = vld [vmem:[%s18540_s13 + $0x40c] sm:$0xf0]  ;;  %v12060_v0 = vor.u32 %v17015_v55, %v12059_v54 }
  0x8f   : > { %v11787_v58 = vld [vmem:[%s18540_s13 + $0x400] sm:$0xf]  ;;  %v16979_v62 = vld [vmem:[%s18540_s13 + $0x50c] sm:$0xf0]  ;;  %v12188_v4 = vor.u32 %v17047_v57, %v12187_v56  ;;  %8656 = vmatpush.bf16.msrb.mxu0 %v11804_v59  ;;  %8669 = vmatpush.bf16.msrb.mxu1 %v11932_v63 }
  0x90   : > { %v11915_v61 = vld [vmem:[%s18540_s13 + $0x500] sm:$0xf]  ;;  %v17011_v2 = vld [vmem:[%s18540_s13 + $0x60c] sm:$0xf0]  ;;  %v11788_v13 = vor.u32 %v16947_v60, %v11787_v58  ;;  %8682 = vmatpush.bf16.msrb.mxu2 %v12060_v0 }
  0x91   : > { %v12043_v1 = vld [vmem:[%s18540_s13 + $0x600] sm:$0xf]  ;;  %v17043_v6 = vld [vmem:[%s18540_s13 + $0x70c] sm:$0xf0]  ;;  %v11916_v20 = vor.u32 %v16979_v62, %v11915_v61  ;;  %8695 = vmatpush.bf16.msrb.mxu3 %v12188_v4 }
  0x92   : > { %v12171_v5 = vld [vmem:[%s18540_s13 + $0x700] sm:$0xf]  ;;  %v302_v9 = vld [vmem:[%s21778_s0 + $0x10] sm:$0xff]  ;;  %v12044_v21 = vor.u32 %v17011_v2, %v12043_v1 }
  0x93   : > { %v12411_v10 = vld [vmem:[%s18540_s13 + $0x8e0] sm:$0xf]  ;;  %v17103_v11 = vld [vmem:[%s18540_s13 + $0x8ec] sm:$0xf0]  ;;  %v1710_v24 = vunpack.c.l.b16 %v302_v9  ;;  %v12172_v26 = vor.u32 %v17043_v6, %v12171_v5  ;;  %v1711_v28 = vunpack.c.h.b16 %v302_v9  ;;  %8657 = vmatpush.bf16.msrb.mxu0 %v11788_v13  ;;  %8670 = vmatpush.bf16.msrb.mxu1 %v11916_v20 }
  0x94   : > { %v12539_v12 = vld [vmem:[%s18540_s13 + $0x9e0] sm:$0xf]  ;;  %v17135_v15 = vld [vmem:[%s18540_s13 + $0x9ec] sm:$0xf0]  ;;  %v12412_v27 = vor.u32 %v17103_v11, %v12411_v10  ;;  %8683 = vmatpush.bf16.msrb.mxu2 %v12044_v21 }
  0x95   : > { %v12667_v16 = vld [vmem:[%s18540_s13 + $0xae0] sm:$0xf]  ;;  %v17167_v17 = vld [vmem:[%s18540_s13 + $0xaec] sm:$0xf0]  ;;  %v12540_v29 = vor.u32 %v17135_v15, %v12539_v12  ;;  %v18724_v41 = vpack.c.b16 %v1710_v24, %v1710_v24  ;;  %8696 = vmatpush.bf16.msrb.mxu3 %v12172_v26  ;;  %v18728_v44 = vpack.c.b16 %v1711_v28, %v1711_v28 }
  0x96   : > { %v12795_v22 = vld [vmem:[%s18540_s13 + $0xbe0] sm:$0xf]  ;;  %v17199_v23 = vld [vmem:[%s18540_s13 + $0xbec] sm:$0xf0]  ;;  %v12668_v30 = vor.u32 %v17167_v17, %v12667_v16 }
  0x97   : > { %v12395_v31 = vld [vmem:[%s18540_s13 + $0x8c0] sm:$0xf]  ;;  %v17099_v32 = vld [vmem:[%s18540_s13 + $0x8cc] sm:$0xf0]  ;;  %v12796_v34 = vor.u32 %v17199_v23, %v12795_v22  ;;  %8702 = vmatpush.bf16.msra.mxu0 %v12412_v27  ;;  %8715 = vmatpush.bf16.msra.mxu1 %v12540_v29 }
  0x98   : > { %v12523_v33 = vld [vmem:[%s18540_s13 + $0x9c0] sm:$0xf]  ;;  %v17131_v35 = vld [vmem:[%s18540_s13 + $0x9cc] sm:$0xf0]  ;;  %v12396_v43 = vor.u32 %v17099_v32, %v12395_v31  ;;  %8728 = vmatpush.bf16.msra.mxu2 %v12668_v30  ;;  %8658 = vmatmul.bf16.vlgmr.msrb.gmra.mxu0 %v18724_v41 }
  0x99   : > { %v12651_v36 = vld [vmem:[%s18540_s13 + $0xac0] sm:$0xf]  ;;  %v17163_v37 = vld [vmem:[%s18540_s13 + $0xacc] sm:$0xf0]  ;;  %v12524_v45 = vor.u32 %v17131_v35, %v12523_v33  ;;  %8741 = vmatpush.bf16.msra.mxu3 %v12796_v34  ;;  %8684 = vmatmul.bf16.vlgmr.msrb.gmra.mxu2 %v18720_v38 }
  0x9a   : > { %v12779_v39 = vld [vmem:[%s18540_s13 + $0xbc0] sm:$0xf]  ;;  %v17195_v40 = vld [vmem:[%s18540_s13 + $0xbcc] sm:$0xf0]  ;;  %v12652_v46 = vor.u32 %v17163_v37, %v12651_v36  ;;  %8697 = vmatmul.bf16.vlgmr.msrb.gmra.mxu3 %v18726_v42  ;;  %8671 = vmatmul.bf16.vlgmr.msrb.gmra.mxu1 %v18728_v44 }
  0x9b   : > { %v12379_v47 = vld [vmem:[%s18540_s13 + $0x8a0] sm:$0xf]  ;;  %v17095_v48 = vld [vmem:[%s18540_s13 + $0x8ac] sm:$0xf0]  ;;  %v12780_v50 = vor.u32 %v17195_v40, %v12779_v39  ;;  %8703 = vmatpush.bf16.msra.mxu0 %v12396_v43  ;;  %8716 = vmatpush.bf16.msra.mxu1 %v12524_v45 }
  0x9c   : > { %v12507_v49 = vld [vmem:[%s18540_s13 + $0x9a0] sm:$0xf]  ;;  %v17127_v51 = vld [vmem:[%s18540_s13 + $0x9ac] sm:$0xf0]  ;;  %v12380_v56 = vor.u32 %v17095_v48, %v12379_v47  ;;  %8729 = vmatpush.bf16.msra.mxu2 %v12652_v46 }
  0x9d   : > { %v12635_v52 = vld [vmem:[%s18540_s13 + $0xaa0] sm:$0xf]  ;;  %v17159_v53 = vld [vmem:[%s18540_s13 + $0xaac] sm:$0xf0]  ;;  %v12508_v57 = vor.u32 %v17127_v51, %v12507_v49  ;;  %8742 = vmatpush.bf16.msra.mxu3 %v12780_v50 }
  0x9e   : > { %v12763_v54 = vld [vmem:[%s18540_s13 + $0xba0] sm:$0xf]  ;;  %v17191_v55 = vld [vmem:[%s18540_s13 + $0xbac] sm:$0xf0]  ;;  %v12636_v58 = vor.u32 %v17159_v53, %v12635_v52 }
  0x9f   : > { %v12363_v59 = vld [vmem:[%s18540_s13 + $0x880] sm:$0xf]  ;;  %v17091_v60 = vld [vmem:[%s18540_s13 + $0x88c] sm:$0xf0]  ;;  %v12764_v62 = vor.u32 %v17191_v55, %v12763_v54  ;;  %8704 = vmatpush.bf16.msra.mxu0 %v12380_v56  ;;  %8717 = vmatpush.bf16.msra.mxu1 %v12508_v57 }
  0xa0   : > { %v12491_v61 = vld [vmem:[%s18540_s13 + $0x980] sm:$0xf]  ;;  %v17123_v63 = vld [vmem:[%s18540_s13 + $0x98c] sm:$0xf0]  ;;  %v12364_v4 = vor.u32 %v17091_v60, %v12363_v59  ;;  %8730 = vmatpush.bf16.msra.mxu2 %v12636_v58 }
  0xa1   : > { %v12619_v0 = vld [vmem:[%s18540_s13 + $0xa80] sm:$0xf]  ;;  %v17155_v1 = vld [vmem:[%s18540_s13 + $0xa8c] sm:$0xf0]  ;;  %v12492_v5 = vor.u32 %v17123_v63, %v12491_v61  ;;  %8743 = vmatpush.bf16.msra.mxu3 %v12764_v62  ;;  %v305_v61 = vld [vmem:[%s21778_s0 + $0x28] sm:$0xff] }
  0xa2   : > { %v12747_v2 = vld [vmem:[%s18540_s13 + $0xb80] sm:$0xf]  ;;  %v17187_v3 = vld [vmem:[%s18540_s13 + $0xb8c] sm:$0xf0]  ;;  %v12620_v6 = vor.u32 %v17155_v1, %v12619_v0 }
  0xa3   : > { %v12347_v9 = vld [vmem:[%s18540_s13 + $0x860] sm:$0xf]  ;;  %v17087_v10 = vld [vmem:[%s18540_s13 + $0x86c] sm:$0xf0]  ;;  %v12748_v12 = vor.u32 %v17187_v3, %v12747_v2  ;;  %8705 = vmatpush.bf16.msra.mxu0 %v12364_v4  ;;  %8718 = vmatpush.bf16.msra.mxu1 %v12492_v5 }
  0xa4   : > { %v12475_v11 = vld [vmem:[%s18540_s13 + $0x960] sm:$0xf]  ;;  %v17119_v13 = vld [vmem:[%s18540_s13 + $0x96c] sm:$0xf0]  ;;  %v12348_v20 = vor.u32 %v17087_v10, %v12347_v9  ;;  %8731 = vmatpush.bf16.msra.mxu2 %v12620_v6 }
  0xa5   : > { %v12603_v15 = vld [vmem:[%s18540_s13 + $0xa60] sm:$0xf]  ;;  %v17151_v16 = vld [vmem:[%s18540_s13 + $0xa6c] sm:$0xf0]  ;;  %v12476_v21 = vor.u32 %v17119_v13, %v12475_v11  ;;  %8744 = vmatpush.bf16.msra.mxu3 %v12748_v12  ;;  %v1716_v12 = vunpack.c.l.b16 %v305_v61 }
  0xa6   : > { %v12731_v17 = vld [vmem:[%s18540_s13 + $0xb60] sm:$0xf]  ;;  %v17183_v18 = vld [vmem:[%s18540_s13 + $0xb6c] sm:$0xf0]  ;;  %v12604_v22 = vor.u32 %v17151_v16, %v12603_v15 }
  0xa7   : > { %v12331_v23 = vld [vmem:[%s18540_s13 + $0x840] sm:$0xf]  ;;  %v17083_v24 = vld [vmem:[%s18540_s13 + $0x84c] sm:$0xf0]  ;;  %v12732_v26 = vor.u32 %v17183_v18, %v12731_v17  ;;  %8706 = vmatpush.bf16.msra.mxu0 %v12348_v20  ;;  %8719 = vmatpush.bf16.msra.mxu1 %v12476_v21  ;;  %v1717_v17 = vunpack.c.h.b16 %v305_v61 }
  0xa8   : > { %v12459_v25 = vld [vmem:[%s18540_s13 + $0x940] sm:$0xf]  ;;  %v17115_v27 = vld [vmem:[%s18540_s13 + $0x94c] sm:$0xf0]  ;;  %v12332_v32 = vor.u32 %v17083_v24, %v12331_v23  ;;  %8732 = vmatpush.bf16.msra.mxu2 %v12604_v22 }
  0xa9   : > { %v12587_v28 = vld [vmem:[%s18540_s13 + $0xa40] sm:$0xf]  ;;  %v17147_v29 = vld [vmem:[%s18540_s13 + $0xa4c] sm:$0xf0]  ;;  %v12460_v33 = vor.u32 %v17115_v27, %v12459_v25  ;;  %8745 = vmatpush.bf16.msra.mxu3 %v12732_v26 }
  0xaa   : > { %v12715_v30 = vld [vmem:[%s18540_s13 + $0xb40] sm:$0xf]  ;;  %v17179_v31 = vld [vmem:[%s18540_s13 + $0xb4c] sm:$0xf0]  ;;  %v12588_v34 = vor.u32 %v17147_v29, %v12587_v28  ;;  %v18804_v29 = vpack.c.b16 %v1716_v12, %v1716_v12 }
  0xab   : > { %v12315_v35 = vld [vmem:[%s18540_s13 + $0x820] sm:$0xf]  ;;  %v17079_v36 = vld [vmem:[%s18540_s13 + $0x82c] sm:$0xf0]  ;;  %v12716_v39 = vor.u32 %v17179_v31, %v12715_v30  ;;  %8707 = vmatpush.bf16.msra.mxu0 %v12332_v32  ;;  %8720 = vmatpush.bf16.msra.mxu1 %v12460_v33  ;;  %v18810_v33 = vpack.c.b16 %v1717_v17, %v1717_v17 }
  0xac   : > { %v12443_v37 = vld [vmem:[%s18540_s13 + $0x920] sm:$0xf]  ;;  %v17111_v40 = vld [vmem:[%s18540_s13 + $0x92c] sm:$0xf0]  ;;  %v12316_v49 = vor.u32 %v17079_v36, %v12315_v35  ;;  %8733 = vmatpush.bf16.msra.mxu2 %v12588_v34 }
  0xad   : > { %v12571_v43 = vld [vmem:[%s18540_s13 + $0xa20] sm:$0xf]  ;;  %v17143_v45 = vld [vmem:[%s18540_s13 + $0xa2c] sm:$0xf0]  ;;  %v12444_v53 = vor.u32 %v17111_v40, %v12443_v37  ;;  %8746 = vmatpush.bf16.msra.mxu3 %v12716_v39 }
  0xae   : > { %v12699_v46 = vld [vmem:[%s18540_s13 + $0xb20] sm:$0xf]  ;;  %v17175_v47 = vld [vmem:[%s18540_s13 + $0xb2c] sm:$0xf0]  ;;  %v12572_v54 = vor.u32 %v17143_v45, %v12571_v43 }
  0xaf   : > { %v12299_v48 = vld [vmem:[%s18540_s13 + $0x800] sm:$0xf]  ;;  %v17075_v50 = vld [vmem:[%s18540_s13 + $0x80c] sm:$0xf0]  ;;  %v12700_v58 = vor.u32 %v17175_v47, %v12699_v46  ;;  %8708 = vmatpush.bf16.msra.mxu0 %v12316_v49  ;;  %8721 = vmatpush.bf16.msra.mxu1 %v12444_v53 }
  0xb0   : > { %v12427_v51 = vld [vmem:[%s18540_s13 + $0x900] sm:$0xf]  ;;  %v17107_v52 = vld [vmem:[%s18540_s13 + $0x90c] sm:$0xf0]  ;;  %v12300_v1 = vor.u32 %v17075_v50, %v12299_v48  ;;  %8734 = vmatpush.bf16.msra.mxu2 %v12572_v54 }
  0xb1   : > { %v12555_v55 = vld [vmem:[%s18540_s13 + $0xa00] sm:$0xf]  ;;  %v17139_v56 = vld [vmem:[%s18540_s13 + $0xa0c] sm:$0xf0]  ;;  %v12428_v6 = vor.u32 %v17107_v52, %v12427_v51  ;;  %8747 = vmatpush.bf16.msra.mxu3 %v12700_v58 }
  0xb2   : > { %v304_v57 = vld [vmem:[%s21778_s0 + $0x20] sm:$0xff]  ;;  %v17171_v60 = vld [vmem:[%s18540_s13 + $0xb0c] sm:$0xf0]  ;;  %v12556_v9 = vor.u32 %v17139_v56, %v12555_v55 }
  0xb3   : > { %v12683_v59 = vld [vmem:[%s18540_s13 + $0xb00] sm:$0xf]  ;;  %v17231_v63 = vld [vmem:[%s18540_s13 + $0xcec] sm:$0xf0]  ;;  %v1714_v5 = vunpack.c.l.b16 %v304_v57  ;;  %v1715_v13 = vunpack.c.h.b16 %v304_v57  ;;  %8709 = vmatpush.bf16.msra.mxu0 %v12300_v1  ;;  %8722 = vmatpush.bf16.msra.mxu1 %v12428_v6 }
  0xb4   : > { %v12923_v62 = vld [vmem:[%s18540_s13 + $0xce0] sm:$0xf]  ;;  %v17263_v2 = vld [vmem:[%s18540_s13 + $0xdec] sm:$0xf0]  ;;  %v12684_v15 = vor.u32 %v17171_v60, %v12683_v59  ;;  %8735 = vmatpush.bf16.msra.mxu2 %v12556_v9 }
  0xb5   : > { %v13051_v0 = vld [vmem:[%s18540_s13 + $0xde0] sm:$0xf]  ;;  %v17295_v4 = vld [vmem:[%s18540_s13 + $0xeec] sm:$0xf0]  ;;  %v12924_v16 = vor.u32 %v17231_v63, %v12923_v62  ;;  %v18799_v25 = vpack.c.b16 %v1714_v5, %v1714_v5  ;;  %v18806_v30 = vpack.c.b16 %v1715_v13, %v1715_v13 }
  0xb6   : > { %v13179_v3 = vld [vmem:[%s18540_s13 + $0xee0] sm:$0xf]  ;;  %v17327_v11 = vld [vmem:[%s18540_s13 + $0xfec] sm:$0xf0]  ;;  %v13052_v18 = vor.u32 %v17263_v2, %v13051_v0  ;;  %8748 = vmatpush.bf16.msra.mxu3 %v12684_v15 }
  0xb7   : > { %v13307_v10 = vld [vmem:[%s18540_s13 + $0xfe0] sm:$0xf]  ;;  %v13180_v20 = vor.u32 %v17295_v4, %v13179_v3  ;;  %v17227_v22 = vld [vmem:[%s18540_s13 + $0xccc] sm:$0xf0]  ;;  %8754 = vmatpush.bf16.msrb.mxu0 %v12924_v16  ;;  %8736 = vmatmul.bf16.vlgmr.msra.gmra.mxu2 %v18804_v29 }
  0xb8   : > { %v12907_v21 = vld [vmem:[%s18540_s13 + $0xcc0] sm:$0xf]  ;;  %v13308_v24 = vor.u32 %v17327_v11, %v13307_v10  ;;  %v17259_v26 = vld [vmem:[%s18540_s13 + $0xdcc] sm:$0xf0]  ;;  %8767 = vmatpush.bf16.msrb.mxu1 %v13052_v18  ;;  %8710 = vmatmul.bf16.vlgmr.msra.gmra.mxu0 %v18799_v25 }
  0xb9   : > { %v13035_v23 = vld [vmem:[%s18540_s13 + $0xdc0] sm:$0xf]  ;;  %v17291_v28 = vld [vmem:[%s18540_s13 + $0xecc] sm:$0xf0]  ;;  %v12908_v34 = vor.u32 %v17227_v22, %v12907_v21  ;;  %8780 = vmatpush.bf16.msrb.mxu2 %v13180_v20  ;;  %8723 = vmatmul.bf16.vlgmr.msra.gmra.mxu1 %v18806_v30 }
  0xba   : > { %v13163_v27 = vld [vmem:[%s18540_s13 + $0xec0] sm:$0xf]  ;;  %v17323_v32 = vld [vmem:[%s18540_s13 + $0xfcc] sm:$0xf0]  ;;  %v13036_v35 = vor.u32 %v17259_v26, %v13035_v23  ;;  %8793 = vmatpush.bf16.msrb.mxu3 %v13308_v24 }
  0xbb   : > { %v13291_v31 = vld [vmem:[%s18540_s13 + $0xfc0] sm:$0xf]  ;;  %v13164_v36 = vor.u32 %v17291_v28, %v13163_v27  ;;  %v17223_v39 = vld [vmem:[%s18540_s13 + $0xcac] sm:$0xf0]  ;;  %8749 = vmatmul.bf16.vlgmr.msra.gmra.mxu3 %v18810_v33  ;;  %8755 = vmatpush.bf16.msrb.mxu0 %v12908_v34 }
  0xbc   : > { %v12891_v37 = vld [vmem:[%s18540_s13 + $0xca0] sm:$0xf]  ;;  %v13292_v43 = vor.u32 %v17323_v32, %v13291_v31  ;;  %v17255_v45 = vld [vmem:[%s18540_s13 + $0xdac] sm:$0xf0]  ;;  %8768 = vmatpush.bf16.msrb.mxu1 %v13036_v35 }
  0xbd   : > { %v13019_v40 = vld [vmem:[%s18540_s13 + $0xda0] sm:$0xf]  ;;  %v17287_v47 = vld [vmem:[%s18540_s13 + $0xeac] sm:$0xf0]  ;;  %v12892_v50 = vor.u32 %v17223_v39, %v12891_v37  ;;  %8781 = vmatpush.bf16.msrb.mxu2 %v13164_v36 }
  0xbe   : > { %v13147_v46 = vld [vmem:[%s18540_s13 + $0xea0] sm:$0xf]  ;;  %v17319_v49 = vld [vmem:[%s18540_s13 + $0xfac] sm:$0xf0]  ;;  %v13020_v51 = vor.u32 %v17255_v45, %v13019_v40  ;;  %8794 = vmatpush.bf16.msrb.mxu3 %v13292_v43 }
  0xbf   : > { %v13275_v48 = vld [vmem:[%s18540_s13 + $0xfa0] sm:$0xf]  ;;  %v13148_v52 = vor.u32 %v17287_v47, %v13147_v46  ;;  %v17219_v54 = vld [vmem:[%s18540_s13 + $0xc8c] sm:$0xf0]  ;;  %8756 = vmatpush.bf16.msrb.mxu0 %v12892_v50 }
  0xc0   : > { %v12875_v53 = vld [vmem:[%s18540_s13 + $0xc80] sm:$0xf]  ;;  %v13276_v56 = vor.u32 %v17319_v49, %v13275_v48  ;;  %v17251_v57 = vld [vmem:[%s18540_s13 + $0xd8c] sm:$0xf0]  ;;  %8769 = vmatpush.bf16.msrb.mxu1 %v13020_v51 }
  0xc1   : > { %v13003_v55 = vld [vmem:[%s18540_s13 + $0xd80] sm:$0xf]  ;;  %v17283_v59 = vld [vmem:[%s18540_s13 + $0xe8c] sm:$0xf0]  ;;  %v12876_v62 = vor.u32 %v17219_v54, %v12875_v53  ;;  %8782 = vmatpush.bf16.msrb.mxu2 %v13148_v52 }
  0xc2   : > { %v13131_v58 = vld [vmem:[%s18540_s13 + $0xe80] sm:$0xf]  ;;  %v17315_v61 = vld [vmem:[%s18540_s13 + $0xf8c] sm:$0xf0]  ;;  %v13004_v63 = vor.u32 %v17251_v57, %v13003_v55  ;;  %8795 = vmatpush.bf16.msrb.mxu3 %v13276_v56 }
  0xc3   : > { %v13259_v60 = vld [vmem:[%s18540_s13 + $0xf80] sm:$0xf]  ;;  %v13132_v0 = vor.u32 %v17283_v59, %v13131_v58  ;;  %v17215_v2 = vld [vmem:[%s18540_s13 + $0xc6c] sm:$0xf0]  ;;  %8757 = vmatpush.bf16.msrb.mxu0 %v12876_v62  ;;  %v307_v59 = vld [vmem:[%s21778_s0 + $0x38] sm:$0xff] }
  0xc4   : > { %v12859_v1 = vld [vmem:[%s18540_s13 + $0xc60] sm:$0xf]  ;;  %v13260_v4 = vor.u32 %v17315_v61, %v13259_v60  ;;  %v17247_v5 = vld [vmem:[%s18540_s13 + $0xd6c] sm:$0xf0]  ;;  %8770 = vmatpush.bf16.msrb.mxu1 %v13004_v63 }
  0xc5   : > { %v12987_v3 = vld [vmem:[%s18540_s13 + $0xd60] sm:$0xf]  ;;  %v17279_v9 = vld [vmem:[%s18540_s13 + $0xe6c] sm:$0xf0]  ;;  %v12860_v12 = vor.u32 %v17215_v2, %v12859_v1  ;;  %8783 = vmatpush.bf16.msrb.mxu2 %v13132_v0 }
  0xc6   : > { %v13115_v6 = vld [vmem:[%s18540_s13 + $0xe60] sm:$0xf]  ;;  %v17311_v11 = vld [vmem:[%s18540_s13 + $0xf6c] sm:$0xf0]  ;;  %v12988_v13 = vor.u32 %v17247_v5, %v12987_v3  ;;  %8796 = vmatpush.bf16.msrb.mxu3 %v13260_v4 }
  0xc7   : > { %v13243_v10 = vld [vmem:[%s18540_s13 + $0xf60] sm:$0xf]  ;;  %v13116_v15 = vor.u32 %v17279_v9, %v13115_v6  ;;  %v17211_v17 = vld [vmem:[%s18540_s13 + $0xc4c] sm:$0xf0]  ;;  %8758 = vmatpush.bf16.msrb.mxu0 %v12860_v12 }
  0xc8   : > { %v12843_v16 = vld [vmem:[%s18540_s13 + $0xc40] sm:$0xf]  ;;  %v13244_v20 = vor.u32 %v17311_v11, %v13243_v10  ;;  %v17243_v21 = vld [vmem:[%s18540_s13 + $0xd4c] sm:$0xf0]  ;;  %8771 = vmatpush.bf16.msrb.mxu1 %v12988_v13  ;;  %v1720_v10 = vunpack.c.l.b16 %v307_v59 }
  0xc9   : > { %v12971_v18 = vld [vmem:[%s18540_s13 + $0xd40] sm:$0xf]  ;;  %v17275_v23 = vld [vmem:[%s18540_s13 + $0xe4c] sm:$0xf0]  ;;  %v12844_v27 = vor.u32 %v17211_v17, %v12843_v16  ;;  %8784 = vmatpush.bf16.msrb.mxu2 %v13116_v15  ;;  %v1721_v15 = vunpack.c.h.b16 %v307_v59 }
  0xca   : > { %v13099_v22 = vld [vmem:[%s18540_s13 + $0xe40] sm:$0xf]  ;;  %v17307_v26 = vld [vmem:[%s18540_s13 + $0xf4c] sm:$0xf0]  ;;  %v12972_v28 = vor.u32 %v17243_v21, %v12971_v18  ;;  %8797 = vmatpush.bf16.msrb.mxu3 %v13244_v20 }
  0xcb   : > { %v13227_v24 = vld [vmem:[%s18540_s13 + $0xf40] sm:$0xf]  ;;  %v13100_v31 = vor.u32 %v17275_v23, %v13099_v22  ;;  %v17207_v34 = vld [vmem:[%s18540_s13 + $0xc2c] sm:$0xf0]  ;;  %8759 = vmatpush.bf16.msrb.mxu0 %v12844_v27 }
  0xcc   : > { %v12827_v32 = vld [vmem:[%s18540_s13 + $0xc20] sm:$0xf]  ;;  %v13228_v36 = vor.u32 %v17307_v26, %v13227_v24  ;;  %v17239_v37 = vld [vmem:[%s18540_s13 + $0xd2c] sm:$0xf0]  ;;  %8772 = vmatpush.bf16.msrb.mxu1 %v12972_v28  ;;  %v18886_v28 = vpack.c.b16 %v1720_v10, %v1720_v10 }
  0xcd   : > { %v12955_v35 = vld [vmem:[%s18540_s13 + $0xd20] sm:$0xf]  ;;  %v17271_v40 = vld [vmem:[%s18540_s13 + $0xe2c] sm:$0xf0]  ;;  %v12828_v47 = vor.u32 %v17207_v34, %v12827_v32  ;;  %8785 = vmatpush.bf16.msrb.mxu2 %v13100_v31 }
  0xce   : > { %v13083_v39 = vld [vmem:[%s18540_s13 + $0xe20] sm:$0xf]  ;;  %v17303_v45 = vld [vmem:[%s18540_s13 + $0xf2c] sm:$0xf0]  ;;  %v12956_v51 = vor.u32 %v17239_v37, %v12955_v35  ;;  %8798 = vmatpush.bf16.msrb.mxu3 %v13228_v36  ;;  %v18892_v35 = vpack.c.b16 %v1721_v15, %v1721_v15 }
  0xcf   : > { %v13211_v43 = vld [vmem:[%s18540_s13 + $0xf20] sm:$0xf]  ;;  %v17203_v48 = vld [vmem:[%s18540_s13 + $0xc0c] sm:$0xf0]  ;;  %v13084_v52 = vor.u32 %v17271_v40, %v13083_v39  ;;  %8760 = vmatpush.bf16.msrb.mxu0 %v12828_v47 }
  0xd0   : > { %v12811_v46 = vld [vmem:[%s18540_s13 + $0xc00] sm:$0xf]  ;;  %v17235_v50 = vld [vmem:[%s18540_s13 + $0xd0c] sm:$0xf0]  ;;  %v13212_v56 = vor.u32 %v17303_v45, %v13211_v43  ;;  %8773 = vmatpush.bf16.msrb.mxu1 %v12956_v51 }
  0xd1   : > { %v12939_v49 = vld [vmem:[%s18540_s13 + $0xd00] sm:$0xf]  ;;  %v17267_v54 = vld [vmem:[%s18540_s13 + $0xe0c] sm:$0xf0]  ;;  %v12812_v63 = vor.u32 %v17203_v48, %v12811_v46  ;;  %8786 = vmatpush.bf16.msrb.mxu2 %v13084_v52 }
  0xd2   : > { %v13067_v53 = vld [vmem:[%s18540_s13 + $0xe00] sm:$0xf]  ;;  %v306_v55 = vld [vmem:[%s21778_s0 + $0x30] sm:$0xff]  ;;  %v12940_v4 = vor.u32 %v17235_v50, %v12939_v49  ;;  %8799 = vmatpush.bf16.msrb.mxu3 %v13212_v56 }
  0xd3   : > { %v13195_v57 = vld [vmem:[%s18540_s13 + $0xf00] sm:$0xf]  ;;  %v17299_v58 = vld [vmem:[%s18540_s13 + $0xf0c] sm:$0xf0]  ;;  %v1718_v3 = vunpack.c.l.b16 %v306_v55  ;;  %v13068_v5 = vor.u32 %v17267_v54, %v13067_v53  ;;  %v1719_v11 = vunpack.c.h.b16 %v306_v55  ;;  %8761 = vmatpush.bf16.msrb.mxu0 %v12812_v63 }
  0xd4   : > { %v13435_v60 = vld [vmem:[%s18540_s13 + $0x10e0] sm:$0xf]  ;;  %v17359_v61 = vld [vmem:[%s18540_s13 + $0x10ec] sm:$0xf0]  ;;  %v13196_v12 = vor.u32 %v17299_v58, %v13195_v57  ;;  %8774 = vmatpush.bf16.msrb.mxu1 %v12940_v4 }
  0xd5   : > { %v13563_v62 = vld [vmem:[%s18540_s13 + $0x11e0] sm:$0xf]  ;;  %v17391_v0 = vld [vmem:[%s18540_s13 + $0x11ec] sm:$0xf0]  ;;  %v13436_v13 = vor.u32 %v17359_v61, %v13435_v60  ;;  %v18881_v23 = vpack.c.b16 %v1718_v3, %v1718_v3  ;;  %8787 = vmatpush.bf16.msrb.mxu2 %v13068_v5  ;;  %v18888_v31 = vpack.c.b16 %v1719_v11, %v1719_v11 }
  0xd6   : > { %v13691_v1 = vld [vmem:[%s18540_s13 + $0x12e0] sm:$0xf]  ;;  %v17423_v2 = vld [vmem:[%s18540_s13 + $0x12ec] sm:$0xf0]  ;;  %v13564_v16 = vor.u32 %v17391_v0, %v13563_v62  ;;  %8800 = vmatpush.bf16.msrb.mxu3 %v13196_v12 }
  0xd7   : > { %v13819_v6 = vld [vmem:[%s18540_s13 + $0x13e0] sm:$0xf]  ;;  %v17455_v9 = vld [vmem:[%s18540_s13 + $0x13ec] sm:$0xf0]  ;;  %v13692_v17 = vor.u32 %v17423_v2, %v13691_v1  ;;  %8806 = vmatpush.bf16.msra.mxu0 %v13436_v13  ;;  %8775 = vmatmul.bf16.vlgmr.msrb.gmra.mxu1 %v18888_v31 }
  0xd8   : > { %v13419_v18 = vld [vmem:[%s18540_s13 + $0x10c0] sm:$0xf]  ;;  %v17355_v20 = vld [vmem:[%s18540_s13 + $0x10cc] sm:$0xf0]  ;;  %v13820_v22 = vor.u32 %v17455_v9, %v13819_v6  ;;  %8819 = vmatpush.bf16.msra.mxu1 %v13564_v16  ;;  %8762 = vmatmul.bf16.vlgmr.msrb.gmra.mxu0 %v18881_v23 }
  0xd9   : > { %v13547_v21 = vld [vmem:[%s18540_s13 + $0x11c0] sm:$0xf]  ;;  %v17387_v24 = vld [vmem:[%s18540_s13 + $0x11cc] sm:$0xf0]  ;;  %v13420_v36 = vor.u32 %v17355_v20, %v13419_v18  ;;  %8832 = vmatpush.bf16.msra.mxu2 %v13692_v17  ;;  %8801 = vmatmul.bf16.vlgmr.msrb.gmra.mxu3 %v18892_v35 }
  0xda   : > { %v13675_v26 = vld [vmem:[%s18540_s13 + $0x12c0] sm:$0xf]  ;;  %v17419_v27 = vld [vmem:[%s18540_s13 + $0x12cc] sm:$0xf0]  ;;  %v13548_v37 = vor.u32 %v17387_v24, %v13547_v21  ;;  %8845 = vmatpush.bf16.msra.mxu3 %v13820_v22  ;;  %8788 = vmatmul.bf16.vlgmr.msrb.gmra.mxu2 %v18886_v28 }
  0xdb   : > { %v13803_v32 = vld [vmem:[%s18540_s13 + $0x13c0] sm:$0xf]  ;;  %v17451_v34 = vld [vmem:[%s18540_s13 + $0x13cc] sm:$0xf0]  ;;  %v13676_v39 = vor.u32 %v17419_v27, %v13675_v26  ;;  %8807 = vmatpush.bf16.msra.mxu0 %v13420_v36 }
  0xdc   : > { %v13403_v40 = vld [vmem:[%s18540_s13 + $0x10a0] sm:$0xf]  ;;  %v17351_v43 = vld [vmem:[%s18540_s13 + $0x10ac] sm:$0xf0]  ;;  %v13804_v46 = vor.u32 %v17451_v34, %v13803_v32  ;;  %8820 = vmatpush.bf16.msra.mxu1 %v13548_v37 }
  0xdd   : > { %v13531_v45 = vld [vmem:[%s18540_s13 + $0x11a0] sm:$0xf]  ;;  %v17383_v47 = vld [vmem:[%s18540_s13 + $0x11ac] sm:$0xf0]  ;;  %v13404_v52 = vor.u32 %v17351_v43, %v13403_v40  ;;  %8833 = vmatpush.bf16.msra.mxu2 %v13676_v39 }
  0xde   : > { %v13659_v48 = vld [vmem:[%s18540_s13 + $0x12a0] sm:$0xf]  ;;  %v17415_v49 = vld [vmem:[%s18540_s13 + $0x12ac] sm:$0xf0]  ;;  %v13532_v53 = vor.u32 %v17383_v47, %v13531_v45  ;;  %8846 = vmatpush.bf16.msra.mxu3 %v13804_v46 }
  0xdf   : > { %v13787_v50 = vld [vmem:[%s18540_s13 + $0x13a0] sm:$0xf]  ;;  %v17447_v51 = vld [vmem:[%s18540_s13 + $0x13ac] sm:$0xf0]  ;;  %v13660_v54 = vor.u32 %v17415_v49, %v13659_v48  ;;  %8808 = vmatpush.bf16.msra.mxu0 %v13404_v52 }
  0xe0   : > { %v13387_v55 = vld [vmem:[%s18540_s13 + $0x1080] sm:$0xf]  ;;  %v17347_v56 = vld [vmem:[%s18540_s13 + $0x108c] sm:$0xf0]  ;;  %v13788_v58 = vor.u32 %v17447_v51, %v13787_v50  ;;  %8821 = vmatpush.bf16.msra.mxu1 %v13532_v53 }
  0xe1   : > { %v13515_v57 = vld [vmem:[%s18540_s13 + $0x1180] sm:$0xf]  ;;  %v17379_v59 = vld [vmem:[%s18540_s13 + $0x118c] sm:$0xf0]  ;;  %v13388_v0 = vor.u32 %v17347_v56, %v13387_v55  ;;  %8834 = vmatpush.bf16.msra.mxu2 %v13660_v54 }
  0xe2   : > { %v13643_v60 = vld [vmem:[%s18540_s13 + $0x1280] sm:$0xf]  ;;  %v17411_v61 = vld [vmem:[%s18540_s13 + $0x128c] sm:$0xf0]  ;;  %v13516_v1 = vor.u32 %v17379_v59, %v13515_v57  ;;  %8847 = vmatpush.bf16.msra.mxu3 %v13788_v58 }
  0xe3   : > { %v13771_v62 = vld [vmem:[%s18540_s13 + $0x1380] sm:$0xf]  ;;  %v17443_v63 = vld [vmem:[%s18540_s13 + $0x138c] sm:$0xf0]  ;;  %v13644_v2 = vor.u32 %v17411_v61, %v13643_v60  ;;  %8809 = vmatpush.bf16.msra.mxu0 %v13388_v0 }
  0xe4   : > { %v13371_v3 = vld [vmem:[%s18540_s13 + $0x1060] sm:$0xf]  ;;  %v17343_v4 = vld [vmem:[%s18540_s13 + $0x106c] sm:$0xf0]  ;;  %v13772_v6 = vor.u32 %v17443_v63, %v13771_v62  ;;  %8822 = vmatpush.bf16.msra.mxu1 %v13516_v1  ;;  %v309_v1 = vld [vmem:[%s21778_s0 + $0x48] sm:$0xff] }
  0xe5   : > { %v13499_v5 = vld [vmem:[%s18540_s13 + $0x1160] sm:$0xf]  ;;  %v17375_v9 = vld [vmem:[%s18540_s13 + $0x116c] sm:$0xf0]  ;;  %v13372_v15 = vor.u32 %v17343_v4, %v13371_v3  ;;  %8835 = vmatpush.bf16.msra.mxu2 %v13644_v2 }
  0xe6   : > { %v13627_v10 = vld [vmem:[%s18540_s13 + $0x1260] sm:$0xf]  ;;  %v17407_v11 = vld [vmem:[%s18540_s13 + $0x126c] sm:$0xf0]  ;;  %v13500_v16 = vor.u32 %v17375_v9, %v13499_v5  ;;  %8848 = vmatpush.bf16.msra.mxu3 %v13772_v6 }
  0xe7   : > { %v13755_v12 = vld [vmem:[%s18540_s13 + $0x1360] sm:$0xf]  ;;  %v17439_v13 = vld [vmem:[%s18540_s13 + $0x136c] sm:$0xf0]  ;;  %v13628_v17 = vor.u32 %v17407_v11, %v13627_v10  ;;  %8810 = vmatpush.bf16.msra.mxu0 %v13372_v15 }
  0xe8   : > { %v13355_v18 = vld [vmem:[%s18540_s13 + $0x1040] sm:$0xf]  ;;  %v17339_v20 = vld [vmem:[%s18540_s13 + $0x104c] sm:$0xf0]  ;;  %v13756_v22 = vor.u32 %v17439_v13, %v13755_v12  ;;  %8823 = vmatpush.bf16.msra.mxu1 %v13500_v16 }
  0xe9   : > { %v13483_v21 = vld [vmem:[%s18540_s13 + $0x1140] sm:$0xf]  ;;  %v17371_v24 = vld [vmem:[%s18540_s13 + $0x114c] sm:$0xf0]  ;;  %v13356_v36 = vor.u32 %v17339_v20, %v13355_v18  ;;  %8836 = vmatpush.bf16.msra.mxu2 %v13628_v17  ;;  %v1724_v17 = vunpack.c.l.b16 %v309_v1 }
  0xea   : > { %v13611_v26 = vld [vmem:[%s18540_s13 + $0x1240] sm:$0xf]  ;;  %v17403_v27 = vld [vmem:[%s18540_s13 + $0x124c] sm:$0xf0]  ;;  %v13484_v37 = vor.u32 %v17371_v24, %v13483_v21  ;;  %8849 = vmatpush.bf16.msra.mxu3 %v13756_v22  ;;  %v1725_v22 = vunpack.c.h.b16 %v309_v1 }
  0xeb   : > { %v13739_v32 = vld [vmem:[%s18540_s13 + $0x1340] sm:$0xf]  ;;  %v17435_v34 = vld [vmem:[%s18540_s13 + $0x134c] sm:$0xf0]  ;;  %v13612_v39 = vor.u32 %v17403_v27, %v13611_v26  ;;  %8811 = vmatpush.bf16.msra.mxu0 %v13356_v36 }
  0xec   : > { %v13339_v40 = vld [vmem:[%s18540_s13 + $0x1020] sm:$0xf]  ;;  %v17335_v43 = vld [vmem:[%s18540_s13 + $0x102c] sm:$0xf0]  ;;  %v13740_v46 = vor.u32 %v17435_v34, %v13739_v32  ;;  %8824 = vmatpush.bf16.msra.mxu1 %v13484_v37 }
  0xed   : > { %v13467_v45 = vld [vmem:[%s18540_s13 + $0x1120] sm:$0xf]  ;;  %v17367_v47 = vld [vmem:[%s18540_s13 + $0x112c] sm:$0xf0]  ;;  %v13340_v53 = vor.u32 %v17335_v43, %v13339_v40  ;;  %8837 = vmatpush.bf16.msra.mxu2 %v13612_v39 }
  0xee   : > { %v13595_v48 = vld [vmem:[%s18540_s13 + $0x1220] sm:$0xf]  ;;  %v17399_v49 = vld [vmem:[%s18540_s13 + $0x122c] sm:$0xf0]  ;;  %v13468_v57 = vor.u32 %v17367_v47, %v13467_v45  ;;  %8850 = vmatpush.bf16.msra.mxu3 %v13740_v46  ;;  %v18968_v45 = vpack.c.b16 %v1724_v17, %v1724_v17 }
  0xef   : > { %v13723_v50 = vld [vmem:[%s18540_s13 + $0x1320] sm:$0xf]  ;;  %v17431_v51 = vld [vmem:[%s18540_s13 + $0x132c] sm:$0xf0]  ;;  %v13596_v58 = vor.u32 %v17399_v49, %v13595_v48  ;;  %8812 = vmatpush.bf16.msra.mxu0 %v13340_v53  ;;  %v18974_v49 = vpack.c.b16 %v1725_v22, %v1725_v22 }
  0xf0   : > { %v13323_v52 = vld [vmem:[%s18540_s13 + $0x1000] sm:$0xf]  ;;  %v17331_v54 = vld [vmem:[%s18540_s13 + $0x100c] sm:$0xf0]  ;;  %v13724_v62 = vor.u32 %v17431_v51, %v13723_v50  ;;  %8825 = vmatpush.bf16.msra.mxu1 %v13468_v57  ;;  %21813 = vst [vmem:[#allocation10_spill] sm:$0xff] %v18968_v45 }
  0xf1   : > { %v13451_v55 = vld [vmem:[%s18540_s13 + $0x1100] sm:$0xf]  ;;  %v17363_v56 = vld [vmem:[%s18540_s13 + $0x110c] sm:$0xf0]  ;;  %v13324_v5 = vor.u32 %v17331_v54, %v13323_v52  ;;  %8838 = vmatpush.bf16.msra.mxu2 %v13596_v58  ;;  %21815 = vst [vmem:[#allocation12_spill] sm:$0xff] %v18974_v49 }
  0xf2   : > { %v13579_v59 = vld [vmem:[%s18540_s13 + $0x1200] sm:$0xf]  ;;  %v17395_v60 = vld [vmem:[%s18540_s13 + $0x120c] sm:$0xf0]  ;;  %v13452_v12 = vor.u32 %v17363_v56, %v13451_v55  ;;  %8851 = vmatpush.bf16.msra.mxu3 %v13724_v62 }
  0xf3   : > { %v308_v61 = vld [vmem:[%s21778_s0 + $0x40] sm:$0xff]  ;;  %v17427_v0 = vld [vmem:[%s18540_s13 + $0x130c] sm:$0xf0]  ;;  %v13580_v13 = vor.u32 %v17395_v60, %v13579_v59  ;;  %8813 = vmatpush.bf16.msra.mxu0 %v13324_v5 }
  0xf4   : > { %v13707_v63 = vld [vmem:[%s18540_s13 + $0x1300] sm:$0xf]  ;;  %v17487_v3 = vld [vmem:[%s18540_s13 + $0x14ec] sm:$0xf0]  ;;  %v1722_v11 = vunpack.c.l.b16 %v308_v61  ;;  %v1723_v18 = vunpack.c.h.b16 %v308_v61  ;;  %8826 = vmatpush.bf16.msra.mxu1 %v13452_v12 }
  0xf5   : > { %v13947_v2 = vld [vmem:[%s18540_s13 + $0x14e0] sm:$0xf]  ;;  %v17519_v6 = vld [vmem:[%s18540_s13 + $0x15ec] sm:$0xf0]  ;;  %v13708_v20 = vor.u32 %v17427_v0, %v13707_v63  ;;  %8839 = vmatpush.bf16.msra.mxu2 %v13580_v13 }
  0xf6   : > { %v14075_v4 = vld [vmem:[%s18540_s13 + $0x15e0] sm:$0xf]  ;;  %v17551_v10 = vld [vmem:[%s18540_s13 + $0x16ec] sm:$0xf0]  ;;  %v13948_v21 = vor.u32 %v17487_v3, %v13947_v2  ;;  %v18963_v37 = vpack.c.b16 %v1722_v11, %v1722_v11  ;;  %v18970_v46 = vpack.c.b16 %v1723_v18, %v1723_v18 }
  0xf7   : > { %v14203_v9 = vld [vmem:[%s18540_s13 + $0x16e0] sm:$0xf]  ;;  %v17583_v16 = vld [vmem:[%s18540_s13 + $0x17ec] sm:$0xf0]  ;;  %v14076_v24 = vor.u32 %v17519_v6, %v14075_v4  ;;  %8852 = vmatpush.bf16.msra.mxu3 %v13708_v20 }
  0xf8   : > { %v14331_v15 = vld [vmem:[%s18540_s13 + $0x17e0] sm:$0xf]  ;;  %v14204_v26 = vor.u32 %v17551_v10, %v14203_v9  ;;  %v17483_v32 = vld [vmem:[%s18540_s13 + $0x14cc] sm:$0xf0]  ;;  %21814 = vst [vmem:[#allocation11_spill] sm:$0xff] %v18970_v46  ;;  %8858 = vmatpush.bf16.msrb.mxu0 %v13948_v21  ;;  %8840 = vmatmul.bf16.vlgmr.msra.gmra.mxu2 %v18968_v45 }
  0xf9   : > { %v13931_v27 = vld [vmem:[%s18540_s13 + $0x14c0] sm:$0xf]  ;;  %v14332_v36 = vor.u32 %v17583_v16, %v14331_v15  ;;  %v17515_v39 = vld [vmem:[%s18540_s13 + $0x15cc] sm:$0xf0]  ;;  %8871 = vmatpush.bf16.msrb.mxu1 %v14076_v24  ;;  %8814 = vmatmul.bf16.vlgmr.msra.gmra.mxu0 %v18963_v37 }
  0xfa   : > { %v14059_v34 = vld [vmem:[%s18540_s13 + $0x15c0] sm:$0xf]  ;;  %v17547_v43 = vld [vmem:[%s18540_s13 + $0x16cc] sm:$0xf0]  ;;  %v13932_v50 = vor.u32 %v17483_v32, %v13931_v27  ;;  %8884 = vmatpush.bf16.msrb.mxu2 %v14204_v26  ;;  %8827 = vmatmul.bf16.vlgmr.msra.gmra.mxu1 %v18970_v46 }
  0xfb   : > { %v14187_v40 = vld [vmem:[%s18540_s13 + $0x16c0] sm:$0xf]  ;;  %v17579_v48 = vld [vmem:[%s18540_s13 + $0x17cc] sm:$0xf0]  ;;  %v14060_v51 = vor.u32 %v17515_v39, %v14059_v34  ;;  %8897 = vmatpush.bf16.msrb.mxu3 %v14332_v36 }
  0xfc   : > { %v14315_v47 = vld [vmem:[%s18540_s13 + $0x17c0] sm:$0xf]  ;;  %v14188_v52 = vor.u32 %v17547_v43, %v14187_v40  ;;  %v17479_v54 = vld [vmem:[%s18540_s13 + $0x14ac] sm:$0xf0]  ;;  %8853 = vmatmul.bf16.vlgmr.msra.gmra.mxu3 %v18974_v49  ;;  %8859 = vmatpush.bf16.msrb.mxu0 %v13932_v50 }
  0xfd   : > { %v13915_v53 = vld [vmem:[%s18540_s13 + $0x14a0] sm:$0xf]  ;;  %v14316_v56 = vor.u32 %v17579_v48, %v14315_v47  ;;  %v17511_v57 = vld [vmem:[%s18540_s13 + $0x15ac] sm:$0xf0]  ;;  %8872 = vmatpush.bf16.msrb.mxu1 %v14060_v51 }
  0xfe   : > { %v14043_v55 = vld [vmem:[%s18540_s13 + $0x15a0] sm:$0xf]  ;;  %v17543_v59 = vld [vmem:[%s18540_s13 + $0x16ac] sm:$0xf0]  ;;  %v13916_v62 = vor.u32 %v17479_v54, %v13915_v53  ;;  %8885 = vmatpush.bf16.msrb.mxu2 %v14188_v52 }
  0xff   : > { %v14171_v58 = vld [vmem:[%s18540_s13 + $0x16a0] sm:$0xf]  ;;  %v17575_v61 = vld [vmem:[%s18540_s13 + $0x17ac] sm:$0xf0]  ;;  %v14044_v0 = vor.u32 %v17511_v57, %v14043_v55  ;;  %8898 = vmatpush.bf16.msrb.mxu3 %v14316_v56  ;;  %v8607_v39 = vpop.f32.mrf.mxu0  ;;  %v8620_v52 = vpop.f32.mrf.mxu1 }
 0x100   : > { %v14299_v60 = vld [vmem:[%s18540_s13 + $0x17a0] sm:$0xf]  ;;  %v14172_v1 = vor.u32 %v17543_v59, %v14171_v58  ;;  %v17475_v2 = vld [vmem:[%s18540_s13 + $0x148c] sm:$0xf0]  ;;  %8860 = vmatpush.bf16.msrb.mxu0 %v13916_v62 }
 0x101   : > { %v13899_v63 = vld [vmem:[%s18540_s13 + $0x1480] sm:$0xf]  ;;  %v17507_v4 = vld [vmem:[%s18540_s13 + $0x158c] sm:$0xf0]  ;;  %v14300_v5 = vor.u32 %v17575_v61, %v14299_v60  ;;  %8873 = vmatpush.bf16.msrb.mxu1 %v14044_v0 }
 0x102   : > { %v14027_v3 = vld [vmem:[%s18540_s13 + $0x1580] sm:$0xf]  ;;  %v17539_v9 = vld [vmem:[%s18540_s13 + $0x168c] sm:$0xf0]  ;;  %v13900_v13 = vor.u32 %v17475_v2, %v13899_v63  ;;  %8886 = vmatpush.bf16.msrb.mxu2 %v14172_v1  ;;  %v8633_v2 = vpop.f32.mrf.mxu2 }
 0x103   : > { %v14155_v6 = vld [vmem:[%s18540_s13 + $0x1680] sm:$0xf]  ;;  %v17571_v12 = vld [vmem:[%s18540_s13 + $0x178c] sm:$0xf0]  ;;  %v14028_v16 = vor.u32 %v17507_v4, %v14027_v3  ;;  %8899 = vmatpush.bf16.msrb.mxu3 %v14300_v5 }
 0x104   : > { %v1674_v10 = vld [vmem:[%s18548_s22] sm:$0xf]  ;;  %v14156_v17 = vor.u32 %v17539_v9, %v14155_v6  ;;  %v17471_v18 = vld [vmem:[%s18540_s13 + $0x146c] sm:$0xf0]  ;;  %8861 = vmatpush.bf16.msrb.mxu0 %v13900_v13 }
 0x105   : > { %v14283_v11 = vld [vmem:[%s18540_s13 + $0x1780] sm:$0xf]  ;;  %v1676_v21 = vperm.slane %v1674_v10, 0  ;;  %v17503_v24 = vld [vmem:[%s18540_s13 + $0x156c] sm:$0xf0]  ;;  %8874 = vmatpush.bf16.msrb.mxu1 %v14028_v16  ;;  %v8646_v10 = vpop.f32.mrf.mxu3 }
 0x106   : > { %v13883_v15 = vld [vmem:[%s18540_s13 + $0x1460] sm:$0xf]  ;;  %v14284_v22 = vor.u32 %v17571_v12, %v14283_v11  ;;  %v17535_v27 = vld [vmem:[%s18540_s13 + $0x166c] sm:$0xf0]  ;;  %8887 = vmatpush.bf16.msrb.mxu2 %v14156_v17 }
 0x107   : > { %v14011_v20 = vld [vmem:[%s18540_s13 + $0x1560] sm:$0xf]  ;;  %v17567_v34 = vld [vmem:[%s18540_s13 + $0x176c] sm:$0xf0]  ;;  %v13884_v36 = vor.u32 %v17471_v18, %v13883_v15  ;;  %v8608_v51 = vadd.f32 %v8607_v39, %v1676_v21  ;;  %v8609_v21 = vpop.f32.mrf.mxu0 }
 0x108   : > { %v14139_v26 = vld [vmem:[%s18540_s13 + $0x1660] sm:$0xf]  ;;  %v14012_v40 = vor.u32 %v17503_v24, %v14011_v20  ;;  %v17467_v48 = vld [vmem:[%s18540_s13 + $0x144c] sm:$0xf0]  ;;  %8900 = vmatpush.bf16.msrb.mxu3 %v14284_v22 }
 0x109   : > { %v14267_v32 = vld [vmem:[%s18540_s13 + $0x1760] sm:$0xf]  ;;  %v14140_v43 = vor.u32 %v17535_v27, %v14139_v26  ;;  %v17499_v54 = vld [vmem:[%s18540_s13 + $0x154c] sm:$0xf0]  ;;  %v8621_v59 = vadd.f32 %v8620_v52, %v8608_v51  ;;  %8862 = vmatpush.bf16.msrb.mxu0 %v13884_v36 }
 0x10a   : > { %v13867_v47 = vld [vmem:[%s18540_s13 + $0x1440] sm:$0xf]  ;;  %v14268_v53 = vor.u32 %v17567_v34, %v14267_v32  ;;  %v17531_v56 = vld [vmem:[%s18540_s13 + $0x164c] sm:$0xf0]  ;;  %8875 = vmatpush.bf16.msrb.mxu1 %v14012_v40  ;;  %v8622_v34 = vpop.f32.mrf.mxu1 }
 0x10b   : > { %v13995_v50 = vld [vmem:[%s18540_s13 + $0x1540] sm:$0xf]  ;;  %v17563_v58 = vld [vmem:[%s18540_s13 + $0x174c] sm:$0xf0]  ;;  %v13868_v60 = vor.u32 %v17467_v48, %v13867_v47  ;;  %8888 = vmatpush.bf16.msrb.mxu2 %v14140_v43  ;;  %v8634_v9 = vadd.f32 %v8633_v2, %v8621_v59  ;;  %v311_v43 = vld [vmem:[%s21778_s0 + $0x58] sm:$0xff] }
 0x10c   : > { %v14123_v55 = vld [vmem:[%s18540_s13 + $0x1640] sm:$0xf]  ;;  %v13996_v61 = vor.u32 %v17499_v54, %v13995_v50  ;;  %v17463_v0 = vld [vmem:[%s18540_s13 + $0x142c] sm:$0xf0]  ;;  %8901 = vmatpush.bf16.msrb.mxu3 %v14268_v53 }
 0x10d   : > { %v14251_v57 = vld [vmem:[%s18540_s13 + $0x1740] sm:$0xf]  ;;  %v14124_v62 = vor.u32 %v17531_v56, %v14123_v55  ;;  %v17495_v4 = vld [vmem:[%s18540_s13 + $0x152c] sm:$0xf0]  ;;  %8863 = vmatpush.bf16.msrb.mxu0 %v13868_v60  ;;  %v19025_v20 = vadd.f32 %v8646_v10, %v8634_v9  ;;  %v1728_v60 = vunpack.c.l.b16 %v311_v43  ;;  %v8648_v2 = vpop.f32.mrf.mxu3 }
 0x10e   : > { %v13851_v63 = vld [vmem:[%s18540_s13 + $0x1420] sm:$0xf]  ;;  %v14252_v3 = vor.u32 %v17563_v58, %v14251_v57  ;;  %v17527_v6 = vld [vmem:[%s18540_s13 + $0x162c] sm:$0xf0]  ;;  %8876 = vmatpush.bf16.msrb.mxu1 %v13996_v61 }
 0x10f   : > { %v13979_v1 = vld [vmem:[%s18540_s13 + $0x1520] sm:$0xf]  ;;  %v17559_v12 = vld [vmem:[%s18540_s13 + $0x172c] sm:$0xf0]  ;;  %v13852_v15 = vor.u32 %v17463_v0, %v13851_v63  ;;  %8889 = vmatpush.bf16.msrb.mxu2 %v14124_v62  ;;  %v8635_v62 = vpop.f32.mrf.mxu2 }
 0x110   : > { %v14107_v5 = vld [vmem:[%s18540_s13 + $0x1620] sm:$0xf]  ;;  %v17459_v16 = vld [vmem:[%s18540_s13 + $0x140c] sm:$0xf0]  ;;  %v13980_v22 = vor.u32 %v17495_v4, %v13979_v1  ;;  %8902 = vmatpush.bf16.msrb.mxu3 %v14252_v3  ;;  %v1729_v1 = vunpack.c.h.b16 %v311_v43 }
 0x111   : > { %v14235_v11 = vld [vmem:[%s18540_s13 + $0x1720] sm:$0xf]  ;;  %v17491_v18 = vld [vmem:[%s18540_s13 + $0x150c] sm:$0xf0]  ;;  %v14108_v24 = vor.u32 %v17527_v6, %v14107_v5  ;;  %8864 = vmatpush.bf16.msrb.mxu0 %v13852_v15 }
 0x112   : > { %v13835_v13 = vld [vmem:[%s18540_s13 + $0x1400] sm:$0xf]  ;;  %v17523_v27 = vld [vmem:[%s18540_s13 + $0x160c] sm:$0xf0]  ;;  %v14236_v36 = vor.u32 %v17559_v12, %v14235_v11  ;;  %8877 = vmatpush.bf16.msrb.mxu1 %v13980_v22  ;;  %v19059_v22 = vpack.c.b16 %v1729_v1, %v1729_v1 }
 0x113   : > { %v13963_v17 = vld [vmem:[%s18540_s13 + $0x1500] sm:$0xf]  ;;  %v310_v32 = vld [vmem:[%s21778_s0 + $0x50] sm:$0xff]  ;;  %v13836_v51 = vor.u32 %v17459_v16, %v13835_v13  ;;  %8890 = vmatpush.bf16.msrb.mxu2 %v14108_v24  ;;  %v19053_v16 = vpack.c.b16 %v1728_v60, %v1728_v60 }
 0x114   : > { %v14091_v26 = vld [vmem:[%s18540_s13 + $0x1600] sm:$0xf]  ;;  %v17555_v40 = vld [vmem:[%s18540_s13 + $0x170c] sm:$0xf0]  ;;  %v1726_v55 = vunpack.c.l.b16 %v310_v32  ;;  %v13964_v56 = vor.u32 %v17491_v18, %v13963_v17  ;;  %v1727_v61 = vunpack.c.h.b16 %v310_v32  ;;  %8903 = vmatpush.bf16.msrb.mxu3 %v14236_v36 }
 0x115   : > { %v14219_v39 = vld [vmem:[%s18540_s13 + $0x1700] sm:$0xf]  ;;  %v17615_v48 = vld [vmem:[%s18540_s13 + $0x18ec] sm:$0xf0]  ;;  %v14092_v57 = vor.u32 %v17523_v27, %v14091_v26  ;;  %8865 = vmatpush.bf16.msrb.mxu0 %v13836_v51 }
 0x116   : > { %v14459_v47 = vld [vmem:[%s18540_s13 + $0x18e0] sm:$0xf]  ;;  %v17647_v52 = vld [vmem:[%s18540_s13 + $0x19ec] sm:$0xf0]  ;;  %v14220_v63 = vor.u32 %v17555_v40, %v14219_v39  ;;  %v19048_v11 = vpack.c.b16 %v1726_v55, %v1726_v55  ;;  %8878 = vmatpush.bf16.msrb.mxu1 %v13964_v56  ;;  %v19055_v17 = vpack.c.b16 %v1727_v61, %v1727_v61 }
 0x117   : > { %v14587_v50 = vld [vmem:[%s18540_s13 + $0x19e0] sm:$0xf]  ;;  %v17679_v54 = vld [vmem:[%s18540_s13 + $0x1aec] sm:$0xf0]  ;;  %v14460_v0 = vor.u32 %v17615_v48, %v14459_v47  ;;  %8891 = vmatpush.bf16.msrb.mxu2 %v14092_v57 }
 0x118   : > { %v14715_v53 = vld [vmem:[%s18540_s13 + $0x1ae0] sm:$0xf]  ;;  %v17711_v59 = vld [vmem:[%s18540_s13 + $0x1bec] sm:$0xf0]  ;;  %v14588_v3 = vor.u32 %v17647_v52, %v14587_v50  ;;  %8904 = vmatpush.bf16.msrb.mxu3 %v14220_v63  ;;  %8866 = vmatmul.bf16.vlgmr.msrb.gmra.mxu0 %v19048_v11 }
 0x119   : > { %v14843_v58 = vld [vmem:[%s18540_s13 + $0x1be0] sm:$0xf]  ;;  %v14716_v4 = vor.u32 %v17679_v54, %v14715_v53  ;;  %v17611_v6 = vld [vmem:[%s18540_s13 + $0x18cc] sm:$0xf0]  ;;  %8910 = vmatpush.bf16.msra.mxu0 %v14460_v0  ;;  %8879 = vmatmul.bf16.vlgmr.msrb.gmra.mxu1 %v19055_v17  ;;  %v8659_v0 = vpop.f32.mrf.mxu0 }
 0x11a   : > { %v14443_v5 = vld [vmem:[%s18540_s13 + $0x18c0] sm:$0xf]  ;;  %v14844_v10 = vor.u32 %v17711_v59, %v14843_v58  ;;  %v17643_v12 = vld [vmem:[%s18540_s13 + $0x19cc] sm:$0xf0]  ;;  %8923 = vmatpush.bf16.msra.mxu1 %v14588_v3  ;;  %8892 = vmatmul.bf16.vlgmr.msrb.gmra.mxu2 %v19053_v16  ;;  %v8660_v3 = vadd.f32 %v8659_v0, %v19025_v20 }
 0x11b   : > { %v14571_v9 = vld [vmem:[%s18540_s13 + $0x19c0] sm:$0xf]  ;;  %v17675_v15 = vld [vmem:[%s18540_s13 + $0x1acc] sm:$0xf0]  ;;  %v14444_v24 = vor.u32 %v17611_v6, %v14443_v5  ;;  %8936 = vmatpush.bf16.msra.mxu2 %v14716_v4  ;;  %8905 = vmatmul.bf16.vlgmr.msrb.gmra.mxu3 %v19059_v22 }
 0x11c   : > { %v14699_v13 = vld [vmem:[%s18540_s13 + $0x1ac0] sm:$0xf]  ;;  %v17707_v21 = vld [vmem:[%s18540_s13 + $0x1bcc] sm:$0xf0]  ;;  %v14572_v26 = vor.u32 %v17643_v12, %v14571_v9  ;;  %8949 = vmatpush.bf16.msra.mxu3 %v14844_v10  ;;  %v8672_v9 = vpop.f32.mrf.mxu1 }
 0x11d   : > { %v14827_v18 = vld [vmem:[%s18540_s13 + $0x1bc0] sm:$0xf]  ;;  %v14700_v27 = vor.u32 %v17675_v15, %v14699_v13  ;;  %v17607_v34 = vld [vmem:[%s18540_s13 + $0x18ac] sm:$0xf0]  ;;  %8911 = vmatpush.bf16.msra.mxu0 %v14444_v24  ;;  %v8673_v24 = vadd.f32 %v8672_v9, %v8660_v3 }
 0x11e   : > { %v14427_v32 = vld [vmem:[%s18540_s13 + $0x18a0] sm:$0xf]  ;;  %v14828_v39 = vor.u32 %v17707_v21, %v14827_v18  ;;  %v17639_v40 = vld [vmem:[%s18540_s13 + $0x19ac] sm:$0xf0]  ;;  %8924 = vmatpush.bf16.msra.mxu1 %v14572_v26 }
 0x11f   : > { %v14555_v36 = vld [vmem:[%s18540_s13 + $0x19a0] sm:$0xf]  ;;  %v17671_v47 = vld [vmem:[%s18540_s13 + $0x1aac] sm:$0xf0]  ;;  %v14428_v51 = vor.u32 %v17607_v34, %v14427_v32  ;;  %8937 = vmatpush.bf16.msra.mxu2 %v14700_v27  ;;  %v8685_v32 = vpop.f32.mrf.mxu2 }
 0x120   : > { %v14683_v43 = vld [vmem:[%s18540_s13 + $0x1aa0] sm:$0xf]  ;;  %v17703_v50 = vld [vmem:[%s18540_s13 + $0x1bac] sm:$0xf0]  ;;  %v14556_v52 = vor.u32 %v17639_v40, %v14555_v36  ;;  %8950 = vmatpush.bf16.msra.mxu3 %v14828_v39 }
 0x121   : > { %v14811_v48 = vld [vmem:[%s18540_s13 + $0x1ba0] sm:$0xf]  ;;  %v14684_v53 = vor.u32 %v17671_v47, %v14683_v43  ;;  %v17603_v55 = vld [vmem:[%s18540_s13 + $0x188c] sm:$0xf0]  ;;  %8912 = vmatpush.bf16.msra.mxu0 %v14428_v51  ;;  %v8686_v43 = vadd.f32 %v8685_v32, %v8673_v24  ;;  %v8698_v51 = vpop.f32.mrf.mxu3 }
 0x122   : > { %v14411_v54 = vld [vmem:[%s18540_s13 + $0x1880] sm:$0xf]  ;;  %v14812_v57 = vor.u32 %v17703_v50, %v14811_v48  ;;  %v17635_v58 = vld [vmem:[%s18540_s13 + $0x198c] sm:$0xf0]  ;;  %8925 = vmatpush.bf16.msra.mxu1 %v14556_v52 }
 0x123   : > { %v14539_v56 = vld [vmem:[%s18540_s13 + $0x1980] sm:$0xf]  ;;  %v17667_v60 = vld [vmem:[%s18540_s13 + $0x1a8c] sm:$0xf0]  ;;  %v14412_v63 = vor.u32 %v17603_v55, %v14411_v54  ;;  %8938 = vmatpush.bf16.msra.mxu2 %v14684_v53  ;;  %v19098_v55 = vadd.f32 %v8698_v51, %v8686_v43 }
 0x124   : > { %v14667_v59 = vld [vmem:[%s18540_s13 + $0x1a80] sm:$0xf]  ;;  %v17699_v62 = vld [vmem:[%s18540_s13 + $0x1b8c] sm:$0xf0]  ;;  %v14540_v1 = vor.u32 %v17635_v58, %v14539_v56  ;;  %8951 = vmatpush.bf16.msra.mxu3 %v14812_v57  ;;  %v8661_v56 = vpop.f32.mrf.mxu0 }
 0x125   : > { %v14795_v61 = vld [vmem:[%s18540_s13 + $0x1b80] sm:$0xf]  ;;  %v14668_v2 = vor.u32 %v17667_v60, %v14667_v59  ;;  %v17599_v5 = vld [vmem:[%s18540_s13 + $0x186c] sm:$0xf0]  ;;  %8913 = vmatpush.bf16.msra.mxu0 %v14412_v63 }
 0x126   : > { %v14395_v4 = vld [vmem:[%s18540_s13 + $0x1860] sm:$0xf]  ;;  %v14796_v10 = vor.u32 %v17699_v62, %v14795_v61  ;;  %v17631_v12 = vld [vmem:[%s18540_s13 + $0x196c] sm:$0xf0]  ;;  %8926 = vmatpush.bf16.msra.mxu1 %v14540_v1  ;;  %v8674_v62 = vpop.f32.mrf.mxu1 }
 0x127   : > { %v14523_v6 = vld [vmem:[%s18540_s13 + $0x1960] sm:$0xf]  ;;  %v17663_v15 = vld [vmem:[%s18540_s13 + $0x1a6c] sm:$0xf0]  ;;  %v14396_v20 = vor.u32 %v17599_v5, %v14395_v4  ;;  %8939 = vmatpush.bf16.msra.mxu2 %v14668_v2 }
 0x128   : > { %v14651_v13 = vld [vmem:[%s18540_s13 + $0x1a60] sm:$0xf]  ;;  %v17695_v21 = vld [vmem:[%s18540_s13 + $0x1b6c] sm:$0xf0]  ;;  %v14524_v26 = vor.u32 %v17631_v12, %v14523_v6  ;;  %8952 = vmatpush.bf16.msra.mxu3 %v14796_v10 }
 0x129   : > { %v14779_v18 = vld [vmem:[%s18540_s13 + $0x1b60] sm:$0xf]  ;;  %v14652_v27 = vor.u32 %v17663_v15, %v14651_v13  ;;  %v17595_v36 = vld [vmem:[%s18540_s13 + $0x184c] sm:$0xf0]  ;;  %8914 = vmatpush.bf16.msra.mxu0 %v14396_v20  ;;  %v8687_v20 = vpop.f32.mrf.mxu2 }
 0x12a   : > { %v14379_v34 = vld [vmem:[%s18540_s13 + $0x1840] sm:$0xf]  ;;  %v14780_v40 = vor.u32 %v17695_v21, %v14779_v18  ;;  %v17627_v47 = vld [vmem:[%s18540_s13 + $0x194c] sm:$0xf0]  ;;  %8927 = vmatpush.bf16.msra.mxu1 %v14524_v26 }
 0x12b   : > { %v14507_v39 = vld [vmem:[%s18540_s13 + $0x1940] sm:$0xf]  ;;  %v17659_v50 = vld [vmem:[%s18540_s13 + $0x1a4c] sm:$0xf0]  ;;  %v14380_v54 = vor.u32 %v17595_v36, %v14379_v34  ;;  %8940 = vmatpush.bf16.msra.mxu2 %v14652_v27  ;;  %v313_v34 = vld [vmem:[%s21778_s0 + $0x68] sm:$0xff]  ;;  %v8700_v36 = vpop.f32.mrf.mxu3 }
 0x12c   : > { %v14635_v48 = vld [vmem:[%s18540_s13 + $0x1a40] sm:$0xf]  ;;  %v17691_v53 = vld [vmem:[%s18540_s13 + $0x1b4c] sm:$0xf0]  ;;  %v14508_v57 = vor.u32 %v17627_v47, %v14507_v39  ;;  %8953 = vmatpush.bf16.msra.mxu3 %v14780_v40  ;;  %v1733_v62 = vunpack.c.h.b16 %v313_v34 }
 0x12d   : > { %v14763_v52 = vld [vmem:[%s18540_s13 + $0x1b40] sm:$0xf]  ;;  %v14636_v58 = vor.u32 %v17659_v50, %v14635_v48  ;;  %v17591_v60 = vld [vmem:[%s18540_s13 + $0x182c] sm:$0xf0]  ;;  %8915 = vmatpush.bf16.msra.mxu0 %v14380_v54 }
 0x12e   : > { %v14363_v59 = vld [vmem:[%s18540_s13 + $0x1820] sm:$0xf]  ;;  %v14764_v63 = vor.u32 %v17691_v53, %v14763_v52  ;;  %v17623_v0 = vld [vmem:[%s18540_s13 + $0x192c] sm:$0xf0]  ;;  %8928 = vmatpush.bf16.msra.mxu1 %v14508_v57 }
 0x12f   : > { %v14491_v61 = vld [vmem:[%s18540_s13 + $0x1920] sm:$0xf]  ;;  %v17655_v2 = vld [vmem:[%s18540_s13 + $0x1a2c] sm:$0xf0]  ;;  %v14364_v6 = vor.u32 %v17591_v60, %v14363_v59  ;;  %8941 = vmatpush.bf16.msra.mxu2 %v14636_v58  ;;  %v1732_v58 = vunpack.c.l.b16 %v313_v34 }
 0x130   : > { %v14619_v1 = vld [vmem:[%s18540_s13 + $0x1a20] sm:$0xf]  ;;  %v17687_v4 = vld [vmem:[%s18540_s13 + $0x1b2c] sm:$0xf0]  ;;  %v14492_v13 = vor.u32 %v17623_v0, %v14491_v61  ;;  %8954 = vmatpush.bf16.msra.mxu3 %v14764_v63 }
 0x131   : > { %v14747_v3 = vld [vmem:[%s18540_s13 + $0x1b20] sm:$0xf]  ;;  %v17587_v9 = vld [vmem:[%s18540_s13 + $0x180c] sm:$0xf0]  ;;  %v14620_v15 = vor.u32 %v17655_v2, %v14619_v1  ;;  %8916 = vmatpush.bf16.msra.mxu0 %v14364_v6 }
 0x132   : > { %v14347_v5 = vld [vmem:[%s18540_s13 + $0x1800] sm:$0xf]  ;;  %v17619_v12 = vld [vmem:[%s18540_s13 + $0x190c] sm:$0xf0]  ;;  %v14748_v26 = vor.u32 %v17687_v4, %v14747_v3  ;;  %8929 = vmatpush.bf16.msra.mxu1 %v14492_v13 }
 0x133   : > { %v14475_v10 = vld [vmem:[%s18540_s13 + $0x1900] sm:$0xf]  ;;  %v17651_v21 = vld [vmem:[%s18540_s13 + $0x1a0c] sm:$0xf0]  ;;  %v14348_v47 = vor.u32 %v17587_v9, %v14347_v5  ;;  %8942 = vmatpush.bf16.msra.mxu2 %v14620_v15 }
 0x134   : > { %v14603_v18 = vld [vmem:[%s18540_s13 + $0x1a00] sm:$0xf]  ;;  %v17683_v32 = vld [vmem:[%s18540_s13 + $0x1b0c] sm:$0xf0]  ;;  %v14476_v53 = vor.u32 %v17619_v12, %v14475_v10  ;;  %8955 = vmatpush.bf16.msra.mxu3 %v14748_v26  ;;  %v19138_v12 = vpack.c.b16 %v1732_v58, %v1732_v58 }
 0x135   : > { %v312_v24 = vld [vmem:[%s21778_s0 + $0x60] sm:$0xff]  ;;  %v17743_v40 = vld [vmem:[%s18540_s13 + $0x1cec] sm:$0xf0]  ;;  %v14604_v54 = vor.u32 %v17651_v21, %v14603_v18  ;;  %8917 = vmatpush.bf16.msra.mxu0 %v14348_v47  ;;  %v19144_v21 = vpack.c.b16 %v1733_v62, %v1733_v62 }
 0x136   : > { %v14731_v27 = vld [vmem:[%s18540_s13 + $0x1b00] sm:$0xf]  ;;  %v17775_v48 = vld [vmem:[%s18540_s13 + $0x1dec] sm:$0xf0]  ;;  %v1730_v52 = vunpack.c.l.b16 %v312_v24  ;;  %v1731_v59 = vunpack.c.h.b16 %v312_v24  ;;  %8930 = vmatpush.bf16.msra.mxu1 %v14476_v53 }
 0x137   : > { %v14971_v39 = vld [vmem:[%s18540_s13 + $0x1ce0] sm:$0xf]  ;;  %v17807_v51 = vld [vmem:[%s18540_s13 + $0x1eec] sm:$0xf0]  ;;  %v14732_v60 = vor.u32 %v17683_v32, %v14731_v27  ;;  %8943 = vmatpush.bf16.msra.mxu2 %v14604_v54 }
 0x138   : > { %v15099_v43 = vld [vmem:[%s18540_s13 + $0x1de0] sm:$0xf]  ;;  %v17839_v57 = vld [vmem:[%s18540_s13 + $0x1fec] sm:$0xf0]  ;;  %v14972_v61 = vor.u32 %v17743_v40, %v14971_v39  ;;  %v19133_v5 = vpack.c.b16 %v1730_v52, %v1730_v52  ;;  %v19140_v13 = vpack.c.b16 %v1731_v59, %v1731_v59 }
 0x139   : > { %v15227_v50 = vld [vmem:[%s18540_s13 + $0x1ee0] sm:$0xf]  ;;  %v15100_v63 = vor.u32 %v17775_v48, %v15099_v43  ;;  %v17739_v2 = vld [vmem:[%s18540_s13 + $0x1ccc] sm:$0xf0]  ;;  %8956 = vmatpush.bf16.msra.mxu3 %v14732_v60 }
 0x13a   : > { %v15355_v56 = vld [vmem:[%s18540_s13 + $0x1fe0] sm:$0xf]  ;;  %v15228_v0 = vor.u32 %v17807_v51, %v15227_v50  ;;  %v17771_v6 = vld [vmem:[%s18540_s13 + $0x1dcc] sm:$0xf0]  ;;  %8962 = vmatpush.bf16.msrb.mxu0 %v14972_v61  ;;  %8944 = vmatmul.bf16.vlgmr.msra.gmra.mxu2 %v19138_v12  ;;  %v8711_v61 = vpop.f32.mrf.mxu0 }
 0x13b   : > { %v14955_v1 = vld [vmem:[%s18540_s13 + $0x1cc0] sm:$0xf]  ;;  %v15356_v4 = vor.u32 %v17839_v57, %v15355_v56  ;;  %v17803_v10 = vld [vmem:[%s18540_s13 + $0x1ecc] sm:$0xf0]  ;;  %8975 = vmatpush.bf16.msrb.mxu1 %v15100_v63  ;;  %8918 = vmatmul.bf16.vlgmr.msra.gmra.mxu0 %v19133_v5 }
 0x13c   : > { %v15083_v3 = vld [vmem:[%s18540_s13 + $0x1dc0] sm:$0xf]  ;;  %v17835_v18 = vld [vmem:[%s18540_s13 + $0x1fcc] sm:$0xf0]  ;;  %v14956_v24 = vor.u32 %v17739_v2, %v14955_v1  ;;  %8988 = vmatpush.bf16.msrb.mxu2 %v15228_v0  ;;  %8931 = vmatmul.bf16.vlgmr.msra.gmra.mxu1 %v19140_v13  ;;  %v8712_v0 = vadd.f32 %v8711_v61, %v19098_v55  ;;  %v8724_v2 = vpop.f32.mrf.mxu1 }
 0x13d   : > { %v15211_v9 = vld [vmem:[%s18540_s13 + $0x1ec0] sm:$0xf]  ;;  %v15084_v20 = vor.u32 %v17771_v6, %v15083_v3  ;;  %v17735_v32 = vld [vmem:[%s18540_s13 + $0x1cac] sm:$0xf0]  ;;  %9001 = vmatpush.bf16.msrb.mxu3 %v15356_v4 }
 0x13e   : > { %v15339_v15 = vld [vmem:[%s18540_s13 + $0x1fc0] sm:$0xf]  ;;  %v15212_v26 = vor.u32 %v17803_v10, %v15211_v9  ;;  %v17767_v39 = vld [vmem:[%s18540_s13 + $0x1dac] sm:$0xf0]  ;;  %8957 = vmatmul.bf16.vlgmr.msra.gmra.mxu3 %v19144_v21  ;;  %8963 = vmatpush.bf16.msrb.mxu0 %v14956_v24 }
 0x13f   : > { %v14939_v27 = vld [vmem:[%s18540_s13 + $0x1ca0] sm:$0xf]  ;;  %v15340_v36 = vor.u32 %v17835_v18, %v15339_v15  ;;  %v17799_v43 = vld [vmem:[%s18540_s13 + $0x1eac] sm:$0xf0]  ;;  %8976 = vmatpush.bf16.msrb.mxu1 %v15084_v20  ;;  %v8725_v18 = vadd.f32 %v8724_v2, %v8712_v0 }
 0x140   : > { %v15067_v34 = vld [vmem:[%s18540_s13 + $0x1da0] sm:$0xf]  ;;  %v17831_v48 = vld [vmem:[%s18540_s13 + $0x1fac] sm:$0xf0]  ;;  %v14940_v50 = vor.u32 %v17735_v32, %v14939_v27  ;;  %8989 = vmatpush.bf16.msrb.mxu2 %v15212_v26 }
 0x141   : > { %v15195_v40 = vld [vmem:[%s18540_s13 + $0x1ea0] sm:$0xf]  ;;  %v15068_v51 = vor.u32 %v17767_v39, %v15067_v34  ;;  %v17731_v54 = vld [vmem:[%s18540_s13 + $0x1c8c] sm:$0xf0]  ;;  %9002 = vmatpush.bf16.msrb.mxu3 %v15340_v36 }
 0x142   : > { %v15323_v47 = vld [vmem:[%s18540_s13 + $0x1fa0] sm:$0xf]  ;;  %v15196_v52 = vor.u32 %v17799_v43, %v15195_v40  ;;  %v17763_v58 = vld [vmem:[%s18540_s13 + $0x1d8c] sm:$0xf0]  ;;  %8964 = vmatpush.bf16.msrb.mxu0 %v14940_v50 }
 0x143   : > { %v14923_v53 = vld [vmem:[%s18540_s13 + $0x1c80] sm:$0xf]  ;;  %v15324_v57 = vor.u32 %v17831_v48, %v15323_v47  ;;  %v17795_v60 = vld [vmem:[%s18540_s13 + $0x1e8c] sm:$0xf0]  ;;  %8977 = vmatpush.bf16.msrb.mxu1 %v15068_v51  ;;  %v8737_v48 = vpop.f32.mrf.mxu2 }
 0x144   : > { %v15051_v56 = vld [vmem:[%s18540_s13 + $0x1d80] sm:$0xf]  ;;  %v17827_v63 = vld [vmem:[%s18540_s13 + $0x1f8c] sm:$0xf0]  ;;  %v14924_v1 = vor.u32 %v17731_v54, %v14923_v53  ;;  %8990 = vmatpush.bf16.msrb.mxu2 %v15196_v52  ;;  %v8738_v53 = vadd.f32 %v8737_v48, %v8725_v18  ;;  %v8750_v54 = vpop.f32.mrf.mxu3  ;;  %v315_v48 = vld [vmem:[%s21778_s0 + $0x78] sm:$0xff] }
 0x145   : > { %v15179_v59 = vld [vmem:[%s18540_s13 + $0x1e80] sm:$0xf]  ;;  %v15052_v3 = vor.u32 %v17763_v58, %v15051_v56  ;;  %v17727_v9 = vld [vmem:[%s18540_s13 + $0x1c6c] sm:$0xf0]  ;;  %9003 = vmatpush.bf16.msrb.mxu3 %v15324_v57  ;;  %v8713_v58 = vpop.f32.mrf.mxu0 }
 0x146   : > { %v15307_v62 = vld [vmem:[%s18540_s13 + $0x1f80] sm:$0xf]  ;;  %v15180_v4 = vor.u32 %v17795_v60, %v15179_v59  ;;  %v17759_v24 = vld [vmem:[%s18540_s13 + $0x1d6c] sm:$0xf0]  ;;  %8965 = vmatpush.bf16.msrb.mxu0 %v14924_v1  ;;  %v8726_v60 = vpop.f32.mrf.mxu1  ;;  %v19183_v61 = vadd.f32 %v8750_v54, %v8738_v53 }
 0x147   : > { %v14907_v6 = vld [vmem:[%s18540_s13 + $0x1c60] sm:$0xf]  ;;  %v15308_v15 = vor.u32 %v17827_v63, %v15307_v62  ;;  %v17791_v55 = vld [vmem:[%s18540_s13 + $0x1e6c] sm:$0xf0]  ;;  %8978 = vmatpush.bf16.msrb.mxu1 %v15052_v3 }
 0x148   : > { %v15035_v10 = vld [vmem:[%s18540_s13 + $0x1d60] sm:$0xf]  ;;  %v17823_v27 = vld [vmem:[%s18540_s13 + $0x1f6c] sm:$0xf0]  ;;  %v14908_v32 = vor.u32 %v17727_v9, %v14907_v6  ;;  %8991 = vmatpush.bf16.msrb.mxu2 %v15180_v4 }
 0x149   : > { %v15163_v20 = vld [vmem:[%s18540_s13 + $0x1e60] sm:$0xf]  ;;  %v15036_v34 = vor.u32 %v17759_v24, %v15035_v10  ;;  %v17723_v40 = vld [vmem:[%s18540_s13 + $0x1c4c] sm:$0xf0]  ;;  %9004 = vmatpush.bf16.msrb.mxu3 %v15308_v15 }
 0x14a   : > { %v15291_v26 = vld [vmem:[%s18540_s13 + $0x1f60] sm:$0xf]  ;;  %v15164_v36 = vor.u32 %v17791_v55, %v15163_v20  ;;  %v17755_v50 = vld [vmem:[%s18540_s13 + $0x1d4c] sm:$0xf0]  ;;  %8966 = vmatpush.bf16.msrb.mxu0 %v14908_v32 }
 0x14b   : > { %v14891_v39 = vld [vmem:[%s18540_s13 + $0x1c40] sm:$0xf]  ;;  %v15292_v47 = vor.u32 %v17823_v27, %v15291_v26  ;;  %v17787_v52 = vld [vmem:[%s18540_s13 + $0x1e4c] sm:$0xf0]  ;;  %8979 = vmatpush.bf16.msrb.mxu1 %v15036_v34 }
 0x14c   : > { %v15019_v43 = vld [vmem:[%s18540_s13 + $0x1d40] sm:$0xf]  ;;  %v17819_v57 = vld [vmem:[%s18540_s13 + $0x1f4c] sm:$0xf0]  ;;  %v14892_v59 = vor.u32 %v17723_v40, %v14891_v39  ;;  %8992 = vmatpush.bf16.msrb.mxu2 %v15164_v36  ;;  %v8752_v54 = vpop.f32.mrf.mxu3 }
 0x14d   : > { %v15147_v51 = vld [vmem:[%s18540_s13 + $0x1e40] sm:$0xf]  ;;  %v15020_v62 = vor.u32 %v17755_v50, %v15019_v43  ;;  %v17719_v1 = vld [vmem:[%s18540_s13 + $0x1c2c] sm:$0xf0]  ;;  %9005 = vmatpush.bf16.msrb.mxu3 %v15292_v47  ;;  %v8739_v50 = vpop.f32.mrf.mxu2 }
 0x14e   : > { %v15275_v56 = vld [vmem:[%s18540_s13 + $0x1f40] sm:$0xf]  ;;  %v15148_v63 = vor.u32 %v17787_v52, %v15147_v51  ;;  %v17751_v4 = vld [vmem:[%s18540_s13 + $0x1d2c] sm:$0xf0]  ;;  %8967 = vmatpush.bf16.msrb.mxu0 %v14892_v59 }
 0x14f   : > { %v14875_v0 = vld [vmem:[%s18540_s13 + $0x1c20] sm:$0xf]  ;;  %v15276_v3 = vor.u32 %v17819_v57, %v15275_v56  ;;  %v17783_v9 = vld [vmem:[%s18540_s13 + $0x1e2c] sm:$0xf0]  ;;  %8980 = vmatpush.bf16.msrb.mxu1 %v15020_v62 }
 0x150   : > { %v15003_v2 = vld [vmem:[%s18540_s13 + $0x1d20] sm:$0xf]  ;;  %v17815_v15 = vld [vmem:[%s18540_s13 + $0x1f2c] sm:$0xf0]  ;;  %v14876_v24 = vor.u32 %v17719_v1, %v14875_v0  ;;  %8993 = vmatpush.bf16.msrb.mxu2 %v15148_v63 }
 0x151   : > { %v15131_v6 = vld [vmem:[%s18540_s13 + $0x1e20] sm:$0xf]  ;;  %v17715_v20 = vld [vmem:[%s18540_s13 + $0x1c0c] sm:$0xf0]  ;;  %v15004_v27 = vor.u32 %v17751_v4, %v15003_v2  ;;  %9006 = vmatpush.bf16.msrb.mxu3 %v15276_v3  ;;  %v1736_v2 = vunpack.c.l.b16 %v315_v48 }
 0x152   : > { %v15259_v10 = vld [vmem:[%s18540_s13 + $0x1f20] sm:$0xf]  ;;  %v17747_v26 = vld [vmem:[%s18540_s13 + $0x1d0c] sm:$0xf0]  ;;  %v15132_v32 = vor.u32 %v17783_v9, %v15131_v6  ;;  %8968 = vmatpush.bf16.msrb.mxu0 %v14876_v24  ;;  %v1737_v9 = vunpack.c.h.b16 %v315_v48 }
 0x153   : > { %v14859_v18 = vld [vmem:[%s18540_s13 + $0x1c00] sm:$0xf]  ;;  %v17779_v36 = vld [vmem:[%s18540_s13 + $0x1e0c] sm:$0xf0]  ;;  %v15260_v40 = vor.u32 %v17815_v15, %v15259_v10  ;;  %8981 = vmatpush.bf16.msrb.mxu1 %v15004_v27 }
 0x154   : > { %v14987_v55 = vld [vmem:[%s18540_s13 + $0x1d00] sm:$0xf]  ;;  %v314_v39 = vld [vmem:[%s21778_s0 + $0x70] sm:$0xff]  ;;  %v14860_v56 = vor.u32 %v17715_v20, %v14859_v18  ;;  %8994 = vmatpush.bf16.msrb.mxu2 %v15132_v32 }
 0x155   : > { %v15115_v34 = vld [vmem:[%s18540_s13 + $0x1e00] sm:$0xf]  ;;  %v17811_v47 = vld [vmem:[%s18540_s13 + $0x1f0c] sm:$0xf0]  ;;  %v1734_v60 = vunpack.c.l.b16 %v314_v39  ;;  %v14988_v62 = vor.u32 %v17747_v26, %v14987_v55  ;;  %v1735_v3 = vunpack.c.h.b16 %v314_v39  ;;  %9007 = vmatpush.bf16.msrb.mxu3 %v15260_v40 }
 0x156   : > { %v15243_v43 = vld [vmem:[%s18540_s13 + $0x1f00] sm:$0xf]  ;;  %v17871_v52 = vld [vmem:[%s18540_s13 + $0x20ec] sm:$0xf0]  ;;  %v15116_v63 = vor.u32 %v17779_v36, %v15115_v34  ;;  %8969 = vmatpush.bf16.msrb.mxu0 %v14860_v56  ;;  %v19223_v36 = vpack.c.b16 %v1736_v2, %v1736_v2 }
 0x157   : > { %v15483_v51 = vld [vmem:[%s18540_s13 + $0x20e0] sm:$0xf]  ;;  %v17903_v57 = vld [vmem:[%s18540_s13 + $0x21ec] sm:$0xf0]  ;;  %v15244_v4 = vor.u32 %v17811_v47, %v15243_v43  ;;  %v19218_v26 = vpack.c.b16 %v1734_v60, %v1734_v60  ;;  %8982 = vmatpush.bf16.msrb.mxu1 %v14988_v62  ;;  %v19225_v39 = vpack.c.b16 %v1735_v3, %v1735_v3  ;;  %v19229_v47 = vpack.c.b16 %v1737_v9, %v1737_v9 }
 0x158   : > { %v15611_v53 = vld [vmem:[%s18540_s13 + $0x21e0] sm:$0xf]  ;;  %v17935_v59 = vld [vmem:[%s18540_s13 + $0x22ec] sm:$0xf0]  ;;  %v15484_v6 = vor.u32 %v17871_v52, %v15483_v51  ;;  %8995 = vmatpush.bf16.msrb.mxu2 %v15116_v63 }
 0x159   : > { %v15739_v58 = vld [vmem:[%s18540_s13 + $0x22e0] sm:$0xf]  ;;  %v17967_v1 = vld [vmem:[%s18540_s13 + $0x23ec] sm:$0xf0]  ;;  %v15612_v10 = vor.u32 %v17903_v57, %v15611_v53  ;;  %9008 = vmatpush.bf16.msrb.mxu3 %v15244_v4  ;;  %21816 = vst [vmem:[#allocation13_spill] sm:$0xff] %v19229_v47  ;;  %8970 = vmatmul.bf16.vlgmr.msrb.gmra.mxu0 %v19218_v26 }
 0x15a   : > { %v15867_v0 = vld [vmem:[%s18540_s13 + $0x23e0] sm:$0xf]  ;;  %v15740_v15 = vor.u32 %v17935_v59, %v15739_v58  ;;  %v17867_v24 = vld [vmem:[%s18540_s13 + $0x20cc] sm:$0xf0]  ;;  %9014 = vmatpush.bf16.msra.mxu0 %v15484_v6  ;;  %8983 = vmatmul.bf16.vlgmr.msrb.gmra.mxu1 %v19225_v39 }
 0x15b   : > { %v15467_v18 = vld [vmem:[%s18540_s13 + $0x20c0] sm:$0xf]  ;;  %v15868_v55 = vor.u32 %v17967_v1, %v15867_v0  ;;  %v17899_v27 = vld [vmem:[%s18540_s13 + $0x21cc] sm:$0xf0]  ;;  %9027 = vmatpush.bf16.msra.mxu1 %v15612_v10  ;;  %8996 = vmatmul.bf16.vlgmr.msrb.gmra.mxu2 %v19223_v36 }
 0x15c   : > { %v15595_v20 = vld [vmem:[%s18540_s13 + $0x21c0] sm:$0xf]  ;;  %v17931_v34 = vld [vmem:[%s18540_s13 + $0x22cc] sm:$0xf0]  ;;  %v15468_v48 = vor.u32 %v17867_v24, %v15467_v18  ;;  %9040 = vmatpush.bf16.msra.mxu2 %v15740_v15  ;;  %9009 = vmatmul.bf16.vlgmr.msrb.gmra.mxu3 %v19229_v47  ;;  %v8763_v18 = vpop.f32.mrf.mxu0 }
 0x15d   : > { %v15723_v32 = vld [vmem:[%s18540_s13 + $0x22c0] sm:$0xf]  ;;  %v17963_v43 = vld [vmem:[%s18540_s13 + $0x23cc] sm:$0xf0]  ;;  %v15596_v50 = vor.u32 %v17899_v27, %v15595_v20  ;;  %9053 = vmatpush.bf16.msra.mxu3 %v15868_v55  ;;  %v8764_v55 = vadd.f32 %v8763_v18, %v19183_v61 }
 0x15e   : > { %v15851_v40 = vld [vmem:[%s18540_s13 + $0x23c0] sm:$0xf]  ;;  %v15724_v51 = vor.u32 %v17931_v34, %v15723_v32  ;;  %v17863_v53 = vld [vmem:[%s18540_s13 + $0x20ac] sm:$0xf0]  ;;  %9015 = vmatpush.bf16.msra.mxu0 %v15468_v48  ;;  %v8776_v32 = vpop.f32.mrf.mxu1 }
 0x15f   : > { %v15451_v52 = vld [vmem:[%s18540_s13 + $0x20a0] sm:$0xf]  ;;  %v15852_v56 = vor.u32 %v17963_v43, %v15851_v40  ;;  %v17895_v57 = vld [vmem:[%s18540_s13 + $0x21ac] sm:$0xf0]  ;;  %9028 = vmatpush.bf16.msra.mxu1 %v15596_v50 }
 0x160   : > { %v15579_v54 = vld [vmem:[%s18540_s13 + $0x21a0] sm:$0xf]  ;;  %v17927_v59 = vld [vmem:[%s18540_s13 + $0x22ac] sm:$0xf0]  ;;  %v15452_v63 = vor.u32 %v17863_v53, %v15451_v52  ;;  %9041 = vmatpush.bf16.msra.mxu2 %v15724_v51  ;;  %v8777_v52 = vadd.f32 %v8776_v32, %v8764_v55 }
 0x161   : > { %v15707_v58 = vld [vmem:[%s18540_s13 + $0x22a0] sm:$0xf]  ;;  %v17959_v62 = vld [vmem:[%s18540_s13 + $0x23ac] sm:$0xf0]  ;;  %v15580_v0 = vor.u32 %v17895_v57, %v15579_v54  ;;  %9054 = vmatpush.bf16.msra.mxu3 %v15852_v56 }
 0x162   : > { %v15835_v60 = vld [vmem:[%s18540_s13 + $0x23a0] sm:$0xf]  ;;  %v15708_v1 = vor.u32 %v17927_v59, %v15707_v58  ;;  %v17859_v3 = vld [vmem:[%s18540_s13 + $0x208c] sm:$0xf0]  ;;  %9016 = vmatpush.bf16.msra.mxu0 %v15452_v63 }
 0x163   : > { %v15435_v2 = vld [vmem:[%s18540_s13 + $0x2080] sm:$0xf]  ;;  %v15836_v6 = vor.u32 %v17959_v62, %v15835_v60  ;;  %v17891_v9 = vld [vmem:[%s18540_s13 + $0x218c] sm:$0xf0]  ;;  %9029 = vmatpush.bf16.msra.mxu1 %v15580_v0 }
 0x164   : > { %v15563_v4 = vld [vmem:[%s18540_s13 + $0x2180] sm:$0xf]  ;;  %v17923_v15 = vld [vmem:[%s18540_s13 + $0x228c] sm:$0xf0]  ;;  %v15436_v27 = vor.u32 %v17859_v3, %v15435_v2  ;;  %9042 = vmatpush.bf16.msra.mxu2 %v15708_v1  ;;  %v8789_v2 = vpop.f32.mrf.mxu2 }
 0x165   : > { %v15691_v10 = vld [vmem:[%s18540_s13 + $0x2280] sm:$0xf]  ;;  %v17955_v20 = vld [vmem:[%s18540_s13 + $0x238c] sm:$0xf0]  ;;  %v15564_v34 = vor.u32 %v17891_v9, %v15563_v4  ;;  %9055 = vmatpush.bf16.msra.mxu3 %v15836_v6  ;;  %v8790_v9 = vadd.f32 %v8789_v2, %v8777_v52 }
 0x166   : > { %v15819_v24 = vld [vmem:[%s18540_s13 + $0x2380] sm:$0xf]  ;;  %v15692_v40 = vor.u32 %v17923_v15, %v15691_v10  ;;  %v17855_v48 = vld [vmem:[%s18540_s13 + $0x206c] sm:$0xf0]  ;;  %9017 = vmatpush.bf16.msra.mxu0 %v15436_v27  ;;  %v8802_v10 = vpop.f32.mrf.mxu3  ;;  %v8778_v55 = vpop.f32.mrf.mxu1 }
 0x167   : > { %v15419_v43 = vld [vmem:[%s18540_s13 + $0x2060] sm:$0xf]  ;;  %v15820_v51 = vor.u32 %v17955_v20, %v15819_v24  ;;  %v17887_v53 = vld [vmem:[%s18540_s13 + $0x216c] sm:$0xf0]  ;;  %9030 = vmatpush.bf16.msra.mxu1 %v15564_v34  ;;  %v8765_v24 = vpop.f32.mrf.mxu0  ;;  %v19268_v27 = vadd.f32 %v8802_v10, %v8790_v9  ;;  %v317_v9 = vld [vmem:[%s21778_s0 + $0x88] sm:$0xff] }
 0x168   : > { %v15547_v50 = vld [vmem:[%s18540_s13 + $0x2160] sm:$0xf]  ;;  %v17919_v61 = vld [vmem:[%s18540_s13 + $0x226c] sm:$0xf0]  ;;  %v15420_v58 = vor.u32 %v17855_v48, %v15419_v43  ;;  %9043 = vmatpush.bf16.msra.mxu2 %v15692_v40 }
 0x169   : > { %v15675_v54 = vld [vmem:[%s18540_s13 + $0x2260] sm:$0xf]  ;;  %v17951_v57 = vld [vmem:[%s18540_s13 + $0x236c] sm:$0xf0]  ;;  %v15548_v59 = vor.u32 %v17887_v53, %v15547_v50  ;;  %9056 = vmatpush.bf16.msra.mxu3 %v15820_v51 }
 0x16a   : > { %v15803_v56 = vld [vmem:[%s18540_s13 + $0x2360] sm:$0xf]  ;;  %v15676_v60 = vor.u32 %v17919_v61, %v15675_v54  ;;  %v17851_v63 = vld [vmem:[%s18540_s13 + $0x204c] sm:$0xf0]  ;;  %9018 = vmatpush.bf16.msra.mxu0 %v15420_v58 }
 0x16b   : > { %v15403_v62 = vld [vmem:[%s18540_s13 + $0x2040] sm:$0xf]  ;;  %v15804_v1 = vor.u32 %v17951_v57, %v15803_v56  ;;  %v17883_v3 = vld [vmem:[%s18540_s13 + $0x214c] sm:$0xf0]  ;;  %9031 = vmatpush.bf16.msra.mxu1 %v15548_v59 }
 0x16c   : > { %v15531_v0 = vld [vmem:[%s18540_s13 + $0x2140] sm:$0xf]  ;;  %v17915_v6 = vld [vmem:[%s18540_s13 + $0x224c] sm:$0xf0]  ;;  %v15404_v20 = vor.u32 %v17851_v63, %v15403_v62  ;;  %9044 = vmatpush.bf16.msra.mxu2 %v15676_v60  ;;  %v8791_v10 = vpop.f32.mrf.mxu2 }
 0x16d   : > { %v15659_v4 = vld [vmem:[%s18540_s13 + $0x2240] sm:$0xf]  ;;  %v17947_v18 = vld [vmem:[%s18540_s13 + $0x234c] sm:$0xf0]  ;;  %v15532_v32 = vor.u32 %v17883_v3, %v15531_v0  ;;  %9057 = vmatpush.bf16.msra.mxu3 %v15804_v1 }
 0x16e   : > { %v15787_v15 = vld [vmem:[%s18540_s13 + $0x2340] sm:$0xf]  ;;  %v15660_v34 = vor.u32 %v17915_v6, %v15659_v4  ;;  %v17847_v43 = vld [vmem:[%s18540_s13 + $0x202c] sm:$0xf0]  ;;  %9019 = vmatpush.bf16.msra.mxu0 %v15404_v20  ;;  %v8804_v20 = vpop.f32.mrf.mxu3 }
 0x16f   : > { %v15387_v40 = vld [vmem:[%s18540_s13 + $0x2020] sm:$0xf]  ;;  %v15788_v50 = vor.u32 %v17947_v18, %v15787_v15  ;;  %v17879_v51 = vld [vmem:[%s18540_s13 + $0x212c] sm:$0xf0]  ;;  %9032 = vmatpush.bf16.msra.mxu1 %v15532_v32 }
 0x170   : > { %v15515_v48 = vld [vmem:[%s18540_s13 + $0x2120] sm:$0xf]  ;;  %v17911_v53 = vld [vmem:[%s18540_s13 + $0x222c] sm:$0xf0]  ;;  %v15388_v57 = vor.u32 %v17847_v43, %v15387_v40  ;;  %9045 = vmatpush.bf16.msra.mxu2 %v15660_v34 }
 0x171   : > { %v15643_v52 = vld [vmem:[%s18540_s13 + $0x2220] sm:$0xf]  ;;  %v17943_v61 = vld [vmem:[%s18540_s13 + $0x232c] sm:$0xf0]  ;;  %v15516_v62 = vor.u32 %v17879_v51, %v15515_v48  ;;  %9058 = vmatpush.bf16.msra.mxu3 %v15788_v50 }
 0x172   : > { %v15771_v54 = vld [vmem:[%s18540_s13 + $0x2320] sm:$0xf]  ;;  %v17843_v58 = vld [vmem:[%s18540_s13 + $0x200c] sm:$0xf0]  ;;  %v15644_v63 = vor.u32 %v17911_v53, %v15643_v52  ;;  %9020 = vmatpush.bf16.msra.mxu0 %v15388_v57  ;;  %v1740_v53 = vunpack.c.l.b16 %v317_v9  ;;  %v1741_v57 = vunpack.c.h.b16 %v317_v9 }
 0x173   : > { %v15371_v56 = vld [vmem:[%s18540_s13 + $0x2000] sm:$0xf]  ;;  %v17875_v60 = vld [vmem:[%s18540_s13 + $0x210c] sm:$0xf0]  ;;  %v15772_v3 = vor.u32 %v17943_v61, %v15771_v54  ;;  %9033 = vmatpush.bf16.msra.mxu1 %v15516_v62 }
 0x174   : > { %v15499_v59 = vld [vmem:[%s18540_s13 + $0x2100] sm:$0xf]  ;;  %v17907_v1 = vld [vmem:[%s18540_s13 + $0x220c] sm:$0xf0]  ;;  %v15372_v55 = vor.u32 %v17843_v58, %v15371_v56  ;;  %9046 = vmatpush.bf16.msra.mxu2 %v15644_v63  ;;  %v19314_v9 = vpack.c.b16 %v1741_v57, %v1741_v57 }
 0x175   : > { %v15627_v0 = vld [vmem:[%s18540_s13 + $0x2200] sm:$0xf]  ;;  %v17939_v6 = vld [vmem:[%s18540_s13 + $0x230c] sm:$0xf0]  ;;  %v15500_v48 = vor.u32 %v17875_v60, %v15499_v59  ;;  %9059 = vmatpush.bf16.msra.mxu3 %v15772_v3 }
 0x176   : > { %v316_v2 = vld [vmem:[%s21778_s0 + $0x80] sm:$0xff]  ;;  %v17999_v18 = vld [vmem:[%s18540_s13 + $0x24ec] sm:$0xf0]  ;;  %v15628_v50 = vor.u32 %v17907_v1, %v15627_v0  ;;  %9021 = vmatpush.bf16.msra.mxu0 %v15372_v55  ;;  %21820 = vst [vmem:[#allocation17_spill] sm:$0xff] %v19314_v9 }
 0x177   : > { %v15755_v4 = vld [vmem:[%s18540_s13 + $0x2300] sm:$0xf]  ;;  %v18031_v32 = vld [vmem:[%s18540_s13 + $0x25ec] sm:$0xf0]  ;;  %v1738_v43 = vunpack.c.l.b16 %v316_v2  ;;  %v1739_v54 = vunpack.c.h.b16 %v316_v2  ;;  %9034 = vmatpush.bf16.msra.mxu1 %v15500_v48  ;;  %v19308_v2 = vpack.c.b16 %v1740_v53, %v1740_v53 }
 0x178   : > { %v15995_v15 = vld [vmem:[%s18540_s13 + $0x24e0] sm:$0xf]  ;;  %v18063_v40 = vld [vmem:[%s18540_s13 + $0x26ec] sm:$0xf0]  ;;  %v15756_v61 = vor.u32 %v17939_v6, %v15755_v4  ;;  %9047 = vmatpush.bf16.msra.mxu2 %v15628_v50 }
 0x179   : > { %v16123_v24 = vld [vmem:[%s18540_s13 + $0x25e0] sm:$0xf]  ;;  %v18095_v52 = vld [vmem:[%s18540_s13 + $0x27ec] sm:$0xf0]  ;;  %v15996_v56 = vor.u32 %v17999_v18, %v15995_v15  ;;  %v19303_v60 = vpack.c.b16 %v1738_v43, %v1738_v43  ;;  %21818 = vst [vmem:[#allocation15_spill] sm:$0xff] %v19308_v2  ;;  %v19310_v3 = vpack.c.b16 %v1739_v54, %v1739_v54 }
 0x17a   : > { %v16251_v34 = vld [vmem:[%s18540_s13 + $0x26e0] sm:$0xf]  ;;  %v16124_v58 = vor.u32 %v18031_v32, %v16123_v24  ;;  %v17995_v20 = vld [vmem:[%s18540_s13 + $0x24cc] sm:$0xf0]  ;;  %9060 = vmatpush.bf16.msra.mxu3 %v15756_v61 }
 0x17b   : > { %v16379_v51 = vld [vmem:[%s18540_s13 + $0x27e0] sm:$0xf]  ;;  %v16252_v10 = vor.u32 %v18063_v40, %v16251_v34  ;;  %21817 = vst [vmem:[#allocation14_spill] sm:$0xff] %v19303_v60  ;;  %v18027_v0 = vld [vmem:[%s18540_s13 + $0x25cc] sm:$0xf0]  ;;  %9066 = vmatpush.bf16.msrb.mxu0 %v15996_v56  ;;  %9048 = vmatmul.bf16.vlgmr.msra.gmra.mxu2 %v19308_v2 }
 0x17c   : > { %v15979_v62 = vld [vmem:[%s18540_s13 + $0x24c0] sm:$0xf]  ;;  %v16380_v59 = vor.u32 %v18095_v52, %v16379_v51  ;;  %v18059_v47 = vld [vmem:[%s18540_s13 + $0x26cc] sm:$0xf0]  ;;  %21819 = vst [vmem:[#allocation16_spill] sm:$0xff] %v19310_v3  ;;  %9079 = vmatpush.bf16.msrb.mxu1 %v16124_v58  ;;  %9022 = vmatmul.bf16.vlgmr.msra.gmra.mxu0 %v19303_v60 }
 0x17d   : > { %v16107_v63 = vld [vmem:[%s18540_s13 + $0x25c0] sm:$0xf]  ;;  %v18091_v6 = vld [vmem:[%s18540_s13 + $0x27cc] sm:$0xf0]  ;;  %v15980_v15 = vor.u32 %v17995_v20, %v15979_v62  ;;  %9092 = vmatpush.bf16.msrb.mxu2 %v16252_v10  ;;  %9035 = vmatmul.bf16.vlgmr.msra.gmra.mxu1 %v19310_v3  ;;  %v16841_v60 = vld [vmem:[%s18540_s13 + $0xc4] sm:$0xf] }
 0x17e   : > { %v16235_v1 = vld [vmem:[%s18540_s13 + $0x26c0] sm:$0xf]  ;;  %v16108_v18 = vor.u32 %v18027_v0, %v16107_v63  ;;  %v17991_v32 = vld [vmem:[%s18540_s13 + $0x24ac] sm:$0xf0]  ;;  %9105 = vmatpush.bf16.msrb.mxu3 %v16380_v59  ;;  %v8815_v63 = vpop.f32.mrf.mxu0 }
 0x17f   : > { %v16363_v4 = vld [vmem:[%s18540_s13 + $0x27c0] sm:$0xf]  ;;  %v16236_v24 = vor.u32 %v18059_v47, %v16235_v1  ;;  %v18023_v43 = vld [vmem:[%s18540_s13 + $0x25ac] sm:$0xf0]  ;;  %9061 = vmatmul.bf16.vlgmr.msra.gmra.mxu3 %v19314_v9  ;;  %9067 = vmatpush.bf16.msrb.mxu0 %v15980_v15  ;;  %v8816_v1 = vadd.f32 %v8815_v63, %v19268_v27 }
 0x180   : > { %v15963_v55 = vld [vmem:[%s18540_s13 + $0x24a0] sm:$0xf]  ;;  %v16364_v40 = vor.u32 %v18091_v6, %v16363_v4  ;;  %v18055_v50 = vld [vmem:[%s18540_s13 + $0x26ac] sm:$0xf0]  ;;  %9080 = vmatpush.bf16.msrb.mxu1 %v16108_v18  ;;  %v8828_v6 = vpop.f32.mrf.mxu1 }
 0x181   : > { %v16091_v34 = vld [vmem:[%s18540_s13 + $0x25a0] sm:$0xf]  ;;  %v18087_v51 = vld [vmem:[%s18540_s13 + $0x27ac] sm:$0xf0]  ;;  %v15964_v52 = vor.u32 %v17991_v32, %v15963_v55  ;;  %9093 = vmatpush.bf16.msrb.mxu2 %v16236_v24 }
 0x182   : > { %v16219_v48 = vld [vmem:[%s18540_s13 + $0x26a0] sm:$0xf]  ;;  %v16092_v53 = vor.u32 %v18023_v43, %v16091_v34  ;;  %v17987_v56 = vld [vmem:[%s18540_s13 + $0x248c] sm:$0xf0]  ;;  %9106 = vmatpush.bf16.msrb.mxu3 %v16364_v40  ;;  %v8829_v40 = vadd.f32 %v8828_v6, %v8816_v1 }
 0x183   : > { %v16347_v47 = vld [vmem:[%s18540_s13 + $0x27a0] sm:$0xf]  ;;  %v16220_v54 = vor.u32 %v18055_v50, %v16219_v48  ;;  %v18019_v10 = vld [vmem:[%s18540_s13 + $0x258c] sm:$0xf0]  ;;  %9068 = vmatpush.bf16.msrb.mxu0 %v15964_v52 }
 0x184   : > { %v15947_v61 = vld [vmem:[%s18540_s13 + $0x2480] sm:$0xf]  ;;  %v16348_v58 = vor.u32 %v18087_v51, %v16347_v47  ;;  %v18051_v20 = vld [vmem:[%s18540_s13 + $0x268c] sm:$0xf0]  ;;  %9081 = vmatpush.bf16.msrb.mxu1 %v16092_v53 }
 0x185   : > { %v16075_v57 = vld [vmem:[%s18540_s13 + $0x2580] sm:$0xf]  ;;  %v18083_v0 = vld [vmem:[%s18540_s13 + $0x278c] sm:$0xf0]  ;;  %v15948_v4 = vor.u32 %v17987_v56, %v15947_v61  ;;  %9094 = vmatpush.bf16.msrb.mxu2 %v16220_v54 }
 0x186   : > { %v16203_v62 = vld [vmem:[%s18540_s13 + $0x2680] sm:$0xf]  ;;  %v16076_v15 = vor.u32 %v18019_v10, %v16075_v57  ;;  %v17983_v55 = vld [vmem:[%s18540_s13 + $0x246c] sm:$0xf0]  ;;  %9107 = vmatpush.bf16.msrb.mxu3 %v16348_v58  ;;  %v8841_v58 = vpop.f32.mrf.mxu2 }
 0x187   : > { %v16331_v59 = vld [vmem:[%s18540_s13 + $0x2780] sm:$0xf]  ;;  %v16204_v18 = vor.u32 %v18051_v20, %v16203_v62  ;;  %v18015_v43 = vld [vmem:[%s18540_s13 + $0x256c] sm:$0xf0]  ;;  %9069 = vmatpush.bf16.msrb.mxu0 %v15948_v4  ;;  %v8842_v63 = vadd.f32 %v8841_v58, %v8829_v40  ;;  %v8817_v4 = vpop.f32.mrf.mxu0 }
 0x188   : > { %v15931_v24 = vld [vmem:[%s18540_s13 + $0x2460] sm:$0xf]  ;;  %v16332_v34 = vor.u32 %v18083_v0, %v16331_v59  ;;  %v18047_v27 = vld [vmem:[%s18540_s13 + $0x266c] sm:$0xf0]  ;;  %9082 = vmatpush.bf16.msrb.mxu1 %v16076_v15  ;;  %v8854_v59 = vpop.f32.mrf.mxu3  ;;  %v8830_v15 = vpop.f32.mrf.mxu1 }
 0x189   : > { %v16059_v32 = vld [vmem:[%s18540_s13 + $0x2560] sm:$0xf]  ;;  %v18079_v47 = vld [vmem:[%s18540_s13 + $0x276c] sm:$0xf0]  ;;  %v15932_v51 = vor.u32 %v17983_v55, %v15931_v24  ;;  %9095 = vmatpush.bf16.msrb.mxu2 %v16204_v18  ;;  %v19353_v18 = vadd.f32 %v8854_v59, %v8842_v63 }
 0x18a   : > { %v16187_v48 = vld [vmem:[%s18540_s13 + $0x2660] sm:$0xf]  ;;  %v16060_v52 = vor.u32 %v18015_v43, %v16059_v32  ;;  %v17979_v61 = vld [vmem:[%s18540_s13 + $0x244c] sm:$0xf0]  ;;  %9108 = vmatpush.bf16.msrb.mxu3 %v16332_v34 }
 0x18b   : > { %v16315_v50 = vld [vmem:[%s18540_s13 + $0x2760] sm:$0xf]  ;;  %v16188_v53 = vor.u32 %v18047_v27, %v16187_v48  ;;  %v18011_v10 = vld [vmem:[%s18540_s13 + $0x254c] sm:$0xf0]  ;;  %9070 = vmatpush.bf16.msrb.mxu0 %v15932_v51 }
 0x18c   : > { %v15915_v54 = vld [vmem:[%s18540_s13 + $0x2440] sm:$0xf]  ;;  %v16316_v57 = vor.u32 %v18079_v47, %v16315_v50  ;;  %v18043_v20 = vld [vmem:[%s18540_s13 + $0x264c] sm:$0xf0]  ;;  %9083 = vmatpush.bf16.msrb.mxu1 %v16060_v52 }
 0x18d   : > { %v16043_v56 = vld [vmem:[%s18540_s13 + $0x2540] sm:$0xf]  ;;  %v18075_v1 = vld [vmem:[%s18540_s13 + $0x274c] sm:$0xf0]  ;;  %v15916_v6 = vor.u32 %v17979_v61, %v15915_v54  ;;  %9096 = vmatpush.bf16.msrb.mxu2 %v16188_v53 }
 0x18e   : > { %v16171_v62 = vld [vmem:[%s18540_s13 + $0x2640] sm:$0xf]  ;;  %v16044_v24 = vor.u32 %v18011_v10, %v16043_v56  ;;  %v17975_v34 = vld [vmem:[%s18540_s13 + $0x242c] sm:$0xf0]  ;;  %9109 = vmatpush.bf16.msrb.mxu3 %v16316_v57  ;;  %v8843_v4 = vpop.f32.mrf.mxu2 }
 0x18f   : > { %v16299_v0 = vld [vmem:[%s18540_s13 + $0x2740] sm:$0xf]  ;;  %v16172_v55 = vor.u32 %v18043_v20, %v16171_v62  ;;  %v18007_v48 = vld [vmem:[%s18540_s13 + $0x252c] sm:$0xf0]  ;;  %9071 = vmatpush.bf16.msrb.mxu0 %v15916_v6 }
 0x190   : > { %v15899_v32 = vld [vmem:[%s18540_s13 + $0x2420] sm:$0xf]  ;;  %v16300_v43 = vor.u32 %v18075_v1, %v16299_v0  ;;  %v18039_v50 = vld [vmem:[%s18540_s13 + $0x262c] sm:$0xf0]  ;;  %9084 = vmatpush.bf16.msrb.mxu1 %v16044_v24  ;;  %v319_v1 = vld [vmem:[%s21778_s0 + $0x98] sm:$0xff] }
 0x191   : > { %v16027_v40 = vld [vmem:[%s18540_s13 + $0x2520] sm:$0xf]  ;;  %v18071_v51 = vld [vmem:[%s18540_s13 + $0x272c] sm:$0xf0]  ;;  %v15900_v53 = vor.u32 %v17975_v34, %v15899_v32  ;;  %9097 = vmatpush.bf16.msrb.mxu2 %v16172_v55  ;;  %v8856_v55 = vpop.f32.mrf.mxu3  ;;  %v1744_v4 = vunpack.c.l.b16 %v319_v1 }
 0x192   : > { %v16155_v27 = vld [vmem:[%s18540_s13 + $0x2620] sm:$0xf]  ;;  %v17971_v54 = vld [vmem:[%s18540_s13 + $0x240c] sm:$0xf0]  ;;  %v16028_v57 = vor.u32 %v18007_v48, %v16027_v40  ;;  %9110 = vmatpush.bf16.msrb.mxu3 %v16300_v43 }
 0x193   : > { %v16283_v47 = vld [vmem:[%s18540_s13 + $0x2720] sm:$0xf]  ;;  %v18003_v56 = vld [vmem:[%s18540_s13 + $0x250c] sm:$0xf0]  ;;  %v16156_v58 = vor.u32 %v18039_v50, %v16155_v27  ;;  %9072 = vmatpush.bf16.msrb.mxu0 %v15900_v53 }
 0x194   : > { %v15883_v52 = vld [vmem:[%s18540_s13 + $0x2400] sm:$0xf]  ;;  %v18035_v62 = vld [vmem:[%s18540_s13 + $0x260c] sm:$0xf0]  ;;  %v16284_v63 = vor.u32 %v18071_v51, %v16283_v47  ;;  %9085 = vmatpush.bf16.msrb.mxu1 %v16028_v57  ;;  %v16845_v47 = vld [vmem:[%s18540_s13 + $0xe4] sm:$0xf] }
 0x195   : > { %v16011_v61 = vld [vmem:[%s18540_s13 + $0x2500] sm:$0xf]  ;;  %v318_v20 = vld [vmem:[%s21778_s0 + $0x90] sm:$0xff]  ;;  %v15884_v32 = vor.u32 %v17971_v54, %v15883_v52  ;;  %9098 = vmatpush.bf16.msrb.mxu2 %v16156_v58  ;;  %v1745_v54 = vunpack.c.h.b16 %v319_v1  ;;  %v16877_v1 = vld [vmem:[%s18540_s13 + $0x1e4] sm:$0xf] }
 0x196   : > { %v16139_v10 = vld [vmem:[%s18540_s13 + $0x2600] sm:$0xf]  ;;  %v18067_v0 = vld [vmem:[%s18540_s13 + $0x270c] sm:$0xf0]  ;;  %v1742_v48 = vunpack.c.l.b16 %v318_v20  ;;  %v16012_v27 = vor.u32 %v18003_v56, %v16011_v61  ;;  %v11389_v51 = vld [vmem:[%s18540_s13 + $0xf0] sm:$0xf0]  ;;  %v1743_v55 = vunpack.c.h.b16 %v318_v20  ;;  %9111 = vmatpush.bf16.msrb.mxu3 %v16284_v63  ;;  %v19394_v63 = vpack.c.b16 %v1744_v4, %v1744_v4 }
 0x197   : > { %v16267_v59 = vld [vmem:[%s18540_s13 + $0x2700] sm:$0xf]  ;;  %v18127_v15 = vld [vmem:[%s18540_s13 + $0x28ec] sm:$0xf0]  ;;  %v16140_v50 = vor.u32 %v18035_v62, %v16139_v10  ;;  %9073 = vmatpush.bf16.msrb.mxu0 %v15884_v32  ;;  %v11392_v10 = vor.u32 %v16845_v47, %v11389_v51  ;;  %v16837_v51 = vld [vmem:[%s18540_s13 + $0xa4] sm:$0xf] }
 0x198   : > { %v16507_v6 = vld [vmem:[%s18540_s13 + $0x28e0] sm:$0xf]  ;;  %v18159_v34 = vld [vmem:[%s18540_s13 + $0x29ec] sm:$0xf0]  ;;  %v16268_v52 = vor.u32 %v18067_v0, %v16267_v59  ;;  %v19389_v62 = vpack.c.b16 %v1742_v48, %v1742_v48  ;;  %9086 = vmatpush.bf16.msrb.mxu1 %v16012_v27  ;;  %v19396_v59 = vpack.c.b16 %v1743_v55, %v1743_v55  ;;  %v11373_v0 = vld [vmem:[%s18540_s13 + $0xd0] sm:$0xf0] }
 0x199   : > { %v16635_v24 = vld [vmem:[%s18540_s13 + $0x29e0] sm:$0xf]  ;;  %v18167_v43 = vld [vmem:[%s18540_s13 + $0x2a2c] sm:$0xf0]  ;;  %v16508_v53 = vor.u32 %v18127_v15, %v16507_v6  ;;  %9099 = vmatpush.bf16.msrb.mxu2 %v16140_v50  ;;  %v11517_v6 = vld [vmem:[%s18540_s13 + $0x1f0] sm:$0xf0]  ;;  %v19401_v15 = vpack.c.b16 %v1745_v54, %v1745_v54  ;;  %v11376_v48 = vor.u32 %v16841_v60, %v11373_v0 }
 0x19a   : > { %v16667_v40 = vld [vmem:[%s18540_s13 + $0x2a20] sm:$0xf]  ;;  %v16636_v2 = vor.u32 %v18159_v34, %v16635_v24  ;;  %v18123_v58 = vld [vmem:[%s18540_s13 + $0x28cc] sm:$0xf0]  ;;  %21821 = vst [vmem:[#allocation18_spill] sm:$0xff] %v19389_v62  ;;  %9112 = vmatpush.bf16.msrb.mxu3 %v16268_v52  ;;  %9074 = vmatmul.bf16.vlgmr.msrb.gmra.mxu0 %v19389_v62  ;;  %v11520_v27 = vor.u32 %v16877_v1, %v11517_v6 }
 0x19b   : > { %v16491_v9 = vld [vmem:[%s18540_s13 + $0x28c0] sm:$0xf]  ;;  %v16668_v57 = vor.u32 %v18167_v43, %v16667_v40  ;;  %v18155_v56 = vld [vmem:[%s18540_s13 + $0x29cc] sm:$0xf0]  ;;  %21822 = vst [vmem:[#allocation19_spill] sm:$0xff] %v19396_v59  ;;  %9118 = vmatpush.bf16.msra.mxu0 %v16508_v53  ;;  %9087 = vmatmul.bf16.vlgmr.msrb.gmra.mxu1 %v19396_v59 }
 0x19c   : > { %v16619_v61 = vld [vmem:[%s18540_s13 + $0x29c0] sm:$0xf]  ;;  %v18163_v20 = vld [vmem:[%s18540_s13 + $0x2a0c] sm:$0xf0]  ;;  %21823 = vst [vmem:[#allocation20_spill] sm:$0xff] %v19401_v15  ;;  %v16492_v24 = vor.u32 %v18123_v58, %v16491_v9  ;;  %9131 = vmatpush.bf16.msra.mxu1 %v16636_v2  ;;  %9100 = vmatmul.bf16.vlgmr.msrb.gmra.mxu2 %v19394_v63 }
 0x19d   : > { %v16651_v3 = vld [vmem:[%s18540_s13 + $0x2a00] sm:$0xf]  ;;  %9150 = vmatpush.bf16.msra.mxu2 %v16668_v57  ;;  %v16620_v32 = vor.u32 %v18155_v56, %v16619_v61  ;;  %v18119_v43 = vld [vmem:[%s18540_s13 + $0x28ac] sm:$0xf0]  ;;  %v11357_v2 = vld [vmem:[%s18540_s13 + $0xb0] sm:$0xf0]  ;;  %9113 = vmatmul.bf16.vlgmr.msrb.gmra.mxu3 %v19401_v15  ;;  %v8867_v56 = vpop.f32.mrf.mxu0 }
 0x19e   : > { %v16652_v34 = vor.u32 %v18163_v20, %v16651_v3  ;;  %v16475_v40 = vld [vmem:[%s18540_s13 + $0x28a0] sm:$0xf]  ;;  %9157 = vmatpush.bf16.msra.mxu3 %v11392_v10  ;;  %v18151_v47 = vld [vmem:[%s18540_s13 + $0x29ac] sm:$0xf0]  ;;  %v16873_v3 = vld [vmem:[%s18540_s13 + $0x1c4] sm:$0xf]  ;;  %v11360_v53 = vor.u32 %v16837_v51, %v11357_v2  ;;  %v8868_v1 = vadd.f32 %v8867_v56, %v19353_v18 }
 0x19f   : > { %v16603_v50 = vld [vmem:[%s18540_s13 + $0x29a0] sm:$0xf]  ;;  %v11501_v9 = vld [vmem:[%s18540_s13 + $0x1d0] sm:$0xf0]  ;;  %9119 = vmatpush.bf16.msra.mxu0 %v16492_v24  ;;  %v16476_v60 = vor.u32 %v18119_v43, %v16475_v40  ;;  %v18115_v52 = vld [vmem:[%s18540_s13 + $0x288c] sm:$0xf0]  ;;  %v8880_v24 = vpop.f32.mrf.mxu1 }
 0x1a0   : > { %9132 = vmatpush.bf16.msra.mxu1 %v16620_v32  ;;  %v16604_v4 = vor.u32 %v18151_v47, %v16603_v50  ;;  %v16459_v55 = vld [vmem:[%s18540_s13 + $0x2880] sm:$0xf]  ;;  %v11504_v54 = vor.u32 %v16873_v3, %v11501_v9  ;;  %v18147_v58 = vld [vmem:[%s18540_s13 + $0x298c] sm:$0xf0]  ;;  %v16833_v61 = vld [vmem:[%s18540_s13 + $0x84] sm:$0xf] }
 0x1a1   : > { %9151 = vmatpush.bf16.msra.mxu2 %v16652_v34  ;;  %v16587_v57 = vld [vmem:[%s18540_s13 + $0x2980] sm:$0xf]  ;;  %v11341_v10 = vld [vmem:[%s18540_s13 + $0x90] sm:$0xf0]  ;;  %v16869_v20 = vld [vmem:[%s18540_s13 + $0x1a4] sm:$0xf]  ;;  %v16460_v6 = vor.u32 %v18115_v52, %v16459_v55 }
 0x1a2   : > { %9158 = vmatpush.bf16.msra.mxu3 %v11376_v48  ;;  %v11485_v0 = vld [vmem:[%s18540_s13 + $0x1b0] sm:$0xf0]  ;;  %v321_v32 = vld [vmem:[%s21778_s0 + $0xa8] sm:$0xf]  ;;  %v16588_v34 = vor.u32 %v18147_v58, %v16587_v57  ;;  %v16443_v40 = vld [vmem:[%s18540_s13 + $0x2860] sm:$0xf]  ;;  %v11344_v48 = vor.u32 %v16833_v61, %v11341_v10  ;;  %v8893_v57 = vpop.f32.mrf.mxu2 }
 0x1a3   : > { %9120 = vmatpush.bf16.msra.mxu0 %v16476_v60  ;;  %v18111_v43 = vld [vmem:[%s18540_s13 + $0x286c] sm:$0xf0]  ;;  %v11488_v18 = vor.u32 %v16869_v20, %v11485_v0  ;;  %v16571_v50 = vld [vmem:[%s18540_s13 + $0x2960] sm:$0xf]  ;;  %v16829_v51 = vld [vmem:[%s18540_s13 + $0x64] sm:$0xf]  ;;  %v1748_v60 = vunpack.c.l.b16 %v321_v32  ;;  %v8906_v0 = vpop.f32.mrf.mxu3 }
 0x1a4   : > { %9133 = vmatpush.bf16.msra.mxu1 %v16604_v4  ;;  %v18143_v47 = vld [vmem:[%s18540_s13 + $0x296c] sm:$0xf0]  ;;  %v11325_v2 = vld [vmem:[%s18540_s13 + $0x70] sm:$0xf0]  ;;  %v16865_v3 = vld [vmem:[%s18540_s13 + $0x184] sm:$0xf]  ;;  %v16444_v4 = vor.u32 %v18111_v43, %v16443_v40 }
 0x1a5   : > { %9170 = vmatpush.bf16.msrb.mxu2 %v11520_v27  ;;  %v8881_v27 = vadd.f32 %v8880_v24, %v8868_v1  ;;  %v11469_v9 = vld [vmem:[%s18540_s13 + $0x190] sm:$0xf0]  ;;  %v16572_v55 = vor.u32 %v18143_v47, %v16571_v50  ;;  %v16427_v52 = vld [vmem:[%s18540_s13 + $0x2840] sm:$0xf]  ;;  %v18139_v56 = vld [vmem:[%s18540_s13 + $0x294c] sm:$0xf0]  ;;  %v19443_v32 = vpack.c.b16 %v1748_v60, %v1748_v60 }
 0x1a6   : > { %9159 = vmatpush.bf16.msra.mxu3 %v11360_v53  ;;  %v18107_v53 = vld [vmem:[%s18540_s13 + $0x284c] sm:$0xf0]  ;;  %v11472_v58 = vor.u32 %v16865_v3, %v11469_v9  ;;  %v16555_v61 = vld [vmem:[%s18540_s13 + $0x2940] sm:$0xf]  ;;  %v16825_v10 = vld [vmem:[%s18540_s13 + $0x44] sm:$0xf] }
 0x1a7   : > { %9121 = vmatpush.bf16.msra.mxu0 %v16460_v6  ;;  %v8894_v20 = vadd.f32 %v8893_v57, %v8881_v27  ;;  %v11309_v1 = vld [vmem:[%s18540_s13 + $0x50] sm:$0xf0]  ;;  %v16861_v6 = vld [vmem:[%s18540_s13 + $0x164] sm:$0xf]  ;;  %21824 = vst [vmem:[#allocation21_spill] sm:$0xff] %v19443_v32  ;;  %v16428_v40 = vor.u32 %v18107_v53, %v16427_v52  ;;  %v8882_v43 = vpop.f32.mrf.mxu1  ;;  %v16556_v27 = vor.u32 %v18139_v56, %v16555_v61 }
 0x1a8   : > { %9134 = vmatpush.bf16.msra.mxu1 %v16588_v34  ;;  %v11453_v24 = vld [vmem:[%s18540_s13 + $0x170] sm:$0xf0]  ;;  %v8869_v34 = vpop.f32.mrf.mxu0  ;;  %v18103_v50 = vld [vmem:[%s18540_s13 + $0x282c] sm:$0xf0]  ;;  %v11312_v47 = vor.u32 %v16825_v10, %v11309_v1  ;;  %v16821_v9 = vld [vmem:[%s18540_s13 + $0x24] sm:$0xf] }
 0x1a9   : > { %9171 = vmatpush.bf16.msrb.mxu2 %v11504_v54  ;;  %v11328_v54 = vor.u32 %v16829_v51, %v11325_v2  ;;  %v11456_v51 = vor.u32 %v16861_v6, %v11453_v24  ;;  %v16539_v2 = vld [vmem:[%s18540_s13 + $0x2920] sm:$0xf]  ;;  %v18135_v3 = vld [vmem:[%s18540_s13 + $0x292c] sm:$0xf0]  ;;  %v11293_v60 = vld [vmem:[%s18540_s13 + $0x30] sm:$0xf0] }
 0x1aa   : > { %9160 = vmatpush.bf16.msra.mxu3 %v11344_v48  ;;  %v19445_v48 = vadd.f32 %v8906_v0, %v8894_v20  ;;  %v16395_v53 = vld [vmem:[%s18540_s13 + $0x2800] sm:$0xf]  ;;  %v18131_v61 = vld [vmem:[%s18540_s13 + $0x290c] sm:$0xf0]  ;;  %v16817_v56 = vld [vmem:[%s18540_s13 + $0x4] sm:$0xf]  ;;  %v11296_v20 = vor.u32 %v16821_v9, %v11293_v60  ;;  %v8895_v34 = vpop.f32.mrf.mxu2 }
 0x1ab   : > { %9122 = vmatpush.bf16.msra.mxu0 %v16444_v4  ;;  %v16857_v4 = vld [vmem:[%s18540_s13 + $0x144] sm:$0xf]  ;;  %v16523_v57 = vld [vmem:[%s18540_s13 + $0x2900] sm:$0xf]  ;;  %v11277_v1 = vld [vmem:[%s18540_s13 + $0x10] sm:$0xf0] }
 0x1ac   : > { %9135 = vmatpush.bf16.msra.mxu1 %v16572_v55  ;;  %v11437_v55 = vld [vmem:[%s18540_s13 + $0x150] sm:$0xf0]  ;;  %16681 = vmatmul.msk.bf16.vlgmr.msra.gmra.mxu2 %vm8594_vm0, %v19443_v32  ;;  %v320_v10 = vld [vmem:[%s21778_s0 + $0xa0] sm:$0xff]  ;;  %v16524_v60 = vor.u32 %v18131_v61, %v16523_v57 }
 0x1ad   : > { %9172 = vmatpush.bf16.msrb.mxu2 %v11488_v18  ;;  %v16411_v18 = vld [vmem:[%s18540_s13 + $0x2820] sm:$0xf]  ;;  %v11440_v0 = vor.u32 %v16857_v4, %v11437_v55  ;;  %v16909_v6 = vld [vmem:[%s18540_s13 + $0x2e4] sm:$0xf]  ;;  %v11645_v24 = vld [vmem:[%s18540_s13 + $0x2f0] sm:$0xf0]  ;;  %v1747_v9 = vunpack.c.h.b16 %v320_v10  ;;  %v11280_v55 = vor.u32 %v16817_v56, %v11277_v1 }
 0x1ae   : > { %9161 = vmatpush.bf16.msra.mxu3 %v11328_v54  ;;  %v16412_v52 = vor.u32 %v18103_v50, %v16411_v18  ;;  %v18099_v54 = vld [vmem:[%s18540_s13 + $0x280c] sm:$0xf0]  ;;  %v11421_v43 = vld [vmem:[%s18540_s13 + $0x130] sm:$0xf0]  ;;  %v8908_v18 = vpop.f32.mrf.mxu3  ;;  %v11648_v4 = vor.u32 %v16909_v6, %v11645_v24  ;;  %v16849_v32 = vld [vmem:[%s18540_s13 + $0x104] sm:$0xf] }
 0x1af   : > { %9123 = vmatpush.bf16.msra.mxu0 %v16428_v40  ;;  %v16853_v40 = vld [vmem:[%s18540_s13 + $0x124] sm:$0xf]  ;;  %v16396_v50 = vor.u32 %v18099_v54, %v16395_v53  ;;  %v11629_v53 = vld [vmem:[%s18540_s13 + $0x2d0] sm:$0xf0] }
 0x1b0   : > { %9136 = vmatpush.bf16.msra.mxu1 %v16556_v27  ;;  %v16941_v27 = vld [vmem:[%s18540_s13 + $0x3e4] sm:$0xf]  ;;  %v11424_v34 = vor.u32 %v16853_v40, %v11421_v43  ;;  %v11405_v15 = vld [vmem:[%s18540_s13 + $0x110] sm:$0xf0] }
 0x1b1   : > { %9173 = vmatpush.bf16.msrb.mxu2 %v11472_v58  ;;  %v16540_v58 = vor.u32 %v18135_v3, %v16539_v2  ;;  %v11773_v2 = vld [vmem:[%s18540_s13 + $0x3f0] sm:$0xf0]  ;;  %v16973_v3 = vld [vmem:[%s18540_s13 + $0x4e4] sm:$0xf]  ;;  %v11408_v24 = vor.u32 %v16849_v32, %v11405_v15 }
 0x1b2   : > { %9162 = vmatpush.bf16.msra.mxu3 %v11312_v47  ;;  %v11901_v47 = vld [vmem:[%s18540_s13 + $0x4f0] sm:$0xf0]  ;;  %v11776_v54 = vor.u32 %v16941_v27, %v11773_v2  ;;  %v17005_v1 = vld [vmem:[%s18540_s13 + $0x5e4] sm:$0xf] }
 0x1b3   : > { %9124 = vmatpush.bf16.msra.mxu0 %v16412_v52  ;;  %v16905_v52 = vld [vmem:[%s18540_s13 + $0x2c4] sm:$0xf]  ;;  %v11904_v18 = vor.u32 %v16973_v3, %v11901_v47  ;;  %v11757_v61 = vld [vmem:[%s18540_s13 + $0x3d0] sm:$0xf0] }
 0x1b4   : > { %9137 = vmatpush.bf16.msra.mxu1 %v16540_v58  ;;  %v19481_v58 = vpack.c.b16 %v1747_v9, %v1747_v9  ;;  %v11885_v56 = vld [vmem:[%s18540_s13 + $0x4d0] sm:$0xf0]  ;;  %v16901_v40 = vld [vmem:[%s18540_s13 + $0x2a4] sm:$0xf] }
 0x1b5   : > { %9174 = vmatpush.bf16.msrb.mxu2 %v11456_v51  ;;  %v1746_v51 = vunpack.c.l.b16 %v320_v10  ;;  %v16937_v10 = vld [vmem:[%s18540_s13 + $0x3c4] sm:$0xf]  ;;  %v12029_v6 = vld [vmem:[%s18540_s13 + $0x5f0] sm:$0xf0] }
 0x1b6   : > { %9163 = vmatpush.bf16.msra.mxu3 %v11296_v20  ;;  %v16969_v20 = vld [vmem:[%s18540_s13 + $0x4c4] sm:$0xf]  ;;  %v11613_v43 = vld [vmem:[%s18540_s13 + $0x2b0] sm:$0xf0]  ;;  %v11760_v27 = vor.u32 %v16937_v10, %v11757_v61  ;;  %v12032_v3 = vor.u32 %v17005_v1, %v12029_v6 }
 0x1b7   : > { %9125 = vmatpush.bf16.msra.mxu0 %v16396_v50  ;;  %v19479_v57 = vpack.c.b16 %v1746_v51, %v1746_v51  ;;  %v11888_v50 = vor.u32 %v16969_v20, %v11885_v56  ;;  %v16933_v2 = vld [vmem:[%s18540_s13 + $0x3a4] sm:$0xf]  ;;  %v11741_v47 = vld [vmem:[%s18540_s13 + $0x3b0] sm:$0xf0]  ;;  %v11616_v32 = vor.u32 %v16901_v40, %v11613_v43 }
 0x1b8   : > { %9138 = vmatpush.bf16.msra.mxu1 %v16524_v60  ;;  %v16965_v51 = vld [vmem:[%s18540_s13 + $0x4a4] sm:$0xf]  ;;  %v11869_v15 = vld [vmem:[%s18540_s13 + $0x4b0] sm:$0xf0]  ;;  %v8919_v20 = vpop.f32.mrf.mxu0 }
 0x1b9   : > { %9175 = vmatpush.bf16.msrb.mxu2 %v11440_v0  ;;  %v11632_v0 = vor.u32 %v16905_v52, %v11629_v53  ;;  %v17001_v9 = vld [vmem:[%s18540_s13 + $0x5c4] sm:$0xf]  ;;  %v12013_v60 = vld [vmem:[%s18540_s13 + $0x5d0] sm:$0xf0]  ;;  %v11872_v52 = vor.u32 %v16965_v51, %v11869_v15  ;;  %v8920_v6 = vadd.f32 %v8919_v20, %v19445_v48 }
 0x1ba   : > { %9164 = vmatpush.bf16.msra.mxu3 %v11280_v55  ;;  %9126 = vmatmul.bf16.vlgmr.msra.gmra.mxu0 %v19479_v57  ;;  %v11597_v55 = vld [vmem:[%s18540_s13 + $0x290] sm:$0xf0]  ;;  %v16929_v53 = vld [vmem:[%s18540_s13 + $0x384] sm:$0xf] }
 0x1bb   : > { %9183 = vmatpush.bf16.msrb.mxu0 %v11648_v4  ;;  %9139 = vmatmul.bf16.vlgmr.msra.gmra.mxu1 %v19481_v58  ;;  %v16897_v4 = vld [vmem:[%s18540_s13 + $0x284] sm:$0xf]  ;;  %v11853_v61 = vld [vmem:[%s18540_s13 + $0x490] sm:$0xf0] }
 0x1bc   : > { %9196 = vmatpush.bf16.msrb.mxu1 %v11776_v54  ;;  %v12016_v54 = vor.u32 %v17001_v9, %v12013_v60  ;;  %v16961_v10 = vld [vmem:[%s18540_s13 + $0x484] sm:$0xf]  ;;  %v11600_v56 = vor.u32 %v16897_v4, %v11597_v55  ;;  %v11997_v1 = vld [vmem:[%s18540_s13 + $0x5b0] sm:$0xf0] }
 0x1bd   : > { %9176 = vmatpush.bf16.msrb.mxu2 %v11424_v34  ;;  %9165 = vmatmul.bf16.vlgmr.msra.gmra.mxu3 %v18655_v14  ;;  %v11744_v34 = vor.u32 %v16933_v2, %v11741_v47  ;;  %v16893_v40 = vld [vmem:[%s18540_s13 + $0x264] sm:$0xf]  ;;  %v11581_v43 = vld [vmem:[%s18540_s13 + $0x270] sm:$0xf0] }
 0x1be   : > { %9209 = vmatpush.bf16.msrb.mxu3 %v11904_v18  ;;  %v11725_v18 = vld [vmem:[%s18540_s13 + $0x390] sm:$0xf0]  ;;  %v16925_v2 = vld [vmem:[%s18540_s13 + $0x364] sm:$0xf] }
 0x1bf   : > { %9184 = vmatpush.bf16.msrb.mxu0 %v11632_v0  ;;  %v16997_v0 = vld [vmem:[%s18540_s13 + $0x5a4] sm:$0xf]  ;;  %v11709_v51 = vld [vmem:[%s18540_s13 + $0x370] sm:$0xf0] }
 0x1c0   : > { %9197 = vmatpush.bf16.msrb.mxu1 %v11760_v27  ;;  %v11728_v27 = vor.u32 %v16929_v53, %v11725_v18  ;;  %v12000_v47 = vor.u32 %v16997_v0, %v11997_v1  ;;  %v16957_v15 = vld [vmem:[%s18540_s13 + $0x464] sm:$0xf]  ;;  %v11837_v48 = vld [vmem:[%s18540_s13 + $0x470] sm:$0xf0] }
 0x1c1   : > { %9177 = vmatpush.bf16.msrb.mxu2 %v11408_v24  ;;  %v8932_v24 = vpop.f32.mrf.mxu1  ;;  %v16993_v9 = vld [vmem:[%s18540_s13 + $0x584] sm:$0xf]  ;;  %v11981_v60 = vld [vmem:[%s18540_s13 + $0x590] sm:$0xf0]  ;;  %v8958_v0 = vpop.f32.mrf.mxu3 }
 0x1c2   : > { %9210 = vmatpush.bf16.msrb.mxu3 %v11888_v50  ;;  %v11856_v50 = vor.u32 %v16961_v10, %v11853_v61  ;;  %v16889_v4 = vld [vmem:[%s18540_s13 + $0x244] sm:$0xf]  ;;  %v11565_v55 = vld [vmem:[%s18540_s13 + $0x250] sm:$0xf0]  ;;  %v11984_v18 = vor.u32 %v16993_v9, %v11981_v60 }
 0x1c3   : > { %9185 = vmatpush.bf16.msrb.mxu0 %v11616_v32  ;;  %v11584_v32 = vor.u32 %v16893_v40, %v11581_v43  ;;  %v16921_v53 = vld [vmem:[%s18540_s13 + $0x344] sm:$0xf]  ;;  %v11693_v10 = vld [vmem:[%s18540_s13 + $0x350] sm:$0xf0]  ;;  %v11568_v1 = vor.u32 %v16889_v4, %v11565_v55  ;;  %v8921_v40 = vpop.f32.mrf.mxu0 }
 0x1c4   : > { %9178 = vmatmul.bf16.vlgmr.msrb.gmra.mxu2 %v18661_v19  ;;  %9198 = vmatpush.bf16.msrb.mxu1 %v11744_v34  ;;  %v11712_v34 = vor.u32 %v16925_v2, %v11709_v51  ;;  %v16953_v61 = vld [vmem:[%s18540_s13 + $0x444] sm:$0xf]  ;;  %v11821_v20 = vld [vmem:[%s18540_s13 + $0x450] sm:$0xf0] }
 0x1c5   : > { %9222 = vmatpush.bf16.msra.mxu2 %v12032_v3  ;;  %v8933_v3 = vadd.f32 %v8932_v24, %v8920_v6  ;;  %v16989_v6 = vld [vmem:[%s18540_s13 + $0x564] sm:$0xf]  ;;  %v11965_v24 = vld [vmem:[%s18540_s13 + $0x570] sm:$0xf0] }
 0x1c6   : > { %9211 = vmatpush.bf16.msrb.mxu3 %v11872_v52  ;;  %v11840_v52 = vor.u32 %v16957_v15, %v11837_v48  ;;  %v16885_v43 = vld [vmem:[%s18540_s13 + $0x224] sm:$0xf]  ;;  %v11968_v15 = vor.u32 %v16989_v6, %v11965_v24  ;;  %v11677_v48 = vld [vmem:[%s18540_s13 + $0x330] sm:$0xf0] }
 0x1c7   : > { %9186 = vmatpush.bf16.msrb.mxu0 %v11600_v56  ;;  %v16917_v51 = vld [vmem:[%s18540_s13 + $0x324] sm:$0xf]  ;;  %v11805_v9 = vld [vmem:[%s18540_s13 + $0x430] sm:$0xf0] }
 0x1c8   : > { %9199 = vmatpush.bf16.msrb.mxu1 %v11728_v27  ;;  %v11549_v27 = vld [vmem:[%s18540_s13 + $0x230] sm:$0xf0]  ;;  %v16985_v4 = vld [vmem:[%s18540_s13 + $0x544] sm:$0xf] }
 0x1c9   : > { %9223 = vmatpush.bf16.msra.mxu2 %v12016_v54  ;;  %v8945_v54 = vpop.f32.mrf.mxu2  ;;  %v11552_v60 = vor.u32 %v16885_v43, %v11549_v27  ;;  %v11949_v55 = vld [vmem:[%s18540_s13 + $0x550] sm:$0xf0]  ;;  %v16981_v6 = vld [vmem:[%s18540_s13 + $0x524] sm:$0xf] }
 0x1ca   : > { %9212 = vmatpush.bf16.msrb.mxu3 %v11856_v50  ;;  %v8946_v56 = vadd.f32 %v8945_v54, %v8933_v3  ;;  %v8934_v50 = vpop.f32.mrf.mxu1  ;;  %v11696_v3 = vor.u32 %v16921_v53, %v11693_v10  ;;  %v16913_v53 = vld [vmem:[%s18540_s13 + $0x304] sm:$0xf]  ;;  %v11680_v54 = vor.u32 %v16917_v51, %v11677_v48  ;;  %v11661_v10 = vld [vmem:[%s18540_s13 + $0x310] sm:$0xf0] }
 0x1cb   : > { %9187 = vmatpush.bf16.msrb.mxu0 %v11584_v32  ;;  %v16949_v32 = vld [vmem:[%s18540_s13 + $0x424] sm:$0xf]  ;;  %v11933_v43 = vld [vmem:[%s18540_s13 + $0x530] sm:$0xf0]  ;;  %v11664_v48 = vor.u32 %v16913_v53, %v11661_v10 }
 0x1cc   : > { %9200 = vmatpush.bf16.msrb.mxu1 %v11712_v34  ;;  %v19527_v2 = vadd.f32 %v8958_v0, %v8946_v56  ;;  %v16881_v34 = vld [vmem:[%s18540_s13 + $0x204] sm:$0xf]  ;;  %v11952_v56 = vor.u32 %v16985_v4, %v11949_v55  ;;  %v12285_v50 = vld [vmem:[%s18540_s13 + $0x7f0] sm:$0xf0]  ;;  %v11936_v4 = vor.u32 %v16981_v6, %v11933_v43 }
 0x1cd   : > { %9224 = vmatpush.bf16.msra.mxu2 %v12000_v47  ;;  %v11824_v47 = vor.u32 %v16953_v61, %v11821_v20  ;;  %v17037_v61 = vld [vmem:[%s18540_s13 + $0x6e4] sm:$0xf]  ;;  %v12157_v20 = vld [vmem:[%s18540_s13 + $0x6f0] sm:$0xf0] }
 0x1ce   : > { %9213 = vmatpush.bf16.msrb.mxu3 %v11840_v52  ;;  %v11533_v52 = vld [vmem:[%s18540_s13 + $0x210] sm:$0xf0]  ;;  %v16945_v0 = vld [vmem:[%s18540_s13 + $0x404] sm:$0xf] }
 0x1cf   : > { %9188 = vmatpush.bf16.msrb.mxu0 %v11568_v1  ;;  %v11789_v1 = vld [vmem:[%s18540_s13 + $0x410] sm:$0xf0]  ;;  %v11536_v40 = vor.u32 %v16881_v34, %v11533_v52  ;;  %v17069_v27 = vld [vmem:[%s18540_s13 + $0x7e4] sm:$0xf] }
 0x1d0   : > { %9201 = vmatpush.bf16.msrb.mxu1 %v11696_v3  ;;  %v8960_v3 = vpop.f32.mrf.mxu3  ;;  %v17101_v51 = vld [vmem:[%s18540_s13 + $0x8e4] sm:$0xf]  ;;  %v12288_v55 = vor.u32 %v17069_v27, %v12285_v50  ;;  %v11917_v52 = vld [vmem:[%s18540_s13 + $0x510] sm:$0xf0] }
 0x1d1   : > { %9225 = vmatpush.bf16.msra.mxu2 %v11984_v18  ;;  %v11808_v18 = vor.u32 %v16949_v32, %v11805_v9  ;;  %v8947_v24 = vpop.f32.mrf.mxu2  ;;  %v11792_v32 = vor.u32 %v16945_v0, %v11789_v1  ;;  %v17033_v9 = vld [vmem:[%s18540_s13 + $0x6c4] sm:$0xf]  ;;  %v12541_v0 = vld [vmem:[%s18540_s13 + $0x9f0] sm:$0xf0] }
 0x1d2   : > { %9214 = vmatpush.bf16.msrb.mxu3 %v11824_v47  ;;  %v12160_v47 = vor.u32 %v17037_v61, %v12157_v20  ;;  %v16977_v34 = vld [vmem:[%s18540_s13 + $0x504] sm:$0xf]  ;;  %v12269_v24 = vld [vmem:[%s18540_s13 + $0x7d0] sm:$0xf0] }
 0x1d3   : > { %9189 = vmatpush.bf16.msrb.mxu0 %v11552_v60  ;;  %v12141_v60 = vld [vmem:[%s18540_s13 + $0x6d0] sm:$0xf0]  ;;  %v17065_v20 = vld [vmem:[%s18540_s13 + $0x7c4] sm:$0xf]  ;;  %v11920_v6 = vor.u32 %v16977_v34, %v11917_v52 }
 0x1d4   : > { %9202 = vmatpush.bf16.msrb.mxu1 %v11680_v54  ;;  %v17097_v54 = vld [vmem:[%s18540_s13 + $0x8c4] sm:$0xf]  ;;  %v12144_v53 = vor.u32 %v17033_v9, %v12141_v60  ;;  %v12125_v1 = vld [vmem:[%s18540_s13 + $0x6b0] sm:$0xf0] }
 0x1d5   : > { %9226 = vmatpush.bf16.msra.mxu2 %v11968_v15  ;;  %v12413_v15 = vld [vmem:[%s18540_s13 + $0x8f0] sm:$0xf0]  ;;  %v17133_v10 = vld [vmem:[%s18540_s13 + $0x9e4] sm:$0xf] }
 0x1d6   : > { %9215 = vmatpush.bf16.msrb.mxu3 %v11808_v18  ;;  %v12416_v61 = vor.u32 %v17101_v51, %v12413_v15  ;;  %v12397_v18 = vld [vmem:[%s18540_s13 + $0x8d0] sm:$0xf0]  ;;  %v12544_v27 = vor.u32 %v17133_v10, %v12541_v0  ;;  %v17061_v50 = vld [vmem:[%s18540_s13 + $0x7a4] sm:$0xf]  ;;  %v8971_v10 = vpop.f32.mrf.mxu0 }
 0x1d7   : > { %9190 = vmatpush.bf16.msrb.mxu0 %v11536_v40  ;;  %v12272_v40 = vor.u32 %v17065_v20, %v12269_v24  ;;  %v12400_v43 = vor.u32 %v17097_v54, %v12397_v18  ;;  %v12253_v3 = vld [vmem:[%s18540_s13 + $0x7b0] sm:$0xf0]  ;;  %v17025_v9 = vld [vmem:[%s18540_s13 + $0x684] sm:$0xf] }
 0x1d8   : > { %9203 = vmatpush.bf16.msrb.mxu1 %v11664_v48  ;;  %v12381_v15 = vld [vmem:[%s18540_s13 + $0x8b0] sm:$0xf0]  ;;  %v17129_v48 = vld [vmem:[%s18540_s13 + $0x9c4] sm:$0xf] }
 0x1d9   : > { %9227 = vmatpush.bf16.msra.mxu2 %v11952_v56  ;;  %v17029_v56 = vld [vmem:[%s18540_s13 + $0x6a4] sm:$0xf]  ;;  %v12109_v60 = vld [vmem:[%s18540_s13 + $0x690] sm:$0xf0] }
 0x1da   : > { %9216 = vmatpush.bf16.msrb.mxu3 %v11792_v32  ;;  %9191 = vmatmul.bf16.vlgmr.msrb.gmra.mxu0 %v18648_v7  ;;  %v12128_v51 = vor.u32 %v17029_v56, %v12125_v1  ;;  %v12525_v32 = vld [vmem:[%s18540_s13 + $0x9d0] sm:$0xf0]  ;;  %v17057_v52 = vld [vmem:[%s18540_s13 + $0x784] sm:$0xf]  ;;  %v12112_v24 = vor.u32 %v17025_v9, %v12109_v60  ;;  %v8972_v1 = vadd.f32 %v8971_v10, %v19527_v2 }
 0x1db   : > { %9235 = vmatpush.bf16.msra.mxu0 %v12160_v47  ;;  %v17093_v47 = vld [vmem:[%s18540_s13 + $0x8a4] sm:$0xf]  ;;  %9204 = vmatmul.bf16.vlgmr.msrb.gmra.mxu1 %v18650_v8  ;;  %v12528_v34 = vor.u32 %v17129_v48, %v12525_v32  ;;  %v12365_v54 = vld [vmem:[%s18540_s13 + $0x890] sm:$0xf0] }
 0x1dc   : > { %9248 = vmatpush.bf16.msra.mxu1 %v12288_v55  ;;  %v12384_v55 = vor.u32 %v17093_v47, %v12381_v15  ;;  %v17089_v20 = vld [vmem:[%s18540_s13 + $0x884] sm:$0xf]  ;;  %v12509_v18 = vld [vmem:[%s18540_s13 + $0x9b0] sm:$0xf0] }
 0x1dd   : > { %9228 = vmatpush.bf16.msra.mxu2 %v11936_v4  ;;  %9217 = vmatmul.bf16.vlgmr.msrb.gmra.mxu3 %v18724_v41  ;;  %v12256_v4 = vor.u32 %v17061_v50, %v12253_v3  ;;  %v17021_v0 = vld [vmem:[%s18540_s13 + $0x664] sm:$0xf]  ;;  %v12093_v56 = vld [vmem:[%s18540_s13 + $0x670] sm:$0xf0] }
 0x1de   : > { %9261 = vmatpush.bf16.msra.mxu3 %v12416_v61  ;;  %v12237_v61 = vld [vmem:[%s18540_s13 + $0x790] sm:$0xf0]  ;;  %v17053_v50 = vld [vmem:[%s18540_s13 + $0x764] sm:$0xf]  ;;  %v12096_v15 = vor.u32 %v17021_v0, %v12093_v56 }
 0x1df   : > { %9236 = vmatpush.bf16.msra.mxu0 %v12144_v53  ;;  %v17125_v53 = vld [vmem:[%s18540_s13 + $0x9a4] sm:$0xf]  ;;  %v12221_v3 = vld [vmem:[%s18540_s13 + $0x770] sm:$0xf0]  ;;  %v9010_v56 = vpop.f32.mrf.mxu3 }
 0x1e0   : > { %9249 = vmatpush.bf16.msra.mxu1 %v12272_v40  ;;  %v8984_v40 = vpop.f32.mrf.mxu1  ;;  %v17085_v47 = vld [vmem:[%s18540_s13 + $0x864] sm:$0xf]  ;;  %v12349_v48 = vld [vmem:[%s18540_s13 + $0x870] sm:$0xf0] }
 0x1e1   : > { %9229 = vmatpush.bf16.msra.mxu2 %v11920_v6  ;;  %v12240_v6 = vor.u32 %v17057_v52, %v12237_v61  ;;  %v17121_v32 = vld [vmem:[%s18540_s13 + $0x984] sm:$0xf]  ;;  %v12493_v2 = vld [vmem:[%s18540_s13 + $0x990] sm:$0xf0] }
 0x1e2   : > { %9262 = vmatpush.bf16.msra.mxu3 %v12400_v43  ;;  %v12368_v43 = vor.u32 %v17089_v20, %v12365_v54  ;;  %v17017_v9 = vld [vmem:[%s18540_s13 + $0x644] sm:$0xf]  ;;  %v12077_v60 = vld [vmem:[%s18540_s13 + $0x650] sm:$0xf0] }
 0x1e3   : > { %9237 = vmatpush.bf16.msra.mxu0 %v12128_v51  ;;  %v8985_v51 = vadd.f32 %v8984_v40, %v8972_v1  ;;  %v17049_v52 = vld [vmem:[%s18540_s13 + $0x744] sm:$0xf]  ;;  %v12205_v61 = vld [vmem:[%s18540_s13 + $0x750] sm:$0xf0]  ;;  %v12080_v54 = vor.u32 %v17017_v9, %v12077_v60  ;;  %v8973_v40 = vpop.f32.mrf.mxu0 }
 0x1e4   : > { %9230 = vmatmul.bf16.vlgmr.msra.gmra.mxu2 %v18728_v44  ;;  %9250 = vmatpush.bf16.msra.mxu1 %v12256_v4  ;;  %v12224_v4 = vor.u32 %v17053_v50, %v12221_v3  ;;  %v17081_v20 = vld [vmem:[%s18540_s13 + $0x844] sm:$0xf]  ;;  %v12477_v10 = vld [vmem:[%s18540_s13 + $0x970] sm:$0xf0] }
 0x1e5   : > { %9274 = vmatpush.bf16.msrb.mxu2 %v12544_v27  ;;  %v12512_v27 = vor.u32 %v17125_v53, %v12509_v18  ;;  %v12333_v53 = vld [vmem:[%s18540_s13 + $0x850] sm:$0xf0]  ;;  %v17117_v18 = vld [vmem:[%s18540_s13 + $0x964] sm:$0xf] }
 0x1e6   : > { %9263 = vmatpush.bf16.msra.mxu3 %v12384_v55  ;;  %v12352_v55 = vor.u32 %v17085_v47, %v12349_v48  ;;  %v17013_v1 = vld [vmem:[%s18540_s13 + $0x624] sm:$0xf]  ;;  %v12336_v3 = vor.u32 %v17081_v20, %v12333_v53  ;;  %v12480_v47 = vor.u32 %v17117_v18, %v12477_v10  ;;  %v12461_v60 = vld [vmem:[%s18540_s13 + $0x950] sm:$0xf0] }
 0x1e7   : > { %9238 = vmatpush.bf16.msra.mxu0 %v12112_v24  ;;  %v8997_v24 = vpop.f32.mrf.mxu2  ;;  %v17077_v48 = vld [vmem:[%s18540_s13 + $0x824] sm:$0xf]  ;;  %v12669_v20 = vld [vmem:[%s18540_s13 + $0xaf0] sm:$0xf0] }
 0x1e8   : > { %9251 = vmatpush.bf16.msra.mxu1 %v12240_v6  ;;  %v8998_v0 = vadd.f32 %v8997_v24, %v8985_v51  ;;  %v12061_v6 = vld [vmem:[%s18540_s13 + $0x630] sm:$0xf0]  ;;  %v17045_v51 = vld [vmem:[%s18540_s13 + $0x724] sm:$0xf] }
 0x1e9   : > { %9275 = vmatpush.bf16.msrb.mxu2 %v12528_v34  ;;  %v12496_v34 = vor.u32 %v17121_v32, %v12493_v2  ;;  %v12064_v32 = vor.u32 %v17013_v1, %v12061_v6  ;;  %v12317_v2 = vld [vmem:[%s18540_s13 + $0x830] sm:$0xf0]  ;;  %v17113_v9 = vld [vmem:[%s18540_s13 + $0x944] sm:$0xf] }
 0x1ea   : > { %9264 = vmatpush.bf16.msra.mxu3 %v12368_v43  ;;  %v12208_v43 = vor.u32 %v17049_v52, %v12205_v61  ;;  %v19598_v50 = vadd.f32 %v9010_v56, %v8998_v0  ;;  %v17041_v52 = vld [vmem:[%s18540_s13 + $0x704] sm:$0xf]  ;;  %v12320_v24 = vor.u32 %v17077_v48, %v12317_v2  ;;  %v12173_v53 = vld [vmem:[%s18540_s13 + $0x710] sm:$0xf0] }
 0x1eb   : > { %9239 = vmatpush.bf16.msra.mxu0 %v12096_v15  ;;  %v12189_v15 = vld [vmem:[%s18540_s13 + $0x730] sm:$0xf0]  ;;  %v17165_v61 = vld [vmem:[%s18540_s13 + $0xae4] sm:$0xf] }
 0x1ec   : > { %9252 = vmatpush.bf16.msra.mxu1 %v12224_v4  ;;  %v17009_v4 = vld [vmem:[%s18540_s13 + $0x604] sm:$0xf]  ;;  %v12301_v10 = vld [vmem:[%s18540_s13 + $0x810] sm:$0xf0] }
 0x1ed   : > { %9276 = vmatpush.bf16.msrb.mxu2 %v12512_v27  ;;  %v8986_v27 = vpop.f32.mrf.mxu1  ;;  %v17073_v18 = vld [vmem:[%s18540_s13 + $0x804] sm:$0xf]  ;;  %v12445_v1 = vld [vmem:[%s18540_s13 + $0x930] sm:$0xf0] }
 0x1ee   : > { %9265 = vmatpush.bf16.msra.mxu3 %v12352_v55  ;;  %v12045_v55 = vld [vmem:[%s18540_s13 + $0x610] sm:$0xf0]  ;;  %v17109_v56 = vld [vmem:[%s18540_s13 + $0x924] sm:$0xf]  ;;  %v12304_v48 = vor.u32 %v17073_v18, %v12301_v10 }
 0x1ef   : > { %9240 = vmatpush.bf16.msra.mxu0 %v12080_v54  ;;  %v12464_v54 = vor.u32 %v17113_v9, %v12461_v60  ;;  %v12048_v0 = vor.u32 %v17009_v4, %v12045_v55  ;;  %v17197_v6 = vld [vmem:[%s18540_s13 + $0xbe4] sm:$0xf]  ;;  %v8999_v40 = vpop.f32.mrf.mxu2  ;;  %v12797_v27 = vld [vmem:[%s18540_s13 + $0xbf0] sm:$0xf0] }
 0x1f0   : > { %9253 = vmatpush.bf16.msra.mxu1 %v12208_v43  ;;  %v12672_v43 = vor.u32 %v17165_v61, %v12669_v20  ;;  %v17161_v2 = vld [vmem:[%s18540_s13 + $0xac4] sm:$0xf]  ;;  %v12653_v9 = vld [vmem:[%s18540_s13 + $0xad0] sm:$0xf0]  ;;  %v12800_v60 = vor.u32 %v17197_v6, %v12797_v27 }
 0x1f1   : > { %9277 = vmatpush.bf16.msrb.mxu2 %v12496_v34  ;;  %v12192_v34 = vor.u32 %v17045_v51, %v12189_v15  ;;  %v9012_v51 = vpop.f32.mrf.mxu3  ;;  %v12176_v15 = vor.u32 %v17041_v52, %v12173_v53  ;;  %v17105_v55 = vld [vmem:[%s18540_s13 + $0x904] sm:$0xf]  ;;  %v12429_v61 = vld [vmem:[%s18540_s13 + $0x910] sm:$0xf0] }
 0x1f2   : > { %9266 = vmatpush.bf16.msra.mxu3 %v12336_v3  ;;  %v17229_v3 = vld [vmem:[%s18540_s13 + $0xce4] sm:$0xf]  ;;  %v13053_v18 = vld [vmem:[%s18540_s13 + $0xdf0] sm:$0xf0]  ;;  %v12432_v10 = vor.u32 %v17105_v55, %v12429_v61 }
 0x1f3   : > { %9241 = vmatpush.bf16.msra.mxu0 %v12064_v32  ;;  %v12448_v32 = vor.u32 %v17109_v56, %v12445_v1  ;;  %v17193_v20 = vld [vmem:[%s18540_s13 + $0xbc4] sm:$0xf]  ;;  %v12637_v56 = vld [vmem:[%s18540_s13 + $0xab0] sm:$0xf0] }
 0x1f4   : > { %9254 = vmatpush.bf16.msra.mxu1 %v12192_v34  ;;  %v12781_v34 = vld [vmem:[%s18540_s13 + $0xbd0] sm:$0xf0]  ;;  %v17225_v52 = vld [vmem:[%s18540_s13 + $0xcc4] sm:$0xf] }
 0x1f5   : > { %9278 = vmatpush.bf16.msrb.mxu2 %v12480_v47  ;;  %v12925_v47 = vld [vmem:[%s18540_s13 + $0xcf0] sm:$0xf0]  ;;  %v17261_v53 = vld [vmem:[%s18540_s13 + $0xde4] sm:$0xf]  ;;  %v12784_v1 = vor.u32 %v17193_v20, %v12781_v34 }
 0x1f6   : > { %9267 = vmatpush.bf16.msra.mxu3 %v12320_v24  ;;  %v12928_v4 = vor.u32 %v17229_v3, %v12925_v47  ;;  %v12909_v24 = vld [vmem:[%s18540_s13 + $0xcd0] sm:$0xf0]  ;;  %v17189_v40 = vld [vmem:[%s18540_s13 + $0xba4] sm:$0xf] }
 0x1f7   : > { %9242 = vmatpush.bf16.msra.mxu0 %v12048_v0  ;;  %v17157_v0 = vld [vmem:[%s18540_s13 + $0xaa4] sm:$0xf]  ;;  %v12912_v6 = vor.u32 %v17225_v52, %v12909_v24  ;;  %v12765_v27 = vld [vmem:[%s18540_s13 + $0xbb0] sm:$0xf0] }
 0x1f8   : > { %9255 = vmatpush.bf16.msra.mxu1 %v12176_v15  ;;  %v17221_v3 = vld [vmem:[%s18540_s13 + $0xca4] sm:$0xf]  ;;  %v12893_v47 = vld [vmem:[%s18540_s13 + $0xcb0] sm:$0xf0]  ;;  %v12640_v51 = vor.u32 %v17157_v0, %v12637_v56 }
 0x1f9   : > { %9279 = vmatpush.bf16.msrb.mxu2 %v12464_v54  ;;  %v12656_v54 = vor.u32 %v17161_v2, %v12653_v9  ;;  %v17257_v15 = vld [vmem:[%s18540_s13 + $0xdc4] sm:$0xf]  ;;  %v12621_v2 = vld [vmem:[%s18540_s13 + $0xa90] sm:$0xf0]  ;;  %v12768_v9 = vor.u32 %v17189_v40, %v12765_v27 }
 0x1fa   : > { %9268 = vmatpush.bf16.msra.mxu3 %v12304_v48  ;;  %9243 = vmatmul.bf16.vlgmr.msra.gmra.mxu0 %v18720_v38  ;;  %v13037_v48 = vld [vmem:[%s18540_s13 + $0xdd0] sm:$0xf0]  ;;  %v17217_v20 = vld [vmem:[%s18540_s13 + $0xc84] sm:$0xf] }
 0x1fb   : > { %9287 = vmatpush.bf16.msrb.mxu0 %v12672_v43  ;;  %9256 = vmatmul.bf16.vlgmr.msra.gmra.mxu1 %v18726_v42  ;;  %v13056_v43 = vor.u32 %v17261_v53, %v13053_v18  ;;  %v13040_v55 = vor.u32 %v17257_v15, %v13037_v48  ;;  %v12749_v61 = vld [vmem:[%s18540_s13 + $0xb90] sm:$0xf0]  ;;  %v17253_v24 = vld [vmem:[%s18540_s13 + $0xda4] sm:$0xf]  ;;  %v9023_v53 = vpop.f32.mrf.mxu0 }
 0x1fc   : > { %9300 = vmatpush.bf16.msrb.mxu1 %v12800_v60  ;;  %v12896_v60 = vor.u32 %v17221_v3, %v12893_v47  ;;  %v12877_v34 = vld [vmem:[%s18540_s13 + $0xc90] sm:$0xf0]  ;;  %v17149_v18 = vld [vmem:[%s18540_s13 + $0xa64] sm:$0xf]  ;;  %v9024_v0 = vadd.f32 %v9023_v53, %v19598_v50 }
 0x1fd   : > { %9280 = vmatpush.bf16.msrb.mxu2 %v12448_v32  ;;  %9269 = vmatmul.bf16.vlgmr.msra.gmra.mxu3 %v18799_v25  ;;  %v17153_v32 = vld [vmem:[%s18540_s13 + $0xa84] sm:$0xf]  ;;  %v12733_v27 = vld [vmem:[%s18540_s13 + $0xb70] sm:$0xf0] }
 0x1fe   : > { %9313 = vmatpush.bf16.msrb.mxu3 %v12928_v4  ;;  %v17185_v4 = vld [vmem:[%s18540_s13 + $0xb84] sm:$0xf]  ;;  %v12624_v52 = vor.u32 %v17153_v32, %v12621_v2  ;;  %v12861_v47 = vld [vmem:[%s18540_s13 + $0xc70] sm:$0xf0] }
 0x1ff   : > { %9288 = vmatpush.bf16.msrb.mxu0 %v12656_v54  ;;  %v13021_v54 = vld [vmem:[%s18540_s13 + $0xdb0] sm:$0xf0]  ;;  %v12752_v56 = vor.u32 %v17185_v4, %v12749_v61  ;;  %v17181_v40 = vld [vmem:[%s18540_s13 + $0xb64] sm:$0xf] }
 0x200   : > { %9301 = vmatpush.bf16.msrb.mxu1 %v12784_v1  ;;  %v12880_v1 = vor.u32 %v17217_v20, %v12877_v34  ;;  %v17213_v3 = vld [vmem:[%s18540_s13 + $0xc64] sm:$0xf]  ;;  %v13005_v32 = vld [vmem:[%s18540_s13 + $0xd90] sm:$0xf0] }
 0x201   : > { %9281 = vmatpush.bf16.msrb.mxu2 %v12432_v10  ;;  %v12605_v10 = vld [vmem:[%s18540_s13 + $0xa70] sm:$0xf0]  ;;  %v17249_v48 = vld [vmem:[%s18540_s13 + $0xd84] sm:$0xf] }
 0x202   : > { %9314 = vmatpush.bf16.msrb.mxu3 %v12912_v6  ;;  %v9036_v6 = vpop.f32.mrf.mxu1  ;;  %v12608_v15 = vor.u32 %v17149_v18, %v12605_v10  ;;  %v17145_v50 = vld [vmem:[%s18540_s13 + $0xa44] sm:$0xf]  ;;  %v12589_v2 = vld [vmem:[%s18540_s13 + $0xa50] sm:$0xf0]  ;;  %v9062_v10 = vpop.f32.mrf.mxu3 }
 0x203   : > { %9289 = vmatpush.bf16.msrb.mxu0 %v12640_v51  ;;  %v9037_v51 = vadd.f32 %v9036_v6, %v9024_v0  ;;  %v17177_v4 = vld [vmem:[%s18540_s13 + $0xb44] sm:$0xf]  ;;  %v12717_v61 = vld [vmem:[%s18540_s13 + $0xb50] sm:$0xf0] }
 0x204   : > { %9282 = vmatmul.bf16.vlgmr.msrb.gmra.mxu2 %v18806_v30  ;;  %9302 = vmatpush.bf16.msrb.mxu1 %v12768_v9  ;;  %v12736_v9 = vor.u32 %v17181_v40, %v12733_v27  ;;  %v17209_v20 = vld [vmem:[%s18540_s13 + $0xc44] sm:$0xf]  ;;  %v12845_v34 = vld [vmem:[%s18540_s13 + $0xc50] sm:$0xf0]  ;;  %v12720_v6 = vor.u32 %v17177_v4, %v12717_v61 }
 0x205   : > { %9326 = vmatpush.bf16.msra.mxu2 %v13056_v43  ;;  %v13024_v43 = vor.u32 %v17253_v24, %v13021_v54  ;;  %v12592_v24 = vor.u32 %v17145_v50, %v12589_v2  ;;  %v17245_v54 = vld [vmem:[%s18540_s13 + $0xd64] sm:$0xf]  ;;  %v12989_v53 = vld [vmem:[%s18540_s13 + $0xd70] sm:$0xf0]  ;;  %v12848_v40 = vor.u32 %v17209_v20, %v12845_v34 }
 0x206   : > { %9315 = vmatpush.bf16.msrb.mxu3 %v12896_v60  ;;  %v12864_v60 = vor.u32 %v17213_v3, %v12861_v47  ;;  %v17141_v0 = vld [vmem:[%s18540_s13 + $0xa24] sm:$0xf]  ;;  %v12992_v47 = vor.u32 %v17245_v54, %v12989_v53  ;;  %v12973_v2 = vld [vmem:[%s18540_s13 + $0xd50] sm:$0xf0] }
 0x207   : > { %9290 = vmatpush.bf16.msrb.mxu0 %v12624_v52  ;;  %v9049_v52 = vpop.f32.mrf.mxu2  ;;  %v17241_v50 = vld [vmem:[%s18540_s13 + $0xd44] sm:$0xf]  ;;  %v12685_v20 = vld [vmem:[%s18540_s13 + $0xb10] sm:$0xf0] }
 0x208   : > { %9303 = vmatpush.bf16.msrb.mxu1 %v12752_v56  ;;  %v9050_v18 = vadd.f32 %v9049_v52, %v9037_v51  ;;  %v12573_v56 = vld [vmem:[%s18540_s13 + $0xa30] sm:$0xf0]  ;;  %v17169_v4 = vld [vmem:[%s18540_s13 + $0xb04] sm:$0xf] }
 0x209   : > { %9327 = vmatpush.bf16.msra.mxu2 %v13040_v55  ;;  %v13008_v55 = vor.u32 %v17249_v48, %v13005_v32  ;;  %v12701_v51 = vld [vmem:[%s18540_s13 + $0xb30] sm:$0xf0]  ;;  %v12576_v32 = vor.u32 %v17141_v0, %v12573_v56  ;;  %v17293_v34 = vld [vmem:[%s18540_s13 + $0xee4] sm:$0xf] }
 0x20a   : > { %9316 = vmatpush.bf16.msrb.mxu3 %v12880_v1  ;;  %v9025_v1 = vpop.f32.mrf.mxu0  ;;  %v9038_v27 = vpop.f32.mrf.mxu1  ;;  %v19670_v3 = vadd.f32 %v9062_v10, %v9050_v18  ;;  %v12829_v48 = vld [vmem:[%s18540_s13 + $0xc30] sm:$0xf0]  ;;  %v17201_v54 = vld [vmem:[%s18540_s13 + $0xc04] sm:$0xf] }
 0x20b   : > { %9291 = vmatpush.bf16.msrb.mxu0 %v12608_v15  ;;  %v17205_v15 = vld [vmem:[%s18540_s13 + $0xc24] sm:$0xf]  ;;  %v13181_v52 = vld [vmem:[%s18540_s13 + $0xef0] sm:$0xf0] }
 0x20c   : > { %9304 = vmatpush.bf16.msrb.mxu1 %v12736_v9  ;;  %v17137_v9 = vld [vmem:[%s18540_s13 + $0xa04] sm:$0xf]  ;;  %v12832_v61 = vor.u32 %v17205_v15, %v12829_v48  ;;  %v12813_v53 = vld [vmem:[%s18540_s13 + $0xc10] sm:$0xf0] }
 0x20d   : > { %9328 = vmatpush.bf16.msra.mxu2 %v13024_v43  ;;  %v17173_v43 = vld [vmem:[%s18540_s13 + $0xb24] sm:$0xf]  ;;  %v12957_v0 = vld [vmem:[%s18540_s13 + $0xd30] sm:$0xf0]  ;;  %v12816_v15 = vor.u32 %v17201_v54, %v12813_v53 }
 0x20e   : > { %9317 = vmatpush.bf16.msrb.mxu3 %v12864_v60  ;;  %v12557_v60 = vld [vmem:[%s18540_s13 + $0xa10] sm:$0xf0]  ;;  %v17237_v18 = vld [vmem:[%s18540_s13 + $0xd24] sm:$0xf] }
 0x20f   : > { %9292 = vmatpush.bf16.msrb.mxu0 %v12592_v24  ;;  %v12976_v24 = vor.u32 %v17241_v50, %v12973_v2  ;;  %v12560_v10 = vor.u32 %v17137_v9, %v12557_v60  ;;  %v17325_v56 = vld [vmem:[%s18540_s13 + $0xfe4] sm:$0xf]  ;;  %v13309_v1 = vld [vmem:[%s18540_s13 + $0xff0] sm:$0xf0] }
 0x210   : > { %9305 = vmatpush.bf16.msrb.mxu1 %v12720_v6  ;;  %v9051_v6 = vpop.f32.mrf.mxu2  ;;  %v13437_v27 = vld [vmem:[%s18540_s13 + $0x10f0] sm:$0xf0]  ;;  %v17233_v48 = vld [vmem:[%s18540_s13 + $0xd04] sm:$0xf]  ;;  %v13312_v50 = vor.u32 %v17325_v56, %v13309_v1 }
 0x211   : > { %9329 = vmatpush.bf16.msra.mxu2 %v13008_v55  ;;  %v12704_v55 = vor.u32 %v17173_v43, %v12701_v51  ;;  %v17357_v43 = vld [vmem:[%s18540_s13 + $0x10e4] sm:$0xf]  ;;  %v12688_v51 = vor.u32 %v17169_v4, %v12685_v20  ;;  %v12941_v2 = vld [vmem:[%s18540_s13 + $0xd10] sm:$0xf0] }
 0x212   : > { %9318 = vmatpush.bf16.msrb.mxu3 %v12848_v40  ;;  %v13184_v40 = vor.u32 %v17293_v34, %v13181_v52  ;;  %v17289_v9 = vld [vmem:[%s18540_s13 + $0xec4] sm:$0xf]  ;;  %v13165_v60 = vld [vmem:[%s18540_s13 + $0xed0] sm:$0xf0]  ;;  %v13440_v34 = vor.u32 %v17357_v43, %v13437_v27  ;;  %v12944_v54 = vor.u32 %v17233_v48, %v12941_v2 }
 0x213   : > { %9293 = vmatpush.bf16.msrb.mxu0 %v12576_v32  ;;  %v12960_v32 = vor.u32 %v17237_v18, %v12957_v0  ;;  %v17321_v52 = vld [vmem:[%s18540_s13 + $0xfc4] sm:$0xf]  ;;  %v13293_v6 = vld [vmem:[%s18540_s13 + $0xfd0] sm:$0xf0] }
 0x214   : > { %9306 = vmatpush.bf16.msrb.mxu1 %v12704_v55  ;;  %v17353_v55 = vld [vmem:[%s18540_s13 + $0x10c4] sm:$0xf]  ;;  %v13565_v20 = vld [vmem:[%s18540_s13 + $0x11f0] sm:$0xf0]  ;;  %v13296_v53 = vor.u32 %v17321_v52, %v13293_v6 }
 0x215   : > { %9330 = vmatpush.bf16.msra.mxu2 %v12992_v47  ;;  %v9064_v47 = vpop.f32.mrf.mxu3  ;;  %v17389_v4 = vld [vmem:[%s18540_s13 + $0x11e4] sm:$0xf]  ;;  %v13405_v27 = vld [vmem:[%s18540_s13 + $0x10b0] sm:$0xf0] }
 0x216   : > { %9319 = vmatpush.bf16.msrb.mxu3 %v12832_v61  ;;  %v13421_v61 = vld [vmem:[%s18540_s13 + $0x10d0] sm:$0xf0]  ;;  %v17285_v18 = vld [vmem:[%s18540_s13 + $0xea4] sm:$0xf]  ;;  %v13568_v56 = vor.u32 %v17389_v4, %v13565_v20 }
 0x217   : > { %9294 = vmatpush.bf16.msrb.mxu0 %v12560_v10  ;;  %v13149_v10 = vld [vmem:[%s18540_s13 + $0xeb0] sm:$0xf0]  ;;  %v13424_v0 = vor.u32 %v17353_v55, %v13421_v61  ;;  %v17317_v1 = vld [vmem:[%s18540_s13 + $0xfa4] sm:$0xf]  ;;  %v9075_v20 = vpop.f32.mrf.mxu0 }
 0x218   : > { %9307 = vmatpush.bf16.msrb.mxu1 %v12688_v51  ;;  %v17349_v43 = vld [vmem:[%s18540_s13 + $0x10a4] sm:$0xf]  ;;  %v13549_v51 = vld [vmem:[%s18540_s13 + $0x11d0] sm:$0xf0] }
 0x219   : > { %9331 = vmatpush.bf16.msra.mxu2 %v12976_v24  ;;  %v13168_v24 = vor.u32 %v17289_v9, %v13165_v60  ;;  %v17385_v47 = vld [vmem:[%s18540_s13 + $0x11c4] sm:$0xf]  ;;  %v13408_v2 = vor.u32 %v17349_v43, %v13405_v27  ;;  %v13389_v6 = vld [vmem:[%s18540_s13 + $0x1090] sm:$0xf0] }
 0x21a   : > { %9320 = vmatpush.bf16.msrb.mxu3 %v12816_v15  ;;  %9295 = vmatmul.bf16.vlgmr.msrb.gmra.mxu0 %v18804_v29  ;;  %v13152_v15 = vor.u32 %v17285_v18, %v13149_v10  ;;  %v13552_v9 = vor.u32 %v17385_v47, %v13549_v51  ;;  %v17313_v60 = vld [vmem:[%s18540_s13 + $0xf84] sm:$0xf]  ;;  %v13533_v61 = vld [vmem:[%s18540_s13 + $0x11b0] sm:$0xf0]  ;;  %v9076_v18 = vadd.f32 %v9075_v20, %v19670_v3 }
 0x21b   : > { %9339 = vmatpush.bf16.msra.mxu0 %v13184_v40  ;;  %v13277_v40 = vld [vmem:[%s18540_s13 + $0xfb0] sm:$0xf0]  ;;  %9308 = vmatmul.bf16.vlgmr.msrb.gmra.mxu1 %v18810_v33  ;;  %v17345_v52 = vld [vmem:[%s18540_s13 + $0x1084] sm:$0xf] }
 0x21c   : > { %9352 = vmatpush.bf16.msra.mxu1 %v13312_v50  ;;  %v13280_v48 = vor.u32 %v17317_v1, %v13277_v40  ;;  %v13133_v50 = vld [vmem:[%s18540_s13 + $0xe90] sm:$0xf0]  ;;  %v17381_v55 = vld [vmem:[%s18540_s13 + $0x11a4] sm:$0xf]  ;;  %v13392_v10 = vor.u32 %v17345_v52, %v13389_v6 }
 0x21d   : > { %9332 = vmatpush.bf16.msra.mxu2 %v12960_v32  ;;  %9321 = vmatmul.bf16.vlgmr.msrb.gmra.mxu3 %v18881_v23  ;;  %v17281_v32 = vld [vmem:[%s18540_s13 + $0xe84] sm:$0xf]  ;;  %v13245_v40 = vld [vmem:[%s18540_s13 + $0xf70] sm:$0xf0] }
 0x21e   : > { %9365 = vmatpush.bf16.msra.mxu3 %v13440_v34  ;;  %v13261_v34 = vld [vmem:[%s18540_s13 + $0xf90] sm:$0xf0]  ;;  %v13136_v4 = vor.u32 %v17281_v32, %v13133_v50  ;;  %v17309_v1 = vld [vmem:[%s18540_s13 + $0xf64] sm:$0xf] }
 0x21f   : > { %9340 = vmatpush.bf16.msra.mxu0 %v13168_v24  ;;  %v13264_v24 = vor.u32 %v17313_v60, %v13261_v34  ;;  %v17341_v43 = vld [vmem:[%s18540_s13 + $0x1064] sm:$0xf]  ;;  %v13373_v27 = vld [vmem:[%s18540_s13 + $0x1070] sm:$0xf0]  ;;  %v13248_v3 = vor.u32 %v17309_v1, %v13245_v40 }
 0x220   : > { %9353 = vmatpush.bf16.msra.mxu1 %v13296_v53  ;;  %v13117_v53 = vld [vmem:[%s18540_s13 + $0xe70] sm:$0xf0]  ;;  %v17377_v47 = vld [vmem:[%s18540_s13 + $0x1184] sm:$0xf] }
 0x221   : > { %9333 = vmatpush.bf16.msra.mxu2 %v12944_v54  ;;  %v17277_v54 = vld [vmem:[%s18540_s13 + $0xe64] sm:$0xf]  ;;  %v13517_v51 = vld [vmem:[%s18540_s13 + $0x1190] sm:$0xf0] }
 0x222   : > { %9366 = vmatpush.bf16.msra.mxu3 %v13424_v0  ;;  %v9088_v0 = vpop.f32.mrf.mxu1  ;;  %v17273_v32 = vld [vmem:[%s18540_s13 + $0xe44] sm:$0xf]  ;;  %v13101_v50 = vld [vmem:[%s18540_s13 + $0xe50] sm:$0xf0] }
 0x223   : > { %9341 = vmatpush.bf16.msra.mxu0 %v13152_v15  ;;  %v9089_v15 = vadd.f32 %v9088_v0, %v9076_v18  ;;  %v17305_v60 = vld [vmem:[%s18540_s13 + $0xf44] sm:$0xf]  ;;  %v13229_v34 = vld [vmem:[%s18540_s13 + $0xf50] sm:$0xf0]  ;;  %v13104_v20 = vor.u32 %v17273_v32, %v13101_v50  ;;  %v9077_v0 = vpop.f32.mrf.mxu0 }
 0x224   : > { %9334 = vmatmul.bf16.vlgmr.msra.gmra.mxu2 %v18888_v31  ;;  %9354 = vmatpush.bf16.msra.mxu1 %v13280_v48  ;;  %v13120_v48 = vor.u32 %v17277_v54, %v13117_v53  ;;  %v17337_v52 = vld [vmem:[%s18540_s13 + $0x1044] sm:$0xf]  ;;  %v13357_v6 = vld [vmem:[%s18540_s13 + $0x1050] sm:$0xf0]  ;;  %v9114_v54 = vpop.f32.mrf.mxu3  ;;  %v13232_v53 = vor.u32 %v17305_v60, %v13229_v34 }
 0x225   : > { %9378 = vmatpush.bf16.msrb.mxu2 %v13568_v56  ;;  %v13536_v56 = vor.u32 %v17381_v55, %v13533_v61  ;;  %v17373_v55 = vld [vmem:[%s18540_s13 + $0x1164] sm:$0xf]  ;;  %v13501_v61 = vld [vmem:[%s18540_s13 + $0x1170] sm:$0xf0] }
 0x226   : > { %9367 = vmatpush.bf16.msra.mxu3 %v13408_v2  ;;  %v13376_v2 = vor.u32 %v17341_v43, %v13373_v27  ;;  %v17269_v18 = vld [vmem:[%s18540_s13 + $0xe24] sm:$0xf]  ;;  %v13504_v1 = vor.u32 %v17373_v55, %v13501_v61  ;;  %v13213_v43 = vld [vmem:[%s18540_s13 + $0xf30] sm:$0xf0] }
 0x227   : > { %9342 = vmatpush.bf16.msra.mxu0 %v13136_v4  ;;  %v9101_v4 = vpop.f32.mrf.mxu2  ;;  %v17301_v40 = vld [vmem:[%s18540_s13 + $0xf24] sm:$0xf]  ;;  %v13197_v34 = vld [vmem:[%s18540_s13 + $0xf10] sm:$0xf0] }
 0x228   : > { %9355 = vmatpush.bf16.msra.mxu1 %v13264_v24  ;;  %v9102_v24 = vadd.f32 %v9101_v4, %v9089_v15  ;;  %v17333_v27 = vld [vmem:[%s18540_s13 + $0x1024] sm:$0xf]  ;;  %v13341_v15 = vld [vmem:[%s18540_s13 + $0x1030] sm:$0xf0] }
 0x229   : > { %9379 = vmatpush.bf16.msrb.mxu2 %v13552_v9  ;;  %v13520_v9 = vor.u32 %v17377_v47, %v13517_v51  ;;  %v17265_v50 = vld [vmem:[%s18540_s13 + $0xe04] sm:$0xf]  ;;  %v13325_v61 = vld [vmem:[%s18540_s13 + $0x1010] sm:$0xf0] }
 0x22a   : > { %9368 = vmatpush.bf16.msra.mxu3 %v13392_v10  ;;  %v13085_v10 = vld [vmem:[%s18540_s13 + $0xe30] sm:$0xf0]  ;;  %v9090_v47 = vpop.f32.mrf.mxu1  ;;  %v19743_v51 = vadd.f32 %v9114_v54, %v9102_v24  ;;  %v17297_v60 = vld [vmem:[%s18540_s13 + $0xf04] sm:$0xf] }
 0x22b   : > { %9343 = vmatpush.bf16.msra.mxu0 %v13120_v48  ;;  %v17369_v48 = vld [vmem:[%s18540_s13 + $0x1144] sm:$0xf]  ;;  %v13088_v32 = vor.u32 %v17269_v18, %v13085_v10  ;;  %v13469_v54 = vld [vmem:[%s18540_s13 + $0x1130] sm:$0xf0] }
 0x22c   : > { %9356 = vmatpush.bf16.msra.mxu1 %v13248_v3  ;;  %v13485_v3 = vld [vmem:[%s18540_s13 + $0x1150] sm:$0xf0]  ;;  %v17421_v4 = vld [vmem:[%s18540_s13 + $0x12e4] sm:$0xf] }
 0x22d   : > { %9380 = vmatpush.bf16.msrb.mxu2 %v13536_v56  ;;  %v13360_v56 = vor.u32 %v17337_v52, %v13357_v6  ;;  %v17329_v52 = vld [vmem:[%s18540_s13 + $0x1004] sm:$0xf]  ;;  %v13344_v6 = vor.u32 %v17333_v27, %v13341_v15  ;;  %v13488_v55 = vor.u32 %v17369_v48, %v13485_v3  ;;  %v13821_v0 = vld [vmem:[%s18540_s13 + $0x13f0] sm:$0xf0]  ;;  %v9116_v27 = vpop.f32.mrf.mxu3 }
 0x22e   : > { %9369 = vmatpush.bf16.msra.mxu3 %v13376_v2  ;;  %v13069_v2 = vld [vmem:[%s18540_s13 + $0xe10] sm:$0xf0]  ;;  %v17365_v24 = vld [vmem:[%s18540_s13 + $0x1124] sm:$0xf]  ;;  %v13328_v47 = vor.u32 %v17329_v52, %v13325_v61 }
 0x22f   : > { %9344 = vmatpush.bf16.msra.mxu0 %v13104_v20  ;;  %v13693_v20 = vld [vmem:[%s18540_s13 + $0x12f0] sm:$0xf0]  ;;  %v17453_v18 = vld [vmem:[%s18540_s13 + $0x13e4] sm:$0xf]  ;;  %v13072_v10 = vor.u32 %v17265_v50, %v13069_v2  ;;  %v13472_v15 = vor.u32 %v17365_v24, %v13469_v54 }
 0x230   : > { %9357 = vmatpush.bf16.msra.mxu1 %v13232_v53  ;;  %v9103_v53 = vpop.f32.mrf.mxu2  ;;  %v17417_v48 = vld [vmem:[%s18540_s13 + $0x12c4] sm:$0xf]  ;;  %v13677_v3 = vld [vmem:[%s18540_s13 + $0x12d0] sm:$0xf0] }
 0x231   : > { %9381 = vmatpush.bf16.msrb.mxu2 %v13520_v9  ;;  %v13216_v9 = vor.u32 %v17301_v40, %v13213_v43  ;;  %v17485_v40 = vld [vmem:[%s18540_s13 + $0x14e4] sm:$0xf]  ;;  %v13696_v43 = vor.u32 %v17421_v4, %v13693_v20  ;;  %v13933_v4 = vld [vmem:[%s18540_s13 + $0x14d0] sm:$0xf0]  ;;  %v13680_v52 = vor.u32 %v17417_v48, %v13677_v3 }
 0x232   : > { %9370 = vmatpush.bf16.msra.mxu3 %v13360_v56  ;;  %v13949_v56 = vld [vmem:[%s18540_s13 + $0x14f0] sm:$0xf0]  ;;  %v17361_v2 = vld [vmem:[%s18540_s13 + $0x1104] sm:$0xf] }
 0x233   : > { %9345 = vmatpush.bf16.msra.mxu0 %v13088_v32  ;;  %v13824_v32 = vor.u32 %v17453_v18, %v13821_v0  ;;  %v13952_v50 = vor.u32 %v17485_v40, %v13949_v56  ;;  %v17449_v53 = vld [vmem:[%s18540_s13 + $0x13c4] sm:$0xf]  ;;  %v13661_v24 = vld [vmem:[%s18540_s13 + $0x12b0] sm:$0xf0] }
 0x234   : > { %9358 = vmatpush.bf16.msra.mxu1 %v13216_v9  ;;  %v13453_v9 = vld [vmem:[%s18540_s13 + $0x1110] sm:$0xf0]  ;;  %v17413_v20 = vld [vmem:[%s18540_s13 + $0x12a4] sm:$0xf] }
 0x235   : > { %9382 = vmatpush.bf16.msrb.mxu2 %v13504_v1  ;;  %v13200_v1 = vor.u32 %v17297_v60, %v13197_v34  ;;  %v13805_v60 = vld [vmem:[%s18540_s13 + $0x13d0] sm:$0xf0]  ;;  %v17481_v34 = vld [vmem:[%s18540_s13 + $0x14c4] sm:$0xf]  ;;  %v13456_v61 = vor.u32 %v17361_v2, %v13453_v9  ;;  %v13664_v27 = vor.u32 %v17413_v20, %v13661_v24 }
 0x236   : > { %9371 = vmatpush.bf16.msra.mxu3 %v13344_v6  ;;  %v17517_v6 = vld [vmem:[%s18540_s13 + $0x15e4] sm:$0xf]  ;;  %v13808_v54 = vor.u32 %v17449_v53, %v13805_v60  ;;  %v13936_v18 = vor.u32 %v17481_v34, %v13933_v4  ;;  %v13789_v40 = vld [vmem:[%s18540_s13 + $0x13b0] sm:$0xf0] }
 0x237   : > { %9346 = vmatpush.bf16.msra.mxu0 %v13072_v10  ;;  %v17445_v10 = vld [vmem:[%s18540_s13 + $0x13a4] sm:$0xf]  ;;  %v13645_v3 = vld [vmem:[%s18540_s13 + $0x1290] sm:$0xf0]  ;;  %v9127_v20 = vpop.f32.mrf.mxu0 }
 0x238   : > { %9359 = vmatpush.bf16.msra.mxu1 %v13200_v1  ;;  %v17477_v56 = vld [vmem:[%s18540_s13 + $0x14a4] sm:$0xf]  ;;  %v13917_v1 = vld [vmem:[%s18540_s13 + $0x14b0] sm:$0xf0] }
 0x239   : > { %9383 = vmatpush.bf16.msrb.mxu2 %v13488_v55  ;;  %v14077_v55 = vld [vmem:[%s18540_s13 + $0x15f0] sm:$0xf0]  ;;  %v17409_v48 = vld [vmem:[%s18540_s13 + $0x1284] sm:$0xf] }
 0x23a   : > { %9372 = vmatpush.bf16.msra.mxu3 %v13328_v47  ;;  %9347 = vmatmul.bf16.vlgmr.msra.gmra.mxu0 %v18886_v28  ;;  %v14080_v0 = vor.u32 %v17517_v6, %v14077_v55  ;;  %v17513_v47 = vld [vmem:[%s18540_s13 + $0x15c4] sm:$0xf]  ;;  %v13773_v53 = vld [vmem:[%s18540_s13 + $0x1390] sm:$0xf0]  ;;  %v13648_v4 = vor.u32 %v17409_v48, %v13645_v3 }
 0x23b   : > { %9391 = vmatpush.bf16.msrb.mxu0 %v13696_v43  ;;  %9360 = vmatmul.bf16.vlgmr.msra.gmra.mxu1 %v18892_v35  ;;  %v9153_v43 = vpop.f32.mrf.mxu2  ;;  %v17441_v2 = vld [vmem:[%s18540_s13 + $0x1384] sm:$0xf]  ;;  %v13901_v34 = vld [vmem:[%s18540_s13 + $0x1490] sm:$0xf0] }
 0x23c   : > { %9404 = vmatpush.bf16.msrb.mxu1 %v13824_v32  ;;  %v13792_v32 = vor.u32 %v17445_v10, %v13789_v40  ;;  %v17473_v60 = vld [vmem:[%s18540_s13 + $0x1484] sm:$0xf]  ;;  %v14045_v6 = vld [vmem:[%s18540_s13 + $0x15b0] sm:$0xf0]  ;;  %v13776_v24 = vor.u32 %v17441_v2, %v13773_v53 }
 0x23d   : > { %9384 = vmatpush.bf16.msrb.mxu2 %v13472_v15  ;;  %9373 = vmatmul.bf16.vlgmr.msra.gmra.mxu3 %v18963_v37  ;;  %v14061_v15 = vld [vmem:[%s18540_s13 + $0x15d0] sm:$0xf0]  ;;  %v17405_v55 = vld [vmem:[%s18540_s13 + $0x1264] sm:$0xf] }
 0x23e   : > { %9417 = vmatpush.bf16.msrb.mxu3 %v13952_v50  ;;  %v13920_v50 = vor.u32 %v17477_v56, %v13917_v1  ;;  %v14064_v9 = vor.u32 %v17513_v47, %v14061_v15  ;;  %v17437_v10 = vld [vmem:[%s18540_s13 + $0x1364] sm:$0xf]  ;;  %v13757_v56 = vld [vmem:[%s18540_s13 + $0x1370] sm:$0xf0] }
 0x23f   : > { %9392 = vmatpush.bf16.msrb.mxu0 %v13680_v52  ;;  %v17509_v52 = vld [vmem:[%s18540_s13 + $0x15a4] sm:$0xf]  ;;  %v14029_v3 = vld [vmem:[%s18540_s13 + $0x1590] sm:$0xf0] }
 0x240   : > { %9405 = vmatpush.bf16.msrb.mxu1 %v13808_v54  ;;  %v13904_v54 = vor.u32 %v17473_v60, %v13901_v34  ;;  %v14048_v40 = vor.u32 %v17509_v52, %v14045_v6  ;;  %v17469_v1 = vld [vmem:[%s18540_s13 + $0x1464] sm:$0xf]  ;;  %v13613_v2 = vld [vmem:[%s18540_s13 + $0x1250] sm:$0xf0] }
 0x241   : > { %9385 = vmatpush.bf16.msrb.mxu2 %v13456_v61  ;;  %v13629_v61 = vld [vmem:[%s18540_s13 + $0x1270] sm:$0xf0]  ;;  %v17505_v48 = vld [vmem:[%s18540_s13 + $0x1584] sm:$0xf] }
 0x242   : > { %9418 = vmatpush.bf16.msrb.mxu3 %v13936_v18  ;;  %v9140_v18 = vpop.f32.mrf.mxu1  ;;  %v13632_v15 = vor.u32 %v17405_v55, %v13629_v61  ;;  %v17433_v53 = vld [vmem:[%s18540_s13 + $0x1344] sm:$0xf]  ;;  %v14032_v52 = vor.u32 %v17505_v48, %v14029_v3  ;;  %v13741_v6 = vld [vmem:[%s18540_s13 + $0x1350] sm:$0xf0] }
 0x243   : > { %9393 = vmatpush.bf16.msrb.mxu0 %v13664_v27  ;;  %v13885_v27 = vld [vmem:[%s18540_s13 + $0x1470] sm:$0xf0]  ;;  %v9155_v47 = vpop.f32.mrf.mxu2  ;;  %v18257_v60 = vld [vmem:[%s18548_s22] sm:$0xf] }
 0x244   : > { %9386 = vmatmul.bf16.vlgmr.msrb.gmra.mxu2 %v18970_v46  ;;  %9406 = vmatpush.bf16.msrb.mxu1 %v13792_v32  ;;  %v1677_v34 = vperm.slane %v18257_v60, 1  ;;  %v17465_v55 = vld [vmem:[%s18540_s13 + $0x1444] sm:$0xf]  ;;  %v13869_v61 = vld [vmem:[%s18540_s13 + $0x1450] sm:$0xf0]  ;;  %v9129_v47 = vpop.f32.mrf.mxu0 }
 0x245   : > { %9430 = vmatpush.bf16.msra.mxu2 %v14080_v0  ;;  %v9128_v0 = vadd.f32 %v9127_v20, %v19743_v51  ;;  %v13760_v51 = vor.u32 %v17437_v10, %v13757_v56  ;;  %v13597_v10 = vld [vmem:[%s18540_s13 + $0x1230] sm:$0xf0]  ;;  %v17429_v56 = vld [vmem:[%s18540_s13 + $0x1324] sm:$0xf] }
 0x246   : > { %9419 = vmatpush.bf16.msrb.mxu3 %v13920_v50  ;;  %v17401_v50 = vld [vmem:[%s18540_s13 + $0x1244] sm:$0xf]  ;;  %v13725_v48 = vld [vmem:[%s18540_s13 + $0x1330] sm:$0xf0] }
 0x247   : > { %9394 = vmatpush.bf16.msrb.mxu0 %v13648_v4  ;;  %v9141_v32 = vadd.f32 %v9140_v18, %v9128_v0  ;;  %v13616_v20 = vor.u32 %v17401_v50, %v13613_v2  ;;  %v17397_v18 = vld [vmem:[%s18540_s13 + $0x1224] sm:$0xf]  ;;  %v9166_v0 = vpop.f32.mrf.mxu3 }
 0x248   : > { %9407 = vmatpush.bf16.msrb.mxu1 %v13776_v24  ;;  %v17501_v24 = vld [vmem:[%s18540_s13 + $0x1564] sm:$0xf]  ;;  %v13600_v50 = vor.u32 %v17397_v18, %v13597_v10  ;;  %v13837_v10 = vld [vmem:[%s18540_s13 + $0x1410] sm:$0xf0] }
 0x249   : > { %9431 = vmatpush.bf16.msra.mxu2 %v14064_v9  ;;  %v13888_v9 = vor.u32 %v17469_v1, %v13885_v27  ;;  %v19805_v4 = vadd.f32 %v9153_v43, %v9141_v32  ;;  %v13744_v43 = vor.u32 %v17433_v53, %v13741_v6  ;;  %v9167_v1 = vadd.f32 %v9166_v0, %v1677_v34  ;;  %v17461_v3 = vld [vmem:[%s18540_s13 + $0x1424] sm:$0xf]  ;;  %v13853_v32 = vld [vmem:[%s18540_s13 + $0x1430] sm:$0xf0] }
 0x24a   : > { %9420 = vmatpush.bf16.msrb.mxu3 %v13904_v54  ;;  %v14013_v54 = vld [vmem:[%s18540_s13 + $0x1570] sm:$0xf0]  ;;  %v9142_v27 = vpop.f32.mrf.mxu1  ;;  %v17497_v2 = vld [vmem:[%s18540_s13 + $0x1544] sm:$0xf]  ;;  %v13856_v6 = vor.u32 %v17461_v3, %v13853_v32 }
 0x24b   : > { %21825 = vst [vmem:[#allocation22_spill] sm:$0xff] %v19805_v4  ;;  %9395 = vmatpush.bf16.msrb.mxu0 %v13632_v15  ;;  %v14016_v15 = vor.u32 %v17501_v24, %v14013_v54  ;;  %v13581_v53 = vld [vmem:[%s18540_s13 + $0x1210] sm:$0xf0]  ;;  %v17425_v60 = vld [vmem:[%s18540_s13 + $0x1304] sm:$0xf]  ;;  %v9179_v34 = vpop.f32.mrf.mxu2 }
 0x24c   : > { %9408 = vmatpush.bf16.msrb.mxu1 %v13760_v51  ;;  %v13997_v51 = vld [vmem:[%s18540_s13 + $0x1550] sm:$0xf0]  ;;  %v19826_v24 = vadd.f32 %v9179_v34, %v9167_v1  ;;  %v17457_v18 = vld [vmem:[%s18540_s13 + $0x1404] sm:$0xf] }
 0x24d   : > { %9432 = vmatpush.bf16.msra.mxu2 %v14048_v40  ;;  %v13872_v40 = vor.u32 %v17465_v55, %v13869_v61  ;;  %v13709_v55 = vld [vmem:[%s18540_s13 + $0x1310] sm:$0xf0]  ;;  %v17549_v61 = vld [vmem:[%s18540_s13 + $0x16e4] sm:$0xf]  ;;  %v14000_v54 = vor.u32 %v17497_v2, %v13997_v51  ;;  %v13840_v32 = vor.u32 %v17457_v18, %v13837_v10 }
 0x24e   : > { %9421 = vmatpush.bf16.msrb.mxu3 %v13888_v9  ;;  %v17393_v9 = vld [vmem:[%s18540_s13 + $0x1204] sm:$0xf]  ;;  %v14333_v27 = vld [vmem:[%s18540_s13 + $0x17f0] sm:$0xf0] }
 0x24f   : > { %9396 = vmatpush.bf16.msrb.mxu0 %v13616_v20  ;;  %v14205_v20 = vld [vmem:[%s18540_s13 + $0x16f0] sm:$0xf0]  ;;  %v17493_v0 = vld [vmem:[%s18540_s13 + $0x1524] sm:$0xf]  ;;  %v9168_v1 = vpop.f32.mrf.mxu3 }
 0x250   : > { %9409 = vmatpush.bf16.msrb.mxu1 %v13744_v43  ;;  %v13584_v43 = vor.u32 %v17393_v9, %v13581_v53  ;;  %v14208_v47 = vor.u32 %v17549_v61, %v14205_v20  ;;  %v14461_v3 = vld [vmem:[%s18540_s13 + $0x18f0] sm:$0xf0]  ;;  %v17545_v53 = vld [vmem:[%s18540_s13 + $0x16c4] sm:$0xf] }
 0x251   : > { %9433 = vmatpush.bf16.msra.mxu2 %v14032_v52  ;;  %v13728_v52 = vor.u32 %v17429_v56, %v13725_v48  ;;  %v17581_v56 = vld [vmem:[%s18540_s13 + $0x17e4] sm:$0xf]  ;;  %v13965_v9 = vld [vmem:[%s18540_s13 + $0x1510] sm:$0xf0] }
 0x252   : > { %9422 = vmatpush.bf16.msrb.mxu3 %v13872_v40  ;;  %v13981_v40 = vld [vmem:[%s18540_s13 + $0x1530] sm:$0xf0]  ;;  %v17613_v48 = vld [vmem:[%s18540_s13 + $0x18e4] sm:$0xf]  ;;  %v14336_v51 = vor.u32 %v17581_v56, %v14333_v27 }
 0x253   : > { %9397 = vmatpush.bf16.msrb.mxu0 %v13600_v50  ;;  %v17489_v50 = vld [vmem:[%s18540_s13 + $0x1504] sm:$0xf]  ;;  %v13984_v2 = vor.u32 %v17493_v0, %v13981_v40  ;;  %v14189_v34 = vld [vmem:[%s18540_s13 + $0x16d0] sm:$0xf0]  ;;  %v14464_v61 = vor.u32 %v17613_v48, %v14461_v3  ;;  %v9181_v18 = vpop.f32.mrf.mxu2 }
 0x254   : > { %9410 = vmatpush.bf16.msrb.mxu1 %v13728_v52  ;;  %v17577_v20 = vld [vmem:[%s18540_s13 + $0x17c4] sm:$0xf]  ;;  %v14317_v1 = vld [vmem:[%s18540_s13 + $0x17d0] sm:$0xf0]  ;;  %v13968_v10 = vor.u32 %v17489_v50, %v13965_v9 }
 0x255   : > { %9434 = vmatpush.bf16.msra.mxu2 %v14016_v15  ;;  %v13712_v15 = vor.u32 %v17425_v60, %v13709_v55  ;;  %v17609_v52 = vld [vmem:[%s18540_s13 + $0x18c4] sm:$0xf]  ;;  %v14589_v55 = vld [vmem:[%s18540_s13 + $0x19f0] sm:$0xf0]  ;;  %v14320_v0 = vor.u32 %v17577_v20, %v14317_v1 }
 0x256   : > { %9423 = vmatpush.bf16.msrb.mxu3 %v13856_v6  ;;  %v14445_v6 = vld [vmem:[%s18540_s13 + $0x18d0] sm:$0xf0]  ;;  %v17645_v60 = vld [vmem:[%s18540_s13 + $0x19e4] sm:$0xf] }
 0x257   : > { %9398 = vmatpush.bf16.msrb.mxu0 %v13584_v43  ;;  %v17541_v43 = vld [vmem:[%s18540_s13 + $0x16a4] sm:$0xf]  ;;  %v14173_v40 = vld [vmem:[%s18540_s13 + $0x16b0] sm:$0xf0]  ;;  %v14448_v56 = vor.u32 %v17609_v52, %v14445_v6  ;;  %v14592_v27 = vor.u32 %v17645_v60, %v14589_v55 }
 0x258   : > { %9411 = vmatpush.bf16.msrb.mxu1 %v13712_v15  ;;  %v14301_v48 = vld [vmem:[%s18540_s13 + $0x17b0] sm:$0xf0]  ;;  %v17605_v3 = vld [vmem:[%s18540_s13 + $0x18a4] sm:$0xf] }
 0x259   : > { %9435 = vmatpush.bf16.msra.mxu2 %v14000_v54  ;;  %v14192_v54 = vor.u32 %v17545_v53, %v14189_v34  ;;  %v14429_v15 = vld [vmem:[%s18540_s13 + $0x18b0] sm:$0xf0]  ;;  %v17537_v9 = vld [vmem:[%s18540_s13 + $0x1684] sm:$0xf] }
 0x25a   : > { %9424 = vmatpush.bf16.msrb.mxu3 %v13840_v32  ;;  %9399 = vmatmul.bf16.vlgmr.msrb.gmra.mxu0 %v18968_v45  ;;  %v17641_v32 = vld [vmem:[%s18540_s13 + $0x19c4] sm:$0xf]  ;;  %v14573_v50 = vld [vmem:[%s18540_s13 + $0x19d0] sm:$0xf0]  ;;  %v14432_v34 = vor.u32 %v17605_v3, %v14429_v15 }
 0x25b   : > { %9443 = vmatpush.bf16.msra.mxu0 %v14208_v47  ;;  %v17573_v47 = vld [vmem:[%s18540_s13 + $0x17a4] sm:$0xf]  ;;  %9412 = vmatmul.bf16.vlgmr.msrb.gmra.mxu1 %v18974_v49  ;;  %v14157_v53 = vld [vmem:[%s18540_s13 + $0x1690] sm:$0xf0] }
 0x25c   : > { %9456 = vmatpush.bf16.msra.mxu1 %v14336_v51  ;;  %v14304_v51 = vor.u32 %v17573_v47, %v14301_v48  ;;  %v17569_v20 = vld [vmem:[%s18540_s13 + $0x1784] sm:$0xf]  ;;  %v14285_v1 = vld [vmem:[%s18540_s13 + $0x1790] sm:$0xf0]  ;;  %v14160_v18 = vor.u32 %v17537_v9, %v14157_v53 }
 0x25d   : > { %9436 = vmatpush.bf16.msra.mxu2 %v13984_v2  ;;  %9425 = vmatmul.bf16.vlgmr.msrb.gmra.mxu3 %v19048_v11  ;;  %v14176_v2 = vor.u32 %v17541_v43, %v14173_v40  ;;  %v17601_v52 = vld [vmem:[%s18540_s13 + $0x1884] sm:$0xf]  ;;  %v14413_v6 = vld [vmem:[%s18540_s13 + $0x1890] sm:$0xf0]  ;;  %v9192_v43 = vpop.f32.mrf.mxu0 }
 0x25e   : > { %9469 = vmatpush.bf16.msra.mxu3 %v14464_v61  ;;  %v14576_v61 = vor.u32 %v17641_v32, %v14573_v50  ;;  %v17637_v60 = vld [vmem:[%s18540_s13 + $0x19a4] sm:$0xf]  ;;  %v14557_v55 = vld [vmem:[%s18540_s13 + $0x19b0] sm:$0xf0]  ;;  %v14416_v40 = vor.u32 %v17601_v52, %v14413_v6  ;;  %v9193_v3 = vadd.f32 %v9192_v43, %v19826_v24 }
 0x25f   : > { %9444 = vmatpush.bf16.msra.mxu0 %v14192_v54  ;;  %v14288_v54 = vor.u32 %v17569_v20, %v14285_v1  ;;  %v14269_v47 = vld [vmem:[%s18540_s13 + $0x1770] sm:$0xf0]  ;;  %v17597_v48 = vld [vmem:[%s18540_s13 + $0x1864] sm:$0xf] }
 0x260   : > { %9457 = vmatpush.bf16.msra.mxu1 %v14320_v0  ;;  %v14141_v0 = vld [vmem:[%s18540_s13 + $0x1670] sm:$0xf0]  ;;  %v17633_v32 = vld [vmem:[%s18540_s13 + $0x1984] sm:$0xf] }
 0x261   : > { %9437 = vmatpush.bf16.msra.mxu2 %v13968_v10  ;;  %v17533_v10 = vld [vmem:[%s18540_s13 + $0x1664] sm:$0xf]  ;;  %v14397_v15 = vld [vmem:[%s18540_s13 + $0x1870] sm:$0xf0] }
 0x262   : > { %9470 = vmatpush.bf16.msra.mxu3 %v14448_v56  ;;  %v14560_v56 = vor.u32 %v17637_v60, %v14557_v55  ;;  %v14541_v50 = vld [vmem:[%s18540_s13 + $0x1990] sm:$0xf0]  ;;  %v14400_v24 = vor.u32 %v17597_v48, %v14397_v15  ;;  %v17561_v1 = vld [vmem:[%s18540_s13 + $0x1744] sm:$0xf] }
 0x263   : > { %9445 = vmatpush.bf16.msra.mxu0 %v14176_v2  ;;  %v9205_v2 = vpop.f32.mrf.mxu1  ;;  %v14544_v20 = vor.u32 %v17633_v32, %v14541_v50  ;;  %v14253_v52 = vld [vmem:[%s18540_s13 + $0x1750] sm:$0xf0]  ;;  %v17593_v6 = vld [vmem:[%s18540_s13 + $0x1844] sm:$0xf] }
 0x264   : > { %9438 = vmatmul.bf16.vlgmr.msra.gmra.mxu2 %v19055_v17  ;;  %9458 = vmatpush.bf16.msra.mxu1 %v14304_v51  ;;  %v14144_v51 = vor.u32 %v17533_v10, %v14141_v0  ;;  %v9206_v9 = vadd.f32 %v9205_v2, %v9193_v3  ;;  %v14381_v60 = vld [vmem:[%s18540_s13 + $0x1850] sm:$0xf0]  ;;  %v17629_v55 = vld [vmem:[%s18540_s13 + $0x1964] sm:$0xf]  ;;  %v9218_v10 = vpop.f32.mrf.mxu3  ;;  %v14256_v0 = vor.u32 %v17561_v1, %v14253_v52 }
 0x265   : > { %9482 = vmatpush.bf16.msrb.mxu2 %v14592_v27  ;;  %v17565_v27 = vld [vmem:[%s18540_s13 + $0x1764] sm:$0xf]  ;;  %v14237_v15 = vld [vmem:[%s18540_s13 + $0x1730] sm:$0xf0] }
 0x266   : > { %9471 = vmatpush.bf16.msra.mxu3 %v14432_v34  ;;  %v14272_v53 = vor.u32 %v17565_v27, %v14269_v47  ;;  %v17529_v34 = vld [vmem:[%s18540_s13 + $0x1644] sm:$0xf]  ;;  %v9219_v43 = vadd.f32 %v9218_v10, %v9206_v9  ;;  %v9194_v27 = vpop.f32.mrf.mxu0  ;;  %v14384_v47 = vor.u32 %v17593_v6, %v14381_v60  ;;  %v14365_v50 = vld [vmem:[%s18540_s13 + $0x1830] sm:$0xf0] }
 0x267   : > { %9446 = vmatpush.bf16.msra.mxu0 %v14160_v18  ;;  %v14525_v18 = vld [vmem:[%s18540_s13 + $0x1970] sm:$0xf0]  ;;  %v17557_v3 = vld [vmem:[%s18540_s13 + $0x1724] sm:$0xf] }
 0x268   : > { %9459 = vmatpush.bf16.msra.mxu1 %v14288_v54  ;;  %v14528_v48 = vor.u32 %v17629_v55, %v14525_v18  ;;  %v17589_v32 = vld [vmem:[%s18540_s13 + $0x1824] sm:$0xf]  ;;  %v14221_v52 = vld [vmem:[%s18540_s13 + $0x1710] sm:$0xf0] }
 0x269   : > { %9483 = vmatpush.bf16.msrb.mxu2 %v14576_v61  ;;  %v14125_v61 = vld [vmem:[%s18540_s13 + $0x1650] sm:$0xf0]  ;;  %v17625_v2 = vld [vmem:[%s18540_s13 + $0x1944] sm:$0xf]  ;;  %v14368_v60 = vor.u32 %v17589_v32, %v14365_v50 }
 0x26a   : > { %9472 = vmatpush.bf16.msra.mxu3 %v14416_v40  ;;  %v14128_v54 = vor.u32 %v17529_v34, %v14125_v61  ;;  %v17525_v40 = vld [vmem:[%s18540_s13 + $0x1624] sm:$0xf]  ;;  %v14093_v61 = vld [vmem:[%s18540_s13 + $0x1610] sm:$0xf0] }
 0x26b   : > { %9447 = vmatpush.bf16.msra.mxu0 %v14144_v51  ;;  %v14509_v51 = vld [vmem:[%s18540_s13 + $0x1950] sm:$0xf0]  ;;  %v17521_v34 = vld [vmem:[%s18540_s13 + $0x1604] sm:$0xf] }
 0x26c   : > { %9460 = vmatpush.bf16.msra.mxu1 %v14272_v53  ;;  %v9207_v53 = vpop.f32.mrf.mxu1  ;;  %v17553_v1 = vld [vmem:[%s18540_s13 + $0x1704] sm:$0xf]  ;;  %v14512_v18 = vor.u32 %v17625_v2, %v14509_v51  ;;  %v14477_v4 = vld [vmem:[%s18540_s13 + $0x1910] sm:$0xf0] }
 0x26d   : > { %9484 = vmatpush.bf16.msrb.mxu2 %v14560_v56  ;;  %v14109_v56 = vld [vmem:[%s18540_s13 + $0x1630] sm:$0xf0]  ;;  %v17585_v6 = vld [vmem:[%s18540_s13 + $0x1804] sm:$0xf] }
 0x26e   : > { %9473 = vmatpush.bf16.msra.mxu3 %v14400_v24  ;;  %v14112_v9 = vor.u32 %v17525_v40, %v14109_v56  ;;  %v14240_v24 = vor.u32 %v17557_v3, %v14237_v15  ;;  %v17677_v10 = vld [vmem:[%s18540_s13 + $0x1ae4] sm:$0xf]  ;;  %v14717_v40 = vld [vmem:[%s18540_s13 + $0x1af0] sm:$0xf0]  ;;  %v14096_v3 = vor.u32 %v17521_v34, %v14093_v61 }
 0x26f   : > { %9448 = vmatpush.bf16.msra.mxu0 %v14128_v54  ;;  %v14349_v54 = vld [vmem:[%s18540_s13 + $0x1810] sm:$0xf0]  ;;  %v17621_v56 = vld [vmem:[%s18540_s13 + $0x1924] sm:$0xf]  ;;  %v14720_v32 = vor.u32 %v17677_v10, %v14717_v40 }
 0x270   : > { %9461 = vmatpush.bf16.msra.mxu1 %v14256_v0  ;;  %v14493_v0 = vld [vmem:[%s18540_s13 + $0x1930] sm:$0xf0]  ;;  %v17709_v27 = vld [vmem:[%s18540_s13 + $0x1be4] sm:$0xf]  ;;  %v14352_v50 = vor.u32 %v17585_v6, %v14349_v54 }
 0x271   : > { %9485 = vmatpush.bf16.msrb.mxu2 %v14544_v20  ;;  %v9231_v20 = vpop.f32.mrf.mxu2  ;;  %v14845_v15 = vld [vmem:[%s18540_s13 + $0x1bf0] sm:$0xf0]  ;;  %v17741_v53 = vld [vmem:[%s18540_s13 + $0x1ce4] sm:$0xf]  ;;  %v14496_v2 = vor.u32 %v17621_v56, %v14493_v0 }
 0x272   : > { %9474 = vmatpush.bf16.msra.mxu3 %v14384_v47  ;;  %v19896_v55 = vadd.f32 %v9231_v20, %v9219_v43  ;;  %v14973_v47 = vld [vmem:[%s18540_s13 + $0x1cf0] sm:$0xf0]  ;;  %v14224_v43 = vor.u32 %v17553_v1, %v14221_v52  ;;  %v17673_v51 = vld [vmem:[%s18540_s13 + $0x1ac4] sm:$0xf]  ;;  %v14848_v34 = vor.u32 %v17709_v27, %v14845_v15 }
 0x273   : > { %9449 = vmatpush.bf16.msra.mxu0 %v14112_v9  ;;  %v14701_v9 = vld [vmem:[%s18540_s13 + $0x1ad0] sm:$0xf0]  ;;  %v14976_v61 = vor.u32 %v17741_v53, %v14973_v47  ;;  %v17617_v20 = vld [vmem:[%s18540_s13 + $0x1904] sm:$0xf] }
 0x274   : > { %9462 = vmatpush.bf16.msra.mxu1 %v14240_v24  ;;  %v14829_v24 = vld [vmem:[%s18540_s13 + $0x1bd0] sm:$0xf0]  ;;  %v17737_v1 = vld [vmem:[%s18540_s13 + $0x1cc4] sm:$0xf]  ;;  %v14704_v6 = vor.u32 %v17673_v51, %v14701_v9  ;;  %v14480_v10 = vor.u32 %v17617_v20, %v14477_v4 }
 0x275   : > { %9486 = vmatpush.bf16.msrb.mxu2 %v14528_v48  ;;  %v9220_v48 = vpop.f32.mrf.mxu3  ;;  %v14957_v52 = vld [vmem:[%s18540_s13 + $0x1cd0] sm:$0xf0]  ;;  %v17669_v40 = vld [vmem:[%s18540_s13 + $0x1aa4] sm:$0xf] }
 0x276   : > { %9475 = vmatpush.bf16.msra.mxu3 %v14368_v60  ;;  %v17705_v48 = vld [vmem:[%s18540_s13 + $0x1bc4] sm:$0xf]  ;;  %v14685_v56 = vld [vmem:[%s18540_s13 + $0x1ab0] sm:$0xf0]  ;;  %v14960_v27 = vor.u32 %v17737_v1, %v14957_v52 }
 0x277   : > { %9450 = vmatpush.bf16.msra.mxu0 %v14096_v3  ;;  %v17773_v60 = vld [vmem:[%s18540_s13 + $0x1de4] sm:$0xf]  ;;  %v14832_v0 = vor.u32 %v17705_v48, %v14829_v24  ;;  %v14813_v53 = vld [vmem:[%s18540_s13 + $0x1bb0] sm:$0xf0] }
 0x278   : > { %9463 = vmatpush.bf16.msra.mxu1 %v14224_v43  ;;  %v17701_v3 = vld [vmem:[%s18540_s13 + $0x1ba4] sm:$0xf]  ;;  %v14941_v4 = vld [vmem:[%s18540_s13 + $0x1cb0] sm:$0xf0]  ;;  %v14688_v43 = vor.u32 %v17669_v40, %v14685_v56 }
 0x279   : > { %9487 = vmatpush.bf16.msrb.mxu2 %v14512_v18  ;;  %v15101_v18 = vld [vmem:[%s18540_s13 + $0x1df0] sm:$0xf0]  ;;  %v9233_v54 = vpop.f32.mrf.mxu2  ;;  %v17733_v47 = vld [vmem:[%s18540_s13 + $0x1ca4] sm:$0xf]  ;;  %v14816_v9 = vor.u32 %v17701_v3, %v14813_v53 }
 0x27a   : > { %9476 = vmatpush.bf16.msra.mxu3 %v14352_v50  ;;  %9451 = vmatmul.bf16.vlgmr.msra.gmra.mxu0 %v19053_v16  ;;  %v15104_v15 = vor.u32 %v17773_v60, %v15101_v18  ;;  %v15085_v50 = vld [vmem:[%s18540_s13 + $0x1dd0] sm:$0xf0]  ;;  %v17729_v24 = vld [vmem:[%s18540_s13 + $0x1c84] sm:$0xf] }
 0x27b   : > { %9495 = vmatpush.bf16.msrb.mxu0 %v14720_v32  ;;  %9464 = vmatmul.bf16.vlgmr.msra.gmra.mxu1 %v19059_v22  ;;  %v17769_v32 = vld [vmem:[%s18540_s13 + $0x1dc4] sm:$0xf]  ;;  %v14669_v51 = vld [vmem:[%s18540_s13 + $0x1a90] sm:$0xf0] }
 0x27c   : > { %9508 = vmatpush.bf16.msrb.mxu1 %v14848_v34  ;;  %v14944_v34 = vor.u32 %v17733_v47, %v14941_v4  ;;  %v15088_v20 = vor.u32 %v17769_v32, %v15085_v50  ;;  %v14797_v48 = vld [vmem:[%s18540_s13 + $0x1b90] sm:$0xf0]  ;;  %v17661_v18 = vld [vmem:[%s18540_s13 + $0x1a64] sm:$0xf] }
 0x27d   : > { %9488 = vmatpush.bf16.msrb.mxu2 %v14496_v2  ;;  %9477 = vmatmul.bf16.vlgmr.msra.gmra.mxu3 %v19133_v5  ;;  %v17665_v2 = vld [vmem:[%s18540_s13 + $0x1a84] sm:$0xf]  ;;  %v14925_v1 = vld [vmem:[%s18540_s13 + $0x1c90] sm:$0xf0] }
 0x27e   : > { %9521 = vmatpush.bf16.msrb.mxu3 %v14976_v61  ;;  %v17697_v61 = vld [vmem:[%s18540_s13 + $0x1b84] sm:$0xf]  ;;  %v14672_v52 = vor.u32 %v17665_v2, %v14669_v51  ;;  %v15069_v60 = vld [vmem:[%s18540_s13 + $0x1db0] sm:$0xf0]  ;;  %v14928_v56 = vor.u32 %v17729_v24, %v14925_v1 }
 0x27f   : > { %9496 = vmatpush.bf16.msrb.mxu0 %v14704_v6  ;;  %v17765_v6 = vld [vmem:[%s18540_s13 + $0x1da4] sm:$0xf]  ;;  %v14653_v54 = vld [vmem:[%s18540_s13 + $0x1a70] sm:$0xf0]  ;;  %v14800_v40 = vor.u32 %v17697_v61, %v14797_v48 }
 0x280   : > { %9509 = vmatpush.bf16.msrb.mxu1 %v14832_v0  ;;  %v9257_v0 = vpop.f32.mrf.mxu1  ;;  %v14781_v53 = vld [vmem:[%s18540_s13 + $0x1b70] sm:$0xf0]  ;;  %v17725_v47 = vld [vmem:[%s18540_s13 + $0x1c64] sm:$0xf] }
 0x281   : > { %9489 = vmatpush.bf16.msrb.mxu2 %v14480_v10  ;;  %v9244_v10 = vpop.f32.mrf.mxu0  ;;  %v14909_v4 = vld [vmem:[%s18540_s13 + $0x1c70] sm:$0xf0]  ;;  %v17761_v32 = vld [vmem:[%s18540_s13 + $0x1d84] sm:$0xf] }
 0x282   : > { %9522 = vmatpush.bf16.msrb.mxu3 %v14960_v27  ;;  %v17693_v27 = vld [vmem:[%s18540_s13 + $0x1b64] sm:$0xf]  ;;  %v9245_v3 = vadd.f32 %v9244_v10, %v19896_v55  ;;  %v15053_v50 = vld [vmem:[%s18540_s13 + $0x1d90] sm:$0xf0] }
 0x283   : > { %9497 = vmatpush.bf16.msrb.mxu0 %v14688_v43  ;;  %v14656_v43 = vor.u32 %v17661_v18, %v14653_v54  ;;  %v17657_v51 = vld [vmem:[%s18540_s13 + $0x1a44] sm:$0xf]  ;;  %v14784_v55 = vor.u32 %v17693_v27, %v14781_v53  ;;  %v14765_v48 = vld [vmem:[%s18540_s13 + $0x1b50] sm:$0xf0]  ;;  %v9270_v18 = vpop.f32.mrf.mxu3 }
 0x284   : > { %9490 = vmatmul.bf16.vlgmr.msrb.gmra.mxu2 %v19140_v13  ;;  %9510 = vmatpush.bf16.msrb.mxu1 %v14816_v9  ;;  %v9258_v2 = vadd.f32 %v9257_v0, %v9245_v3  ;;  %v14637_v9 = vld [vmem:[%s18540_s13 + $0x1a50] sm:$0xf0]  ;;  %v17689_v61 = vld [vmem:[%s18540_s13 + $0x1b44] sm:$0xf] }
 0x285   : > { %9534 = vmatpush.bf16.msra.mxu2 %v15104_v15  ;;  %v15072_v15 = vor.u32 %v17765_v6, %v15069_v60  ;;  %v17721_v24 = vld [vmem:[%s18540_s13 + $0x1c44] sm:$0xf]  ;;  %v14893_v1 = vld [vmem:[%s18540_s13 + $0x1c50] sm:$0xf0] }
 0x286   : > { %9523 = vmatpush.bf16.msrb.mxu3 %v14944_v34  ;;  %v14912_v34 = vor.u32 %v17725_v47, %v14909_v4  ;;  %v17757_v6 = vld [vmem:[%s18540_s13 + $0x1d64] sm:$0xf]  ;;  %v15037_v60 = vld [vmem:[%s18540_s13 + $0x1d70] sm:$0xf0]  ;;  %v14896_v0 = vor.u32 %v17721_v24, %v14893_v1 }
 0x287   : > { %9498 = vmatpush.bf16.msrb.mxu0 %v14672_v52  ;;  %v14640_v52 = vor.u32 %v17657_v51, %v14637_v9  ;;  %v17653_v54 = vld [vmem:[%s18540_s13 + $0x1a24] sm:$0xf]  ;;  %v14621_v10 = vld [vmem:[%s18540_s13 + $0x1a30] sm:$0xf0]  ;;  %v15040_v53 = vor.u32 %v17757_v6, %v15037_v60  ;;  %v9283_v51 = vpop.f32.mrf.mxu2 }
 0x288   : > { %9511 = vmatpush.bf16.msrb.mxu1 %v14800_v40  ;;  %v9271_v40 = vadd.f32 %v9270_v18, %v9258_v2  ;;  %v17685_v27 = vld [vmem:[%s18540_s13 + $0x1b24] sm:$0xf]  ;;  %v14749_v47 = vld [vmem:[%s18540_s13 + $0x1b30] sm:$0xf0] }
 0x289   : > { %9535 = vmatpush.bf16.msra.mxu2 %v15088_v20  ;;  %v15056_v20 = vor.u32 %v17761_v32, %v15053_v50  ;;  %v9246_v3 = vpop.f32.mrf.mxu0  ;;  %v17717_v4 = vld [vmem:[%s18540_s13 + $0x1c24] sm:$0xf]  ;;  %v14624_v32 = vor.u32 %v17653_v54, %v14621_v10  ;;  %v15021_v2 = vld [vmem:[%s18540_s13 + $0x1d50] sm:$0xf0] }
 0x28a   : > { %9524 = vmatpush.bf16.msrb.mxu3 %v14928_v56  ;;  %v14768_v56 = vor.u32 %v17689_v61, %v14765_v48  ;;  %v17753_v50 = vld [vmem:[%s18540_s13 + $0x1d44] sm:$0xf]  ;;  %v19965_v61 = vadd.f32 %v9283_v51, %v9271_v40  ;;  %v14733_v24 = vld [vmem:[%s18540_s13 + $0x1b10] sm:$0xf0] }
 0x28b   : > { %9499 = vmatpush.bf16.msrb.mxu0 %v14656_v43  ;;  %v14877_v43 = vld [vmem:[%s18540_s13 + $0x1c30] sm:$0xf0]  ;;  %v17649_v9 = vld [vmem:[%s18540_s13 + $0x1a04] sm:$0xf]  ;;  %v15024_v6 = vor.u32 %v17753_v50, %v15021_v2 }
 0x28c   : > { %9512 = vmatpush.bf16.msrb.mxu1 %v14784_v55  ;;  %v14605_v55 = vld [vmem:[%s18540_s13 + $0x1a10] sm:$0xf0]  ;;  %v14880_v48 = vor.u32 %v17717_v4, %v14877_v43  ;;  %v17805_v1 = vld [vmem:[%s18540_s13 + $0x1ee4] sm:$0xf] }
 0x28d   : > { %9536 = vmatpush.bf16.msra.mxu2 %v15072_v15  ;;  %v9259_v15 = vpop.f32.mrf.mxu1  ;;  %v17713_v60 = vld [vmem:[%s18540_s13 + $0x1c04] sm:$0xf]  ;;  %v14861_v18 = vld [vmem:[%s18540_s13 + $0x1c10] sm:$0xf0]  ;;  %v14608_v10 = vor.u32 %v17649_v9, %v14605_v55 }
 0x28e   : > { %9525 = vmatpush.bf16.msrb.mxu3 %v14912_v34  ;;  %v17681_v34 = vld [vmem:[%s18540_s13 + $0x1b04] sm:$0xf]  ;;  %v15485_v15 = vld [vmem:[%s18540_s13 + $0x20f0] sm:$0xf0]  ;;  %v14864_v4 = vor.u32 %v17713_v60, %v14861_v18 }
 0x28f   : > { %9500 = vmatpush.bf16.msrb.mxu0 %v14640_v52  ;;  %v15229_v52 = vld [vmem:[%s18540_s13 + $0x1ef0] sm:$0xf0]  ;;  %v17749_v54 = vld [vmem:[%s18540_s13 + $0x1d24] sm:$0xf]  ;;  %v9285_v60 = vpop.f32.mrf.mxu2 }
 0x290   : > { %9513 = vmatpush.bf16.msrb.mxu1 %v14768_v56  ;;  %v15005_v56 = vld [vmem:[%s18540_s13 + $0x1d30] sm:$0xf0]  ;;  %v17837_v40 = vld [vmem:[%s18540_s13 + $0x1fe4] sm:$0xf] }
 0x291   : > { %9537 = vmatpush.bf16.msra.mxu2 %v15056_v20  ;;  %v14752_v20 = vor.u32 %v17685_v27, %v14749_v47  ;;  %v15232_v27 = vor.u32 %v17805_v1, %v15229_v52  ;;  %v17869_v3 = vld [vmem:[%s18540_s13 + $0x20e4] sm:$0xf]  ;;  %v9272_v47 = vpop.f32.mrf.mxu3  ;;  %v14989_v2 = vld [vmem:[%s18540_s13 + $0x1d10] sm:$0xf0] }
 0x292   : > { %9526 = vmatpush.bf16.msrb.mxu3 %v14896_v0  ;;  %v15357_v0 = vld [vmem:[%s18540_s13 + $0x1ff0] sm:$0xf0]  ;;  %v17745_v43 = vld [vmem:[%s18540_s13 + $0x1d04] sm:$0xf]  ;;  %v15488_v55 = vor.u32 %v17869_v3, %v15485_v15 }
 0x293   : > { %9501 = vmatpush.bf16.msrb.mxu0 %v14624_v32  ;;  %v15008_v32 = vor.u32 %v17749_v54, %v15005_v56  ;;  %v15360_v50 = vor.u32 %v17837_v40, %v15357_v0  ;;  %v17801_v51 = vld [vmem:[%s18540_s13 + $0x1ec4] sm:$0xf]  ;;  %v15213_v9 = vld [vmem:[%s18540_s13 + $0x1ed0] sm:$0xf0]  ;;  %v14992_v18 = vor.u32 %v17745_v43, %v14989_v2 }
 0x294   : > { %9514 = vmatpush.bf16.msrb.mxu1 %v14752_v20  ;;  %v17833_v1 = vld [vmem:[%s18540_s13 + $0x1fc4] sm:$0xf]  ;;  %v15341_v52 = vld [vmem:[%s18540_s13 + $0x1fd0] sm:$0xf0] }
 0x295   : > { %9538 = vmatpush.bf16.msra.mxu2 %v15040_v53  ;;  %v14736_v53 = vor.u32 %v17681_v34, %v14733_v24  ;;  %v17865_v20 = vld [vmem:[%s18540_s13 + $0x20c4] sm:$0xf]  ;;  %v15613_v24 = vld [vmem:[%s18540_s13 + $0x21f0] sm:$0xf0]  ;;  %v15344_v54 = vor.u32 %v17833_v1, %v15341_v52 }
 0x296   : > { %9527 = vmatpush.bf16.msrb.mxu3 %v14880_v48  ;;  %v15469_v48 = vld [vmem:[%s18540_s13 + $0x20d0] sm:$0xf0]  ;;  %v17901_v34 = vld [vmem:[%s18540_s13 + $0x21e4] sm:$0xf] }
 0x297   : > { %9502 = vmatpush.bf16.msrb.mxu0 %v14608_v10  ;;  %v17797_v10 = vld [vmem:[%s18540_s13 + $0x1ea4] sm:$0xf]  ;;  %v15197_v56 = vld [vmem:[%s18540_s13 + $0x1eb0] sm:$0xf0]  ;;  %v15472_v40 = vor.u32 %v17865_v20, %v15469_v48  ;;  %v15616_v0 = vor.u32 %v17901_v34, %v15613_v24  ;;  %v9296_v60 = vpop.f32.mrf.mxu0 }
 0x298   : > { %9515 = vmatpush.bf16.msrb.mxu1 %v14736_v53  ;;  %v15325_v3 = vld [vmem:[%s18540_s13 + $0x1fb0] sm:$0xf0]  ;;  %v17861_v15 = vld [vmem:[%s18540_s13 + $0x20a4] sm:$0xf]  ;;  %v15200_v43 = vor.u32 %v17797_v10, %v15197_v56  ;;  %v9297_v10 = vadd.f32 %v9296_v60, %v19965_v61 }
 0x299   : > { %9539 = vmatpush.bf16.msra.mxu2 %v15024_v6  ;;  %v15216_v6 = vor.u32 %v17801_v51, %v15213_v9  ;;  %v15453_v47 = vld [vmem:[%s18540_s13 + $0x20b0] sm:$0xf0]  ;;  %v17897_v53 = vld [vmem:[%s18540_s13 + $0x21c4] sm:$0xf] }
 0x29a   : > { %9528 = vmatpush.bf16.msrb.mxu3 %v14864_v4  ;;  %9503 = vmatmul.bf16.vlgmr.msrb.gmra.mxu0 %v19138_v12  ;;  %v15597_v4 = vld [vmem:[%s18540_s13 + $0x21d0] sm:$0xf0]  ;;  %v15456_v51 = vor.u32 %v17861_v15, %v15453_v47  ;;  %v17857_v52 = vld [vmem:[%s18540_s13 + $0x2084] sm:$0xf] }
 0x29b   : > { %9547 = vmatpush.bf16.msra.mxu0 %v15232_v27  ;;  %v17829_v27 = vld [vmem:[%s18540_s13 + $0x1fa4] sm:$0xf]  ;;  %9516 = vmatmul.bf16.vlgmr.msrb.gmra.mxu1 %v19144_v21  ;;  %v15181_v2 = vld [vmem:[%s18540_s13 + $0x1e90] sm:$0xf0]  ;;  %v15600_v9 = vor.u32 %v17897_v53, %v15597_v4 }
 0x29c   : > { %9560 = vmatpush.bf16.msra.mxu1 %v15360_v50  ;;  %v17793_v50 = vld [vmem:[%s18540_s13 + $0x1e84] sm:$0xf]  ;;  %v15309_v1 = vld [vmem:[%s18540_s13 + $0x1f90] sm:$0xf0] }
 0x29d   : > { %9540 = vmatpush.bf16.msra.mxu2 %v15008_v32  ;;  %9529 = vmatmul.bf16.vlgmr.msrb.gmra.mxu3 %v19218_v26  ;;  %v15328_v32 = vor.u32 %v17829_v27, %v15325_v3  ;;  %v15437_v20 = vld [vmem:[%s18540_s13 + $0x2090] sm:$0xf0]  ;;  %v17893_v48 = vld [vmem:[%s18540_s13 + $0x21a4] sm:$0xf]  ;;  %v15184_v24 = vor.u32 %v17793_v50, %v15181_v2 }
 0x29e   : > { %9573 = vmatpush.bf16.msra.mxu3 %v15488_v55  ;;  %v17825_v55 = vld [vmem:[%s18540_s13 + $0x1f84] sm:$0xf]  ;;  %v15581_v34 = vld [vmem:[%s18540_s13 + $0x21b0] sm:$0xf0]  ;;  %v15440_v56 = vor.u32 %v17857_v52, %v15437_v20 }
 0x29f   : > { %9548 = vmatpush.bf16.msra.mxu0 %v15216_v6  ;;  %v15312_v6 = vor.u32 %v17825_v55, %v15309_v1  ;;  %v17821_v27 = vld [vmem:[%s18540_s13 + $0x1f64] sm:$0xf]  ;;  %v15293_v3 = vld [vmem:[%s18540_s13 + $0x1f70] sm:$0xf0] }
 0x2a0   : > { %9561 = vmatpush.bf16.msra.mxu1 %v15344_v54  ;;  %v15165_v54 = vld [vmem:[%s18540_s13 + $0x1e70] sm:$0xf0]  ;;  %v17853_v15 = vld [vmem:[%s18540_s13 + $0x2064] sm:$0xf]  ;;  %v15296_v61 = vor.u32 %v17821_v27, %v15293_v3 }
 0x2a1   : > { %9541 = vmatpush.bf16.msra.mxu2 %v14992_v18  ;;  %v17789_v18 = vld [vmem:[%s18540_s13 + $0x1e64] sm:$0xf]  ;;  %v15421_v47 = vld [vmem:[%s18540_s13 + $0x2070] sm:$0xf0] }
 0x2a2   : > { %9574 = vmatpush.bf16.msra.mxu3 %v15472_v40  ;;  %v9309_v40 = vpop.f32.mrf.mxu1  ;;  %v17889_v53 = vld [vmem:[%s18540_s13 + $0x2184] sm:$0xf]  ;;  %v15565_v4 = vld [vmem:[%s18540_s13 + $0x2190] sm:$0xf0] }
 0x2a3   : > { %9549 = vmatpush.bf16.msra.mxu0 %v15200_v43  ;;  %v9310_v43 = vadd.f32 %v9309_v40, %v9297_v10  ;;  %v17785_v50 = vld [vmem:[%s18540_s13 + $0x1e44] sm:$0xf]  ;;  %v15149_v2 = vld [vmem:[%s18540_s13 + $0x1e50] sm:$0xf0] }
 0x2a4   : > { %9542 = vmatmul.bf16.vlgmr.msra.gmra.mxu2 %v19225_v39  ;;  %9562 = vmatpush.bf16.msra.mxu1 %v15328_v32  ;;  %v15168_v32 = vor.u32 %v17789_v18, %v15165_v54  ;;  %v17817_v55 = vld [vmem:[%s18540_s13 + $0x1f44] sm:$0xf]  ;;  %v15277_v1 = vld [vmem:[%s18540_s13 + $0x1f50] sm:$0xf0]  ;;  %v15152_v60 = vor.u32 %v17785_v50, %v15149_v2 }
 0x2a5   : > { %9586 = vmatpush.bf16.msrb.mxu2 %v15616_v0  ;;  %v15584_v0 = vor.u32 %v17893_v48, %v15581_v34  ;;  %v17849_v52 = vld [vmem:[%s18540_s13 + $0x2044] sm:$0xf]  ;;  %v15405_v20 = vld [vmem:[%s18540_s13 + $0x2050] sm:$0xf0]  ;;  %v15280_v18 = vor.u32 %v17817_v55, %v15277_v1 }
 0x2a6   : > { %9575 = vmatpush.bf16.msra.mxu3 %v15456_v51  ;;  %v15424_v51 = vor.u32 %v17853_v15, %v15421_v47  ;;  %v17885_v48 = vld [vmem:[%s18540_s13 + $0x2164] sm:$0xf]  ;;  %v15549_v34 = vld [vmem:[%s18540_s13 + $0x2170] sm:$0xf0]  ;;  %v15408_v40 = vor.u32 %v17849_v52, %v15405_v20 }
 0x2a7   : > { %9550 = vmatpush.bf16.msra.mxu0 %v15184_v24  ;;  %v9322_v24 = vpop.f32.mrf.mxu3  ;;  %v17781_v54 = vld [vmem:[%s18540_s13 + $0x1e24] sm:$0xf]  ;;  %v15133_v10 = vld [vmem:[%s18540_s13 + $0x1e30] sm:$0xf0]  ;;  %v9335_v2 = vpop.f32.mrf.mxu2 }
 0x2a8   : > { %9563 = vmatpush.bf16.msra.mxu1 %v15312_v6  ;;  %v9323_v6 = vadd.f32 %v9322_v24, %v9310_v43  ;;  %v17813_v27 = vld [vmem:[%s18540_s13 + $0x1f24] sm:$0xf]  ;;  %v15261_v3 = vld [vmem:[%s18540_s13 + $0x1f30] sm:$0xf0] }
 0x2a9   : > { %9587 = vmatpush.bf16.msrb.mxu2 %v15600_v9  ;;  %v15568_v9 = vor.u32 %v17889_v53, %v15565_v4  ;;  %v17845_v15 = vld [vmem:[%s18540_s13 + $0x2024] sm:$0xf]  ;;  %v15389_v53 = vld [vmem:[%s18540_s13 + $0x2030] sm:$0xf0] }
 0x2aa   : > { %9576 = vmatpush.bf16.msra.mxu3 %v15440_v56  ;;  %v9298_v56 = vpop.f32.mrf.mxu0  ;;  %v9311_v47 = vpop.f32.mrf.mxu1  ;;  %v17881_v4 = vld [vmem:[%s18540_s13 + $0x2144] sm:$0xf]  ;;  %v15533_v43 = vld [vmem:[%s18540_s13 + $0x2150] sm:$0xf0]  ;;  %v20038_v52 = vadd.f32 %v9335_v2, %v9323_v6  ;;  %v15392_v20 = vor.u32 %v17845_v15, %v15389_v53 }
 0x2ab   : > { %9551 = vmatpush.bf16.msra.mxu0 %v15168_v32  ;;  %v15136_v32 = vor.u32 %v17781_v54, %v15133_v10  ;;  %v15117_v50 = vld [vmem:[%s18540_s13 + $0x1e10] sm:$0xf0]  ;;  %v17841_v1 = vld [vmem:[%s18540_s13 + $0x2004] sm:$0xf] }
 0x2ac   : > { %9564 = vmatpush.bf16.msra.mxu1 %v15296_v61  ;;  %v17777_v61 = vld [vmem:[%s18540_s13 + $0x1e04] sm:$0xf]  ;;  %v15245_v55 = vld [vmem:[%s18540_s13 + $0x1f10] sm:$0xf0] }
 0x2ad   : > { %9588 = vmatpush.bf16.msrb.mxu2 %v15584_v0  ;;  %v15552_v0 = vor.u32 %v17885_v48, %v15549_v34  ;;  %v15536_v48 = vor.u32 %v17881_v4, %v15533_v43  ;;  %v15373_v34 = vld [vmem:[%s18540_s13 + $0x2010] sm:$0xf0]  ;;  %v17933_v24 = vld [vmem:[%s18540_s13 + $0x22e4] sm:$0xf]  ;;  %v15120_v56 = vor.u32 %v17777_v61, %v15117_v50 }
 0x2ae   : > { %9577 = vmatpush.bf16.msra.mxu3 %v15424_v51  ;;  %v15264_v51 = vor.u32 %v17813_v27, %v15261_v3  ;;  %v17877_v54 = vld [vmem:[%s18540_s13 + $0x2124] sm:$0xf]  ;;  %v15869_v27 = vld [vmem:[%s18540_s13 + $0x23f0] sm:$0xf0]  ;;  %v15376_v47 = vor.u32 %v17841_v1, %v15373_v34 }
 0x2af   : > { %9552 = vmatpush.bf16.msra.mxu0 %v15152_v60  ;;  %v15741_v60 = vld [vmem:[%s18540_s13 + $0x22f0] sm:$0xf0]  ;;  %v17965_v10 = vld [vmem:[%s18540_s13 + $0x23e4] sm:$0xf]  ;;  %v9324_v6 = vpop.f32.mrf.mxu3  ;;  %v9337_v34 = vpop.f32.mrf.mxu2 }
 0x2b0   : > { %9565 = vmatpush.bf16.msra.mxu1 %v15280_v18  ;;  %v15517_v18 = vld [vmem:[%s18540_s13 + $0x2130] sm:$0xf0]  ;;  %v17997_v3 = vld [vmem:[%s18540_s13 + $0x24e4] sm:$0xf]  ;;  %v15744_v15 = vor.u32 %v17933_v24, %v15741_v60 }
 0x2b1   : > { %9589 = vmatpush.bf16.msrb.mxu2 %v15568_v9  ;;  %v17809_v9 = vld [vmem:[%s18540_s13 + $0x1f04] sm:$0xf]  ;;  %v15520_v53 = vor.u32 %v17877_v54, %v15517_v18  ;;  %v15725_v43 = vld [vmem:[%s18540_s13 + $0x22d0] sm:$0xf0] }
 0x2b2   : > { %9578 = vmatpush.bf16.msra.mxu3 %v15408_v40  ;;  %v15997_v40 = vld [vmem:[%s18540_s13 + $0x24f0] sm:$0xf0]  ;;  %v17929_v4 = vld [vmem:[%s18540_s13 + $0x22c4] sm:$0xf] }
 0x2b3   : > { %9553 = vmatpush.bf16.msra.mxu0 %v15136_v32  ;;  %v15872_v32 = vor.u32 %v17965_v10, %v15869_v27  ;;  %v16000_v61 = vor.u32 %v17997_v3, %v15997_v40  ;;  %v17873_v50 = vld [vmem:[%s18540_s13 + $0x2104] sm:$0xf]  ;;  %v15501_v2 = vld [vmem:[%s18540_s13 + $0x2110] sm:$0xf0]  ;;  %v15728_v1 = vor.u32 %v17929_v4, %v15725_v43  ;;  %v21826_v27 = vld [vmem:[#allocation13_spill] sm:$0xff] }
 0x2b4   : > { %9566 = vmatpush.bf16.msra.mxu1 %v15264_v51  ;;  %v17961_v6 = vld [vmem:[%s18540_s13 + $0x23c4] sm:$0xf]  ;;  %v15853_v51 = vld [vmem:[%s18540_s13 + $0x23d0] sm:$0xf0]  ;;  %v15504_v24 = vor.u32 %v17873_v50, %v15501_v2 }
 0x2b5   : > { %9590 = vmatpush.bf16.msrb.mxu2 %v15552_v0  ;;  %v15248_v0 = vor.u32 %v17809_v9, %v15245_v55  ;;  %v17993_v9 = vld [vmem:[%s18540_s13 + $0x24c4] sm:$0xf]  ;;  %v15981_v55 = vld [vmem:[%s18540_s13 + $0x24d0] sm:$0xf0]  ;;  %v15856_v18 = vor.u32 %v17961_v6, %v15853_v51 }
 0x2b6   : > { %9579 = vmatpush.bf16.msra.mxu3 %v15392_v20  ;;  %v18029_v20 = vld [vmem:[%s18540_s13 + $0x25e4] sm:$0xf]  ;;  %v15709_v54 = vld [vmem:[%s18540_s13 + $0x22b0] sm:$0xf0]  ;;  %v15984_v10 = vor.u32 %v17993_v9, %v15981_v55 }
 0x2b7   : > { %9554 = vmatpush.bf16.msra.mxu0 %v15120_v56  ;;  %v17925_v60 = vld [vmem:[%s18540_s13 + $0x22a4] sm:$0xf]  ;;  %v15837_v40 = vld [vmem:[%s18540_s13 + $0x23b0] sm:$0xf0] }
 0x2b8   : > { %9567 = vmatpush.bf16.msra.mxu1 %v15248_v0  ;;  %v17957_v56 = vld [vmem:[%s18540_s13 + $0x23a4] sm:$0xf]  ;;  %v16109_v43 = vld [vmem:[%s18540_s13 + $0x25d0] sm:$0xf0] }
 0x2b9   : > { %9591 = vmatpush.bf16.msrb.mxu2 %v15536_v48  ;;  %v16125_v48 = vld [vmem:[%s18540_s13 + $0x25f0] sm:$0xf0]  ;;  %v17989_v0 = vld [vmem:[%s18540_s13 + $0x24a4] sm:$0xf]  ;;  %v15840_v50 = vor.u32 %v17957_v56, %v15837_v40 }
 0x2ba   : > { %9580 = vmatpush.bf16.msra.mxu3 %v15376_v47  ;;  %9555 = vmatmul.bf16.vlgmr.msra.gmra.mxu0 %v19223_v36  ;;  %v16128_v3 = vor.u32 %v18029_v20, %v16125_v48  ;;  %v21827_v47 = vld [vmem:[#allocation14_spill] sm:$0xff]  ;;  %v18025_v4 = vld [vmem:[%s18540_s13 + $0x25c4] sm:$0xf] }
 0x2bb   : > { %9599 = vmatpush.bf16.msrb.mxu0 %v15744_v15  ;;  %9568 = vmatmul.bf16.vlgmr.msra.gmra.mxu1 %v21826_v27  ;;  %v15965_v15 = vld [vmem:[%s18540_s13 + $0x24b0] sm:$0xf0]  ;;  %v17953_v6 = vld [vmem:[%s18540_s13 + $0x2384] sm:$0xf]  ;;  %v16112_v51 = vor.u32 %v18025_v4, %v16109_v43 }
 0x2bc   : > { %9612 = vmatpush.bf16.msrb.mxu1 %v15872_v32  ;;  %v17921_v32 = vld [vmem:[%s18540_s13 + $0x2284] sm:$0xf]  ;;  %v15968_v2 = vor.u32 %v17989_v0, %v15965_v15  ;;  %v15821_v9 = vld [vmem:[%s18540_s13 + $0x2390] sm:$0xf0] }
 0x2bd   : > { %9592 = vmatpush.bf16.msrb.mxu2 %v15520_v53  ;;  %9581 = vmatmul.bf16.vlgmr.msra.gmra.mxu3 %v21827_v47  ;;  %v15712_v53 = vor.u32 %v17925_v60, %v15709_v54  ;;  %v17985_v55 = vld [vmem:[%s18540_s13 + $0x2484] sm:$0xf]  ;;  %v15677_v54 = vld [vmem:[%s18540_s13 + $0x2270] sm:$0xf0] }
 0x2be   : > { %9625 = vmatpush.bf16.msrb.mxu3 %v16000_v61  ;;  %v15693_v61 = vld [vmem:[%s18540_s13 + $0x2290] sm:$0xf0]  ;;  %v21828_v20 = vld [vmem:[#allocation16_spill] sm:$0xff] }
 0x2bf   : > { %9600 = vmatpush.bf16.msrb.mxu0 %v15728_v1  ;;  %v15949_v1 = vld [vmem:[%s18540_s13 + $0x2490] sm:$0xf0]  ;;  %v15696_v48 = vor.u32 %v17921_v32, %v15693_v61  ;;  %v18021_v34 = vld [vmem:[%s18540_s13 + $0x25a4] sm:$0xf] }
 0x2c0   : > { %9613 = vmatpush.bf16.msrb.mxu1 %v15856_v18  ;;  %v17917_v60 = vld [vmem:[%s18540_s13 + $0x2264] sm:$0xf]  ;;  %v9348_v18 = vpop.f32.mrf.mxu0  ;;  %v15952_v56 = vor.u32 %v17985_v55, %v15949_v1  ;;  %v15933_v43 = vld [vmem:[%s18540_s13 + $0x2470] sm:$0xf0] }
 0x2c1   : > { %9593 = vmatpush.bf16.msrb.mxu2 %v15504_v24  ;;  %v16093_v24 = vld [vmem:[%s18540_s13 + $0x25b0] sm:$0xf0]  ;;  %v17949_v40 = vld [vmem:[%s18540_s13 + $0x2364] sm:$0xf]  ;;  %v9349_v0 = vadd.f32 %v9348_v18, %v20038_v52  ;;  %v15680_v32 = vor.u32 %v17917_v60, %v15677_v54 }
 0x2c2   : > { %9626 = vmatpush.bf16.msrb.mxu3 %v15984_v10  ;;  %v15824_v10 = vor.u32 %v17953_v6, %v15821_v9  ;;  %v16096_v15 = vor.u32 %v18021_v34, %v16093_v24  ;;  %v17981_v4 = vld [vmem:[%s18540_s13 + $0x2464] sm:$0xf]  ;;  %v15661_v9 = vld [vmem:[%s18540_s13 + $0x2250] sm:$0xf0] }
 0x2c3   : > { %9601 = vmatpush.bf16.msrb.mxu0 %v15712_v53  ;;  %v15805_v53 = vld [vmem:[%s18540_s13 + $0x2370] sm:$0xf0]  ;;  %v18017_v61 = vld [vmem:[%s18540_s13 + $0x2584] sm:$0xf] }
 0x2c4   : > { %9594 = vmatmul.bf16.vlgmr.msrb.gmra.mxu2 %v21828_v20  ;;  %9614 = vmatpush.bf16.msrb.mxu1 %v15840_v50  ;;  %v16077_v50 = vld [vmem:[%s18540_s13 + $0x2590] sm:$0xf0]  ;;  %v17913_v6 = vld [vmem:[%s18540_s13 + $0x2244] sm:$0xf]  ;;  %v15808_v52 = vor.u32 %v17949_v40, %v15805_v53 }
 0x2c5   : > { %9638 = vmatpush.bf16.msra.mxu2 %v16128_v3  ;;  %v9361_v3 = vpop.f32.mrf.mxu1  ;;  %v17945_v55 = vld [vmem:[%s18540_s13 + $0x2344] sm:$0xf]  ;;  %v16080_v1 = vor.u32 %v18017_v61, %v16077_v50  ;;  %v15917_v24 = vld [vmem:[%s18540_s13 + $0x2450] sm:$0xf0]  ;;  %v15664_v60 = vor.u32 %v17913_v6, %v15661_v9 }
 0x2c6   : > { %9627 = vmatpush.bf16.msrb.mxu3 %v15968_v2  ;;  %v9362_v2 = vadd.f32 %v9361_v3, %v9349_v0  ;;  %v17977_v34 = vld [vmem:[%s18540_s13 + $0x2444] sm:$0xf]  ;;  %v16061_v18 = vld [vmem:[%s18540_s13 + $0x2570] sm:$0xf0]  ;;  %v9374_v3 = vpop.f32.mrf.mxu3 }
 0x2c7   : > { %9602 = vmatpush.bf16.msrb.mxu0 %v15696_v48  ;;  %v15789_v48 = vld [vmem:[%s18540_s13 + $0x2350] sm:$0xf0]  ;;  %v18013_v54 = vld [vmem:[%s18540_s13 + $0x2564] sm:$0xf] }
 0x2c8   : > { %9615 = vmatpush.bf16.msrb.mxu1 %v15824_v10  ;;  %v17909_v10 = vld [vmem:[%s18540_s13 + $0x2224] sm:$0xf]  ;;  %v15645_v0 = vld [vmem:[%s18540_s13 + $0x2230] sm:$0xf0]  ;;  %v15792_v40 = vor.u32 %v17945_v55, %v15789_v48 }
 0x2c9   : > { %9639 = vmatpush.bf16.msra.mxu2 %v16112_v51  ;;  %v15936_v51 = vor.u32 %v17981_v4, %v15933_v43  ;;  %v17941_v53 = vld [vmem:[%s18540_s13 + $0x2324] sm:$0xf]  ;;  %v9350_v4 = vpop.f32.mrf.mxu0  ;;  %v15773_v61 = vld [vmem:[%s18540_s13 + $0x2330] sm:$0xf0]  ;;  %v15648_v9 = vor.u32 %v17909_v10, %v15645_v0 }
 0x2ca   : > { %9628 = vmatpush.bf16.msrb.mxu3 %v15952_v56  ;;  %v9375_v56 = vadd.f32 %v9374_v3, %v9362_v2  ;;  %v17973_v50 = vld [vmem:[%s18540_s13 + $0x2424] sm:$0xf]  ;;  %v15901_v6 = vld [vmem:[%s18540_s13 + $0x2430] sm:$0xf0] }
 0x2cb   : > { %9603 = vmatpush.bf16.msrb.mxu0 %v15680_v32  ;;  %v16064_v32 = vor.u32 %v18013_v54, %v16061_v18  ;;  %v16045_v2 = vld [vmem:[%s18540_s13 + $0x2550] sm:$0xf0]  ;;  %v17905_v55 = vld [vmem:[%s18540_s13 + $0x2204] sm:$0xf] }
 0x2cc   : > { %9616 = vmatpush.bf16.msrb.mxu1 %v15808_v52  ;;  %v18009_v52 = vld [vmem:[%s18540_s13 + $0x2544] sm:$0xf]  ;;  %v15629_v48 = vld [vmem:[%s18540_s13 + $0x2210] sm:$0xf0] }
 0x2cd   : > { %9640 = vmatpush.bf16.msra.mxu2 %v16096_v15  ;;  %v15920_v15 = vor.u32 %v17977_v34, %v15917_v24  ;;  %v9363_v43 = vpop.f32.mrf.mxu1  ;;  %v17937_v34 = vld [vmem:[%s18540_s13 + $0x2304] sm:$0xf]  ;;  %v15776_v24 = vor.u32 %v17941_v53, %v15773_v61  ;;  %v15757_v54 = vld [vmem:[%s18540_s13 + $0x2310] sm:$0xf0]  ;;  %v16048_v10 = vor.u32 %v18009_v52, %v16045_v2 }
 0x2ce   : > { %9629 = vmatpush.bf16.msrb.mxu3 %v15936_v51  ;;  %v9387_v51 = vpop.f32.mrf.mxu2  ;;  %v18061_v18 = vld [vmem:[%s18540_s13 + $0x26e4] sm:$0xf]  ;;  %v16253_v3 = vld [vmem:[%s18540_s13 + $0x26f0] sm:$0xf0] }
 0x2cf   : > { %9604 = vmatpush.bf16.msrb.mxu0 %v15664_v60  ;;  %v15904_v60 = vor.u32 %v17973_v50, %v15901_v6  ;;  %v17969_v0 = vld [vmem:[%s18540_s13 + $0x2404] sm:$0xf]  ;;  %v15885_v4 = vld [vmem:[%s18540_s13 + $0x2410] sm:$0xf0]  ;;  %v16256_v61 = vor.u32 %v18061_v18, %v16253_v3 }
 0x2d0   : > { %9617 = vmatpush.bf16.msrb.mxu1 %v15792_v40  ;;  %v18005_v43 = vld [vmem:[%s18540_s13 + $0x2524] sm:$0xf]  ;;  %v15632_v40 = vor.u32 %v17905_v55, %v15629_v48  ;;  %v16381_v53 = vld [vmem:[%s18540_s13 + $0x27f0] sm:$0xf0] }
 0x2d1   : > { %9641 = vmatpush.bf16.msra.mxu2 %v16080_v1  ;;  %v20107_v1 = vadd.f32 %v9387_v51, %v9375_v56  ;;  %v18093_v56 = vld [vmem:[%s18540_s13 + $0x27e4] sm:$0xf]  ;;  %v16509_v6 = vld [vmem:[%s18540_s13 + $0x28f0] sm:$0xf0]  ;;  %v9376_v51 = vpop.f32.mrf.mxu3 }
 0x2d2   : > { %9630 = vmatpush.bf16.msrb.mxu3 %v15920_v15  ;;  %v16029_v15 = vld [vmem:[%s18540_s13 + $0x2530] sm:$0xf0]  ;;  %v18125_v50 = vld [vmem:[%s18540_s13 + $0x28e4] sm:$0xf]  ;;  %v16384_v55 = vor.u32 %v18093_v56, %v16381_v53  ;;  %v21829_v56 = vld [vmem:[#allocation15_spill] sm:$0xff] }
 0x2d3   : > { %9605 = vmatpush.bf16.msrb.mxu0 %v15648_v9  ;;  %v15888_v9 = vor.u32 %v17969_v0, %v15885_v4  ;;  %v18001_v52 = vld [vmem:[%s18540_s13 + $0x2504] sm:$0xf]  ;;  %v16032_v2 = vor.u32 %v18005_v43, %v16029_v15  ;;  %v16013_v48 = vld [vmem:[%s18540_s13 + $0x2510] sm:$0xf0]  ;;  %v16512_v3 = vor.u32 %v18125_v50, %v16509_v6 }
 0x2d4   : > { %9618 = vmatpush.bf16.msrb.mxu1 %v15776_v24  ;;  %v18057_v20 = vld [vmem:[%s18540_s13 + $0x26c4] sm:$0xf]  ;;  %v16237_v18 = vld [vmem:[%s18540_s13 + $0x26d0] sm:$0xf0]  ;;  %v16016_v4 = vor.u32 %v18001_v52, %v16013_v48 }
 0x2d5   : > { %9642 = vmatpush.bf16.msra.mxu2 %v16064_v32  ;;  %v15760_v32 = vor.u32 %v17937_v34, %v15757_v54  ;;  %v18089_v47 = vld [vmem:[%s18540_s13 + $0x27c4] sm:$0xf]  ;;  %v16365_v51 = vld [vmem:[%s18540_s13 + $0x27d0] sm:$0xf0] }
 0x2d6   : > { %9631 = vmatpush.bf16.msrb.mxu3 %v15904_v60  ;;  %v18121_v24 = vld [vmem:[%s18540_s13 + $0x28c4] sm:$0xf]  ;;  %v16493_v60 = vld [vmem:[%s18540_s13 + $0x28d0] sm:$0xf0]  ;;  %v9389_v0 = vpop.f32.mrf.mxu2  ;;  %v16368_v43 = vor.u32 %v18089_v47, %v16365_v51 }
 0x2d7   : > { %9606 = vmatpush.bf16.msrb.mxu0 %v15632_v40  ;;  %v18157_v34 = vld [vmem:[%s18540_s13 + $0x29e4] sm:$0xf]  ;;  %v16637_v54 = vld [vmem:[%s18540_s13 + $0x29f0] sm:$0xf0]  ;;  %v16496_v53 = vor.u32 %v18121_v24, %v16493_v60 }
 0x2d8   : > { %9619 = vmatpush.bf16.msrb.mxu1 %v15760_v32  ;;  %v18053_v40 = vld [vmem:[%s18540_s13 + $0x26a4] sm:$0xf]  ;;  %v16221_v15 = vld [vmem:[%s18540_s13 + $0x26b0] sm:$0xf0] }
 0x2d9   : > { %9643 = vmatpush.bf16.msra.mxu2 %v16048_v10  ;;  %v16240_v10 = vor.u32 %v18057_v20, %v16237_v18  ;;  %v18085_v50 = vld [vmem:[%s18540_s13 + $0x27a4] sm:$0xf]  ;;  %v16349_v6 = vld [vmem:[%s18540_s13 + $0x27b0] sm:$0xf0]  ;;  %v21830_v20 = vld [vmem:[#allocation17_spill] sm:$0xff] }
 0x2da   : > { %9632 = vmatpush.bf16.msrb.mxu3 %v15888_v9  ;;  %9607 = vmatmul.bf16.vlgmr.msrb.gmra.mxu0 %v21829_v56  ;;  %v18117_v32 = vld [vmem:[%s18540_s13 + $0x28a4] sm:$0xf]  ;;  %v16477_v9 = vld [vmem:[%s18540_s13 + $0x28b0] sm:$0xf0] }
 0x2db   : > { %9651 = vmatpush.bf16.msra.mxu0 %v16256_v61  ;;  %v16640_v61 = vor.u32 %v18157_v34, %v16637_v54  ;;  %9620 = vmatmul.bf16.vlgmr.msrb.gmra.mxu1 %v21830_v20  ;;  %v18153_v47 = vld [vmem:[%s18540_s13 + $0x29c4] sm:$0xf]  ;;  %v16621_v52 = vld [vmem:[%s18540_s13 + $0x29d0] sm:$0xf0] }
 0x2dc   : > { %9664 = vmatpush.bf16.msra.mxu1 %v16384_v55  ;;  %v16352_v55 = vor.u32 %v18085_v50, %v16349_v6  ;;  %v18049_v48 = vld [vmem:[%s18540_s13 + $0x2684] sm:$0xf]  ;;  %v16205_v18 = vld [vmem:[%s18540_s13 + $0x2690] sm:$0xf0]  ;;  %v16624_v51 = vor.u32 %v18153_v47, %v16621_v52  ;;  %v9413_v6 = vpop.f32.mrf.mxu1 }
 0x2dd   : > { %9644 = vmatpush.bf16.msra.mxu2 %v16032_v2  ;;  %9633 = vmatmul.bf16.vlgmr.msrb.gmra.mxu3 %v19389_v62  ;;  %v16224_v2 = vor.u32 %v18053_v40, %v16221_v15  ;;  %v18081_v24 = vld [vmem:[%s18540_s13 + $0x2784] sm:$0xf]  ;;  %v16333_v60 = vld [vmem:[%s18540_s13 + $0x2790] sm:$0xf0]  ;;  %v11395_v62 = vld [vmem:[%s18540_s13 + $0xe8] sm:$0xf] }
 0x2de   : > { %9677 = vmatpush.bf16.msra.mxu3 %v16512_v3  ;;  %v16480_v3 = vor.u32 %v18117_v32, %v16477_v9  ;;  %v18113_v34 = vld [vmem:[%s18540_s13 + $0x2884] sm:$0xf]  ;;  %v16461_v54 = vld [vmem:[%s18540_s13 + $0x2890] sm:$0xf0]  ;;  %v16336_v40 = vor.u32 %v18081_v24, %v16333_v60 }
 0x2df   : > { %9652 = vmatpush.bf16.msra.mxu0 %v16240_v10  ;;  %v18149_v0 = vld [vmem:[%s18540_s13 + $0x29a4] sm:$0xf]  ;;  %v16605_v10 = vld [vmem:[%s18540_s13 + $0x29b0] sm:$0xf0]  ;;  %v16464_v50 = vor.u32 %v18113_v34, %v16461_v54 }
 0x2e0   : > { %9665 = vmatpush.bf16.msra.mxu1 %v16368_v43  ;;  %v9400_v43 = vpop.f32.mrf.mxu0  ;;  %v18045_v15 = vld [vmem:[%s18540_s13 + $0x2664] sm:$0xf]  ;;  %v16608_v32 = vor.u32 %v18149_v0, %v16605_v10  ;;  %v16317_v47 = vld [vmem:[%s18540_s13 + $0x2770] sm:$0xf0] }
 0x2e1   : > { %9645 = vmatpush.bf16.msra.mxu2 %v16016_v4  ;;  %v16208_v4 = vor.u32 %v18049_v48, %v16205_v18  ;;  %v18077_v9 = vld [vmem:[%s18540_s13 + $0x2764] sm:$0xf]  ;;  %v16589_v48 = vld [vmem:[%s18540_s13 + $0x2990] sm:$0xf0] }
 0x2e2   : > { %9678 = vmatpush.bf16.msra.mxu3 %v16496_v53  ;;  %v16189_v53 = vld [vmem:[%s18540_s13 + $0x2670] sm:$0xf0]  ;;  %v18109_v52 = vld [vmem:[%s18540_s13 + $0x2864] sm:$0xf] }
 0x2e3   : > { %9653 = vmatpush.bf16.msra.mxu0 %v16224_v2  ;;  %v16445_v2 = vld [vmem:[%s18540_s13 + $0x2870] sm:$0xf0]  ;;  %v18073_v54 = vld [vmem:[%s18540_s13 + $0x2744] sm:$0xf] }
 0x2e4   : > { %9646 = vmatmul.bf16.vlgmr.msra.gmra.mxu2 %v19396_v59  ;;  %9666 = vmatpush.bf16.msra.mxu1 %v16352_v55  ;;  %v18145_v55 = vld [vmem:[%s18540_s13 + $0x2984] sm:$0xf]  ;;  %v16173_v24 = vld [vmem:[%s18540_s13 + $0x2650] sm:$0xf0]  ;;  %v16448_v60 = vor.u32 %v18109_v52, %v16445_v2 }
 0x2e5   : > { %9690 = vmatpush.bf16.msrb.mxu2 %v16640_v61  ;;  %v9401_v61 = vadd.f32 %v9400_v43, %v20107_v1  ;;  %v16320_v1 = vor.u32 %v18077_v9, %v16317_v47  ;;  %v16592_v34 = vor.u32 %v18145_v55, %v16589_v48  ;;  %v16301_v0 = vld [vmem:[%s18540_s13 + $0x2750] sm:$0xf0]  ;;  %v18105_v10 = vld [vmem:[%s18540_s13 + $0x2844] sm:$0xf]  ;;  %v9415_v48 = vpop.f32.mrf.mxu1 }
 0x2e6   : > { %9679 = vmatpush.bf16.msra.mxu3 %v16480_v3  ;;  %v16192_v3 = vor.u32 %v18045_v15, %v16189_v53  ;;  %v16429_v43 = vld [vmem:[%s18540_s13 + $0x2850] sm:$0xf0]  ;;  %v18141_v59 = vld [vmem:[%s18540_s13 + $0x2964] sm:$0xf] }
 0x2e7   : > { %9654 = vmatpush.bf16.msra.mxu0 %v16208_v4  ;;  %v9414_v18 = vadd.f32 %v9413_v6, %v9401_v61  ;;  %v16573_v4 = vld [vmem:[%s18540_s13 + $0x2970] sm:$0xf0]  ;;  %v16304_v61 = vor.u32 %v18073_v54, %v16301_v0  ;;  %v16432_v9 = vor.u32 %v18105_v10, %v16429_v43  ;;  %v18069_v52 = vld [vmem:[%s18540_s13 + $0x2724] sm:$0xf] }
 0x2e8   : > { %9667 = vmatpush.bf16.msra.mxu1 %v16336_v40  ;;  %v9426_v40 = vpop.f32.mrf.mxu3  ;;  %v16157_v6 = vld [vmem:[%s18540_s13 + $0x2630] sm:$0xf0]  ;;  %v16576_v47 = vor.u32 %v18141_v59, %v16573_v4  ;;  %v18101_v55 = vld [vmem:[%s18540_s13 + $0x2824] sm:$0xf]  ;;  %v9439_v59 = vpop.f32.mrf.mxu2 }
 0x2e9   : > { %9691 = vmatpush.bf16.msrb.mxu2 %v16624_v51  ;;  %v18041_v51 = vld [vmem:[%s18540_s13 + $0x2644] sm:$0xf]  ;;  %v9427_v53 = vadd.f32 %v9426_v40, %v9414_v18  ;;  %v16285_v2 = vld [vmem:[%s18540_s13 + $0x2730] sm:$0xf0] }
 0x2ea   : > { %9680 = vmatpush.bf16.msra.mxu3 %v16464_v50  ;;  %v16176_v15 = vor.u32 %v18041_v51, %v16173_v24  ;;  %v18037_v50 = vld [vmem:[%s18540_s13 + $0x2624] sm:$0xf]  ;;  %v16557_v18 = vld [vmem:[%s18540_s13 + $0x2950] sm:$0xf0] }
 0x2eb   : > { %9655 = vmatpush.bf16.msra.mxu0 %v16192_v3  ;;  %v16413_v3 = vld [vmem:[%s18540_s13 + $0x2830] sm:$0xf0]  ;;  %v16160_v51 = vor.u32 %v18037_v50, %v16157_v6  ;;  %v18033_v24 = vld [vmem:[%s18540_s13 + $0x2604] sm:$0xf]  ;;  %v20180_v43 = vadd.f32 %v9439_v59, %v9427_v53  ;;  %v11651_v50 = vld [vmem:[%s18540_s13 + $0x2e8] sm:$0xf] }
 0x2ec   : > { %9668 = vmatpush.bf16.msra.mxu1 %v16320_v1  ;;  %v18137_v1 = vld [vmem:[%s18540_s13 + $0x2944] sm:$0xf]  ;;  %v16269_v0 = vld [vmem:[%s18540_s13 + $0x2710] sm:$0xf0]  ;;  %v16416_v4 = vor.u32 %v18101_v55, %v16413_v3  ;;  %v16912_v6 = vld [vmem:[%s18540_s13 + $0x2f4] sm:$0xf0] }
 0x2ed   : > { %9692 = vmatpush.bf16.msrb.mxu2 %v16608_v32  ;;  %v9402_v32 = vpop.f32.mrf.mxu0  ;;  %v18065_v54 = vld [vmem:[%s18540_s13 + $0x2704] sm:$0xf]  ;;  %v16560_v40 = vor.u32 %v18137_v1, %v16557_v18  ;;  %v16669_v48 = vld [vmem:[%s18540_s13 + $0x2a30] sm:$0xf0]  ;;  %v11652_v55 = vor.u32 %v16912_v6, %v11651_v50 }
 0x2ee   : > { %9681 = vmatpush.bf16.msra.mxu3 %v16448_v60  ;;  %v16141_v60 = vld [vmem:[%s18540_s13 + $0x2610] sm:$0xf0]  ;;  %v18097_v10 = vld [vmem:[%s18540_s13 + $0x2804] sm:$0xf] }
 0x2ef   : > { %9656 = vmatpush.bf16.msra.mxu0 %v16176_v15  ;;  %v16397_v15 = vld [vmem:[%s18540_s13 + $0x2810] sm:$0xf0]  ;;  %v18133_v32 = vld [vmem:[%s18540_s13 + $0x2924] sm:$0xf] }
 0x2f0   : > { %9669 = vmatpush.bf16.msra.mxu1 %v16304_v61  ;;  %v16541_v61 = vld [vmem:[%s18540_s13 + $0x2930] sm:$0xf0]  ;;  %v9428_v53 = vpop.f32.mrf.mxu3  ;;  %v16400_v3 = vor.u32 %v18097_v10, %v16397_v15  ;;  %v18129_v18 = vld [vmem:[%s18540_s13 + $0x2904] sm:$0xf]  ;;  %v16880_v10 = vld [vmem:[%s18540_s13 + $0x1f4] sm:$0xf0]  ;;  %v9441_v6 = vpop.f32.mrf.mxu2 }
 0x2f1   : > { %9693 = vmatpush.bf16.msrb.mxu2 %v16592_v34  ;;  %v16288_v34 = vor.u32 %v18069_v52, %v16285_v2  ;;  %v18165_v52 = vld [vmem:[%s18540_s13 + $0x2a24] sm:$0xf]  ;;  %v16144_v2 = vor.u32 %v18033_v24, %v16141_v60  ;;  %v16544_v1 = vor.u32 %v18133_v32, %v16541_v61  ;;  %v16908_v24 = vld [vmem:[%s18540_s13 + $0x2d4] sm:$0xf0]  ;;  %v16525_v20 = vld [vmem:[%s18540_s13 + $0x2910] sm:$0xf0] }
 0x2f2   : > { %9682 = vmatpush.bf16.msra.mxu3 %v16432_v9  ;;  %v16848_v9 = vld [vmem:[%s18540_s13 + $0xf4] sm:$0xf0]  ;;  %v16672_v60 = vor.u32 %v18165_v52, %v16669_v48  ;;  %v18161_v53 = vld [vmem:[%s18540_s13 + $0x2a04] sm:$0xf]  ;;  %v11619_v32 = vld [vmem:[%s18540_s13 + $0x2a8] sm:$0xf] }
 0x2f3   : > { %9657 = vmatpush.bf16.msra.mxu0 %v16160_v51  ;;  %v11635_v51 = vld [vmem:[%s18540_s13 + $0x2c8] sm:$0xf]  ;;  %v11396_v59 = vor.u32 %v16848_v9, %v11395_v62  ;;  %v16944_v15 = vld [vmem:[%s18540_s13 + $0x3f4] sm:$0xf0]  ;;  %v16528_v62 = vor.u32 %v18129_v18, %v16525_v20  ;;  %v21831_v48 = vld [vmem:[#allocation20_spill] sm:$0xff] }
 0x2f4   : > { %9670 = vmatpush.bf16.msra.mxu1 %v16288_v34  ;;  %v16653_v34 = vld [vmem:[%s18540_s13 + $0x2a10] sm:$0xf0]  ;;  %v11636_v50 = vor.u32 %v16908_v24, %v11635_v51  ;;  %v16904_v61 = vld [vmem:[%s18540_s13 + $0x2b4] sm:$0xf0]  ;;  %v11507_v20 = vld [vmem:[%s18540_s13 + $0x1c8] sm:$0xf] }
 0x2f5   : > { %9694 = vmatpush.bf16.msrb.mxu2 %v16576_v47  ;;  %v16272_v47 = vor.u32 %v18065_v54, %v16269_v0  ;;  %v11379_v54 = vld [vmem:[%s18540_s13 + $0xc8] sm:$0xf]  ;;  %v16844_v0 = vld [vmem:[%s18540_s13 + $0xd4] sm:$0xf0]  ;;  %v16656_v52 = vor.u32 %v18161_v53, %v16653_v34  ;;  %v11620_v24 = vor.u32 %v16904_v61, %v11619_v32 }
 0x2f6   : > { %9683 = vmatpush.bf16.msra.mxu3 %v16416_v4  ;;  %v11523_v4 = vld [vmem:[%s18540_s13 + $0x1e8] sm:$0xf]  ;;  %v16940_v51 = vld [vmem:[%s18540_s13 + $0x3d4] sm:$0xf0] }
 0x2f7   : > { %9658 = vmatpush.bf16.msra.mxu0 %v16144_v2  ;;  %v11380_v2 = vor.u32 %v16844_v0, %v11379_v54  ;;  %v11524_v9 = vor.u32 %v16880_v10, %v11523_v4  ;;  %v11763_v18 = vld [vmem:[%s18540_s13 + $0x3c8] sm:$0xf]  ;;  %v16836_v4 = vld [vmem:[%s18540_s13 + $0x94] sm:$0xf0]  ;;  %v9452_v61 = vpop.f32.mrf.mxu0 }
 0x2f8   : > { %9671 = vmatpush.bf16.msra.mxu1 %v16272_v47  ;;  %v11764_v54 = vor.u32 %v16940_v51, %v11763_v18  ;;  %v11347_v0 = vld [vmem:[%s18540_s13 + $0x88] sm:$0xf]  ;;  %v16896_v32 = vld [vmem:[%s18540_s13 + $0x274] sm:$0xf0] }
 0x2f9   : > { %9695 = vmatpush.bf16.msrb.mxu2 %v16560_v40  ;;  %v11779_v40 = vld [vmem:[%s18540_s13 + $0x3e8] sm:$0xf]  ;;  %v16868_v18 = vld [vmem:[%s18540_s13 + $0x194] sm:$0xf0] }
 0x2fa   : > { %9684 = vmatpush.bf16.msra.mxu3 %v16400_v3  ;;  %9659 = vmatmul.bf16.vlgmr.msra.gmra.mxu0 %v19394_v63  ;;  %v11780_v47 = vor.u32 %v16944_v15, %v11779_v40  ;;  %v16840_v3 = vld [vmem:[%s18540_s13 + $0xb4] sm:$0xf0]  ;;  %v11491_v10 = vld [vmem:[%s18540_s13 + $0x1a8] sm:$0xf] }
 0x2fb   : > { %9742 = vmatpush.bf16.msrb.mxu0 %v11652_v55  ;;  %9672 = vmatmul.bf16.vlgmr.msra.gmra.mxu1 %v21831_v48  ;;  %v11363_v55 = vld [vmem:[%s18540_s13 + $0xa8] sm:$0xf]  ;;  %v16872_v40 = vld [vmem:[%s18540_s13 + $0x1b4] sm:$0xf0] }
 0x2fc   : > { %9716 = vmatpush.bf16.msrb.mxu1 %v11396_v59  ;;  %v16900_v59 = vld [vmem:[%s18540_s13 + $0x294] sm:$0xf0]  ;;  %v11364_v53 = vor.u32 %v16840_v3, %v11363_v55  ;;  %v11747_v15 = vld [vmem:[%s18540_s13 + $0x3a8] sm:$0xf] }
 0x2fd   : > { %9696 = vmatpush.bf16.msrb.mxu2 %v16544_v1  ;;  %9685 = vmatmul.bf16.vlgmr.msra.gmra.mxu3 %v19479_v57  ;;  %v16876_v1 = vld [vmem:[%s18540_s13 + $0x1d4] sm:$0xf0]  ;;  %v11331_v3 = vld [vmem:[%s18540_s13 + $0x68] sm:$0xf] }
 0x2fe   : > { %9709 = vmatpush.bf16.msrb.mxu3 %v16672_v60  ;;  %v11603_v60 = vld [vmem:[%s18540_s13 + $0x288] sm:$0xf]  ;;  %v11508_v34 = vor.u32 %v16876_v1, %v11507_v20  ;;  %v16832_v20 = vld [vmem:[%s18540_s13 + $0x74] sm:$0xf0] }
 0x2ff   : > { %9743 = vmatpush.bf16.msrb.mxu0 %v11636_v50  ;;  %v16936_v50 = vld [vmem:[%s18540_s13 + $0x3b4] sm:$0xf0]  ;;  %v11604_v6 = vor.u32 %v16900_v59, %v11603_v60  ;;  %v11475_v1 = vld [vmem:[%s18540_s13 + $0x188] sm:$0xf] }
 0x300   : > { %9717 = vmatpush.bf16.msrb.mxu1 %v11380_v2  ;;  %v9465_v2 = vpop.f32.mrf.mxu1  ;;  %v11748_v55 = vor.u32 %v16936_v50, %v11747_v15  ;;  %v11731_v51 = vld [vmem:[%s18540_s13 + $0x388] sm:$0xf]  ;;  %v16864_v15 = vld [vmem:[%s18540_s13 + $0x174] sm:$0xf0] }
 0x301   : > { %9697 = vmatpush.bf16.msrb.mxu2 %v16528_v62  ;;  %v11587_v62 = vld [vmem:[%s18540_s13 + $0x268] sm:$0xf] }
 0x302   : > { %9710 = vmatpush.bf16.msrb.mxu3 %v16656_v52  ;;  %v11348_v52 = vor.u32 %v16836_v4, %v11347_v0  ;;  %v11588_v60 = vor.u32 %v16896_v32, %v11587_v62  ;;  %v11315_v4 = vld [vmem:[%s18540_s13 + $0x48] sm:$0xf]  ;;  %v9478_v32 = vpop.f32.mrf.mxu3 }
 0x303   : > { %9744 = vmatpush.bf16.msrb.mxu0 %v11620_v24  ;;  %v16932_v24 = vld [vmem:[%s18540_s13 + $0x394] sm:$0xf0]  ;;  %v11715_v50 = vld [vmem:[%s18540_s13 + $0x368] sm:$0xf] }
 0x304   : > { %9698 = vmatmul.bf16.vlgmr.msrb.gmra.mxu2 %v19481_v58  ;;  %9718 = vmatpush.bf16.msrb.mxu1 %v11364_v53  ;;  %v11571_v53 = vld [vmem:[%s18540_s13 + $0x248] sm:$0xf]  ;;  %v11732_v0 = vor.u32 %v16932_v24, %v11731_v51 }
 0x305   : > { %9755 = vmatpush.bf16.msra.mxu2 %v11780_v47  ;;  %v11492_v47 = vor.u32 %v16872_v40, %v11491_v10  ;;  %v16828_v10 = vld [vmem:[%s18540_s13 + $0x54] sm:$0xf0]  ;;  %v11459_v40 = vld [vmem:[%s18540_s13 + $0x168] sm:$0xf] }
 0x306   : > { %9729 = vmatpush.bf16.msra.mxu3 %v11524_v9  ;;  %v9453_v9 = vadd.f32 %v9452_v61, %v20180_v43  ;;  %v11332_v43 = vor.u32 %v16832_v20, %v11331_v3  ;;  %v11555_v61 = vld [vmem:[%s18540_s13 + $0x228] sm:$0xf]  ;;  %v11460_v3 = vor.u32 %v16864_v15, %v11459_v40  ;;  %v17040_v15 = vld [vmem:[%s18540_s13 + $0x6f4] sm:$0xf0] }
 0x307   : > { %9745 = vmatpush.bf16.msrb.mxu0 %v11604_v6  ;;  %v16928_v6 = vld [vmem:[%s18540_s13 + $0x374] sm:$0xf0]  ;;  %v11443_v51 = vld [vmem:[%s18540_s13 + $0x148] sm:$0xf] }
 0x308   : > { %v9466_v59 = vadd.f32 %v9465_v2, %v9453_v9  ;;  %9719 = vmatpush.bf16.msrb.mxu1 %v11348_v52  ;;  %v16888_v52 = vld [vmem:[%s18540_s13 + $0x234] sm:$0xf0]  ;;  %v11316_v9 = vor.u32 %v16828_v10, %v11315_v4  ;;  %v11716_v20 = vor.u32 %v16928_v6, %v11715_v50  ;;  %v21832_v24 = vld [vmem:[#allocation21_spill] sm:$0xff] }
 0x309   : > { %9756 = vmatpush.bf16.msra.mxu2 %v11764_v54  ;;  %v11476_v54 = vor.u32 %v16868_v18, %v11475_v1  ;;  %v11299_v1 = vld [vmem:[%s18540_s13 + $0x28] sm:$0xf]  ;;  %v16824_v18 = vld [vmem:[%s18540_s13 + $0x34] sm:$0xf0] }
 0x30a   : > { %9730 = vmatpush.bf16.msra.mxu3 %v11508_v34  ;;  %v16892_v34 = vld [vmem:[%s18540_s13 + $0x254] sm:$0xf0]  ;;  %v9479_v2 = vadd.f32 %v9478_v32, %v9466_v59  ;;  %v11699_v59 = vld [vmem:[%s18540_s13 + $0x348] sm:$0xf]  ;;  %v11300_v10 = vor.u32 %v16824_v18, %v11299_v1 }
 0x30b   : > { %9746 = vmatpush.bf16.msrb.mxu0 %v11588_v60  ;;  %v11572_v62 = vor.u32 %v16892_v34, %v11571_v53  ;;  %v16860_v60 = vld [vmem:[%s18540_s13 + $0x154] sm:$0xf0]  ;;  %v11556_v34 = vor.u32 %v16888_v52, %v11555_v61  ;;  %v12163_v40 = vld [vmem:[%s18540_s13 + $0x6e8] sm:$0xf] }
 0x30c   : > { %9720 = vmatpush.bf16.msrb.mxu1 %v11332_v43  ;;  %v16924_v53 = vld [vmem:[%s18540_s13 + $0x354] sm:$0xf0]  ;;  %v9491_v43 = vpop.f32.mrf.mxu2  ;;  %v11444_v50 = vor.u32 %v16860_v60, %v11443_v51  ;;  %v11427_v61 = vld [vmem:[%s18540_s13 + $0x128] sm:$0xf] }
 0x30d   : > { %9757 = vmatpush.bf16.msra.mxu2 %v11748_v55  ;;  %v9467_v55 = vpop.f32.mrf.mxu1  ;;  %16682 = vmatmul.msk.bf16.vlgmr.msrb.gmra.mxu3 %vm8594_vm0, %v21832_v24  ;;  %v20252_v4 = vadd.f32 %v9491_v43, %v9479_v2  ;;  %v11700_v6 = vor.u32 %v16924_v53, %v11699_v59  ;;  %v16820_v32 = vld [vmem:[%s18540_s13 + $0x14] sm:$0xf0]  ;;  %v12147_v51 = vld [vmem:[%s18540_s13 + $0x6c8] sm:$0xf] }
 0x30e   : > { %9731 = vmatpush.bf16.msra.mxu3 %v11492_v47  ;;  %v9454_v47 = vpop.f32.mrf.mxu0  ;;  %v16856_v52 = vld [vmem:[%s18540_s13 + $0x134] sm:$0xf0]  ;;  %v11907_v55 = vld [vmem:[%s18540_s13 + $0x4e8] sm:$0xf] }
 0x30f   : > { %9747 = vmatpush.bf16.msrb.mxu0 %v11572_v62  ;;  %v11283_v62 = vld [vmem:[%s18540_s13 + $0x8] sm:$0xf]  ;;  %v16920_v2 = vld [vmem:[%s18540_s13 + $0x334] sm:$0xf0]  ;;  %v11428_v59 = vor.u32 %v16856_v52, %v11427_v61 }
 0x310   : > { %9721 = vmatpush.bf16.msrb.mxu1 %v11316_v9  ;;  %v11683_v9 = vld [vmem:[%s18540_s13 + $0x328] sm:$0xf]  ;;  %v16976_v1 = vld [vmem:[%s18540_s13 + $0x4f4] sm:$0xf0]  ;;  %v11284_v18 = vor.u32 %v16820_v32, %v11283_v62 }
 0x311   : > { %9758 = vmatpush.bf16.msra.mxu2 %v11732_v0  ;;  %v16884_v0 = vld [vmem:[%s18540_s13 + $0x214] sm:$0xf0]  ;;  %v11684_v53 = vor.u32 %v16920_v2, %v11683_v9  ;;  %v12035_v62 = vld [vmem:[%s18540_s13 + $0x5e8] sm:$0xf] }
 0x312   : > { %9732 = vmatpush.bf16.msra.mxu3 %v11476_v54  ;;  %v11539_v54 = vld [vmem:[%s18540_s13 + $0x208] sm:$0xf]  ;;  %v17036_v60 = vld [vmem:[%s18540_s13 + $0x6d4] sm:$0xf0] }
 0x313   : > { %9748 = vmatpush.bf16.msrb.mxu0 %v11556_v34  ;;  %v11540_v47 = vor.u32 %v16884_v0, %v11539_v54  ;;  %v11411_v34 = vld [vmem:[%s18540_s13 + $0x108] sm:$0xf]  ;;  %v16852_v43 = vld [vmem:[%s18540_s13 + $0x114] sm:$0xf0]  ;;  %v11908_v0 = vor.u32 %v16976_v1, %v11907_v55 }
 0x314   : > { %9722 = vmatpush.bf16.msrb.mxu1 %v11300_v10  ;;  %v11667_v54 = vld [vmem:[%s18540_s13 + $0x308] sm:$0xf]  ;;  %v17008_v32 = vld [vmem:[%s18540_s13 + $0x5f4] sm:$0xf0]  ;;  %v9493_v61 = vpop.f32.mrf.mxu2 }
 0x315   : > { %9759 = vmatpush.bf16.msra.mxu2 %v11716_v20  ;;  %v9480_v20 = vpop.f32.mrf.mxu3  ;;  %v11891_v10 = vld [vmem:[%s18540_s13 + $0x4c8] sm:$0xf]  ;;  %v17072_v52 = vld [vmem:[%s18540_s13 + $0x7f4] sm:$0xf0] }
 0x316   : > { %9733 = vmatpush.bf16.msra.mxu3 %v11460_v3  ;;  %v12164_v3 = vor.u32 %v17040_v15, %v12163_v40  ;;  %v16916_v40 = vld [vmem:[%s18540_s13 + $0x314] sm:$0xf0]  ;;  %v12131_v9 = vld [vmem:[%s18540_s13 + $0x6a8] sm:$0xf] }
 0x317   : > { %9749 = vmatpush.bf16.msrb.mxu0 %v11540_v47  ;;  %v16972_v15 = vld [vmem:[%s18540_s13 + $0x4d4] sm:$0xf0]  ;;  %v11412_v47 = vor.u32 %v16852_v43, %v11411_v34  ;;  %v11668_v55 = vor.u32 %v16916_v40, %v11667_v54  ;;  %v11875_v20 = vld [vmem:[%s18540_s13 + $0x4a8] sm:$0xf] }
 0x318   : > { %9723 = vmatpush.bf16.msrb.mxu1 %v11284_v18  ;;  %v17032_v2 = vld [vmem:[%s18540_s13 + $0x6b4] sm:$0xf0]  ;;  %v11892_v1 = vor.u32 %v16972_v15, %v11891_v10  ;;  %v12115_v43 = vld [vmem:[%s18540_s13 + $0x688] sm:$0xf] }
 0x319   : > { %9760 = vmatpush.bf16.msra.mxu2 %v11700_v6  ;;  %v12148_v6 = vor.u32 %v17036_v60, %v12147_v51  ;;  %v16968_v51 = vld [vmem:[%s18540_s13 + $0x4b4] sm:$0xf0]  ;;  %v12019_v60 = vld [vmem:[%s18540_s13 + $0x5c8] sm:$0xf] }
 0x31a   : > { %9734 = vmatpush.bf16.msra.mxu3 %v11444_v50  ;;  %v12291_v50 = vld [vmem:[%s18540_s13 + $0x7e8] sm:$0xf]  ;;  %9750 = vmatmul.bf16.vlgmr.msrb.gmra.mxu0 %v18648_v7  ;;  %v17004_v61 = vld [vmem:[%s18540_s13 + $0x5d4] sm:$0xf0] }
 0x31b   : > { %9794 = vmatpush.bf16.msra.mxu0 %v12164_v3  ;;  %v12036_v3 = vor.u32 %v17008_v32, %v12035_v62  ;;  %v12292_v18 = vor.u32 %v17072_v52, %v12291_v50  ;;  %9724 = vmatmul.bf16.vlgmr.msrb.gmra.mxu1 %v18655_v14  ;;  %v17068_v34 = vld [vmem:[%s18540_s13 + $0x7d4] sm:$0xf0]  ;;  %v12020_v40 = vor.u32 %v17004_v61, %v12019_v60  ;;  %v11859_v10 = vld [vmem:[%s18540_s13 + $0x488] sm:$0xf] }
 0x31c   : > { %9768 = vmatpush.bf16.msra.mxu1 %v11908_v0  ;;  %v17028_v54 = vld [vmem:[%s18540_s13 + $0x694] sm:$0xf0]  ;;  %v11876_v0 = vor.u32 %v16968_v51, %v11875_v20  ;;  %v12003_v32 = vld [vmem:[%s18540_s13 + $0x5a8] sm:$0xf]  ;;  %v9517_v20 = vpop.f32.mrf.mxu1 }
 0x31d   : > { %9761 = vmatpush.bf16.msra.mxu2 %v11684_v53  ;;  %v12132_v53 = vor.u32 %v17032_v2, %v12131_v9  ;;  %v16964_v15 = vld [vmem:[%s18540_s13 + $0x494] sm:$0xf0]  ;;  %v12116_v52 = vor.u32 %v17028_v54, %v12115_v43  ;;  %v12099_v2 = vld [vmem:[%s18540_s13 + $0x668] sm:$0xf] }
 0x31e   : > { %9735 = vmatpush.bf16.msra.mxu3 %v11428_v59  ;;  %v12275_v59 = vld [vmem:[%s18540_s13 + $0x7c8] sm:$0xf]  ;;  %v17000_v50 = vld [vmem:[%s18540_s13 + $0x5b4] sm:$0xf0] }
 0x31f   : > { %9795 = vmatpush.bf16.msra.mxu0 %v12148_v6  ;;  %v12276_v62 = vor.u32 %v17068_v34, %v12275_v59  ;;  %v12259_v6 = vld [vmem:[%s18540_s13 + $0x7a8] sm:$0xf]  ;;  %v17064_v9 = vld [vmem:[%s18540_s13 + $0x7b4] sm:$0xf0]  ;;  %v12004_v51 = vor.u32 %v17000_v50, %v12003_v32 }
 0x320   : > { %9769 = vmatpush.bf16.msra.mxu1 %v11892_v1  ;;  %v16960_v60 = vld [vmem:[%s18540_s13 + $0x474] sm:$0xf0]  ;;  %v12260_v61 = vor.u32 %v17064_v9, %v12259_v6  ;;  %v11987_v59 = vld [vmem:[%s18540_s13 + $0x588] sm:$0xf] }
 0x321   : > { %9762 = vmatpush.bf16.msra.mxu2 %v11668_v55  ;;  %v9504_v55 = vpop.f32.mrf.mxu0  ;;  %v12243_v34 = vld [vmem:[%s18540_s13 + $0x788] sm:$0xf]  ;;  %v16956_v32 = vld [vmem:[%s18540_s13 + $0x454] sm:$0xf0] }
 0x322   : > { %9736 = vmatpush.bf16.msra.mxu3 %v11412_v47  ;;  %v17024_v47 = vld [vmem:[%s18540_s13 + $0x674] sm:$0xf0]  ;;  %v9505_v1 = vadd.f32 %v9504_v55, %v20252_v4  ;;  %v11971_v6 = vld [vmem:[%s18540_s13 + $0x568] sm:$0xf] }
 0x323   : > { %9796 = vmatpush.bf16.msra.mxu0 %v12132_v53  ;;  %v16996_v53 = vld [vmem:[%s18540_s13 + $0x594] sm:$0xf0]  ;;  %v12100_v43 = vor.u32 %v17024_v47, %v12099_v2  ;;  %v12227_v9 = vld [vmem:[%s18540_s13 + $0x768] sm:$0xf]  ;;  %v9530_v47 = vpop.f32.mrf.mxu3 }
 0x324   : > { %9763 = vmatmul.bf16.vlgmr.msra.gmra.mxu2 %v18650_v8  ;;  %9770 = vmatpush.bf16.msra.mxu1 %v11876_v0  ;;  %v9518_v54 = vadd.f32 %v9517_v20, %v9505_v1  ;;  %v17060_v4 = vld [vmem:[%s18540_s13 + $0x794] sm:$0xf0]  ;;  %v12083_v0 = vld [vmem:[%s18540_s13 + $0x648] sm:$0xf] }
 0x325   : > { %9807 = vmatpush.bf16.msrb.mxu2 %v12292_v18  ;;  %9737 = vmatmul.bf16.vlgmr.msra.gmra.mxu3 %v18661_v19  ;;  %v11843_v18 = vld [vmem:[%s18540_s13 + $0x468] sm:$0xf]  ;;  %v12244_v50 = vor.u32 %v17060_v4, %v12243_v34  ;;  %v17056_v55 = vld [vmem:[%s18540_s13 + $0x774] sm:$0xf0] }
 0x326   : > { %9781 = vmatpush.bf16.msrb.mxu3 %v12036_v3  ;;  %v11860_v3 = vor.u32 %v16964_v15, %v11859_v10  ;;  %v11844_v10 = vor.u32 %v16960_v60, %v11843_v18  ;;  %v11988_v15 = vor.u32 %v16996_v53, %v11987_v59  ;;  %v12067_v1 = vld [vmem:[%s18540_s13 + $0x628] sm:$0xf]  ;;  %v9531_v20 = vadd.f32 %v9530_v47, %v9518_v54  ;;  %v16952_v59 = vld [vmem:[%s18540_s13 + $0x434] sm:$0xf0]  ;;  %v9519_v53 = vpop.f32.mrf.mxu1 }
 0x327   : > { %9797 = vmatpush.bf16.msra.mxu0 %v12116_v52  ;;  %v16992_v52 = vld [vmem:[%s18540_s13 + $0x574] sm:$0xf0]  ;;  %v12228_v34 = vor.u32 %v17056_v55, %v12227_v9  ;;  %v12211_v4 = vld [vmem:[%s18540_s13 + $0x748] sm:$0xf] }
 0x328   : > { %9771 = vmatpush.bf16.msra.mxu1 %v11860_v3  ;;  %v17016_v3 = vld [vmem:[%s18540_s13 + $0x634] sm:$0xf0]  ;;  %v11972_v60 = vor.u32 %v16992_v52, %v11971_v6 }
 0x329   : > { %9808 = vmatpush.bf16.msrb.mxu2 %v12276_v62  ;;  %v11827_v62 = vld [vmem:[%s18540_s13 + $0x448] sm:$0xf]  ;;  %v16988_v54 = vld [vmem:[%s18540_s13 + $0x554] sm:$0xf0] }
 0x32a   : > { %9782 = vmatpush.bf16.msrb.mxu3 %v12020_v40  ;;  %v17020_v40 = vld [vmem:[%s18540_s13 + $0x654] sm:$0xf0]  ;;  %v11828_v18 = vor.u32 %v16956_v32, %v11827_v62  ;;  %v9543_v62 = vpop.f32.mrf.mxu2  ;;  %v12675_v32 = vld [vmem:[%s18540_s13 + $0xae8] sm:$0xf] }
 0x32b   : > { %9798 = vmatpush.bf16.msra.mxu0 %v12100_v43  ;;  %v12084_v2 = vor.u32 %v17020_v40, %v12083_v0  ;;  %v11955_v43 = vld [vmem:[%s18540_s13 + $0x548] sm:$0xf]  ;;  %v12068_v0 = vor.u32 %v17016_v3, %v12067_v1  ;;  %v17052_v40 = vld [vmem:[%s18540_s13 + $0x754] sm:$0xf0] }
 0x32c   : > { %9772 = vmatpush.bf16.msra.mxu1 %v11844_v10  ;;  %v12051_v10 = vld [vmem:[%s18540_s13 + $0x608] sm:$0xf]  ;;  %v17168_v6 = vld [vmem:[%s18540_s13 + $0xaf4] sm:$0xf0]  ;;  %v11956_v9 = vor.u32 %v16988_v54, %v11955_v43  ;;  %v12212_v55 = vor.u32 %v17052_v40, %v12211_v4 }
 0x32d   : > { %9809 = vmatpush.bf16.msrb.mxu2 %v12260_v61  ;;  %v11811_v61 = vld [vmem:[%s18540_s13 + $0x428] sm:$0xf]  ;;  %v16948_v47 = vld [vmem:[%s18540_s13 + $0x414] sm:$0xf0] }
 0x32e   : > { %9783 = vmatpush.bf16.msrb.mxu3 %v12004_v51  ;;  %v9506_v51 = vpop.f32.mrf.mxu0  ;;  %v11812_v52 = vor.u32 %v16952_v59, %v11811_v61  ;;  %v11939_v1 = vld [vmem:[%s18540_s13 + $0x528] sm:$0xf]  ;;  %v16984_v3 = vld [vmem:[%s18540_s13 + $0x534] sm:$0xf0]  ;;  %v9532_v61 = vpop.f32.mrf.mxu3 }
 0x32f   : > { %9799 = vmatpush.bf16.msra.mxu0 %v12084_v2  ;;  %v11795_v2 = vld [vmem:[%s18540_s13 + $0x408] sm:$0xf]  ;;  %v17048_v8 = vld [vmem:[%s18540_s13 + $0x734] sm:$0xf0]  ;;  %v11940_v54 = vor.u32 %v16984_v3, %v11939_v1 }
 0x330   : > { %9773 = vmatpush.bf16.msra.mxu1 %v11828_v18  ;;  %v12195_v51 = vld [vmem:[%s18540_s13 + $0x728] sm:$0xf]  ;;  %v17164_v43 = vld [vmem:[%s18540_s13 + $0xad4] sm:$0xf0] }
 0x331   : > { %9810 = vmatpush.bf16.msrb.mxu2 %v12244_v50  ;;  %v20325_v50 = vadd.f32 %v9543_v62, %v9531_v20  ;;  %v12419_v18 = vld [vmem:[%s18540_s13 + $0x8e8] sm:$0xf]  ;;  %v17104_v20 = vld [vmem:[%s18540_s13 + $0x8f4] sm:$0xf0] }
 0x332   : > { %9784 = vmatpush.bf16.msrb.mxu3 %v11988_v15  ;;  %v17012_v15 = vld [vmem:[%s18540_s13 + $0x614] sm:$0xf0]  ;;  %v12659_v59 = vld [vmem:[%s18540_s13 + $0xac8] sm:$0xf]  ;;  %v12420_v40 = vor.u32 %v17104_v20, %v12419_v18 }
 0x333   : > { %9800 = vmatpush.bf16.msra.mxu0 %v12068_v0  ;;  %v12052_v53 = vor.u32 %v17012_v15, %v12051_v10  ;;  %v11923_v4 = vld [vmem:[%s18540_s13 + $0x508] sm:$0xf]  ;;  %v12196_v0 = vor.u32 %v17048_v8, %v12195_v51  ;;  %v16980_v10 = vld [vmem:[%s18540_s13 + $0x514] sm:$0xf0] }
 0x334   : > { %9774 = vmatpush.bf16.msra.mxu1 %v11812_v52  ;;  %v12179_v15 = vld [vmem:[%s18540_s13 + $0x708] sm:$0xf]  ;;  %v17044_v62 = vld [vmem:[%s18540_s13 + $0x714] sm:$0xf0]  ;;  %v11924_v8 = vor.u32 %v16980_v10, %v11923_v4 }
 0x335   : > { %9811 = vmatpush.bf16.msrb.mxu2 %v12228_v34  ;;  %v11796_v34 = vor.u32 %v16948_v47, %v11795_v2  ;;  %v12547_v52 = vld [vmem:[%s18540_s13 + $0x9e8] sm:$0xf]  ;;  %v17136_v61 = vld [vmem:[%s18540_s13 + $0x9f4] sm:$0xf0]  ;;  %v12180_v51 = vor.u32 %v17044_v62, %v12179_v15 }
 0x336   : > { %9785 = vmatpush.bf16.msrb.mxu3 %v11972_v60  ;;  %v12676_v60 = vor.u32 %v17168_v6, %v12675_v32  ;;  %v12403_v32 = vld [vmem:[%s18540_s13 + $0x8c8] sm:$0xf]  ;;  %v17100_v6 = vld [vmem:[%s18540_s13 + $0x8d4] sm:$0xf0]  ;;  %v12548_v18 = vor.u32 %v17136_v61, %v12547_v52 }
 0x337   : > { %9801 = vmatpush.bf16.msra.mxu0 %v12052_v53  ;;  %v12803_v2 = vld [vmem:[%s18540_s13 + $0xbe8] sm:$0xf]  ;;  %v17200_v47 = vld [vmem:[%s18540_s13 + $0xbf4] sm:$0xf0]  ;;  %v12404_v53 = vor.u32 %v17100_v6, %v12403_v32 }
 0x338   : > { %9775 = vmatpush.bf16.msra.mxu1 %v11796_v34  ;;  %v12643_v1 = vld [vmem:[%s18540_s13 + $0xaa8] sm:$0xf]  ;;  %v17160_v3 = vld [vmem:[%s18540_s13 + $0xab4] sm:$0xf0]  ;;  %v12804_v20 = vor.u32 %v17200_v47, %v12803_v2 }
 0x339   : > { %9812 = vmatpush.bf16.msrb.mxu2 %v12212_v55  ;;  %v9545_v55 = vpop.f32.mrf.mxu2  ;;  %v17132_v34 = vld [vmem:[%s18540_s13 + $0x9d4] sm:$0xf0]  ;;  %v12371_v6 = vld [vmem:[%s18540_s13 + $0x888] sm:$0xf] }
 0x33a   : > { %9786 = vmatpush.bf16.msrb.mxu3 %v11956_v9  ;;  %v12660_v9 = vor.u32 %v17164_v43, %v12659_v59  ;;  %v17096_v59 = vld [vmem:[%s18540_s13 + $0x8b4] sm:$0xf0]  ;;  %v12531_v43 = vld [vmem:[%s18540_s13 + $0x9c8] sm:$0xf]  ;;  %9802 = vmatmul.bf16.vlgmr.msra.gmra.mxu0 %v18720_v38 }
 0x33b   : > { %9846 = vmatpush.bf16.msrb.mxu0 %v12676_v60  ;;  %v12387_v60 = vld [vmem:[%s18540_s13 + $0x8a8] sm:$0xf]  ;;  %9776 = vmatmul.bf16.vlgmr.msra.gmra.mxu1 %v18724_v41  ;;  %v17196_v4 = vld [vmem:[%s18540_s13 + $0xbd4] sm:$0xf0]  ;;  %v12532_v62 = vor.u32 %v17132_v34, %v12531_v43 }
 0x33c   : > { %9820 = vmatpush.bf16.msrb.mxu1 %v12420_v40  ;;  %v12627_v40 = vld [vmem:[%s18540_s13 + $0xa88] sm:$0xf]  ;;  %v17156_v10 = vld [vmem:[%s18540_s13 + $0xa94] sm:$0xf0]  ;;  %v12388_v15 = vor.u32 %v17096_v59, %v12387_v60 }
 0x33d   : > { %9813 = vmatpush.bf16.msrb.mxu2 %v12196_v0  ;;  %v12644_v0 = vor.u32 %v17160_v3, %v12643_v1  ;;  %v17092_v52 = vld [vmem:[%s18540_s13 + $0x894] sm:$0xf0]  ;;  %v12771_v2 = vld [vmem:[%s18540_s13 + $0xba8] sm:$0xf]  ;;  %v12628_v55 = vor.u32 %v17156_v10, %v12627_v40  ;;  %v9556_v3 = vpop.f32.mrf.mxu0 }
 0x33e   : > { %9787 = vmatpush.bf16.msrb.mxu3 %v11940_v54  ;;  %v12787_v54 = vld [vmem:[%s18540_s13 + $0xbc8] sm:$0xf]  ;;  %v17128_v61 = vld [vmem:[%s18540_s13 + $0x9b4] sm:$0xf0] }
 0x33f   : > { %9847 = vmatpush.bf16.msrb.mxu0 %v12660_v9  ;;  %v12788_v32 = vor.u32 %v17196_v4, %v12787_v54  ;;  %v12515_v9 = vld [vmem:[%s18540_s13 + $0x9a8] sm:$0xf]  ;;  %v17192_v47 = vld [vmem:[%s18540_s13 + $0xbb4] sm:$0xf0] }
 0x340   : > { %9821 = vmatpush.bf16.msrb.mxu1 %v12404_v53  ;;  %v17152_v1 = vld [vmem:[%s18540_s13 + $0xa74] sm:$0xf0]  ;;  %v9569_v53 = vpop.f32.mrf.mxu1  ;;  %v12772_v60 = vor.u32 %v17192_v47, %v12771_v2  ;;  %v12355_v59 = vld [vmem:[%s18540_s13 + $0x868] sm:$0xf] }
 0x341   : > { %9814 = vmatpush.bf16.msrb.mxu2 %v12180_v51  ;;  %v12372_v51 = vor.u32 %v17092_v52, %v12371_v6  ;;  %v17088_v43 = vld [vmem:[%s18540_s13 + $0x874] sm:$0xf0]  ;;  %v12499_v34 = vld [vmem:[%s18540_s13 + $0x988] sm:$0xf] }
 0x342   : > { %9788 = vmatpush.bf16.msrb.mxu3 %v11924_v8  ;;  %v12611_v8 = vld [vmem:[%s18540_s13 + $0xa68] sm:$0xf]  ;;  %v17124_v54 = vld [vmem:[%s18540_s13 + $0x994] sm:$0xf0] }
 0x343   : > { %9848 = vmatpush.bf16.msrb.mxu0 %v12644_v0  ;;  %v12755_v4 = vld [vmem:[%s18540_s13 + $0xb88] sm:$0xf]  ;;  %v17188_v0 = vld [vmem:[%s18540_s13 + $0xb94] sm:$0xf0]  ;;  %v12612_v40 = vor.u32 %v17152_v1, %v12611_v8  ;;  %v9582_v1 = vpop.f32.mrf.mxu3 }
 0x344   : > { %9815 = vmatmul.bf16.vlgmr.msrb.gmra.mxu2 %v18726_v42  ;;  %9822 = vmatpush.bf16.msrb.mxu1 %v12388_v15  ;;  %v12595_v15 = vld [vmem:[%s18540_s13 + $0xa48] sm:$0xf]  ;;  %v12756_v6 = vor.u32 %v17188_v0, %v12755_v4  ;;  %v17120_v2 = vld [vmem:[%s18540_s13 + $0x974] sm:$0xf0] }
 0x345   : > { %9859 = vmatpush.bf16.msra.mxu2 %v12804_v20  ;;  %9789 = vmatmul.bf16.vlgmr.msrb.gmra.mxu3 %v18728_v44  ;;  %v12516_v20 = vor.u32 %v17128_v61, %v12515_v9  ;;  %v12339_v52 = vld [vmem:[%s18540_s13 + $0x848] sm:$0xf]  ;;  %v17084_v9 = vld [vmem:[%s18540_s13 + $0x854] sm:$0xf0] }
 0x346   : > { %9833 = vmatpush.bf16.msra.mxu3 %v12548_v18  ;;  %v9557_v18 = vadd.f32 %v9556_v3, %v20325_v50  ;;  %v12356_v50 = vor.u32 %v17088_v43, %v12355_v59  ;;  %v12483_v61 = vld [vmem:[%s18540_s13 + $0x968] sm:$0xf]  ;;  %v17116_v0 = vld [vmem:[%s18540_s13 + $0x954] sm:$0xf0] }
 0x347   : > { %9849 = vmatpush.bf16.msrb.mxu0 %v12628_v55  ;;  %v12739_v47 = vld [vmem:[%s18540_s13 + $0xb68] sm:$0xf]  ;;  %v17184_v55 = vld [vmem:[%s18540_s13 + $0xb74] sm:$0xf0]  ;;  %v12484_v59 = vor.u32 %v17120_v2, %v12483_v61 }
 0x348   : > { %v9570_v10 = vadd.f32 %v9569_v53, %v9557_v18  ;;  %9823 = vmatpush.bf16.msrb.mxu1 %v12372_v51  ;;  %v12579_v3 = vld [vmem:[%s18540_s13 + $0xa28] sm:$0xf]  ;;  %v17144_v51 = vld [vmem:[%s18540_s13 + $0xa34] sm:$0xf0]  ;;  %v12340_v18 = vor.u32 %v17084_v9, %v12339_v52  ;;  %v12740_v43 = vor.u32 %v17184_v55, %v12739_v47 }
 0x349   : > { %9860 = vmatpush.bf16.msra.mxu2 %v12788_v32  ;;  %v12500_v32 = vor.u32 %v17124_v54, %v12499_v34  ;;  %v12323_v34 = vld [vmem:[%s18540_s13 + $0x828] sm:$0xf]  ;;  %v17080_v54 = vld [vmem:[%s18540_s13 + $0x834] sm:$0xf0] }
 0x34a   : > { %9834 = vmatpush.bf16.msra.mxu3 %v12532_v62  ;;  %v17148_v62 = vld [vmem:[%s18540_s13 + $0xa54] sm:$0xf0]  ;;  %v9583_v53 = vadd.f32 %v9582_v1, %v9570_v10  ;;  %v12467_v4 = vld [vmem:[%s18540_s13 + $0x948] sm:$0xf]  ;;  %v12324_v52 = vor.u32 %v17080_v54, %v12323_v34 }
 0x34b   : > { %9850 = vmatpush.bf16.msrb.mxu0 %v12612_v40  ;;  %v12596_v8 = vor.u32 %v17148_v62, %v12595_v15  ;;  %v12723_v40 = vld [vmem:[%s18540_s13 + $0xb48] sm:$0xf]  ;;  %v17180_v10 = vld [vmem:[%s18540_s13 + $0xb54] sm:$0xf0]  ;;  %v12580_v15 = vor.u32 %v17144_v51, %v12579_v3  ;;  %v9595_v62 = vpop.f32.mrf.mxu2  ;;  %v12468_v2 = vor.u32 %v17116_v0, %v12467_v4 }
 0x34c   : > { %9824 = vmatpush.bf16.msrb.mxu1 %v12356_v50  ;;  %v12563_v50 = vld [vmem:[%s18540_s13 + $0xa08] sm:$0xf]  ;;  %v17296_v61 = vld [vmem:[%s18540_s13 + $0xef4] sm:$0xf0]  ;;  %v12724_v47 = vor.u32 %v17180_v10, %v12723_v40 }
 0x34d   : > { %9861 = vmatpush.bf16.msra.mxu2 %v12772_v60  ;;  %v9571_v60 = vpop.f32.mrf.mxu1  ;;  %v13187_v9 = vld [vmem:[%s18540_s13 + $0xee8] sm:$0xf]  ;;  %v17112_v3 = vld [vmem:[%s18540_s13 + $0x934] sm:$0xf0] }
 0x34e   : > { %9835 = vmatpush.bf16.msra.mxu3 %v12516_v20  ;;  %v9558_v20 = vpop.f32.mrf.mxu0  ;;  %v12307_v55 = vld [vmem:[%s18540_s13 + $0x808] sm:$0xf]  ;;  %v17232_v60 = vld [vmem:[%s18540_s13 + $0xcf4] sm:$0xf0] }
 0x34f   : > { %9851 = vmatpush.bf16.msrb.mxu0 %v12596_v8  ;;  %v17076_v8 = vld [vmem:[%s18540_s13 + $0x814] sm:$0xf0]  ;;  %v12451_v1 = vld [vmem:[%s18540_s13 + $0x928] sm:$0xf] }
 0x350   : > { %9825 = vmatpush.bf16.msrb.mxu1 %v12340_v18  ;;  %v12707_v51 = vld [vmem:[%s18540_s13 + $0xb28] sm:$0xf]  ;;  %v12308_v34 = vor.u32 %v17076_v8, %v12307_v55  ;;  %v17292_v4 = vld [vmem:[%s18540_s13 + $0xed4] sm:$0xf0]  ;;  %v12452_v0 = vor.u32 %v17112_v3, %v12451_v1 }
 0x351   : > { %9862 = vmatpush.bf16.msra.mxu2 %v12756_v6  ;;  %v20394_v6 = vadd.f32 %v9595_v62, %v9583_v53  ;;  %v17176_v53 = vld [vmem:[%s18540_s13 + $0xb34] sm:$0xf0]  ;;  %v12931_v20 = vld [vmem:[%s18540_s13 + $0xce8] sm:$0xf] }
 0x352   : > { %9836 = vmatpush.bf16.msra.mxu3 %v12500_v32  ;;  %v17140_v32 = vld [vmem:[%s18540_s13 + $0xa14] sm:$0xf0]  ;;  %v13171_v54 = vld [vmem:[%s18540_s13 + $0xec8] sm:$0xf]  ;;  %v12708_v40 = vor.u32 %v17176_v53, %v12707_v51 }
 0x353   : > { %9852 = vmatpush.bf16.msrb.mxu0 %v12580_v15  ;;  %v12564_v18 = vor.u32 %v17140_v32, %v12563_v50  ;;  %v12435_v10 = vld [vmem:[%s18540_s13 + $0x908] sm:$0xf]  ;;  %v17108_v15 = vld [vmem:[%s18540_s13 + $0x914] sm:$0xf0]  ;;  %v12932_v50 = vor.u32 %v17232_v60, %v12931_v20  ;;  %v9597_v8 = vpop.f32.mrf.mxu2 }
 0x354   : > { %9826 = vmatpush.bf16.msrb.mxu1 %v12324_v52  ;;  %v12691_v62 = vld [vmem:[%s18540_s13 + $0xb08] sm:$0xf]  ;;  %v17172_v32 = vld [vmem:[%s18540_s13 + $0xb14] sm:$0xf0]  ;;  %v12436_v53 = vor.u32 %v17108_v15, %v12435_v10 }
 0x355   : > { %9863 = vmatpush.bf16.msra.mxu2 %v12740_v43  ;;  %v9584_v43 = vpop.f32.mrf.mxu3  ;;  %v12915_v52 = vld [vmem:[%s18540_s13 + $0xcc8] sm:$0xf]  ;;  %v17264_v55 = vld [vmem:[%s18540_s13 + $0xdf4] sm:$0xf0] }
 0x356   : > { %9837 = vmatpush.bf16.msra.mxu3 %v12484_v59  ;;  %v13188_v59 = vor.u32 %v17296_v61, %v13187_v9  ;;  %v17228_v9 = vld [vmem:[%s18540_s13 + $0xcd4] sm:$0xf0]  ;;  %v13059_v61 = vld [vmem:[%s18540_s13 + $0xde8] sm:$0xf] }
 0x357   : > { %9853 = vmatpush.bf16.msrb.mxu0 %v12564_v18  ;;  %v17328_v1 = vld [vmem:[%s18540_s13 + $0xff4] sm:$0xf0]  ;;  %v13155_v3 = vld [vmem:[%s18540_s13 + $0xea8] sm:$0xf]  ;;  %v12692_v18 = vor.u32 %v17172_v32, %v12691_v62  ;;  %v12916_v20 = vor.u32 %v17228_v9, %v12915_v52  ;;  %v13060_v60 = vor.u32 %v17264_v55, %v13059_v61 }
 0x358   : > { %9827 = vmatpush.bf16.msrb.mxu1 %v12308_v34  ;;  %v17288_v51 = vld [vmem:[%s18540_s13 + $0xeb4] sm:$0xf0]  ;;  %v13139_v15 = vld [vmem:[%s18540_s13 + $0xe88] sm:$0xf] }
 0x359   : > { %9864 = vmatpush.bf16.msra.mxu2 %v12724_v47  ;;  %v13172_v47 = vor.u32 %v17292_v4, %v13171_v54  ;;  %v17224_v43 = vld [vmem:[%s18540_s13 + $0xcb4] sm:$0xf0]  ;;  %v13043_v54 = vld [vmem:[%s18540_s13 + $0xdc8] sm:$0xf] }
 0x35a   : > { %9838 = vmatpush.bf16.msra.mxu3 %v12468_v2  ;;  %v13315_v2 = vld [vmem:[%s18540_s13 + $0xfe8] sm:$0xf]  ;;  %9854 = vmatmul.bf16.vlgmr.msrb.gmra.mxu0 %v18804_v29  ;;  %v17260_v4 = vld [vmem:[%s18540_s13 + $0xdd4] sm:$0xf0] }
 0x35b   : > { %9898 = vmatpush.bf16.msra.mxu0 %v13188_v59  ;;  %v12899_v59 = vld [vmem:[%s18540_s13 + $0xca8] sm:$0xf]  ;;  %9828 = vmatmul.bf16.vlgmr.msrb.gmra.mxu1 %v18799_v25  ;;  %v13316_v34 = vor.u32 %v17328_v1, %v13315_v2  ;;  %v17324_v10 = vld [vmem:[%s18540_s13 + $0xfd4] sm:$0xf0]  ;;  %v13044_v32 = vor.u32 %v17260_v4, %v13043_v54 }
 0x35c   : > { %9872 = vmatpush.bf16.msra.mxu1 %v12932_v50  ;;  %v17284_v62 = vld [vmem:[%s18540_s13 + $0xe94] sm:$0xf0]  ;;  %v12900_v50 = vor.u32 %v17224_v43, %v12899_v59  ;;  %v12883_v52 = vld [vmem:[%s18540_s13 + $0xc88] sm:$0xf] }
 0x35d   : > { %9865 = vmatpush.bf16.msra.mxu2 %v12708_v40  ;;  %v13156_v40 = vor.u32 %v17288_v51, %v13155_v3  ;;  %v17220_v9 = vld [vmem:[%s18540_s13 + $0xc94] sm:$0xf0]  ;;  %v13027_v55 = vld [vmem:[%s18540_s13 + $0xda8] sm:$0xf]  ;;  %v13140_v8 = vor.u32 %v17284_v62, %v13139_v15 }
 0x35e   : > { %9839 = vmatpush.bf16.msra.mxu3 %v12452_v0  ;;  %v13299_v0 = vld [vmem:[%s18540_s13 + $0xfc8] sm:$0xf]  ;;  %v17256_v2 = vld [vmem:[%s18540_s13 + $0xdb4] sm:$0xf0] }
 0x35f   : > { %9899 = vmatpush.bf16.msra.mxu0 %v13172_v47  ;;  %v13300_v61 = vor.u32 %v17324_v10, %v13299_v0  ;;  %v13283_v47 = vld [vmem:[%s18540_s13 + $0xfa8] sm:$0xf]  ;;  %v17320_v1 = vld [vmem:[%s18540_s13 + $0xfb4] sm:$0xf0]  ;;  %v13028_v59 = vor.u32 %v17256_v2, %v13027_v55 }
 0x360   : > { %9873 = vmatpush.bf16.msra.mxu1 %v12916_v20  ;;  %v13123_v3 = vld [vmem:[%s18540_s13 + $0xe68] sm:$0xf]  ;;  %v17280_v51 = vld [vmem:[%s18540_s13 + $0xe74] sm:$0xf0]  ;;  %v12884_v20 = vor.u32 %v17220_v9, %v12883_v52  ;;  %v13284_v54 = vor.u32 %v17320_v1, %v13283_v47 }
 0x361   : > { %9866 = vmatpush.bf16.msra.mxu2 %v12692_v18  ;;  %v12867_v43 = vld [vmem:[%s18540_s13 + $0xc68] sm:$0xf]  ;;  %v17252_v0 = vld [vmem:[%s18540_s13 + $0xd94] sm:$0xf0]  ;;  %v13124_v10 = vor.u32 %v17280_v51, %v13123_v3  ;;  %v9634_v3 = vpop.f32.mrf.mxu3 }
 0x362   : > { %9840 = vmatpush.bf16.msra.mxu3 %v12436_v53  ;;  %v9608_v53 = vpop.f32.mrf.mxu0  ;;  %v13011_v4 = vld [vmem:[%s18540_s13 + $0xd88] sm:$0xf]  ;;  %v17248_v47 = vld [vmem:[%s18540_s13 + $0xd74] sm:$0xf0] }
 0x363   : > { %9900 = vmatpush.bf16.msra.mxu0 %v13156_v40  ;;  %v9609_v18 = vadd.f32 %v9608_v53, %v20394_v6  ;;  %v13267_v40 = vld [vmem:[%s18540_s13 + $0xf88] sm:$0xf]  ;;  %v17316_v6 = vld [vmem:[%s18540_s13 + $0xf94] sm:$0xf0]  ;;  %v13012_v52 = vor.u32 %v17252_v0, %v13011_v4 }
 0x364   : > { %9867 = vmatmul.bf16.vlgmr.msra.gmra.mxu2 %v18810_v33  ;;  %9874 = vmatpush.bf16.msra.mxu1 %v12900_v50  ;;  %v13107_v62 = vld [vmem:[%s18540_s13 + $0xe48] sm:$0xf]  ;;  %v17276_v50 = vld [vmem:[%s18540_s13 + $0xe54] sm:$0xf0]  ;;  %v13268_v55 = vor.u32 %v17316_v6, %v13267_v40 }
 0x365   : > { %9911 = vmatpush.bf16.msrb.mxu2 %v13316_v34  ;;  %9841 = vmatmul.bf16.vlgmr.msra.gmra.mxu3 %v18806_v30  ;;  %v17216_v34 = vld [vmem:[%s18540_s13 + $0xc74] sm:$0xf0]  ;;  %v12851_v9 = vld [vmem:[%s18540_s13 + $0xc48] sm:$0xf]  ;;  %v13108_v1 = vor.u32 %v17276_v50, %v13107_v62 }
 0x366   : > { %9885 = vmatpush.bf16.msrb.mxu3 %v13060_v60  ;;  %v9621_v60 = vpop.f32.mrf.mxu1  ;;  %v12995_v2 = vld [vmem:[%s18540_s13 + $0xd68] sm:$0xf]  ;;  %v17312_v51 = vld [vmem:[%s18540_s13 + $0xf74] sm:$0xf0] }
 0x367   : > { %9901 = vmatpush.bf16.msra.mxu0 %v13140_v8  ;;  %v9622_v15 = vadd.f32 %v9621_v60, %v9609_v18  ;;  %v13251_v8 = vld [vmem:[%s18540_s13 + $0xf68] sm:$0xf]  ;;  %v17272_v18 = vld [vmem:[%s18540_s13 + $0xe34] sm:$0xf0] }
 0x368   : > { %9875 = vmatpush.bf16.msra.mxu1 %v12884_v20  ;;  %v13091_v53 = vld [vmem:[%s18540_s13 + $0xe28] sm:$0xf]  ;;  %v13252_v0 = vor.u32 %v17312_v51, %v13251_v8  ;;  %v17308_v62 = vld [vmem:[%s18540_s13 + $0xf54] sm:$0xf0] }
 0x369   : > { %9912 = vmatpush.bf16.msrb.mxu2 %v13300_v61  ;;  %v17212_v61 = vld [vmem:[%s18540_s13 + $0xc54] sm:$0xf0]  ;;  %v9635_v20 = vadd.f32 %v9634_v3, %v9622_v15  ;;  %v12979_v40 = vld [vmem:[%s18540_s13 + $0xd48] sm:$0xf]  ;;  %v13092_v6 = vor.u32 %v17272_v18, %v13091_v53 }
 0x36a   : > { %9886 = vmatpush.bf16.msrb.mxu3 %v13044_v32  ;;  %v12868_v32 = vor.u32 %v17216_v34, %v12867_v43  ;;  %v9610_v60 = vpop.f32.mrf.mxu0  ;;  %v12996_v43 = vor.u32 %v17248_v47, %v12995_v2  ;;  %v12835_v34 = vld [vmem:[%s18540_s13 + $0xc28] sm:$0xf]  ;;  %v17240_v53 = vld [vmem:[%s18540_s13 + $0xd34] sm:$0xf0] }
 0x36b   : > { %9902 = vmatpush.bf16.msra.mxu0 %v13124_v10  ;;  %v17244_v10 = vld [vmem:[%s18540_s13 + $0xd54] sm:$0xf0]  ;;  %v13235_v15 = vld [vmem:[%s18540_s13 + $0xf48] sm:$0xf] }
 0x36c   : > { %9876 = vmatpush.bf16.msra.mxu1 %v12868_v32  ;;  %v13075_v50 = vld [vmem:[%s18540_s13 + $0xe08] sm:$0xf]  ;;  %v17268_v32 = vld [vmem:[%s18540_s13 + $0xe14] sm:$0xf0]  ;;  %v12980_v47 = vor.u32 %v17244_v10, %v12979_v40  ;;  %v13236_v3 = vor.u32 %v17308_v62, %v13235_v15 }
 0x36d   : > { %9913 = vmatpush.bf16.msrb.mxu2 %v13284_v54  ;;  %v17208_v54 = vld [vmem:[%s18540_s13 + $0xc34] sm:$0xf0]  ;;  %v12819_v8 = vld [vmem:[%s18540_s13 + $0xc08] sm:$0xf]  ;;  %v13076_v60 = vor.u32 %v17268_v32, %v13075_v50 }
 0x36e   : > { %9887 = vmatpush.bf16.msrb.mxu3 %v13028_v59  ;;  %v12852_v59 = vor.u32 %v17212_v61, %v12851_v9  ;;  %v9623_v4 = vpop.f32.mrf.mxu1  ;;  %v13699_v9 = vld [vmem:[%s18540_s13 + $0x12e8] sm:$0xf]  ;;  %v17424_v61 = vld [vmem:[%s18540_s13 + $0x12f4] sm:$0xf0]  ;;  %v12836_v2 = vor.u32 %v17208_v54, %v12835_v34  ;;  %v9636_v34 = vpop.f32.mrf.mxu3 }
 0x36f   : > { %9903 = vmatpush.bf16.msra.mxu0 %v13108_v1  ;;  %v17204_v1 = vld [vmem:[%s18540_s13 + $0xc14] sm:$0xf0]  ;;  %v12963_v51 = vld [vmem:[%s18540_s13 + $0xd28] sm:$0xf] }
 0x370   : > { %9877 = vmatpush.bf16.msra.mxu1 %v12852_v59  ;;  %v13219_v18 = vld [vmem:[%s18540_s13 + $0xf28] sm:$0xf]  ;;  %v17304_v4 = vld [vmem:[%s18540_s13 + $0xf34] sm:$0xf0]  ;;  %v12964_v10 = vor.u32 %v17240_v53, %v12963_v51 }
 0x371   : > { %9914 = vmatpush.bf16.msrb.mxu2 %v13268_v55  ;;  %v13443_v59 = vld [vmem:[%s18540_s13 + $0x10e8] sm:$0xf]  ;;  %v17420_v40 = vld [vmem:[%s18540_s13 + $0x12d4] sm:$0xf0] }
 0x372   : > { %9888 = vmatpush.bf16.msrb.mxu3 %v13012_v52  ;;  %v9647_v52 = vpop.f32.mrf.mxu2  ;;  %v13683_v54 = vld [vmem:[%s18540_s13 + $0x12c8] sm:$0xf]  ;;  %v17236_v50 = vld [vmem:[%s18540_s13 + $0xd14] sm:$0xf0] }
 0x373   : > { %v20467_v55 = vadd.f32 %v9647_v52, %v9635_v20  ;;  %9904 = vmatpush.bf16.msra.mxu0 %v13092_v6  ;;  %v17360_v20 = vld [vmem:[%s18540_s13 + $0x10f4] sm:$0xf0]  ;;  %v12947_v15 = vld [vmem:[%s18540_s13 + $0xd08] sm:$0xf]  ;;  %v13220_v6 = vor.u32 %v17304_v4, %v13219_v18 }
 0x374   : > { %9878 = vmatpush.bf16.msra.mxu1 %v12836_v2  ;;  %v13444_v62 = vor.u32 %v17360_v20, %v13443_v59  ;;  %v13203_v32 = vld [vmem:[%s18540_s13 + $0xf08] sm:$0xf]  ;;  %v17300_v52 = vld [vmem:[%s18540_s13 + $0xf14] sm:$0xf0]  ;;  %v12948_v51 = vor.u32 %v17236_v50, %v12947_v15 }
 0x375   : > { %9915 = vmatpush.bf16.msrb.mxu2 %v13252_v0  ;;  %v12820_v0 = vor.u32 %v17204_v1, %v12819_v8  ;;  %v13571_v2 = vld [vmem:[%s18540_s13 + $0x11e8] sm:$0xf]  ;;  %v17392_v34 = vld [vmem:[%s18540_s13 + $0x11f4] sm:$0xf0] }
 0x376   : > { %9889 = vmatpush.bf16.msrb.mxu3 %v12996_v43  ;;  %v13700_v43 = vor.u32 %v17424_v61, %v13699_v9  ;;  %v13427_v9 = vld [vmem:[%s18540_s13 + $0x10c8] sm:$0xf]  ;;  %v17356_v61 = vld [vmem:[%s18540_s13 + $0x10d4] sm:$0xf0]  ;;  %v13572_v59 = vor.u32 %v17392_v34, %v13571_v2 }
 0x377   : > { %9905 = vmatpush.bf16.msra.mxu0 %v13076_v60  ;;  %v13827_v8 = vld [vmem:[%s18540_s13 + $0x13e8] sm:$0xf]  ;;  %v17456_v1 = vld [vmem:[%s18540_s13 + $0x13f4] sm:$0xf0]  ;;  %v13204_v60 = vor.u32 %v17300_v52, %v13203_v32  ;;  %v13428_v4 = vor.u32 %v17356_v61, %v13427_v9 }
 0x378   : > { %9879 = vmatpush.bf16.msra.mxu1 %v12820_v0  ;;  %v13667_v53 = vld [vmem:[%s18540_s13 + $0x12a8] sm:$0xf]  ;;  %v17416_v18 = vld [vmem:[%s18540_s13 + $0x12b4] sm:$0xf0]  ;;  %v13828_v20 = vor.u32 %v17456_v1, %v13827_v8 }
 0x379   : > { %9916 = vmatpush.bf16.msrb.mxu2 %v13236_v3  ;;  %v17388_v0 = vld [vmem:[%s18540_s13 + $0x11d4] sm:$0xf0]  ;;  %v13395_v61 = vld [vmem:[%s18540_s13 + $0x1088] sm:$0xf] }
 0x37a   : > { %9890 = vmatpush.bf16.msrb.mxu3 %v12980_v47  ;;  %v13684_v47 = vor.u32 %v17420_v40, %v13683_v54  ;;  %v9649_v3 = vpop.f32.mrf.mxu2  ;;  %v17352_v54 = vld [vmem:[%s18540_s13 + $0x10b4] sm:$0xf0]  ;;  %v13555_v40 = vld [vmem:[%s18540_s13 + $0x11c8] sm:$0xf]  ;;  %9906 = vmatmul.bf16.vlgmr.msra.gmra.mxu0 %v18886_v28 }
 0x37b   : > { %9950 = vmatpush.bf16.msrb.mxu0 %v13700_v43  ;;  %v13411_v43 = vld [vmem:[%s18540_s13 + $0x10a8] sm:$0xf]  ;;  %9880 = vmatmul.bf16.vlgmr.msra.gmra.mxu1 %v18881_v23  ;;  %v17452_v15 = vld [vmem:[%s18540_s13 + $0x13d4] sm:$0xf0]  ;;  %v13556_v52 = vor.u32 %v17388_v0, %v13555_v40 }
 0x37c   : > { %9924 = vmatpush.bf16.msrb.mxu1 %v13444_v62  ;;  %v13651_v62 = vld [vmem:[%s18540_s13 + $0x1288] sm:$0xf]  ;;  %v17412_v50 = vld [vmem:[%s18540_s13 + $0x1294] sm:$0xf0]  ;;  %v13412_v32 = vor.u32 %v17352_v54, %v13411_v43 }
 0x37d   : > { %9917 = vmatpush.bf16.msrb.mxu2 %v13220_v6  ;;  %v13668_v6 = vor.u32 %v17416_v18, %v13667_v53  ;;  %v17348_v2 = vld [vmem:[%s18540_s13 + $0x1094] sm:$0xf0]  ;;  %v13795_v8 = vld [vmem:[%s18540_s13 + $0x13a8] sm:$0xf]  ;;  %v13652_v3 = vor.u32 %v17412_v50, %v13651_v62  ;;  %v9660_v18 = vpop.f32.mrf.mxu0 }
 0x37e   : > { %9891 = vmatpush.bf16.msrb.mxu3 %v12964_v10  ;;  %v13811_v10 = vld [vmem:[%s18540_s13 + $0x13c8] sm:$0xf]  ;;  %v17384_v34 = vld [vmem:[%s18540_s13 + $0x11b4] sm:$0xf0] }
 0x37f   : > { %9951 = vmatpush.bf16.msrb.mxu0 %v13684_v47  ;;  %v13812_v9 = vor.u32 %v17452_v15, %v13811_v10  ;;  %v13539_v47 = vld [vmem:[%s18540_s13 + $0x11a8] sm:$0xf]  ;;  %v17448_v1 = vld [vmem:[%s18540_s13 + $0x13b4] sm:$0xf0] }
 0x380   : > { %9925 = vmatpush.bf16.msrb.mxu1 %v13428_v4  ;;  %v17408_v53 = vld [vmem:[%s18540_s13 + $0x1274] sm:$0xf0]  ;;  %v9673_v4 = vpop.f32.mrf.mxu1  ;;  %v13796_v43 = vor.u32 %v17448_v1, %v13795_v8  ;;  %v13379_v54 = vld [vmem:[%s18540_s13 + $0x1068] sm:$0xf] }
 0x381   : > { %9918 = vmatpush.bf16.msrb.mxu2 %v13204_v60  ;;  %v13396_v60 = vor.u32 %v17348_v2, %v13395_v61  ;;  %v17344_v40 = vld [vmem:[%s18540_s13 + $0x1074] sm:$0xf0]  ;;  %v13523_v0 = vld [vmem:[%s18540_s13 + $0x1188] sm:$0xf] }
 0x382   : > { %9892 = vmatpush.bf16.msrb.mxu3 %v12948_v51  ;;  %v13635_v51 = vld [vmem:[%s18540_s13 + $0x1268] sm:$0xf]  ;;  %v17380_v10 = vld [vmem:[%s18540_s13 + $0x1194] sm:$0xf0] }
 0x383   : > { %9952 = vmatpush.bf16.msrb.mxu0 %v13668_v6  ;;  %v13779_v15 = vld [vmem:[%s18540_s13 + $0x1388] sm:$0xf]  ;;  %v17444_v6 = vld [vmem:[%s18540_s13 + $0x1394] sm:$0xf0]  ;;  %v13636_v62 = vor.u32 %v17408_v53, %v13635_v51  ;;  %v9686_v53 = vpop.f32.mrf.mxu3 }
 0x384   : > { %9919 = vmatmul.bf16.vlgmr.msrb.gmra.mxu2 %v18892_v35  ;;  %9926 = vmatpush.bf16.msrb.mxu1 %v13412_v32  ;;  %v13619_v32 = vld [vmem:[%s18540_s13 + $0x1248] sm:$0xf]  ;;  %v13780_v61 = vor.u32 %v17444_v6, %v13779_v15  ;;  %v17376_v8 = vld [vmem:[%s18540_s13 + $0x1174] sm:$0xf0] }
 0x385   : > { %9963 = vmatpush.bf16.msra.mxu2 %v13828_v20  ;;  %9893 = vmatmul.bf16.vlgmr.msrb.gmra.mxu3 %v18888_v31  ;;  %v13540_v20 = vor.u32 %v17384_v34, %v13539_v47  ;;  %v13363_v2 = vld [vmem:[%s18540_s13 + $0x1048] sm:$0xf]  ;;  %v17340_v47 = vld [vmem:[%s18540_s13 + $0x1054] sm:$0xf0] }
 0x386   : > { %9937 = vmatpush.bf16.msra.mxu3 %v13572_v59  ;;  %v9661_v59 = vadd.f32 %v9660_v18, %v20467_v55  ;;  %v13380_v55 = vor.u32 %v17344_v40, %v13379_v54  ;;  %v13507_v34 = vld [vmem:[%s18540_s13 + $0x1168] sm:$0xf]  ;;  %v17372_v6 = vld [vmem:[%s18540_s13 + $0x1154] sm:$0xf0] }
 0x387   : > { %9953 = vmatpush.bf16.msrb.mxu0 %v13652_v3  ;;  %v13763_v1 = vld [vmem:[%s18540_s13 + $0x1368] sm:$0xf]  ;;  %v17440_v3 = vld [vmem:[%s18540_s13 + $0x1374] sm:$0xf0]  ;;  %v13508_v54 = vor.u32 %v17376_v8, %v13507_v34 }
 0x388   : > { %v9674_v50 = vadd.f32 %v9673_v4, %v9661_v59  ;;  %9927 = vmatpush.bf16.msrb.mxu1 %v13396_v60  ;;  %v13603_v18 = vld [vmem:[%s18540_s13 + $0x1228] sm:$0xf]  ;;  %v17400_v60 = vld [vmem:[%s18540_s13 + $0x1234] sm:$0xf0]  ;;  %v13364_v59 = vor.u32 %v17340_v47, %v13363_v2  ;;  %v13764_v40 = vor.u32 %v17440_v3, %v13763_v1 }
 0x389   : > { %9964 = vmatpush.bf16.msra.mxu2 %v13812_v9  ;;  %v13524_v9 = vor.u32 %v17380_v10, %v13523_v0  ;;  %v13347_v0 = vld [vmem:[%s18540_s13 + $0x1028] sm:$0xf]  ;;  %v17336_v10 = vld [vmem:[%s18540_s13 + $0x1034] sm:$0xf0] }
 0x38a   : > { %9938 = vmatpush.bf16.msra.mxu3 %v13556_v52  ;;  %v17404_v52 = vld [vmem:[%s18540_s13 + $0x1254] sm:$0xf0]  ;;  %v9687_v4 = vadd.f32 %v9686_v53, %v9674_v50  ;;  %v13491_v15 = vld [vmem:[%s18540_s13 + $0x1148] sm:$0xf]  ;;  %v13348_v2 = vor.u32 %v17336_v10, %v13347_v0 }
 0x38b   : > { %9954 = vmatpush.bf16.msrb.mxu0 %v13636_v62  ;;  %v13620_v51 = vor.u32 %v17404_v52, %v13619_v32  ;;  %v13747_v62 = vld [vmem:[%s18540_s13 + $0x1348] sm:$0xf]  ;;  %v17436_v50 = vld [vmem:[%s18540_s13 + $0x1354] sm:$0xf0]  ;;  %v13604_v32 = vor.u32 %v17400_v60, %v13603_v18  ;;  %v9699_v52 = vpop.f32.mrf.mxu2  ;;  %v13492_v8 = vor.u32 %v17372_v6, %v13491_v15 }
 0x38c   : > { %9928 = vmatpush.bf16.msrb.mxu1 %v13380_v55  ;;  %v13587_v55 = vld [vmem:[%s18540_s13 + $0x1208] sm:$0xf]  ;;  %v17552_v34 = vld [vmem:[%s18540_s13 + $0x16f4] sm:$0xf0]  ;;  %v13748_v1 = vor.u32 %v17436_v50, %v13747_v62 }
 0x38d   : > { %9965 = vmatpush.bf16.msra.mxu2 %v13796_v43  ;;  %v9662_v43 = vpop.f32.mrf.mxu0  ;;  %v14211_v47 = vld [vmem:[%s18540_s13 + $0x16e8] sm:$0xf]  ;;  %v17368_v18 = vld [vmem:[%s18540_s13 + $0x1134] sm:$0xf0] }
 0x38e   : > { %9939 = vmatpush.bf16.msra.mxu3 %v13540_v20  ;;  %v9675_v20 = vpop.f32.mrf.mxu1  ;;  %v13331_v3 = vld [vmem:[%s18540_s13 + $0x1008] sm:$0xf]  ;;  %v17548_v15 = vld [vmem:[%s18540_s13 + $0x16d4] sm:$0xf0] }
 0x38f   : > { %9955 = vmatpush.bf16.msrb.mxu0 %v13620_v51  ;;  %v17332_v51 = vld [vmem:[%s18540_s13 + $0x1014] sm:$0xf0]  ;;  %v13475_v53 = vld [vmem:[%s18540_s13 + $0x1128] sm:$0xf]  ;;  %v9688_v20 = vpop.f32.mrf.mxu3 }
 0x390   : > { %9929 = vmatpush.bf16.msrb.mxu1 %v13364_v59  ;;  %v13731_v60 = vld [vmem:[%s18540_s13 + $0x1328] sm:$0xf]  ;;  %v13332_v0 = vor.u32 %v17332_v51, %v13331_v3  ;;  %v13476_v6 = vor.u32 %v17368_v18, %v13475_v53  ;;  %v17520_v3 = vld [vmem:[%s18540_s13 + $0x15f4] sm:$0xf0] }
 0x391   : > { %9966 = vmatpush.bf16.msra.mxu2 %v13780_v61  ;;  %v20536_v61 = vadd.f32 %v9699_v52, %v9687_v4  ;;  %v17432_v4 = vld [vmem:[%s18540_s13 + $0x1334] sm:$0xf0]  ;;  %v13955_v43 = vld [vmem:[%s18540_s13 + $0x14e8] sm:$0xf] }
 0x392   : > { %9940 = vmatpush.bf16.msra.mxu3 %v13524_v9  ;;  %v17396_v9 = vld [vmem:[%s18540_s13 + $0x1214] sm:$0xf0]  ;;  %v14195_v10 = vld [vmem:[%s18540_s13 + $0x16c8] sm:$0xf]  ;;  %v13732_v62 = vor.u32 %v17432_v4, %v13731_v60 }
 0x393   : > { %9956 = vmatpush.bf16.msrb.mxu0 %v13604_v32  ;;  %v13588_v59 = vor.u32 %v17396_v9, %v13587_v55  ;;  %v13459_v50 = vld [vmem:[%s18540_s13 + $0x1108] sm:$0xf]  ;;  %v17364_v32 = vld [vmem:[%s18540_s13 + $0x1114] sm:$0xf0]  ;;  %v9701_v51 = vpop.f32.mrf.mxu2 }
 0x394   : > { %9930 = vmatpush.bf16.msrb.mxu1 %v13348_v2  ;;  %v13715_v52 = vld [vmem:[%s18540_s13 + $0x1308] sm:$0xf]  ;;  %v17428_v9 = vld [vmem:[%s18540_s13 + $0x1314] sm:$0xf0]  ;;  %v13460_v4 = vor.u32 %v17364_v32, %v13459_v50 }
 0x395   : > { %9967 = vmatpush.bf16.msra.mxu2 %v13764_v40  ;;  %v14212_v40 = vor.u32 %v17552_v34, %v14211_v47  ;;  %v13939_v2 = vld [vmem:[%s18540_s13 + $0x14c8] sm:$0xf]  ;;  %v17484_v47 = vld [vmem:[%s18540_s13 + $0x14d4] sm:$0xf0] }
 0x396   : > { %9941 = vmatpush.bf16.msra.mxu3 %v13508_v54  ;;  %v17488_v54 = vld [vmem:[%s18540_s13 + $0x14f4] sm:$0xf0]  ;;  %v14083_v34 = vld [vmem:[%s18540_s13 + $0x15e8] sm:$0xf]  ;;  %v13940_v20 = vor.u32 %v17484_v47, %v13939_v2 }
 0x397   : > { %v13956_v55 = vor.u32 %v17488_v54, %v13955_v43  ;;  %9957 = vmatpush.bf16.msrb.mxu0 %v13588_v59  ;;  %v17584_v53 = vld [vmem:[%s18540_s13 + $0x17f4] sm:$0xf0]  ;;  %v14179_v18 = vld [vmem:[%s18540_s13 + $0x16a8] sm:$0xf]  ;;  %v13716_v59 = vor.u32 %v17428_v9, %v13715_v52  ;;  %v14084_v43 = vor.u32 %v17520_v3, %v14083_v34 }
 0x398   : > { %9931 = vmatpush.bf16.msrb.mxu1 %v13332_v0  ;;  %v17544_v60 = vld [vmem:[%s18540_s13 + $0x16b4] sm:$0xf0]  ;;  %v13923_v54 = vld [vmem:[%s18540_s13 + $0x14a8] sm:$0xf]  ;;  %v9712_v0 = vpop.f32.mrf.mxu3 }
 0x399   : > { %9968 = vmatpush.bf16.msra.mxu2 %v13748_v1  ;;  %v14196_v1 = vor.u32 %v17548_v15, %v14195_v10  ;;  %v14067_v15 = vld [vmem:[%s18540_s13 + $0x15c8] sm:$0xf]  ;;  %v14180_v50 = vor.u32 %v17544_v60, %v14179_v18  ;;  %v20570_v32 = vadd.f32 %v9712_v0, %v20536_v61  ;;  %v17580_v52 = vld [vmem:[%s18540_s13 + $0x17d4] sm:$0xf0]  ;;  %v9725_v0 = vpop.f32.mrf.mxu1 }
 0x39a   : > { %9942 = vmatpush.bf16.msra.mxu3 %v13492_v8  ;;  %v14339_v8 = vld [vmem:[%s18540_s13 + $0x17e8] sm:$0xf]  ;;  %9958 = vmatmul.bf16.vlgmr.msrb.gmra.mxu0 %v18968_v45  ;;  %v17540_v9 = vld [vmem:[%s18540_s13 + $0x1694] sm:$0xf0] }
 0x39b   : > { %10002 = vmatpush.bf16.msra.mxu0 %v14212_v40  ;;  %v17480_v40 = vld [vmem:[%s18540_s13 + $0x14b4] sm:$0xf0]  ;;  %9932 = vmatmul.bf16.vlgmr.msrb.gmra.mxu1 %v18963_v37  ;;  %v14340_v10 = vor.u32 %v17584_v53, %v14339_v8  ;;  %21833 = vst [vmem:[#allocation13_spill] sm:$0xff] %v20570_v32  ;;  %v13907_v34 = vld [vmem:[%s18540_s13 + $0x1488] sm:$0xf] }
 0x39c   : > { %9976 = vmatpush.bf16.msra.mxu1 %v13956_v55  ;;  %v14163_v55 = vld [vmem:[%s18540_s13 + $0x1688] sm:$0xf]  ;;  %v13924_v2 = vor.u32 %v17480_v40, %v13923_v54  ;;  %v17476_v3 = vld [vmem:[%s18540_s13 + $0x1494] sm:$0xf0] }
 0x39d   : > { %9969 = vmatpush.bf16.msra.mxu2 %v13732_v62  ;;  %v14323_v62 = vld [vmem:[%s18540_s13 + $0x17c8] sm:$0xf]  ;;  %v14164_v53 = vor.u32 %v17540_v9, %v14163_v55  ;;  %v17576_v18 = vld [vmem:[%s18540_s13 + $0x17b4] sm:$0xf0] }
 0x39e   : > { %9943 = vmatpush.bf16.msra.mxu3 %v13476_v6  ;;  %v17516_v6 = vld [vmem:[%s18540_s13 + $0x15d4] sm:$0xf0]  ;;  %v14324_v8 = vor.u32 %v17580_v52, %v14323_v62  ;;  %v14051_v61 = vld [vmem:[%s18540_s13 + $0x15a8] sm:$0xf] }
 0x39f   : > { %10003 = vmatpush.bf16.msra.mxu0 %v14196_v1  ;;  %v14068_v47 = vor.u32 %v17516_v6, %v14067_v15  ;;  %v17512_v1 = vld [vmem:[%s18540_s13 + $0x15b4] sm:$0xf0]  ;;  %v14307_v51 = vld [vmem:[%s18540_s13 + $0x17a8] sm:$0xf] }
 0x3a0   : > { %9977 = vmatpush.bf16.msra.mxu1 %v13940_v20  ;;  %v14147_v60 = vld [vmem:[%s18540_s13 + $0x1668] sm:$0xf]  ;;  %v13908_v20 = vor.u32 %v17476_v3, %v13907_v34  ;;  %v17472_v40 = vld [vmem:[%s18540_s13 + $0x1474] sm:$0xf0]  ;;  %v9714_v52 = vpop.f32.mrf.mxu3 }
 0x3a1   : > { %9970 = vmatpush.bf16.msra.mxu2 %v13716_v59  ;;  %v20585_v59 = vpop.f32.mrf.mxu0  ;;  %v13891_v54 = vld [vmem:[%s18540_s13 + $0x1468] sm:$0xf]  ;;  %v17508_v6 = vld [vmem:[%s18540_s13 + $0x1594] sm:$0xf0]  ;;  %v9727_v52 = vpop.f32.mrf.mxu1 }
 0x3a2   : > { %9944 = vmatpush.bf16.msra.mxu3 %v13460_v4  ;;  %v17536_v4 = vld [vmem:[%s18540_s13 + $0x1674] sm:$0xf0]  ;;  %v14035_v15 = vld [vmem:[%s18540_s13 + $0x1588] sm:$0xf] }
 0x3a3   : > { %10004 = vmatpush.bf16.msra.mxu0 %v14180_v50  ;;  %v14291_v62 = vld [vmem:[%s18540_s13 + $0x1788] sm:$0xf]  ;;  %v14148_v50 = vor.u32 %v17536_v4, %v14147_v60  ;;  %v17572_v55 = vld [vmem:[%s18540_s13 + $0x1794] sm:$0xf0]  ;;  %v14036_v34 = vor.u32 %v17508_v6, %v14035_v15 }
 0x3a4   : > { %9971 = vmatmul.bf16.vlgmr.msra.gmra.mxu2 %v18974_v49  ;;  %9978 = vmatpush.bf16.msra.mxu1 %v13924_v2  ;;  %v14131_v9 = vld [vmem:[%s18540_s13 + $0x1648] sm:$0xf]  ;;  %v17532_v2 = vld [vmem:[%s18540_s13 + $0x1654] sm:$0xf0] }
 0x3a5   : > { %10015 = vmatpush.bf16.msrb.mxu2 %v14340_v10  ;;  %9945 = vmatmul.bf16.vlgmr.msra.gmra.mxu3 %v18970_v46  ;;  %v14308_v10 = vor.u32 %v17576_v18, %v14307_v51  ;;  %v13875_v3 = vld [vmem:[%s18540_s13 + $0x1448] sm:$0xf]  ;;  %v14292_v51 = vor.u32 %v17572_v55, %v14291_v62  ;;  %v17504_v18 = vld [vmem:[%s18540_s13 + $0x1574] sm:$0xf0]  ;;  %v14132_v4 = vor.u32 %v17532_v2, %v14131_v9 }
 0x3a6   : > { %9989 = vmatpush.bf16.msrb.mxu3 %v14084_v43  ;;  %v14052_v43 = vor.u32 %v17512_v1, %v14051_v61  ;;  %v18258_v61 = vld [vmem:[%s18548_s22] sm:$0xf]  ;;  %v14275_v60 = vld [vmem:[%s18540_s13 + $0x1768] sm:$0xf]  ;;  %v17464_v62 = vld [vmem:[%s18540_s13 + $0x1434] sm:$0xf0] }
 0x3a7   : > { %10005 = vmatpush.bf16.msra.mxu0 %v14164_v53  ;;  %v1678_v1 = vperm.slane %v18258_v61, 2  ;;  %v14019_v53 = vld [vmem:[%s18540_s13 + $0x1568] sm:$0xf]  ;;  %v17500_v2 = vld [vmem:[%s18540_s13 + $0x1554] sm:$0xf0] }
 0x3a8   : > { %9979 = vmatpush.bf16.msra.mxu1 %v13908_v20  ;;  %v17568_v20 = vld [vmem:[%s18540_s13 + $0x1774] sm:$0xf0]  ;;  %v14020_v15 = vor.u32 %v17504_v18, %v14019_v53  ;;  %v13859_v6 = vld [vmem:[%s18540_s13 + $0x1428] sm:$0xf]  ;;  %v9738_v18 = vpop.f32.mrf.mxu3 }
 0x3a9   : > { %10016 = vmatpush.bf16.msrb.mxu2 %v14324_v8  ;;  %v17468_v8 = vld [vmem:[%s18540_s13 + $0x1454] sm:$0xf0]  ;;  %v14276_v55 = vor.u32 %v17568_v20, %v14275_v60  ;;  %v14003_v9 = vld [vmem:[%s18540_s13 + $0x1548] sm:$0xf] }
 0x3aa   : > { %9990 = vmatpush.bf16.msrb.mxu3 %v14068_v47  ;;  %v13892_v47 = vor.u32 %v17472_v40, %v13891_v54  ;;  %v17528_v54 = vld [vmem:[%s18540_s13 + $0x1634] sm:$0xf0]  ;;  %v9753_v40 = vpop.f32.mrf.mxu0  ;;  %v14259_v61 = vld [vmem:[%s18540_s13 + $0x1748] sm:$0xf] }
 0x3ab   : > { %10006 = vmatpush.bf16.msra.mxu0 %v14148_v50  ;;  %v9726_v50 = vadd.f32 %v9725_v0, %v1678_v1  ;;  %v17564_v40 = vld [vmem:[%s18540_s13 + $0x1754] sm:$0xf0]  ;;  %v9764_v0 = vpop.f32.mrf.mxu2  ;;  %v13860_v1 = vor.u32 %v17464_v62, %v13859_v6  ;;  %v13843_v60 = vld [vmem:[%s18540_s13 + $0x1408] sm:$0xf] }
 0x3ac   : > { %9980 = vmatpush.bf16.msra.mxu1 %v13892_v47  ;;  %v17680_v53 = vld [vmem:[%s18540_s13 + $0x1af4] sm:$0xf0]  ;;  %v14243_v32 = vld [vmem:[%s18540_s13 + $0x1728] sm:$0xf] }
 0x3ad   : > { %10017 = vmatpush.bf16.msrb.mxu2 %v14308_v10  ;;  %v13876_v10 = vor.u32 %v17468_v8, %v13875_v3  ;;  %v17524_v3 = vld [vmem:[%s18540_s13 + $0x1614] sm:$0xf0]  ;;  %v14723_v8 = vld [vmem:[%s18540_s13 + $0x1ae8] sm:$0xf]  ;;  %v9739_v20 = vadd.f32 %v9738_v18, %v9726_v50 }
 0x3ae   : > { %9991 = vmatpush.bf16.msrb.mxu3 %v14052_v43  ;;  %v14115_v43 = vld [vmem:[%s18540_s13 + $0x1628] sm:$0xf]  ;;  %v17496_v52 = vld [vmem:[%s18540_s13 + $0x1534] sm:$0xf0] }
 0x3af   : > { %10007 = vmatpush.bf16.msra.mxu0 %v14132_v4  ;;  %v14116_v47 = vor.u32 %v17528_v54, %v14115_v43  ;;  %v17460_v4 = vld [vmem:[%s18540_s13 + $0x1414] sm:$0xf0]  ;;  %v14260_v43 = vor.u32 %v17564_v40, %v14259_v61  ;;  %v13987_v54 = vld [vmem:[%s18540_s13 + $0x1528] sm:$0xf]  ;;  %v9752_v6 = vadd.f32 %v20585_v59, %v9739_v20 }
 0x3b0   : > { %9981 = vmatpush.bf16.msra.mxu1 %v13876_v10  ;;  %v17560_v45 = vld [vmem:[%s18540_s13 + $0x1734] sm:$0xf0]  ;;  %v14467_v46 = vld [vmem:[%s18540_s13 + $0x18e8] sm:$0xf] }
 0x3b1   : > { %10018 = vmatpush.bf16.msrb.mxu2 %v14292_v51  ;;  %v14004_v51 = vor.u32 %v17500_v2, %v14003_v9  ;;  %v17616_v10 = vld [vmem:[%s18540_s13 + $0x18f4] sm:$0xf0]  ;;  %v14707_v62 = vld [vmem:[%s18540_s13 + $0x1ac8] sm:$0xf]  ;;  %v13988_v9 = vor.u32 %v17496_v52, %v13987_v54  ;;  %v20626_v61 = vadd.f32 %v9764_v0, %v9752_v6  ;;  %v9740_v0 = vpop.f32.mrf.mxu3 }
 0x3b2   : > { %9992 = vmatpush.bf16.msrb.mxu3 %v14036_v34  ;;  %v14099_v34 = vld [vmem:[%s18540_s13 + $0x1608] sm:$0xf]  ;;  %v17676_v50 = vld [vmem:[%s18540_s13 + $0x1ad4] sm:$0xf0]  ;;  %v14468_v40 = vor.u32 %v17616_v10, %v14467_v46 }
 0x3b3   : > { %10008 = vmatpush.bf16.msra.mxu0 %v14116_v47  ;;  %v14100_v49 = vor.u32 %v17524_v3, %v14099_v34  ;;  %v13971_v2 = vld [vmem:[%s18540_s13 + $0x1508] sm:$0xf]  ;;  %v14244_v47 = vor.u32 %v17560_v45, %v14243_v32  ;;  %v17492_v59 = vld [vmem:[%s18540_s13 + $0x1514] sm:$0xf0]  ;;  %v9766_v45 = vpop.f32.mrf.mxu2 }
 0x3b4   : > { %9982 = vmatpush.bf16.msra.mxu1 %v13860_v1  ;;  %v14227_v34 = vld [vmem:[%s18540_s13 + $0x1708] sm:$0xf]  ;;  %v17556_v3 = vld [vmem:[%s18540_s13 + $0x1714] sm:$0xf0]  ;;  %v14708_v1 = vor.u32 %v17676_v50, %v14707_v62  ;;  %v13972_v46 = vor.u32 %v17492_v59, %v13971_v2 }
 0x3b5   : > { %10019 = vmatpush.bf16.msrb.mxu2 %v14276_v55  ;;  %v13844_v55 = vor.u32 %v17460_v4, %v13843_v60  ;;  %v14595_v18 = vld [vmem:[%s18540_s13 + $0x19e8] sm:$0xf]  ;;  %v17712_v4 = vld [vmem:[%s18540_s13 + $0x1bf4] sm:$0xf0]  ;;  %v14228_v20 = vor.u32 %v17556_v3, %v14227_v34 }
 0x3b6   : > { %9993 = vmatpush.bf16.msrb.mxu3 %v14020_v15  ;;  %v14724_v15 = vor.u32 %v17680_v53, %v14723_v8  ;;  %v14451_v8 = vld [vmem:[%s18540_s13 + $0x18c8] sm:$0xf]  ;;  %v17612_v53 = vld [vmem:[%s18540_s13 + $0x18d4] sm:$0xf0] }
 0x3b7   : > { %10009 = vmatpush.bf16.msra.mxu0 %v14100_v49  ;;  %v14851_v60 = vld [vmem:[%s18540_s13 + $0x1be8] sm:$0xf]  ;;  %v17672_v32 = vld [vmem:[%s18540_s13 + $0x1ab4] sm:$0xf0] }
 0x3b8   : > { %9983 = vmatpush.bf16.msra.mxu1 %v13844_v55  ;;  %v14691_v49 = vld [vmem:[%s18540_s13 + $0x1aa8] sm:$0xf]  ;;  %v14852_v52 = vor.u32 %v17712_v4, %v14851_v60  ;;  %v17644_v62 = vld [vmem:[%s18540_s13 + $0x19d4] sm:$0xf0] }
 0x3b9   : > { %10020 = vmatpush.bf16.msrb.mxu2 %v14260_v43  ;;  %v14452_v43 = vor.u32 %v17612_v53, %v14451_v8  ;;  %v14435_v10 = vld [vmem:[%s18540_s13 + $0x18a8] sm:$0xf]  ;;  %v17708_v55 = vld [vmem:[%s18540_s13 + $0x1bd4] sm:$0xf0] }
 0x3ba   : > { %9994 = vmatpush.bf16.msrb.mxu3 %v14004_v51  ;;  %v17648_v51 = vld [vmem:[%s18540_s13 + $0x19f4] sm:$0xf0]  ;;  %v14579_v6 = vld [vmem:[%s18540_s13 + $0x19c8] sm:$0xf]  ;;  %10010 = vmatmul.bf16.vlgmr.msra.gmra.mxu0 %v19053_v16 }
 0x3bb   : > { %10054 = vmatpush.bf16.msrb.mxu0 %v14724_v15  ;;  %v14596_v54 = vor.u32 %v17648_v51, %v14595_v18  ;;  %v17608_v15 = vld [vmem:[%s18540_s13 + $0x18b4] sm:$0xf0]  ;;  %9984 = vmatmul.bf16.vlgmr.msra.gmra.mxu1 %v19048_v11  ;;  %v14835_v50 = vld [vmem:[%s18540_s13 + $0x1bc8] sm:$0xf]  ;;  %v14580_v59 = vor.u32 %v17644_v62, %v14579_v6 }
 0x3bc   : > { %10028 = vmatpush.bf16.msrb.mxu1 %v14468_v40  ;;  %v14675_v2 = vld [vmem:[%s18540_s13 + $0x1a88] sm:$0xf]  ;;  %v14436_v40 = vor.u32 %v17608_v15, %v14435_v10  ;;  %v14836_v34 = vor.u32 %v17708_v55, %v14835_v50  ;;  %v17604_v8 = vld [vmem:[%s18540_s13 + $0x1894] sm:$0xf0] }
 0x3bd   : > { %10021 = vmatpush.bf16.msrb.mxu2 %v14244_v47  ;;  %v17668_v47 = vld [vmem:[%s18540_s13 + $0x1a94] sm:$0xf0]  ;;  %v14419_v3 = vld [vmem:[%s18540_s13 + $0x1888] sm:$0xf] }
 0x3be   : > { %9995 = vmatpush.bf16.msrb.mxu3 %v13988_v9  ;;  %v14692_v9 = vor.u32 %v17672_v32, %v14691_v49  ;;  %v14563_v53 = vld [vmem:[%s18540_s13 + $0x19a8] sm:$0xf]  ;;  %v17640_v18 = vld [vmem:[%s18540_s13 + $0x19b4] sm:$0xf0]  ;;  %v14676_v60 = vor.u32 %v17668_v47, %v14675_v2  ;;  %v14420_v45 = vor.u32 %v17604_v8, %v14419_v3 }
 0x3bf   : > { %10055 = vmatpush.bf16.msrb.mxu0 %v14708_v1  ;;  %v14819_v1 = vld [vmem:[%s18540_s13 + $0x1ba8] sm:$0xf]  ;;  %v17704_v51 = vld [vmem:[%s18540_s13 + $0x1bb4] sm:$0xf0] }
 0x3c0   : > { %10029 = vmatpush.bf16.msrb.mxu1 %v14452_v43  ;;  %v14659_v4 = vld [vmem:[%s18540_s13 + $0x1a68] sm:$0xf]  ;;  %v17664_v0 = vld [vmem:[%s18540_s13 + $0x1a74] sm:$0xf0]  ;;  %v14820_v49 = vor.u32 %v17704_v51, %v14819_v1 }
 0x3c1   : > { %10022 = vmatpush.bf16.msrb.mxu2 %v14228_v20  ;;  %v14403_v32 = vld [vmem:[%s18540_s13 + $0x1868] sm:$0xf]  ;;  %v17600_v20 = vld [vmem:[%s18540_s13 + $0x1874] sm:$0xf0]  ;;  %v14660_v50 = vor.u32 %v17664_v0, %v14659_v4 }
 0x3c2   : > { %9996 = vmatpush.bf16.msrb.mxu3 %v13972_v46  ;;  %v14564_v46 = vor.u32 %v17640_v18, %v14563_v53  ;;  %v14547_v43 = vld [vmem:[%s18540_s13 + $0x1988] sm:$0xf]  ;;  %v17636_v10 = vld [vmem:[%s18540_s13 + $0x1994] sm:$0xf0]  ;;  %v14404_v2 = vor.u32 %v17600_v20, %v14403_v32 }
 0x3c3   : > { %10056 = vmatpush.bf16.msrb.mxu0 %v14692_v9  ;;  %v14803_v15 = vld [vmem:[%s18540_s13 + $0x1b88] sm:$0xf]  ;;  %v17700_v6 = vld [vmem:[%s18540_s13 + $0x1b94] sm:$0xf0]  ;;  %v14548_v47 = vor.u32 %v17636_v10, %v14547_v43 }
 0x3c4   : > { %10023 = vmatmul.bf16.vlgmr.msrb.gmra.mxu2 %v19059_v22  ;;  %10030 = vmatpush.bf16.msrb.mxu1 %v14436_v40  ;;  %v14643_v55 = vld [vmem:[%s18540_s13 + $0x1a48] sm:$0xf]  ;;  %v17660_v9 = vld [vmem:[%s18540_s13 + $0x1a54] sm:$0xf0]  ;;  %v14804_v40 = vor.u32 %v17700_v6, %v14803_v15 }
 0x3c5   : > { %10067 = vmatpush.bf16.msra.mxu2 %v14852_v52  ;;  %9997 = vmatmul.bf16.vlgmr.msrb.gmra.mxu3 %v19055_v17  ;;  %v9803_v52 = vpop.f32.mrf.mxu0  ;;  %v14531_v3 = vld [vmem:[%s18540_s13 + $0x1968] sm:$0xf]  ;;  %v17696_v53 = vld [vmem:[%s18540_s13 + $0x1b74] sm:$0xf0]  ;;  %v14644_v18 = vor.u32 %v17660_v9, %v14643_v55 }
 0x3c6   : > { %10041 = vmatpush.bf16.msra.mxu3 %v14596_v54  ;;  %v9777_v54 = vpop.f32.mrf.mxu1  ;;  %v14787_v8 = vld [vmem:[%s18540_s13 + $0x1b68] sm:$0xf]  ;;  %v17656_v51 = vld [vmem:[%s18540_s13 + $0x1a34] sm:$0xf0] }
 0x3c7   : > { %10057 = vmatpush.bf16.msrb.mxu0 %v14676_v60  ;;  %v9778_v62 = vadd.f32 %v9777_v54, %v20626_v61  ;;  %v17632_v61 = vld [vmem:[%s18540_s13 + $0x1974] sm:$0xf0]  ;;  %v14627_v1 = vld [vmem:[%s18540_s13 + $0x1a28] sm:$0xf]  ;;  %v14788_v0 = vor.u32 %v17696_v53, %v14787_v8 }
 0x3c8   : > { %10031 = vmatpush.bf16.msrb.mxu1 %v14420_v45  ;;  %v14532_v4 = vor.u32 %v17632_v61, %v14531_v3  ;;  %v14371_v45 = vld [vmem:[%s18540_s13 + $0x1828] sm:$0xf]  ;;  %v17628_v43 = vld [vmem:[%s18540_s13 + $0x1954] sm:$0xf0]  ;;  %v14628_v15 = vor.u32 %v17656_v51, %v14627_v1  ;;  %v9790_v6 = vpop.f32.mrf.mxu3 }
 0x3c9   : > { %10068 = vmatpush.bf16.msra.mxu2 %v14836_v34  ;;  %v17596_v34 = vld [vmem:[%s18540_s13 + $0x1854] sm:$0xf0]  ;;  %v14771_v54 = vld [vmem:[%s18540_s13 + $0x1b48] sm:$0xf]  ;;  %v9791_v9 = vadd.f32 %v9790_v6, %v9778_v62 }
 0x3ca   : > { %10042 = vmatpush.bf16.msra.mxu3 %v14580_v59  ;;  %v14387_v59 = vld [vmem:[%s18540_s13 + $0x1848] sm:$0xf]  ;;  %v17692_v10 = vld [vmem:[%s18540_s13 + $0x1b54] sm:$0xf0] }
 0x3cb   : > { %10058 = vmatpush.bf16.msrb.mxu0 %v14660_v50  ;;  %v14388_v60 = vor.u32 %v17596_v34, %v14387_v59  ;;  %v14611_v50 = vld [vmem:[%s18540_s13 + $0x1a08] sm:$0xf]  ;;  %v17652_v55 = vld [vmem:[%s18540_s13 + $0x1a14] sm:$0xf0]  ;;  %v14772_v3 = vor.u32 %v17692_v10, %v14771_v54 }
 0x3cc   : > { %10032 = vmatpush.bf16.msrb.mxu1 %v14404_v2  ;;  %v17808_v59 = vld [vmem:[%s18540_s13 + $0x1ef4] sm:$0xf0]  ;;  %v14355_v61 = vld [vmem:[%s18540_s13 + $0x1808] sm:$0xf] }
 0x3cd   : > { %10069 = vmatpush.bf16.msra.mxu2 %v14820_v49  ;;  %v14515_v49 = vld [vmem:[%s18540_s13 + $0x1948] sm:$0xf]  ;;  %v9805_v20 = vpop.f32.mrf.mxu0  ;;  %v17588_v8 = vld [vmem:[%s18540_s13 + $0x1814] sm:$0xf0] }
 0x3ce   : > { %10043 = vmatpush.bf16.msra.mxu3 %v14564_v46  ;;  %v17592_v46 = vld [vmem:[%s18540_s13 + $0x1834] sm:$0xf0]  ;;  %v9779_v32 = vpop.f32.mrf.mxu1  ;;  %v14516_v34 = vor.u32 %v17628_v43, %v14515_v49  ;;  %v14499_v53 = vld [vmem:[%s18540_s13 + $0x1928] sm:$0xf]  ;;  %v14356_v49 = vor.u32 %v17588_v8, %v14355_v61 }
 0x3cf   : > { %10059 = vmatpush.bf16.msrb.mxu0 %v14644_v18  ;;  %v14372_v2 = vor.u32 %v17592_v46, %v14371_v45  ;;  %v9804_v18 = vadd.f32 %v9803_v52, %v9791_v9  ;;  %v17624_v1 = vld [vmem:[%s18540_s13 + $0x1934] sm:$0xf0]  ;;  %v14755_v62 = vld [vmem:[%s18540_s13 + $0x1b28] sm:$0xf] }
 0x3d0   : > { %10033 = vmatpush.bf16.msrb.mxu1 %v14388_v60  ;;  %v17688_v51 = vld [vmem:[%s18540_s13 + $0x1b34] sm:$0xf0]  ;;  %v14612_v60 = vor.u32 %v17652_v55, %v14611_v50  ;;  %v14979_v45 = vld [vmem:[%s18540_s13 + $0x1ce8] sm:$0xf]  ;;  %v14500_v20 = vor.u32 %v17624_v1, %v14499_v53 }
 0x3d1   : > { %10070 = vmatpush.bf16.msra.mxu2 %v14804_v40  ;;  %v15235_v40 = vld [vmem:[%s18540_s13 + $0x1ee8] sm:$0xf]  ;;  %v17744_v46 = vld [vmem:[%s18540_s13 + $0x1cf4] sm:$0xf0]  ;;  %v14756_v43 = vor.u32 %v17688_v51, %v14755_v62 }
 0x3d2   : > { %10044 = vmatpush.bf16.msra.mxu3 %v14548_v47  ;;  %v9816_v47 = vpop.f32.mrf.mxu2  ;;  %v15219_v52 = vld [vmem:[%s18540_s13 + $0x1ec8] sm:$0xf]  ;;  %v17804_v32 = vld [vmem:[%s18540_s13 + $0x1ed4] sm:$0xf0]  ;;  %v14980_v6 = vor.u32 %v17744_v46, %v14979_v45 }
 0x3d3   : > { %10060 = vmatpush.bf16.msrb.mxu0 %v14628_v15  ;;  %v14483_v54 = vld [vmem:[%s18540_s13 + $0x1908] sm:$0xf]  ;;  %v17620_v10 = vld [vmem:[%s18540_s13 + $0x1914] sm:$0xf0] }
 0x3d4   : > { %10034 = vmatpush.bf16.msrb.mxu1 %v14372_v2  ;;  %v14739_v15 = vld [vmem:[%s18540_s13 + $0x1b08] sm:$0xf]  ;;  %v17684_v50 = vld [vmem:[%s18540_s13 + $0x1b14] sm:$0xf0] }
 0x3d5   : > { %10071 = vmatpush.bf16.msra.mxu2 %v14788_v0  ;;  %v20694_v0 = vadd.f32 %v9816_v47, %v9804_v18  ;;  %v14963_v55 = vld [vmem:[%s18540_s13 + $0x1cc8] sm:$0xf]  ;;  %v17740_v9 = vld [vmem:[%s18540_s13 + $0x1cd4] sm:$0xf0]  ;;  %v14484_v18 = vor.u32 %v17620_v10, %v14483_v54  ;;  %v14740_v1 = vor.u32 %v17684_v50, %v14739_v15 }
 0x3d6   : > { %10045 = vmatpush.bf16.msra.mxu3 %v14532_v4  ;;  %v15236_v4 = vor.u32 %v17808_v59, %v15235_v40  ;;  %v15107_v2 = vld [vmem:[%s18540_s13 + $0x1de8] sm:$0xf]  ;;  %v17776_v47 = vld [vmem:[%s18540_s13 + $0x1df4] sm:$0xf0]  ;;  %v15220_v59 = vor.u32 %v17804_v32, %v15219_v52  ;;  %v14964_v62 = vor.u32 %v17740_v9, %v14963_v55 }
 0x3d7   : > { %10061 = vmatpush.bf16.msrb.mxu0 %v14612_v60  ;;  %v15363_v40 = vld [vmem:[%s18540_s13 + $0x1fe8] sm:$0xf]  ;;  %v17800_v8 = vld [vmem:[%s18540_s13 + $0x1eb4] sm:$0xf0]  ;;  %v15108_v51 = vor.u32 %v17776_v47, %v15107_v2 }
 0x3d8   : > { %10035 = vmatpush.bf16.msrb.mxu1 %v14356_v49  ;;  %v15203_v61 = vld [vmem:[%s18540_s13 + $0x1ea8] sm:$0xf]  ;;  %v17736_v45 = vld [vmem:[%s18540_s13 + $0x1cb4] sm:$0xf0] }
 0x3d9   : > { %10072 = vmatpush.bf16.msra.mxu2 %v14772_v3  ;;  %v17840_v3 = vld [vmem:[%s18540_s13 + $0x1ff4] sm:$0xf0]  ;;  %v14947_v60 = vld [vmem:[%s18540_s13 + $0x1ca8] sm:$0xf]  ;;  %v15204_v32 = vor.u32 %v17800_v8, %v15203_v61  ;;  %v20730_v61 = vpop.f32.mrf.mxu0  ;;  %v9829_v8 = vpop.f32.mrf.mxu1 }
 0x3da   : > { %10046 = vmatpush.bf16.msra.mxu3 %v14516_v34  ;;  %v9792_v34 = vpop.f32.mrf.mxu3  ;;  %v9818_v53 = vpop.f32.mrf.mxu2  ;;  %10062 = vmatmul.bf16.vlgmr.msrb.gmra.mxu0 %v19138_v12  ;;  %v15364_v46 = vor.u32 %v17840_v3, %v15363_v40  ;;  %v17772_v49 = vld [vmem:[%s18540_s13 + $0x1dd4] sm:$0xf0]  ;;  %v15347_v52 = vld [vmem:[%s18540_s13 + $0x1fc8] sm:$0xf]  ;;  %v14948_v10 = vor.u32 %v17736_v45, %v14947_v60 }
 0x3db   : > { %10106 = vmatpush.bf16.msra.mxu0 %v15236_v4  ;;  %10036 = vmatmul.bf16.vlgmr.msrb.gmra.mxu1 %v19133_v5  ;;  %v15091_v4 = vld [vmem:[%s18540_s13 + $0x1dc8] sm:$0xf]  ;;  %v17796_v54 = vld [vmem:[%s18540_s13 + $0x1e94] sm:$0xf0] }
 0x3dc   : > { %10080 = vmatpush.bf16.msra.mxu1 %v14980_v6  ;;  %v15092_v15 = vor.u32 %v17772_v49, %v15091_v4  ;;  %v14931_v6 = vld [vmem:[%s18540_s13 + $0x1c88] sm:$0xf]  ;;  %v17732_v50 = vld [vmem:[%s18540_s13 + $0x1c94] sm:$0xf0] }
 0x3dd   : > { %10073 = vmatpush.bf16.msra.mxu2 %v14756_v43  ;;  %v15187_v43 = vld [vmem:[%s18540_s13 + $0x1e88] sm:$0xf]  ;;  %v17768_v2 = vld [vmem:[%s18540_s13 + $0x1db4] sm:$0xf0]  ;;  %v14932_v53 = vor.u32 %v17732_v50, %v14931_v6 }
 0x3de   : > { %10047 = vmatpush.bf16.msra.mxu3 %v14500_v20  ;;  %v17836_v20 = vld [vmem:[%s18540_s13 + $0x1fd4] sm:$0xf0]  ;;  %v15075_v9 = vld [vmem:[%s18540_s13 + $0x1da8] sm:$0xf]  ;;  %v15188_v40 = vor.u32 %v17796_v54, %v15187_v43 }
 0x3df   : > { %10107 = vmatpush.bf16.msra.mxu0 %v15220_v59  ;;  %v15348_v55 = vor.u32 %v17836_v20, %v15347_v52  ;;  %v15331_v47 = vld [vmem:[%s18540_s13 + $0x1fa8] sm:$0xf]  ;;  %v17832_v59 = vld [vmem:[%s18540_s13 + $0x1fb4] sm:$0xf0] }
 0x3e0   : > { %10081 = vmatpush.bf16.msra.mxu1 %v14964_v62  ;;  %v15171_v34 = vld [vmem:[%s18540_s13 + $0x1e68] sm:$0xf]  ;;  %v17792_v3 = vld [vmem:[%s18540_s13 + $0x1e74] sm:$0xf0]  ;;  %v15332_v60 = vor.u32 %v17832_v59, %v15331_v47 }
 0x3e1   : > { %10074 = vmatpush.bf16.msra.mxu2 %v14740_v1  ;;  %v14915_v1 = vld [vmem:[%s18540_s13 + $0x1c68] sm:$0xf]  ;;  %v17728_v62 = vld [vmem:[%s18540_s13 + $0x1c74] sm:$0xf0]  ;;  %v15172_v49 = vor.u32 %v17792_v3, %v15171_v34  ;;  %v9857_v59 = vpop.f32.mrf.mxu0 }
 0x3e2   : > { %10048 = vmatpush.bf16.msra.mxu3 %v14484_v18  ;;  %v15076_v18 = vor.u32 %v17768_v2, %v15075_v9  ;;  %v15059_v45 = vld [vmem:[%s18540_s13 + $0x1d88] sm:$0xf]  ;;  %v17828_v52 = vld [vmem:[%s18540_s13 + $0x1f94] sm:$0xf0]  ;;  %v14916_v43 = vor.u32 %v17728_v62, %v14915_v1 }
 0x3e3   : > { %10108 = vmatpush.bf16.msra.mxu0 %v15204_v32  ;;  %v15315_v4 = vld [vmem:[%s18540_s13 + $0x1f88] sm:$0xf]  ;;  %v17788_v20 = vld [vmem:[%s18540_s13 + $0x1e54] sm:$0xf0] }
 0x3e4   : > { %10075 = vmatmul.bf16.vlgmr.msra.gmra.mxu2 %v19144_v21  ;;  %10082 = vmatpush.bf16.msra.mxu1 %v14948_v10  ;;  %v15155_v32 = vld [vmem:[%s18540_s13 + $0x1e48] sm:$0xf]  ;;  %v17724_v10 = vld [vmem:[%s18540_s13 + $0x1c54] sm:$0xf0] }
 0x3e5   : > { %10119 = vmatpush.bf16.msrb.mxu2 %v15364_v46  ;;  %10049 = vmatmul.bf16.vlgmr.msra.gmra.mxu3 %v19140_v13  ;;  %v17764_v46 = vld [vmem:[%s18540_s13 + $0x1d94] sm:$0xf0]  ;;  %v15043_v6 = vld [vmem:[%s18540_s13 + $0x1d68] sm:$0xf]  ;;  %v15156_v9 = vor.u32 %v17788_v20, %v15155_v32 }
 0x3e6   : > { %10093 = vmatpush.bf16.msrb.mxu3 %v15108_v51  ;;  %v9830_v51 = vadd.f32 %v9829_v8, %v20694_v0  ;;  %v15060_v54 = vor.u32 %v17764_v46, %v15059_v45  ;;  %v14899_v0 = vld [vmem:[%s18540_s13 + $0x1c48] sm:$0xf]  ;;  %v17760_v50 = vld [vmem:[%s18540_s13 + $0x1d74] sm:$0xf0] }
 0x3e7   : > { %10109 = vmatpush.bf16.msra.mxu0 %v15188_v40  ;;  %v17824_v2 = vld [vmem:[%s18540_s13 + $0x1f74] sm:$0xf0]  ;;  %v15139_v47 = vld [vmem:[%s18540_s13 + $0x1e28] sm:$0xf]  ;;  %v14900_v34 = vor.u32 %v17724_v10, %v14899_v0  ;;  %v15044_v3 = vor.u32 %v17760_v50, %v15043_v6  ;;  %v9868_v20 = vpop.f32.mrf.mxu2 }
 0x3e8   : > { %10083 = vmatpush.bf16.msra.mxu1 %v14932_v53  ;;  %v17784_v40 = vld [vmem:[%s18540_s13 + $0x1e34] sm:$0xf0]  ;;  %v14883_v8 = vld [vmem:[%s18540_s13 + $0x1c28] sm:$0xf]  ;;  %v9842_v32 = vpop.f32.mrf.mxu3 }
 0x3e9   : > { %10120 = vmatpush.bf16.msrb.mxu2 %v15348_v55  ;;  %v15299_v55 = vld [vmem:[%s18540_s13 + $0x1f68] sm:$0xf]  ;;  %v17720_v53 = vld [vmem:[%s18540_s13 + $0x1c34] sm:$0xf0]  ;;  %v15140_v46 = vor.u32 %v17784_v40, %v15139_v47  ;;  %v9843_v0 = vadd.f32 %v9842_v32, %v9830_v51 }
 0x3ea   : > { %10094 = vmatpush.bf16.msrb.mxu3 %v15092_v15  ;;  %v15316_v15 = vor.u32 %v17828_v52, %v15315_v4  ;;  %v15300_v1 = vor.u32 %v17824_v2, %v15299_v55  ;;  %v15027_v62 = vld [vmem:[%s18540_s13 + $0x1d48] sm:$0xf]  ;;  %v17820_v4 = vld [vmem:[%s18540_s13 + $0x1f54] sm:$0xf0]  ;;  %v14884_v10 = vor.u32 %v17720_v53, %v14883_v8 }
 0x3eb   : > { %10110 = vmatpush.bf16.msra.mxu0 %v15172_v49  ;;  %v15283_v45 = vld [vmem:[%s18540_s13 + $0x1f48] sm:$0xf]  ;;  %v17780_v52 = vld [vmem:[%s18540_s13 + $0x1e14] sm:$0xf0]  ;;  %v9856_v59 = vadd.f32 %v20730_v61, %v9843_v0 }
 0x3ec   : > { %10084 = vmatpush.bf16.msra.mxu1 %v14916_v43  ;;  %v15123_v49 = vld [vmem:[%s18540_s13 + $0x1e08] sm:$0xf]  ;;  %v17716_v50 = vld [vmem:[%s18540_s13 + $0x1c14] sm:$0xf0]  ;;  %v15284_v55 = vor.u32 %v17820_v4, %v15283_v45 }
 0x3ed   : > { %10121 = vmatpush.bf16.msrb.mxu2 %v15332_v60  ;;  %v17756_v60 = vld [vmem:[%s18540_s13 + $0x1d54] sm:$0xf0]  ;;  %v15747_v43 = vld [vmem:[%s18540_s13 + $0x22e8] sm:$0xf]  ;;  %v15124_v40 = vor.u32 %v17780_v52, %v15123_v49 }
 0x3ee   : > { %10095 = vmatpush.bf16.msrb.mxu3 %v15076_v18  ;;  %v9831_v18 = vpop.f32.mrf.mxu1  ;;  %v14867_v6 = vld [vmem:[%s18540_s13 + $0x1c08] sm:$0xf]  ;;  %v17752_v2 = vld [vmem:[%s18540_s13 + $0x1d34] sm:$0xf0] }
 0x3ef   : > { %10111 = vmatpush.bf16.msra.mxu0 %v15156_v9  ;;  %v15011_v9 = vld [vmem:[%s18540_s13 + $0x1d28] sm:$0xf]  ;;  %v17872_v51 = vld [vmem:[%s18540_s13 + $0x20f4] sm:$0xf0] }
 0x3f0   : > { %10085 = vmatpush.bf16.msra.mxu1 %v14900_v34  ;;  %v15267_v47 = vld [vmem:[%s18540_s13 + $0x1f28] sm:$0xf]  ;;  %v17816_v34 = vld [vmem:[%s18540_s13 + $0x1f34] sm:$0xf0]  ;;  %v15012_v61 = vor.u32 %v17752_v2, %v15011_v9 }
 0x3f1   : > { %10122 = vmatpush.bf16.msrb.mxu2 %v15316_v15  ;;  %v15028_v15 = vor.u32 %v17756_v60, %v15027_v62  ;;  %v15731_v53 = vld [vmem:[%s18540_s13 + $0x22c8] sm:$0xf]  ;;  %v17932_v18 = vld [vmem:[%s18540_s13 + $0x22d4] sm:$0xf0]  ;;  %v14868_v62 = vor.u32 %v17716_v50, %v14867_v6  ;;  %v15268_v45 = vor.u32 %v17816_v34, %v15267_v47  ;;  %v9844_v6 = vpop.f32.mrf.mxu3  ;;  %v9870_v50 = vpop.f32.mrf.mxu2 }
 0x3f2   : > { %10096 = vmatpush.bf16.msrb.mxu3 %v15060_v54  ;;  %v17936_v54 = vld [vmem:[%s18540_s13 + $0x22f4] sm:$0xf0]  ;;  %v14995_v60 = vld [vmem:[%s18540_s13 + $0x1d08] sm:$0xf] }
 0x3f3   : > { %10112 = vmatpush.bf16.msra.mxu0 %v15140_v46  ;;  %v15748_v8 = vor.u32 %v17936_v54, %v15747_v43  ;;  %v17748_v4 = vld [vmem:[%s18540_s13 + $0x1d14] sm:$0xf0]  ;;  %v15251_v49 = vld [vmem:[%s18540_s13 + $0x1f08] sm:$0xf]  ;;  %v15732_v54 = vor.u32 %v17932_v18, %v15731_v53 }
 0x3f4   : > { %10086 = vmatpush.bf16.msra.mxu1 %v14884_v10  ;;  %v17812_v52 = vld [vmem:[%s18540_s13 + $0x1f14] sm:$0xf0]  ;;  %v15475_v32 = vld [vmem:[%s18540_s13 + $0x20c8] sm:$0xf] }
 0x3f5   : > { %10123 = vmatpush.bf16.msrb.mxu2 %v15300_v1  ;;  %v20770_v1 = vadd.f32 %v9868_v20, %v9856_v59  ;;  %v17868_v43 = vld [vmem:[%s18540_s13 + $0x20d4] sm:$0xf0]  ;;  %v15619_v20 = vld [vmem:[%s18540_s13 + $0x21e8] sm:$0xf]  ;;  %v15252_v47 = vor.u32 %v17812_v52, %v15251_v49 }
 0x3f6   : > { %10097 = vmatpush.bf16.msrb.mxu3 %v15044_v3  ;;  %v15491_v3 = vld [vmem:[%s18540_s13 + $0x20e8] sm:$0xf]  ;;  %v17904_v0 = vld [vmem:[%s18540_s13 + $0x21f4] sm:$0xf0] }
 0x3f7   : > { %v15492_v46 = vor.u32 %v17872_v51, %v15491_v3  ;;  %10113 = vmatpush.bf16.msra.mxu0 %v15124_v40  ;;  %v15875_v10 = vld [vmem:[%s18540_s13 + $0x23e8] sm:$0xf]  ;;  %v17928_v2 = vld [vmem:[%s18540_s13 + $0x22b4] sm:$0xf0]  ;;  %v15476_v40 = vor.u32 %v17868_v43, %v15475_v32  ;;  %v15620_v59 = vor.u32 %v17904_v0, %v15619_v20 }
 0x3f8   : > { %10087 = vmatpush.bf16.msra.mxu1 %v14868_v62  ;;  %v15715_v9 = vld [vmem:[%s18540_s13 + $0x22a8] sm:$0xf]  ;;  %v17864_v51 = vld [vmem:[%s18540_s13 + $0x20b4] sm:$0xf0] }
 0x3f9   : > { %10124 = vmatpush.bf16.msrb.mxu2 %v15284_v55  ;;  %v14996_v55 = vor.u32 %v17748_v4, %v14995_v60  ;;  %v15459_v3 = vld [vmem:[%s18540_s13 + $0x20a8] sm:$0xf]  ;;  %v17900_v53 = vld [vmem:[%s18540_s13 + $0x21d4] sm:$0xf0] }
 0x3fa   : > { %10098 = vmatpush.bf16.msrb.mxu3 %v15028_v15  ;;  %v17968_v15 = vld [vmem:[%s18540_s13 + $0x23f4] sm:$0xf0]  ;;  %v15859_v18 = vld [vmem:[%s18540_s13 + $0x23c8] sm:$0xf]  ;;  %10114 = vmatmul.bf16.vlgmr.msra.gmra.mxu0 %v19223_v36 }
 0x3fb   : > { %10158 = vmatpush.bf16.msrb.mxu0 %v15748_v8  ;;  %v15876_v34 = vor.u32 %v17968_v15, %v15875_v10  ;;  %v15603_v8 = vld [vmem:[%s18540_s13 + $0x21c8] sm:$0xf]  ;;  %10088 = vmatmul.bf16.vlgmr.msra.gmra.mxu1 %v19218_v26  ;;  %v17964_v62 = vld [vmem:[%s18540_s13 + $0x23d4] sm:$0xf0] }
 0x3fc   : > { %10132 = vmatpush.bf16.msrb.mxu1 %v15492_v46  ;;  %v15699_v60 = vld [vmem:[%s18540_s13 + $0x2288] sm:$0xf]  ;;  %v15460_v46 = vor.u32 %v17864_v51, %v15459_v3  ;;  %v15604_v4 = vor.u32 %v17900_v53, %v15603_v8  ;;  %v15860_v49 = vor.u32 %v17964_v62, %v15859_v18  ;;  %v17860_v32 = vld [vmem:[%s18540_s13 + $0x2094] sm:$0xf0] }
 0x3fd   : > { %10125 = vmatpush.bf16.msrb.mxu2 %v15268_v45  ;;  %v17924_v45 = vld [vmem:[%s18540_s13 + $0x2294] sm:$0xf0]  ;;  %v15443_v52 = vld [vmem:[%s18540_s13 + $0x2088] sm:$0xf] }
 0x3fe   : > { %10099 = vmatpush.bf16.msrb.mxu3 %v15012_v61  ;;  %v15716_v61 = vor.u32 %v17928_v2, %v15715_v9  ;;  %v15587_v43 = vld [vmem:[%s18540_s13 + $0x21a8] sm:$0xf]  ;;  %v17896_v20 = vld [vmem:[%s18540_s13 + $0x21b4] sm:$0xf0]  ;;  %v15700_v10 = vor.u32 %v17924_v45, %v15699_v60  ;;  %v15444_v50 = vor.u32 %v17860_v32, %v15443_v52 }
 0x3ff   : > { %10159 = vmatpush.bf16.msrb.mxu0 %v15732_v54  ;;  %v15843_v54 = vld [vmem:[%s18540_s13 + $0x23a8] sm:$0xf]  ;;  %v17960_v0 = vld [vmem:[%s18540_s13 + $0x23b4] sm:$0xf0]  ;;  %v15588_v9 = vor.u32 %v17896_v20, %v15587_v43 }
 0x400   : > { %10133 = vmatpush.bf16.msrb.mxu1 %v15476_v40  ;;  %v15683_v15 = vld [vmem:[%s18540_s13 + $0x2268] sm:$0xf]  ;;  %v17920_v6 = vld [vmem:[%s18540_s13 + $0x2274] sm:$0xf0]  ;;  %v15844_v2 = vor.u32 %v17960_v0, %v15843_v54 }
 0x401   : > { %10126 = vmatpush.bf16.msrb.mxu2 %v15252_v47  ;;  %v15427_v47 = vld [vmem:[%s18540_s13 + $0x2068] sm:$0xf]  ;;  %v17856_v40 = vld [vmem:[%s18540_s13 + $0x2074] sm:$0xf0]  ;;  %v15684_v18 = vor.u32 %v17920_v6, %v15683_v15 }
 0x402   : > { %10100 = vmatpush.bf16.msrb.mxu3 %v14996_v55  ;;  %v9881_v55 = vpop.f32.mrf.mxu1  ;;  %v17892_v51 = vld [vmem:[%s18540_s13 + $0x2194] sm:$0xf0]  ;;  %v15827_v8 = vld [vmem:[%s18540_s13 + $0x2388] sm:$0xf]  ;;  %v15428_v60 = vor.u32 %v17856_v40, %v15427_v47 }
 0x403   : > { %10160 = vmatpush.bf16.msrb.mxu0 %v15716_v61  ;;  %v9882_v3 = vadd.f32 %v9881_v55, %v20770_v1  ;;  %v17956_v53 = vld [vmem:[%s18540_s13 + $0x2394] sm:$0xf0]  ;;  %v15667_v62 = vld [vmem:[%s18540_s13 + $0x2248] sm:$0xf] }
 0x404   : > { %10127 = vmatmul.bf16.vlgmr.msrb.gmra.mxu2 %v21826_v27  ;;  %10134 = vmatpush.bf16.msrb.mxu1 %v15460_v46  ;;  %v17916_v61 = vld [vmem:[%s18540_s13 + $0x2254] sm:$0xf0]  ;;  %v15828_v46 = vor.u32 %v17956_v53, %v15827_v8  ;;  %v15411_v1 = vld [vmem:[%s18540_s13 + $0x2048] sm:$0xf] }
 0x405   : > { %10171 = vmatpush.bf16.msra.mxu2 %v15876_v34  ;;  %10101 = vmatmul.bf16.vlgmr.msrb.gmra.mxu3 %v19225_v39  ;;  %v9907_v34 = vpop.f32.mrf.mxu0  ;;  %v17888_v52 = vld [vmem:[%s18540_s13 + $0x2174] sm:$0xf0]  ;;  %v15811_v32 = vld [vmem:[%s18540_s13 + $0x2368] sm:$0xf]  ;;  %v15668_v20 = vor.u32 %v17916_v61, %v15667_v62 }
 0x406   : > { %10145 = vmatpush.bf16.msra.mxu3 %v15620_v59  ;;  %v15571_v59 = vld [vmem:[%s18540_s13 + $0x2188] sm:$0xf]  ;;  %v17952_v43 = vld [vmem:[%s18540_s13 + $0x2374] sm:$0xf0] }
 0x407   : > { %10161 = vmatpush.bf16.msrb.mxu0 %v15700_v10  ;;  %v15572_v45 = vor.u32 %v17892_v51, %v15571_v59  ;;  %v15651_v54 = vld [vmem:[%s18540_s13 + $0x2228] sm:$0xf]  ;;  %v17912_v0 = vld [vmem:[%s18540_s13 + $0x2234] sm:$0xf0]  ;;  %v15812_v6 = vor.u32 %v17952_v43, %v15811_v32 }
 0x408   : > { %10135 = vmatpush.bf16.msrb.mxu1 %v15444_v50  ;;  %v15395_v50 = vld [vmem:[%s18540_s13 + $0x2028] sm:$0xf]  ;;  %v17848_v55 = vld [vmem:[%s18540_s13 + $0x2034] sm:$0xf0]  ;;  %v15652_v8 = vor.u32 %v17912_v0, %v15651_v54  ;;  %v9894_v53 = vpop.f32.mrf.mxu3 }
 0x409   : > { %10172 = vmatpush.bf16.msra.mxu2 %v15860_v49  ;;  %v15555_v49 = vld [vmem:[%s18540_s13 + $0x2168] sm:$0xf]  ;;  %v17884_v40 = vld [vmem:[%s18540_s13 + $0x2154] sm:$0xf0]  ;;  %v9895_v61 = vadd.f32 %v9894_v53, %v9882_v3 }
 0x40a   : > { %10146 = vmatpush.bf16.msra.mxu3 %v15604_v4  ;;  %v17852_v4 = vld [vmem:[%s18540_s13 + $0x2054] sm:$0xf0]  ;;  %v15556_v15 = vor.u32 %v17888_v52, %v15555_v49  ;;  %v15795_v59 = vld [vmem:[%s18540_s13 + $0x2348] sm:$0xf] }
 0x40b   : > { %10162 = vmatpush.bf16.msrb.mxu0 %v15684_v18  ;;  %v15412_v10 = vor.u32 %v17852_v4, %v15411_v1  ;;  %v17948_v51 = vld [vmem:[%s18540_s13 + $0x2354] sm:$0xf0]  ;;  %v15635_v18 = vld [vmem:[%s18540_s13 + $0x2208] sm:$0xf] }
 0x40c   : > { %10136 = vmatpush.bf16.msrb.mxu1 %v15428_v60  ;;  %v17908_v62 = vld [vmem:[%s18540_s13 + $0x2214] sm:$0xf0]  ;;  %v15396_v60 = vor.u32 %v17848_v55, %v15395_v50  ;;  %v15796_v49 = vor.u32 %v17948_v51, %v15795_v59  ;;  %v15379_v52 = vld [vmem:[%s18540_s13 + $0x2008] sm:$0xf] }
 0x40d   : > { %10173 = vmatpush.bf16.msra.mxu2 %v15844_v2  ;;  %v9883_v2 = vpop.f32.mrf.mxu1  ;;  %v9909_v47 = vpop.f32.mrf.mxu0  ;;  %v18064_v1 = vld [vmem:[%s18540_s13 + $0x26f4] sm:$0xf0]  ;;  %v15523_v43 = vld [vmem:[%s18540_s13 + $0x2128] sm:$0xf] }
 0x40e   : > { %10147 = vmatpush.bf16.msra.mxu3 %v15588_v9  ;;  %v15539_v9 = vld [vmem:[%s18540_s13 + $0x2148] sm:$0xf]  ;;  %v17844_v32 = vld [vmem:[%s18540_s13 + $0x2014] sm:$0xf0] }
 0x40f   : > { %10163 = vmatpush.bf16.msrb.mxu0 %v15668_v20  ;;  %v15540_v4 = vor.u32 %v17884_v40, %v15539_v9  ;;  %v9908_v20 = vadd.f32 %v9907_v34, %v9895_v61  ;;  %v17880_v54 = vld [vmem:[%s18540_s13 + $0x2134] sm:$0xf0]  ;;  %v15779_v3 = vld [vmem:[%s18540_s13 + $0x2328] sm:$0xf]  ;;  %v15380_v9 = vor.u32 %v17844_v32, %v15379_v52 }
 0x410   : > { %10137 = vmatpush.bf16.msrb.mxu1 %v15412_v10  ;;  %v17944_v0 = vld [vmem:[%s18540_s13 + $0x2334] sm:$0xf0]  ;;  %v15636_v10 = vor.u32 %v17908_v62, %v15635_v18  ;;  %v16003_v50 = vld [vmem:[%s18540_s13 + $0x24e8] sm:$0xf]  ;;  %v15524_v47 = vor.u32 %v17880_v54, %v15523_v43 }
 0x411   : > { %10174 = vmatpush.bf16.msra.mxu2 %v15828_v46  ;;  %v16259_v46 = vld [vmem:[%s18540_s13 + $0x26e8] sm:$0xf]  ;;  %v18000_v55 = vld [vmem:[%s18540_s13 + $0x24f4] sm:$0xf0]  ;;  %v15780_v40 = vor.u32 %v17944_v0, %v15779_v3 }
 0x412   : > { %10148 = vmatpush.bf16.msra.mxu3 %v15572_v45  ;;  %v9920_v45 = vpop.f32.mrf.mxu2  ;;  %v16243_v34 = vld [vmem:[%s18540_s13 + $0x26c8] sm:$0xf]  ;;  %v18060_v2 = vld [vmem:[%s18540_s13 + $0x26d4] sm:$0xf0]  ;;  %v16004_v53 = vor.u32 %v18000_v55, %v16003_v50  ;;  %v21834_v55 = vld [vmem:[#allocation14_spill] sm:$0xff] }
 0x413   : > { %10164 = vmatpush.bf16.msrb.mxu0 %v15652_v8  ;;  %v15507_v59 = vld [vmem:[%s18540_s13 + $0x2108] sm:$0xf]  ;;  %v17876_v51 = vld [vmem:[%s18540_s13 + $0x2114] sm:$0xf0] }
 0x414   : > { %10138 = vmatpush.bf16.msrb.mxu1 %v15396_v60  ;;  %v15763_v8 = vld [vmem:[%s18540_s13 + $0x2308] sm:$0xf]  ;;  %v17940_v18 = vld [vmem:[%s18540_s13 + $0x2314] sm:$0xf0] }
 0x415   : > { %10175 = vmatpush.bf16.msra.mxu2 %v15812_v6  ;;  %v20839_v6 = vadd.f32 %v9920_v45, %v9908_v20  ;;  %v15987_v62 = vld [vmem:[%s18540_s13 + $0x24c8] sm:$0xf]  ;;  %v17996_v61 = vld [vmem:[%s18540_s13 + $0x24d4] sm:$0xf0]  ;;  %v15508_v20 = vor.u32 %v17876_v51, %v15507_v59  ;;  %v15764_v54 = vor.u32 %v17940_v18, %v15763_v8 }
 0x416   : > { %10149 = vmatpush.bf16.msra.mxu3 %v15556_v15  ;;  %v16260_v15 = vor.u32 %v18064_v1, %v16259_v46  ;;  %v16131_v60 = vld [vmem:[%s18540_s13 + $0x25e8] sm:$0xf]  ;;  %v18032_v45 = vld [vmem:[%s18540_s13 + $0x25f4] sm:$0xf0]  ;;  %v16244_v1 = vor.u32 %v18060_v2, %v16243_v34  ;;  %v15988_v3 = vor.u32 %v17996_v61, %v15987_v62 }
 0x417   : > { %10165 = vmatpush.bf16.msrb.mxu0 %v15636_v10  ;;  %v16387_v46 = vld [vmem:[%s18540_s13 + $0x27e8] sm:$0xf]  ;;  %v18056_v32 = vld [vmem:[%s18540_s13 + $0x26b4] sm:$0xf0]  ;;  %v16132_v0 = vor.u32 %v18032_v45, %v16131_v60 }
 0x418   : > { %10139 = vmatpush.bf16.msrb.mxu1 %v15380_v9  ;;  %v16227_v52 = vld [vmem:[%s18540_s13 + $0x26a8] sm:$0xf]  ;;  %v17992_v50 = vld [vmem:[%s18540_s13 + $0x24b4] sm:$0xf0] }
 0x419   : > { %10176 = vmatpush.bf16.msra.mxu2 %v15796_v49  ;;  %v18096_v49 = vld [vmem:[%s18540_s13 + $0x27f4] sm:$0xf0]  ;;  %v15971_v10 = vld [vmem:[%s18540_s13 + $0x24a8] sm:$0xf] }
 0x41a   : > { %10150 = vmatpush.bf16.msra.mxu3 %v15540_v4  ;;  %v9896_v4 = vpop.f32.mrf.mxu3  ;;  %v9922_v43 = vpop.f32.mrf.mxu2  ;;  %10166 = vmatmul.bf16.vlgmr.msrb.gmra.mxu0 %v21829_v56  ;;  %v16115_v9 = vld [vmem:[%s18540_s13 + $0x25c8] sm:$0xf]  ;;  %v18028_v34 = vld [vmem:[%s18540_s13 + $0x25d4] sm:$0xf0]  ;;  %v15972_v8 = vor.u32 %v17992_v50, %v15971_v10 }
 0x41b   : > { %10210 = vmatpush.bf16.msra.mxu0 %v16260_v15  ;;  %10140 = vmatmul.bf16.vlgmr.msrb.gmra.mxu1 %v21834_v55  ;;  %v16388_v15 = vor.u32 %v18096_v49, %v16387_v46  ;;  %v16371_v2 = vld [vmem:[%s18540_s13 + $0x27c8] sm:$0xf]  ;;  %v18052_v51 = vld [vmem:[%s18540_s13 + $0x2694] sm:$0xf0]  ;;  %v21835_v4 = vld [vmem:[#allocation16_spill] sm:$0xff] }
 0x41c   : > { %10184 = vmatpush.bf16.msra.mxu1 %v16004_v53  ;;  %v16211_v59 = vld [vmem:[%s18540_s13 + $0x2688] sm:$0xf]  ;;  %v16116_v53 = vor.u32 %v18028_v34, %v16115_v9  ;;  %v17988_v62 = vld [vmem:[%s18540_s13 + $0x2494] sm:$0xf0] }
 0x41d   : > { %10177 = vmatpush.bf16.msra.mxu2 %v15780_v40  ;;  %v18092_v40 = vld [vmem:[%s18540_s13 + $0x27d4] sm:$0xf0]  ;;  %v15955_v18 = vld [vmem:[%s18540_s13 + $0x2488] sm:$0xf] }
 0x41e   : > { %10151 = vmatpush.bf16.msra.mxu3 %v15524_v47  ;;  %v16228_v47 = vor.u32 %v18056_v32, %v16227_v52  ;;  %v16372_v61 = vor.u32 %v18092_v40, %v16371_v2  ;;  %v16099_v60 = vld [vmem:[%s18540_s13 + $0x25a8] sm:$0xf]  ;;  %v18024_v45 = vld [vmem:[%s18540_s13 + $0x25b4] sm:$0xf0] }
 0x41f   : > { %10211 = vmatpush.bf16.msra.mxu0 %v16244_v1  ;;  %v16355_v46 = vld [vmem:[%s18540_s13 + $0x27a8] sm:$0xf]  ;;  %v16212_v1 = vor.u32 %v18052_v51, %v16211_v59  ;;  %v18088_v52 = vld [vmem:[%s18540_s13 + $0x27b4] sm:$0xf0] }
 0x420   : > { %10185 = vmatpush.bf16.msra.mxu1 %v15988_v3  ;;  %v21836_v49 = vld [vmem:[#allocation17_spill] sm:$0xff]  ;;  %v18048_v43 = vld [vmem:[%s18540_s13 + $0x2674] sm:$0xf0]  ;;  %v15956_v3 = vor.u32 %v17988_v62, %v15955_v18  ;;  %v16356_v9 = vor.u32 %v18088_v52, %v16355_v46 }
 0x421   : > { %10178 = vmatpush.bf16.msra.mxu2 %v15764_v54  ;;  %v16195_v32 = vld [vmem:[%s18540_s13 + $0x2668] sm:$0xf]  ;;  %v9933_v54 = vpop.f32.mrf.mxu1  ;;  %v17984_v50 = vld [vmem:[%s18540_s13 + $0x2474] sm:$0xf0] }
 0x422   : > { %10152 = vmatpush.bf16.msra.mxu3 %v15508_v20  ;;  %v20875_v20 = vpop.f32.mrf.mxu0  ;;  %v15939_v10 = vld [vmem:[%s18540_s13 + $0x2468] sm:$0xf]  ;;  %v18020_v2 = vld [vmem:[%s18540_s13 + $0x2594] sm:$0xf0]  ;;  %v16196_v40 = vor.u32 %v18048_v43, %v16195_v32 }
 0x423   : > { %10212 = vmatpush.bf16.msra.mxu0 %v16228_v47  ;;  %v16083_v34 = vld [vmem:[%s18540_s13 + $0x2588] sm:$0xf]  ;;  %v18084_v59 = vld [vmem:[%s18540_s13 + $0x2794] sm:$0xf0] }
 0x424   : > { %10179 = vmatmul.bf16.vlgmr.msra.gmra.mxu2 %v21836_v49  ;;  %10186 = vmatpush.bf16.msra.mxu1 %v15972_v8  ;;  %v16339_v47 = vld [vmem:[%s18540_s13 + $0x2788] sm:$0xf]  ;;  %v18044_v8 = vld [vmem:[%s18540_s13 + $0x2654] sm:$0xf0]  ;;  %v16084_v18 = vor.u32 %v18020_v2, %v16083_v34 }
 0x425   : > { %10223 = vmatpush.bf16.msrb.mxu2 %v16388_v15  ;;  %10153 = vmatmul.bf16.vlgmr.msra.gmra.mxu3 %v21835_v4  ;;  %v9934_v15 = vadd.f32 %v9933_v54, %v20839_v6  ;;  %v16179_v51 = vld [vmem:[%s18540_s13 + $0x2648] sm:$0xf]  ;;  %v17980_v62 = vld [vmem:[%s18540_s13 + $0x2454] sm:$0xf0] }
 0x426   : > { %10197 = vmatpush.bf16.msrb.mxu3 %v16132_v0  ;;  %v16100_v0 = vor.u32 %v18024_v45, %v16099_v60  ;;  %v15923_v6 = vld [vmem:[%s18540_s13 + $0x2448] sm:$0xf]  ;;  %v18016_v45 = vld [vmem:[%s18540_s13 + $0x2574] sm:$0xf0] }
 0x427   : > { %10213 = vmatpush.bf16.msra.mxu0 %v16212_v1  ;;  %v16067_v60 = vld [vmem:[%s18540_s13 + $0x2568] sm:$0xf]  ;;  %v16180_v1 = vor.u32 %v18044_v8, %v16179_v51  ;;  %v18080_v52 = vld [vmem:[%s18540_s13 + $0x2774] sm:$0xf0] }
 0x428   : > { %10187 = vmatpush.bf16.msra.mxu1 %v15956_v3  ;;  %v16323_v46 = vld [vmem:[%s18540_s13 + $0x2768] sm:$0xf]  ;;  %v18040_v43 = vld [vmem:[%s18540_s13 + $0x2634] sm:$0xf0]  ;;  %v15924_v3 = vor.u32 %v17980_v62, %v15923_v6  ;;  %v9972_v6 = vpop.f32.mrf.mxu2 }
 0x429   : > { %10224 = vmatpush.bf16.msrb.mxu2 %v16372_v61  ;;  %v16340_v61 = vor.u32 %v18084_v59, %v16339_v47  ;;  %v16163_v32 = vld [vmem:[%s18540_s13 + $0x2628] sm:$0xf]  ;;  %v16324_v34 = vor.u32 %v18080_v52, %v16323_v46  ;;  %v18012_v47 = vld [vmem:[%s18540_s13 + $0x2554] sm:$0xf0] }
 0x42a   : > { %10198 = vmatpush.bf16.msrb.mxu3 %v16116_v53  ;;  %v15940_v53 = vor.u32 %v17984_v50, %v15939_v10  ;;  %v9961_v54 = vpop.f32.mrf.mxu0  ;;  %v15907_v10 = vld [vmem:[%s18540_s13 + $0x2428] sm:$0xf]  ;;  %v17976_v50 = vld [vmem:[%s18540_s13 + $0x2434] sm:$0xf0]  ;;  %v16164_v59 = vor.u32 %v18040_v43, %v16163_v32 }
 0x42b   : > { %10214 = vmatpush.bf16.msra.mxu0 %v16196_v40  ;;  %v16051_v2 = vld [vmem:[%s18540_s13 + $0x2548] sm:$0xf]  ;;  %v18076_v51 = vld [vmem:[%s18540_s13 + $0x2754] sm:$0xf0] }
 0x42c   : > { %10188 = vmatpush.bf16.msra.mxu1 %v15940_v53  ;;  %v16307_v40 = vld [vmem:[%s18540_s13 + $0x2748] sm:$0xf]  ;;  %v18036_v53 = vld [vmem:[%s18540_s13 + $0x2614] sm:$0xf0]  ;;  %v16052_v46 = vor.u32 %v18012_v47, %v16051_v2 }
 0x42d   : > { %10225 = vmatpush.bf16.msrb.mxu2 %v16356_v9  ;;  %v9935_v9 = vpop.f32.mrf.mxu1  ;;  %v16147_v8 = vld [vmem:[%s18540_s13 + $0x2608] sm:$0xf]  ;;  %v17972_v52 = vld [vmem:[%s18540_s13 + $0x2414] sm:$0xf0]  ;;  %v16308_v32 = vor.u32 %v18076_v51, %v16307_v40 }
 0x42e   : > { %10199 = vmatpush.bf16.msrb.mxu3 %v16100_v0  ;;  %v16068_v0 = vor.u32 %v18016_v45, %v16067_v60  ;;  %v16675_v62 = vld [vmem:[%s18540_s13 + $0x2a28] sm:$0xf]  ;;  %v18168_v60 = vld [vmem:[%s18540_s13 + $0x2a34] sm:$0xf0]  ;;  %v15908_v45 = vor.u32 %v17976_v50, %v15907_v10 }
 0x42f   : > { %10215 = vmatpush.bf16.msra.mxu0 %v16180_v1  ;;  %v15891_v1 = vld [vmem:[%s18540_s13 + $0x2408] sm:$0xf]  ;;  %v18008_v54 = vld [vmem:[%s18540_s13 + $0x2534] sm:$0xf0]  ;;  %v16676_v50 = vor.u32 %v18168_v60, %v16675_v62  ;;  %v16878_v60 = vld [vmem:[%s18540_s13 + $0x1ec] sm:$0xf] }
 0x430   : > { %10189 = vmatpush.bf16.msra.mxu1 %v15924_v3  ;;  %v16035_v43 = vld [vmem:[%s18540_s13 + $0x2528] sm:$0xf]  ;;  %v16148_v3 = vor.u32 %v18036_v53, %v16147_v8  ;;  %v18072_v49 = vld [vmem:[%s18540_s13 + $0x2734] sm:$0xf0]  ;;  %v15892_v40 = vor.u32 %v17972_v52, %v15891_v1 }
 0x431   : > { %10226 = vmatpush.bf16.msrb.mxu2 %v16340_v61  ;;  %v16291_v9 = vld [vmem:[%s18540_s13 + $0x2728] sm:$0xf]  ;;  %v18128_v10 = vld [vmem:[%s18540_s13 + $0x28f4] sm:$0xf0] }
 0x432   : > { %10200 = vmatpush.bf16.msrb.mxu3 %v16084_v18  ;;  %v9946_v18 = vpop.f32.mrf.mxu3  ;;  %v16659_v2 = vld [vmem:[%s18540_s13 + $0x2a08] sm:$0xf]  ;;  %v18004_v51 = vld [vmem:[%s18540_s13 + $0x2514] sm:$0xf0]  ;;  %v16292_v53 = vor.u32 %v18072_v49, %v16291_v9 }
 0x433   : > { %v9947_v61 = vadd.f32 %v9946_v18, %v9934_v15  ;;  %10216 = vmatpush.bf16.msra.mxu0 %v16164_v59  ;;  %v16515_v15 = vld [vmem:[%s18540_s13 + $0x28e8] sm:$0xf]  ;;  %v16036_v59 = vor.u32 %v18008_v54, %v16035_v43  ;;  %v18068_v62 = vld [vmem:[%s18540_s13 + $0x2714] sm:$0xf0]  ;;  %v16846_v43 = vld [vmem:[%s18540_s13 + $0xec] sm:$0xf] }
 0x434   : > { %10190 = vmatpush.bf16.msra.mxu1 %v15908_v45  ;;  %v16275_v8 = vld [vmem:[%s18540_s13 + $0x2708] sm:$0xf]  ;;  %v16516_v18 = vor.u32 %v18128_v10, %v16515_v15  ;;  %v18160_v52 = vld [vmem:[%s18540_s13 + $0x29f4] sm:$0xf0]  ;;  %v11397_v54 = vld [vmem:[%s18540_s13 + $0xf8] sm:$0xf0] }
 0x435   : > { %10227 = vmatpush.bf16.msrb.mxu2 %v16324_v34  ;;  %v18164_v34 = vld [vmem:[%s18540_s13 + $0x2a14] sm:$0xf0]  ;;  %v16499_v45 = vld [vmem:[%s18540_s13 + $0x28c8] sm:$0xf]  ;;  %v16874_v10 = vld [vmem:[%s18540_s13 + $0x1cc] sm:$0xf] }
 0x436   : > { %10201 = vmatpush.bf16.msrb.mxu3 %v16068_v0  ;;  %v9960_v0 = vadd.f32 %v20875_v20, %v9947_v61  ;;  %v16019_v20 = vld [vmem:[%s18540_s13 + $0x2508] sm:$0xf]  ;;  %v11525_v61 = vld [vmem:[%s18540_s13 + $0x1f8] sm:$0xf0]  ;;  %v16660_v1 = vor.u32 %v18164_v34, %v16659_v2  ;;  %v11400_v34 = vor.u32 %v16846_v43, %v11397_v54  ;;  %v18152_v43 = vld [vmem:[%s18540_s13 + $0x29b4] sm:$0xf0] }
 0x437   : > { %10217 = vmatpush.bf16.msra.mxu0 %v16148_v3  ;;  %v16020_v49 = vor.u32 %v18004_v51, %v16019_v20  ;;  %v11528_v9 = vor.u32 %v16878_v60, %v11525_v61  ;;  %v16276_v3 = vor.u32 %v18068_v62, %v16275_v8  ;;  %v18156_v20 = vld [vmem:[%s18540_s13 + $0x29d4] sm:$0xf0]  ;;  %v16842_v51 = vld [vmem:[%s18540_s13 + $0xcc] sm:$0xf]  ;;  %v11381_v8 = vld [vmem:[%s18540_s13 + $0xd8] sm:$0xf0] }
 0x438   : > { %v20915_v47 = vadd.f32 %v9972_v6, %v9960_v0  ;;  %v18124_v6 = vld [vmem:[%s18540_s13 + $0x28d4] sm:$0xf0]  ;;  %10191 = vmatpush.bf16.msra.mxu1 %v15892_v40  ;;  %v16627_v40 = vld [vmem:[%s18540_s13 + $0x29c8] sm:$0xf]  ;;  %v16870_v62 = vld [vmem:[%s18540_s13 + $0x1ac] sm:$0xf] }
 0x439   : > { %10228 = vmatpush.bf16.msrb.mxu2 %v16308_v32  ;;  %v9974_v32 = vpop.f32.mrf.mxu2  ;;  %v16500_v15 = vor.u32 %v18124_v6, %v16499_v45  ;;  %v11493_v60 = vld [vmem:[%s18540_s13 + $0x1b8] sm:$0xf0]  ;;  %v16628_v61 = vor.u32 %v18156_v20, %v16627_v40  ;;  %v11384_v45 = vor.u32 %v16842_v51, %v11381_v8  ;;  %v16467_v6 = vld [vmem:[%s18540_s13 + $0x2888] sm:$0xf]  ;;  %v16838_v54 = vld [vmem:[%s18540_s13 + $0xac] sm:$0xf]  ;;  %v10011_v20 = vpop.f32.mrf.mxu0 }
 0x43a   : > { %10202 = vmatpush.bf16.msrb.mxu3 %v16052_v46  ;;  %v16643_v46 = vld [vmem:[%s18540_s13 + $0x29e8] sm:$0xf]  ;;  %v9948_v0 = vpop.f32.mrf.mxu3  ;;  %v18120_v32 = vld [vmem:[%s18540_s13 + $0x28b4] sm:$0xf0]  ;;  %10218 = vmatmul.bf16.vlgmr.msra.gmra.mxu0 %v19394_v63 }
 0x43b   : > { %10268 = vmatpush.bf16.msrb.mxu0 %v16676_v50  ;;  %v11509_v50 = vld [vmem:[%s18540_s13 + $0x1d8] sm:$0xf0]  ;;  %v16644_v2 = vor.u32 %v18160_v52, %v16643_v46  ;;  %v16483_v0 = vld [vmem:[%s18540_s13 + $0x28a8] sm:$0xf]  ;;  %v18116_v46 = vld [vmem:[%s18540_s13 + $0x2894] sm:$0xf0] }
 0x43c   : > { %10236 = vmatpush.bf16.msrb.mxu1 %v16516_v18  ;;  %v16484_v18 = vor.u32 %v18120_v32, %v16483_v0  ;;  %v21838_v52 = vld [vmem:[#allocation19_spill] sm:$0xff]  ;;  %v16451_v0 = vld [vmem:[%s18540_s13 + $0x2868] sm:$0xf] }
 0x43d   : > { %10229 = vmatpush.bf16.msrb.mxu2 %v16292_v53  ;;  %v11512_v53 = vor.u32 %v16874_v10, %v11509_v50  ;;  %v11477_v10 = vld [vmem:[%s18540_s13 + $0x198] sm:$0xf0]  ;;  %v9985_v50 = vpop.f32.mrf.mxu1  ;;  %v18112_v32 = vld [vmem:[%s18540_s13 + $0x2874] sm:$0xf0]  ;;  %v16595_v40 = vld [vmem:[%s18540_s13 + $0x2988] sm:$0xf] }
 0x43e   : > { %10203 = vmatpush.bf16.msrb.mxu3 %v16036_v59  ;;  %v21837_v59 = vld [vmem:[#allocation18_spill] sm:$0xff]  ;;  %v9986_v51 = vadd.f32 %v9985_v50, %v20915_v47  ;;  %v18148_v8 = vld [vmem:[%s18540_s13 + $0x2994] sm:$0xf0]  ;;  %v16435_v47 = vld [vmem:[%s18540_s13 + $0x2848] sm:$0xf] }
 0x43f   : > { %10269 = vmatpush.bf16.msrb.mxu0 %v16660_v1  ;;  %10192 = vmatmul.bf16.vlgmr.msra.gmra.mxu1 %v21837_v59  ;;  %v16611_v1 = vld [vmem:[%s18540_s13 + $0x29a8] sm:$0xf]  ;;  %v11445_v50 = vld [vmem:[%s18540_s13 + $0x158] sm:$0xf0] }
 0x440   : > { %10237 = vmatpush.bf16.msrb.mxu1 %v16500_v15  ;;  %v16866_v15 = vld [vmem:[%s18540_s13 + $0x18c] sm:$0xf] }
 0x441   : > { %10230 = vmatpush.bf16.msrb.mxu2 %v16276_v3  ;;  %v16468_v3 = vor.u32 %v18116_v46, %v16467_v6  ;;  %v16596_v6 = vor.u32 %v18148_v8, %v16595_v40  ;;  %v16563_v40 = vld [vmem:[%s18540_s13 + $0x2948] sm:$0xf] }
 0x442   : > { %10204 = vmatpush.bf16.msrb.mxu3 %v16020_v49  ;;  %v11365_v49 = vld [vmem:[%s18540_s13 + $0xb8] sm:$0xf0] }
 0x443   : > { %10288 = vmatpush.bf16.msra.mxu0 %v11528_v9  ;;  %v11496_v9 = vor.u32 %v16870_v62, %v11493_v60  ;;  %v11480_v62 = vor.u32 %v16866_v15, %v11477_v10  ;;  %v16452_v60 = vor.u32 %v18112_v32, %v16451_v0  ;;  %v16858_v10 = vld [vmem:[%s18540_s13 + $0x14c] sm:$0xf]  ;;  %v16419_v0 = vld [vmem:[%s18540_s13 + $0x2828] sm:$0xf]  ;;  %v18104_v32 = vld [vmem:[%s18540_s13 + $0x2834] sm:$0xf0] }
 0x444   : > { %10231 = vmatmul.bf16.vlgmr.msrb.gmra.mxu2 %v21831_v48  ;;  %10238 = vmatpush.bf16.msrb.mxu1 %v16484_v18  ;;  %v11349_v18 = vld [vmem:[%s18540_s13 + $0x98] sm:$0xf0] }
 0x445   : > { %10275 = vmatpush.bf16.msra.mxu2 %v11400_v34  ;;  %10205 = vmatmul.bf16.vlgmr.msrb.gmra.mxu3 %v21838_v52  ;;  %v11368_v34 = vor.u32 %v16838_v54, %v11365_v49  ;;  %v18144_v54 = vld [vmem:[%s18540_s13 + $0x2974] sm:$0xf0]  ;;  %v16830_v49 = vld [vmem:[%s18540_s13 + $0x6c] sm:$0xf]  ;;  %v9987_v8 = vpop.f32.mrf.mxu1 }
 0x446   : > { %10249 = vmatpush.bf16.msra.mxu3 %v16644_v2  ;;  %v16612_v2 = vor.u32 %v18152_v43, %v16611_v1  ;;  %v18108_v1 = vld [vmem:[%s18540_s13 + $0x2854] sm:$0xf0]  ;;  %v16579_v43 = vld [vmem:[%s18540_s13 + $0x2968] sm:$0xf]  ;;  %v16822_v8 = vld [vmem:[%s18540_s13 + $0x2c] sm:$0xf] }
 0x447   : > { %10289 = vmatpush.bf16.msra.mxu0 %v11512_v53  ;;  %v16834_v53 = vld [vmem:[%s18540_s13 + $0x8c] sm:$0xf]  ;;  %v16436_v15 = vor.u32 %v18108_v1, %v16435_v47  ;;  %v10024_v47 = vpop.f32.mrf.mxu2 }
 0x448   : > { %10239 = vmatpush.bf16.msrb.mxu1 %v16468_v3  ;;  %v11352_v46 = vor.u32 %v16834_v53, %v11349_v18  ;;  %v10013_v53 = vpop.f32.mrf.mxu0  ;;  %v18140_v18 = vld [vmem:[%s18540_s13 + $0x2954] sm:$0xf0]  ;;  %v16854_v1 = vld [vmem:[%s18540_s13 + $0x12c] sm:$0xf] }
 0x449   : > { %10276 = vmatpush.bf16.msra.mxu2 %v11384_v45  ;;  %v11461_v45 = vld [vmem:[%s18540_s13 + $0x178] sm:$0xf0]  ;;  %v16531_v53 = vld [vmem:[%s18540_s13 + $0x2908] sm:$0xf] }
 0x44a   : > { %10250 = vmatpush.bf16.msra.mxu3 %v16628_v61  ;;  %v16862_v61 = vld [vmem:[%s18540_s13 + $0x16c] sm:$0xf]  ;;  %16683 = vmatmul.msk.bf16.vlgmr.msrb.gmra.mxu0 %vm8594_vm0, %v21832_v24 }
 0x44b   : > { %10290 = vmatpush.bf16.msra.mxu0 %v11496_v9  ;;  %v11333_v9 = vld [vmem:[%s18540_s13 + $0x78] sm:$0xf0]  ;;  %v11464_v3 = vor.u32 %v16862_v61, %v11461_v45  ;;  %v11448_v45 = vor.u32 %v16858_v10, %v11445_v50  ;;  %v16547_v10 = vld [vmem:[%s18540_s13 + $0x2928] sm:$0xf] }
 0x44c   : > { %10240 = vmatpush.bf16.msrb.mxu1 %v16452_v60  ;;  %v11317_v61 = vld [vmem:[%s18540_s13 + $0x58] sm:$0xf0]  ;;  %v9998_v60 = vpop.f32.mrf.mxu3 }
 0x44d   : > { %10277 = vmatpush.bf16.msra.mxu2 %v11368_v34  ;;  %v11336_v34 = vor.u32 %v16830_v49, %v11333_v9  ;;  %v16403_v9 = vld [vmem:[%s18540_s13 + $0x2808] sm:$0xf] }
 0x44e   : > { %10251 = vmatpush.bf16.msra.mxu3 %v16612_v2  ;;  %v16580_v2 = vor.u32 %v18144_v54, %v16579_v43  ;;  %v11429_v43 = vld [vmem:[%s18540_s13 + $0x138] sm:$0xf0]  ;;  %v16564_v54 = vor.u32 %v18140_v18, %v16563_v40 }
 0x44f   : > { %10291 = vmatpush.bf16.msra.mxu0 %v11480_v62  ;;  %v16826_v62 = vld [vmem:[%s18540_s13 + $0x4c] sm:$0xf]  ;;  %v11413_v18 = vld [vmem:[%s18540_s13 + $0x118] sm:$0xf0] }
 0x450   : > { %10241 = vmatpush.bf16.msrb.mxu1 %v16436_v15  ;;  %v11320_v49 = vor.u32 %v16826_v62, %v11317_v61  ;;  %v18136_v15 = vld [vmem:[%s18540_s13 + $0x2934] sm:$0xf0] }
 0x451   : > { %10278 = vmatpush.bf16.msra.mxu2 %v11352_v46  ;;  %v16420_v46 = vor.u32 %v18104_v32, %v16419_v0  ;;  %v16910_v0 = vld [vmem:[%s18540_s13 + $0x2ec] sm:$0xf]  ;;  %v11653_v32 = vld [vmem:[%s18540_s13 + $0x2f8] sm:$0xf0]  ;;  %v16548_v62 = vor.u32 %v18136_v15, %v16547_v10 }
 0x452   : > { %10252 = vmatpush.bf16.msra.mxu3 %v16596_v6  ;;  %v9999_v6 = vadd.f32 %v9998_v60, %v9986_v51  ;;  %v11301_v51 = vld [vmem:[%s18540_s13 + $0x38] sm:$0xf0]  ;;  %v18132_v60 = vld [vmem:[%s18540_s13 + $0x2914] sm:$0xf0] }
 0x453   : > { %10292 = vmatpush.bf16.msra.mxu0 %v11464_v3  ;;  %v18100_v3 = vld [vmem:[%s18540_s13 + $0x2814] sm:$0xf0]  ;;  %v11304_v61 = vor.u32 %v16822_v8, %v11301_v51  ;;  %v11909_v10 = vld [vmem:[%s18540_s13 + $0x4f8] sm:$0xf0]  ;;  %v10026_v8 = vpop.f32.mrf.mxu2  ;;  %v16532_v51 = vor.u32 %v18132_v60, %v16531_v53  ;;  %v16970_v53 = vld [vmem:[%s18540_s13 + $0x4cc] sm:$0xf] }
 0x454   : > { %v10012_v50 = vadd.f32 %v10011_v20, %v9999_v6  ;;  %10242 = vmatpush.bf16.msrb.mxu1 %v16420_v46  ;;  %v16404_v40 = vor.u32 %v18100_v3, %v16403_v9  ;;  %v16850_v20 = vld [vmem:[%s18540_s13 + $0x10c] sm:$0xf]  ;;  %v12037_v6 = vld [vmem:[%s18540_s13 + $0x5f8] sm:$0xf0]  ;;  %v11656_v46 = vor.u32 %v16910_v0, %v11653_v32 }
 0x455   : > { %10279 = vmatpush.bf16.msra.mxu2 %v11336_v34  ;;  %v11637_v9 = vld [vmem:[%s18540_s13 + $0x2d8] sm:$0xf0]  ;;  %v16942_v3 = vld [vmem:[%s18540_s13 + $0x3ec] sm:$0xf]  ;;  %v11416_v24 = vor.u32 %v16850_v20, %v11413_v18 }
 0x456   : > { %10253 = vmatpush.bf16.msra.mxu3 %v16580_v2  ;;  %v11432_v2 = vor.u32 %v16854_v1, %v11429_v43  ;;  %v20986_v34 = vadd.f32 %v10024_v47, %v10012_v50  ;;  %v16818_v1 = vld [vmem:[%s18540_s13 + $0xc] sm:$0xf]  ;;  %v11285_v47 = vld [vmem:[%s18540_s13 + $0x18] sm:$0xf0] }
 0x457   : > { %10293 = vmatpush.bf16.msra.mxu0 %v11448_v45  ;;  %v17006_v45 = vld [vmem:[%s18540_s13 + $0x5ec] sm:$0xf]  ;;  %v11781_v50 = vld [vmem:[%s18540_s13 + $0x3f8] sm:$0xf0]  ;;  %v11288_v0 = vor.u32 %v16818_v1, %v11285_v47 }
 0x458   : > { %v16906_v43 = vld [vmem:[%s18540_s13 + $0x2cc] sm:$0xf]  ;;  %10243 = vmatpush.bf16.msrb.mxu1 %v16404_v40  ;;  %v12040_v15 = vor.u32 %v17006_v45, %v12037_v6  ;;  %v11784_v40 = vor.u32 %v16942_v3, %v11781_v50  ;;  %v11621_v6 = vld [vmem:[%s18540_s13 + $0x2b8] sm:$0xf0] }
 0x459   : > { %10280 = vmatpush.bf16.msra.mxu2 %v11320_v49  ;;  %v16974_v49 = vld [vmem:[%s18540_s13 + $0x4ec] sm:$0xf]  ;;  %v11640_v20 = vor.u32 %v16906_v43, %v11637_v9  ;;  %v11893_v60 = vld [vmem:[%s18540_s13 + $0x4d8] sm:$0xf0] }
 0x45a   : > { %10254 = vmatpush.bf16.msra.mxu3 %v16564_v54  ;;  %v10000_v54 = vpop.f32.mrf.mxu3  ;;  %v17002_v32 = vld [vmem:[%s18540_s13 + $0x5cc] sm:$0xf]  ;;  %v11912_v45 = vor.u32 %v16974_v49, %v11909_v10  ;;  %v12005_v47 = vld [vmem:[%s18540_s13 + $0x5b8] sm:$0xf0]  ;;  %v11896_v3 = vor.u32 %v16970_v53, %v11893_v60 }
 0x45b   : > { %10294 = vmatpush.bf16.msra.mxu0 %v11432_v2  ;;  %v12021_v2 = vld [vmem:[%s18540_s13 + $0x5d8] sm:$0xf0]  ;;  %v16902_v18 = vld [vmem:[%s18540_s13 + $0x2ac] sm:$0xf]  ;;  %10244 = vmatmul.bf16.vlgmr.msrb.gmra.mxu1 %v19479_v57 }
 0x45c   : > { %10301 = vmatpush.bf16.msra.mxu1 %v11656_v46  ;;  %v12024_v46 = vor.u32 %v17002_v32, %v12021_v2  ;;  %v16998_v1 = vld [vmem:[%s18540_s13 + $0x5ac] sm:$0xf]  ;;  %v11605_v50 = vld [vmem:[%s18540_s13 + $0x298] sm:$0xf0]  ;;  %v21023_v32 = vpop.f32.mrf.mxu0 }
 0x45d   : > { %10281 = vmatpush.bf16.msra.mxu2 %v11304_v61  ;;  %v11765_v61 = vld [vmem:[%s18540_s13 + $0x3d8] sm:$0xf0]  ;;  %v16898_v9 = vld [vmem:[%s18540_s13 + $0x28c] sm:$0xf]  ;;  %v12008_v8 = vor.u32 %v16998_v1, %v12005_v47 }
 0x45e   : > { %10255 = vmatpush.bf16.msra.mxu3 %v16548_v62  ;;  %v16938_v62 = vld [vmem:[%s18540_s13 + $0x3cc] sm:$0xf]  ;;  %v11749_v49 = vld [vmem:[%s18540_s13 + $0x3b8] sm:$0xf0]  ;;  %v11608_v2 = vor.u32 %v16898_v9, %v11605_v50 }
 0x45f   : > { %10295 = vmatpush.bf16.msra.mxu0 %v11416_v24  ;;  %v11624_v24 = vor.u32 %v16902_v18, %v11621_v6  ;;  %v11768_v43 = vor.u32 %v16938_v62, %v11765_v61  ;;  %v16934_v54 = vld [vmem:[%s18540_s13 + $0x3ac] sm:$0xf]  ;;  %v11589_v6 = vld [vmem:[%s18540_s13 + $0x278] sm:$0xf0] }
 0x460   : > { %10302 = vmatpush.bf16.msra.mxu1 %v11640_v20  ;;  %v16966_v10 = vld [vmem:[%s18540_s13 + $0x4ac] sm:$0xf]  ;;  %v11752_v20 = vor.u32 %v16934_v54, %v11749_v49  ;;  %v11733_v61 = vld [vmem:[%s18540_s13 + $0x398] sm:$0xf0] }
 0x461   : > { %10282 = vmatpush.bf16.msra.mxu2 %v11288_v0  ;;  %v11989_v0 = vld [vmem:[%s18540_s13 + $0x598] sm:$0xf0]  ;;  %v16930_v62 = vld [vmem:[%s18540_s13 + $0x38c] sm:$0xf] }
 0x462   : > { %10256 = vmatpush.bf16.msra.mxu3 %v16532_v51  ;;  %10296 = vmatmul.bf16.vlgmr.msra.gmra.mxu0 %v18661_v19  ;;  %v16994_v51 = vld [vmem:[%s18540_s13 + $0x58c] sm:$0xf]  ;;  %v10037_v19 = vpop.f32.mrf.mxu1  ;;  %v11861_v53 = vld [vmem:[%s18540_s13 + $0x498] sm:$0xf0]  ;;  %v11736_v47 = vor.u32 %v16930_v62, %v11733_v61 }
 0x463   : > { %10340 = vmatpush.bf16.msrb.mxu0 %v12040_v15  ;;  %v11877_v15 = vld [vmem:[%s18540_s13 + $0x4b8] sm:$0xf0]  ;;  %v10038_v18 = vadd.f32 %v10037_v19, %v20986_v34  ;;  %v11992_v60 = vor.u32 %v16994_v51, %v11989_v0  ;;  %v16958_v54 = vld [vmem:[%s18540_s13 + $0x46c] sm:$0xf] }
 0x464   : > { %10283 = vmatmul.bf16.vlgmr.msra.gmra.mxu2 %v18655_v14  ;;  %10303 = vmatpush.bf16.msra.mxu1 %v11624_v24  ;;  %v16962_v14 = vld [vmem:[%s18540_s13 + $0x48c] sm:$0xf]  ;;  %v11973_v1 = vld [vmem:[%s18540_s13 + $0x578] sm:$0xf0]  ;;  %v10065_v51 = vpop.f32.mrf.mxu0 }
 0x465   : > { %10327 = vmatpush.bf16.msrb.mxu2 %v11912_v45  ;;  %10257 = vmatmul.bf16.vlgmr.msra.gmra.mxu3 %v19481_v58  ;;  %v11880_v45 = vor.u32 %v16966_v10, %v11877_v15  ;;  %v16890_v24 = vld [vmem:[%s18540_s13 + $0x24c] sm:$0xf]  ;;  %v11573_v9 = vld [vmem:[%s18540_s13 + $0x258] sm:$0xf0] }
 0x466   : > { %10314 = vmatpush.bf16.msrb.mxu3 %v11784_v40  ;;  %v16894_v40 = vld [vmem:[%s18540_s13 + $0x26c] sm:$0xf]  ;;  %v11717_v50 = vld [vmem:[%s18540_s13 + $0x378] sm:$0xf0]  ;;  %v11576_v0 = vor.u32 %v16890_v24, %v11573_v9 }
 0x467   : > { %10341 = vmatpush.bf16.msrb.mxu0 %v12024_v46  ;;  %v16990_v46 = vld [vmem:[%s18540_s13 + $0x56c] sm:$0xf]  ;;  %v11592_v34 = vor.u32 %v16894_v40, %v11589_v6  ;;  %v11845_v49 = vld [vmem:[%s18540_s13 + $0x478] sm:$0xf0] }
 0x468   : > { %10304 = vmatpush.bf16.msra.mxu1 %v11608_v2  ;;  %v11976_v10 = vor.u32 %v16990_v46, %v11973_v1  ;;  %v16986_v15 = vld [vmem:[%s18540_s13 + $0x54c] sm:$0xf]  ;;  %v11848_v40 = vor.u32 %v16958_v54, %v11845_v49  ;;  %v11701_v62 = vld [vmem:[%s18540_s13 + $0x358] sm:$0xf0]  ;;  %v10076_v46 = vpop.f32.mrf.mxu2 }
 0x469   : > { %10328 = vmatpush.bf16.msrb.mxu2 %v11896_v3  ;;  %v16926_v3 = vld [vmem:[%s18540_s13 + $0x36c] sm:$0xf]  ;;  %v11685_v49 = vld [vmem:[%s18540_s13 + $0x338] sm:$0xf0] }
 0x46a   : > { %10315 = vmatpush.bf16.msrb.mxu3 %v11768_v43  ;;  %v11864_v43 = vor.u32 %v16962_v14, %v11861_v53  ;;  %v11720_v19 = vor.u32 %v16926_v3, %v11717_v50  ;;  %v16886_v2 = vld [vmem:[%s18540_s13 + $0x22c] sm:$0xf]  ;;  %v11829_v14 = vld [vmem:[%s18540_s13 + $0x458] sm:$0xf0] }
 0x46b   : > { %10342 = vmatpush.bf16.msrb.mxu0 %v12008_v8  ;;  %v11957_v8 = vld [vmem:[%s18540_s13 + $0x558] sm:$0xf0]  ;;  %v16922_v6 = vld [vmem:[%s18540_s13 + $0x34c] sm:$0xf] }
 0x46c   : > { %10305 = vmatpush.bf16.msra.mxu1 %v11592_v34  ;;  %v16954_v61 = vld [vmem:[%s18540_s13 + $0x44c] sm:$0xf]  ;;  %v11960_v53 = vor.u32 %v16986_v15, %v11957_v8  ;;  %v11941_v34 = vld [vmem:[%s18540_s13 + $0x538] sm:$0xf0] }
 0x46d   : > { %10329 = vmatpush.bf16.msrb.mxu2 %v11880_v45  ;;  %v11557_v45 = vld [vmem:[%s18540_s13 + $0x238] sm:$0xf0]  ;;  %v16982_v1 = vld [vmem:[%s18540_s13 + $0x52c] sm:$0xf]  ;;  %v11832_v50 = vor.u32 %v16954_v61, %v11829_v14 }
 0x46e   : > { %10316 = vmatpush.bf16.msrb.mxu3 %v11752_v20  ;;  %v10039_v20 = vpop.f32.mrf.mxu1  ;;  %v11560_v24 = vor.u32 %v16886_v2, %v11557_v45  ;;  %v16882_v9 = vld [vmem:[%s18540_s13 + $0x20c] sm:$0xf]  ;;  %v11541_v3 = vld [vmem:[%s18540_s13 + $0x218] sm:$0xf0] }
 0x46f   : > { %10343 = vmatpush.bf16.msrb.mxu0 %v11992_v60  ;;  %v10050_v60 = vpop.f32.mrf.mxu3  ;;  %v16918_v54 = vld [vmem:[%s18540_s13 + $0x32c] sm:$0xf]  ;;  %v11813_v8 = vld [vmem:[%s18540_s13 + $0x438] sm:$0xf0] }
 0x470   : > { %10306 = vmatpush.bf16.msra.mxu1 %v11576_v0  ;;  %v17038_v51 = vld [vmem:[%s18540_s13 + $0x6ec] sm:$0xf]  ;;  %v11944_v0 = vor.u32 %v16982_v1, %v11941_v34  ;;  %v11925_v2 = vld [vmem:[%s18540_s13 + $0x518] sm:$0xf0] }
 0x471   : > { %10330 = vmatpush.bf16.msrb.mxu2 %v11864_v43  ;;  %v11704_v43 = vor.u32 %v16922_v6, %v11701_v62  ;;  %v16914_v45 = vld [vmem:[%s18540_s13 + $0x30c] sm:$0xf]  ;;  %v12549_v62 = vld [vmem:[%s18540_s13 + $0x9f8] sm:$0xf0] }
 0x472   : > { %10317 = vmatpush.bf16.msrb.mxu3 %v11736_v47  ;;  %v10051_v47 = vadd.f32 %v10050_v60, %v10038_v18  ;;  %v12165_v18 = vld [vmem:[%s18540_s13 + $0x6f8] sm:$0xf0]  ;;  %v17134_v6 = vld [vmem:[%s18540_s13 + $0x9ec] sm:$0xf] }
 0x473   : > { %10344 = vmatpush.bf16.msrb.mxu0 %v11976_v10  ;;  %v16950_v10 = vld [vmem:[%s18540_s13 + $0x42c] sm:$0xf]  ;;  %v12168_v14 = vor.u32 %v17038_v51, %v12165_v18  ;;  %v11797_v1 = vld [vmem:[%s18540_s13 + $0x418] sm:$0xf0] }
 0x474   : > { %v10064_v15 = vadd.f32 %v21023_v32, %v10051_v47  ;;  %10307 = vmatpush.bf16.msra.mxu1 %v11560_v24  ;;  %v11688_v32 = vor.u32 %v16918_v54, %v11685_v49  ;;  %v11816_v61 = vor.u32 %v16950_v10, %v11813_v8  ;;  %v16946_v60 = vld [vmem:[%s18540_s13 + $0x40c] sm:$0xf]  ;;  %v12552_v54 = vor.u32 %v17134_v6, %v12549_v62  ;;  %v12533_v8 = vld [vmem:[%s18540_s13 + $0x9d8] sm:$0xf0] }
 0x475   : > { %10331 = vmatpush.bf16.msrb.mxu2 %v11848_v40  ;;  %v11544_v40 = vor.u32 %v16882_v9, %v11541_v3  ;;  %v17034_v34 = vld [vmem:[%s18540_s13 + $0x6cc] sm:$0xf]  ;;  %v12421_v3 = vld [vmem:[%s18540_s13 + $0x8f8] sm:$0xf0]  ;;  %v11800_v51 = vor.u32 %v16946_v60, %v11797_v1 }
 0x476   : > { %10318 = vmatpush.bf16.msrb.mxu3 %v11720_v19  ;;  %v16978_v19 = vld [vmem:[%s18540_s13 + $0x50c] sm:$0xf]  ;;  %v21062_v20 = vadd.f32 %v10076_v46, %v10064_v15  ;;  %v12149_v46 = vld [vmem:[%s18540_s13 + $0x6d8] sm:$0xf0] }
 0x477   : > { %10345 = vmatpush.bf16.msrb.mxu0 %v11960_v53  ;;  %v11669_v53 = vld [vmem:[%s18540_s13 + $0x318] sm:$0xf0]  ;;  %v17070_v47 = vld [vmem:[%s18540_s13 + $0x7ec] sm:$0xf]  ;;  %v11928_v24 = vor.u32 %v16978_v19, %v11925_v2  ;;  %v10052_v49 = vpop.f32.mrf.mxu3  ;;  %v12152_v18 = vor.u32 %v17034_v34, %v12149_v46 }
 0x478   : > { %v17102_v9 = vld [vmem:[%s18540_s13 + $0x8ec] sm:$0xf]  ;;  %10308 = vmatpush.bf16.msra.mxu1 %v11544_v40  ;;  %v11672_v10 = vor.u32 %v16914_v45, %v11669_v53  ;;  %v12133_v6 = vld [vmem:[%s18540_s13 + $0x6b8] sm:$0xf0] }
 0x479   : > { %10332 = vmatpush.bf16.msrb.mxu2 %v11832_v50  ;;  %v10078_v50 = vpop.f32.mrf.mxu2  ;;  %v17130_v15 = vld [vmem:[%s18540_s13 + $0x9cc] sm:$0xf]  ;;  %v12424_v19 = vor.u32 %v17102_v9, %v12421_v3  ;;  %v12277_v40 = vld [vmem:[%s18540_s13 + $0x7d8] sm:$0xf0] }
 0x47a   : > { %10319 = vmatpush.bf16.msrb.mxu3 %v11704_v43  ;;  %v12293_v43 = vld [vmem:[%s18540_s13 + $0x7f8] sm:$0xf0]  ;;  %v17030_v2 = vld [vmem:[%s18540_s13 + $0x6ac] sm:$0xf]  ;;  %v12536_v53 = vor.u32 %v17130_v15, %v12533_v8  ;;  %v10089_v15 = vpop.f32.mrf.mxu1 }
 0x47b   : > { %10346 = vmatpush.bf16.msrb.mxu0 %v11944_v0  ;;  %v12296_v0 = vor.u32 %v17070_v47, %v12293_v43  ;;  %v17066_v62 = vld [vmem:[%s18540_s13 + $0x7cc] sm:$0xf]  ;;  %v12405_v45 = vld [vmem:[%s18540_s13 + $0x8d8] sm:$0xf0]  ;;  %10309 = vmatmul.bf16.vlgmr.msra.gmra.mxu1 %v18648_v7  ;;  %v12136_v60 = vor.u32 %v17030_v2, %v12133_v6  ;;  %v10090_v2 = vadd.f32 %v10089_v15, %v21062_v20 }
 0x47c   : > { %10353 = vmatpush.bf16.msrb.mxu1 %v12168_v14  ;;  %v12517_v14 = vld [vmem:[%s18540_s13 + $0x9b8] sm:$0xf0]  ;;  %v12280_v1 = vor.u32 %v17066_v62, %v12277_v40  ;;  %v17026_v46 = vld [vmem:[%s18540_s13 + $0x68c] sm:$0xf] }
 0x47d   : > { %10333 = vmatpush.bf16.msrb.mxu2 %v11816_v61  ;;  %v17126_v61 = vld [vmem:[%s18540_s13 + $0x9ac] sm:$0xf]  ;;  %v12117_v47 = vld [vmem:[%s18540_s13 + $0x698] sm:$0xf0] }
 0x47e   : > { %10320 = vmatpush.bf16.msrb.mxu3 %v11688_v32  ;;  %v17098_v32 = vld [vmem:[%s18540_s13 + $0x8cc] sm:$0xf]  ;;  %v12261_v43 = vld [vmem:[%s18540_s13 + $0x7b8] sm:$0xf0] }
 0x47f   : > { %10347 = vmatpush.bf16.msrb.mxu0 %v11928_v24  ;;  %v12408_v34 = vor.u32 %v17098_v32, %v12405_v45  ;;  %v17062_v24 = vld [vmem:[%s18540_s13 + $0x7ac] sm:$0xf]  ;;  %v12389_v3 = vld [vmem:[%s18540_s13 + $0x8b8] sm:$0xf0] }
 0x480   : > { %10354 = vmatpush.bf16.msrb.mxu1 %v12152_v18  ;;  %v21839_v7 = vld [vmem:[#allocation9_spill] sm:$0xff]  ;;  %v12501_v50 = vld [vmem:[%s18540_s13 + $0x998] sm:$0xf0]  ;;  %v12264_v8 = vor.u32 %v17062_v24, %v12261_v43 }
 0x481   : > { %10334 = vmatpush.bf16.msrb.mxu2 %v11800_v51  ;;  %v17094_v9 = vld [vmem:[%s18540_s13 + $0x8ac] sm:$0xf]  ;;  %v12373_v62 = vld [vmem:[%s18540_s13 + $0x898] sm:$0xf0] }
 0x482   : > { %10321 = vmatpush.bf16.msrb.mxu3 %v11672_v10  ;;  %v17122_v49 = vld [vmem:[%s18540_s13 + $0x98c] sm:$0xf]  ;;  %10348 = vmatmul.bf16.vlgmr.msrb.gmra.mxu0 %v18728_v44  ;;  %v12120_v10 = vor.u32 %v17026_v46, %v12117_v47  ;;  %v12392_v51 = vor.u32 %v17094_v9, %v12389_v3  ;;  %v12245_v44 = vld [vmem:[%s18540_s13 + $0x798] sm:$0xf0]  ;;  %v10091_v15 = vpop.f32.mrf.mxu1 }
 0x483   : > { %10392 = vmatpush.bf16.msra.mxu0 %v12552_v54  ;;  %v12520_v54 = vor.u32 %v17126_v61, %v12517_v14  ;;  %v17022_v18 = vld [vmem:[%s18540_s13 + $0x66c] sm:$0xf]  ;;  %v12504_v40 = vor.u32 %v17122_v49, %v12501_v50  ;;  %v12485_v45 = vld [vmem:[%s18540_s13 + $0x978] sm:$0xf0] }
 0x484   : > { %10335 = vmatmul.bf16.vlgmr.msrb.gmra.mxu2 %v18724_v41  ;;  %10355 = vmatpush.bf16.msrb.mxu1 %v12136_v60  ;;  %v10115_v41 = vpop.f32.mrf.mxu0  ;;  %v17090_v6 = vld [vmem:[%s18540_s13 + $0x88c] sm:$0xf]  ;;  %v12085_v60 = vld [vmem:[%s18540_s13 + $0x658] sm:$0xf0] }
 0x485   : > { %10379 = vmatpush.bf16.msra.mxu2 %v12424_v19  ;;  %10322 = vmatmul.bf16.vlgmr.msrb.gmra.mxu3 %v21839_v7  ;;  %v17058_v19 = vld [vmem:[%s18540_s13 + $0x78c] sm:$0xf]  ;;  %v12376_v14 = vor.u32 %v17090_v6, %v12373_v62  ;;  %v12357_v47 = vld [vmem:[%s18540_s13 + $0x878] sm:$0xf0] }
 0x486   : > { %10366 = vmatpush.bf16.msra.mxu3 %v12296_v0  ;;  %v12101_v0 = vld [vmem:[%s18540_s13 + $0x678] sm:$0xf0]  ;;  %v17118_v32 = vld [vmem:[%s18540_s13 + $0x96c] sm:$0xf]  ;;  %v12248_v61 = vor.u32 %v17058_v19, %v12245_v44 }
 0x487   : > { %10393 = vmatpush.bf16.msra.mxu0 %v12536_v53  ;;  %v12104_v53 = vor.u32 %v17022_v18, %v12101_v0  ;;  %v17018_v20 = vld [vmem:[%s18540_s13 + $0x64c] sm:$0xf]  ;;  %v12488_v24 = vor.u32 %v17118_v32, %v12485_v45  ;;  %v12469_v43 = vld [vmem:[%s18540_s13 + $0x958] sm:$0xf0]  ;;  %v10128_v45 = vpop.f32.mrf.mxu2 }
 0x488   : > { %10356 = vmatpush.bf16.msrb.mxu1 %v12120_v10  ;;  %v17086_v46 = vld [vmem:[%s18540_s13 + $0x86c] sm:$0xf]  ;;  %v12088_v9 = vor.u32 %v17018_v20, %v12085_v60  ;;  %v12069_v50 = vld [vmem:[%s18540_s13 + $0x638] sm:$0xf0]  ;;  %v10102_v44 = vpop.f32.mrf.mxu3 }
 0x489   : > { %10380 = vmatpush.bf16.msra.mxu2 %v12408_v34  ;;  %v12229_v34 = vld [vmem:[%s18540_s13 + $0x778] sm:$0xf0]  ;;  %v17114_v7 = vld [vmem:[%s18540_s13 + $0x94c] sm:$0xf] }
 0x48a   : > { %10367 = vmatpush.bf16.msra.mxu3 %v12280_v1  ;;  %v17054_v1 = vld [vmem:[%s18540_s13 + $0x76c] sm:$0xf]  ;;  %v12341_v0 = vld [vmem:[%s18540_s13 + $0x858] sm:$0xf0]  ;;  %v12472_v19 = vor.u32 %v17114_v7, %v12469_v43 }
 0x48b   : > { %10394 = vmatpush.bf16.msra.mxu0 %v12520_v54  ;;  %v12232_v3 = vor.u32 %v17054_v1, %v12229_v34  ;;  %v12360_v54 = vor.u32 %v17086_v46, %v12357_v47  ;;  %v17014_v49 = vld [vmem:[%s18540_s13 + $0x62c] sm:$0xf]  ;;  %v12453_v62 = vld [vmem:[%s18540_s13 + $0x938] sm:$0xf0] }
 0x48c   : > { %10357 = vmatpush.bf16.msrb.mxu1 %v12104_v53  ;;  %v17050_v10 = vld [vmem:[%s18540_s13 + $0x74c] sm:$0xf]  ;;  %v12072_v32 = vor.u32 %v17014_v49, %v12069_v50  ;;  %v12053_v20 = vld [vmem:[%s18540_s13 + $0x618] sm:$0xf0] }
 0x48d   : > { %10381 = vmatpush.bf16.msra.mxu2 %v12392_v51  ;;  %v12213_v51 = vld [vmem:[%s18540_s13 + $0x758] sm:$0xf0]  ;;  %v17082_v18 = vld [vmem:[%s18540_s13 + $0x84c] sm:$0xf] }
 0x48e   : > { %10368 = vmatpush.bf16.msra.mxu3 %v12264_v8  ;;  %v10117_v8 = vpop.f32.mrf.mxu0  ;;  %v17110_v6 = vld [vmem:[%s18540_s13 + $0x92c] sm:$0xf]  ;;  %v12197_v1 = vld [vmem:[%s18540_s13 + $0x738] sm:$0xf0] }
 0x48f   : > { %10395 = vmatpush.bf16.msra.mxu0 %v12504_v40  ;;  %v10103_v40 = vadd.f32 %v10102_v44, %v10090_v2  ;;  %v17010_v53 = vld [vmem:[%s18540_s13 + $0x60c] sm:$0xf]  ;;  %v12325_v2 = vld [vmem:[%s18540_s13 + $0x838] sm:$0xf0] }
 0x490   : > { %10358 = vmatpush.bf16.msrb.mxu1 %v12088_v9  ;;  %v17046_v60 = vld [vmem:[%s18540_s13 + $0x72c] sm:$0xf]  ;;  %v12677_v7 = vld [vmem:[%s18540_s13 + $0xaf8] sm:$0xf0] }
 0x491   : > { %10382 = vmatpush.bf16.msra.mxu2 %v12376_v14  ;;  %v12344_v14 = vor.u32 %v17082_v18, %v12341_v0  ;;  %v10116_v34 = vadd.f32 %v10115_v41, %v10103_v40  ;;  %v17078_v46 = vld [vmem:[%s18540_s13 + $0x82c] sm:$0xf]  ;;  %v12437_v9 = vld [vmem:[%s18540_s13 + $0x918] sm:$0xf0]  ;;  %v12200_v50 = vor.u32 %v17046_v60, %v12197_v1  ;;  %v10130_v60 = vpop.f32.mrf.mxu2 }
 0x492   : > { %10369 = vmatpush.bf16.msra.mxu3 %v12248_v61  ;;  %v12216_v61 = vor.u32 %v17050_v10, %v12213_v51  ;;  %v17166_v47 = vld [vmem:[%s18540_s13 + $0xaec] sm:$0xf]  ;;  %v13061_v49 = vld [vmem:[%s18540_s13 + $0xdf8] sm:$0xf0]  ;;  %v12328_v10 = vor.u32 %v17078_v46, %v12325_v2 }
 0x493   : > { %10396 = vmatpush.bf16.msra.mxu0 %v12488_v24  ;;  %v12456_v24 = vor.u32 %v17110_v6, %v12453_v62  ;;  %v17106_v43 = vld [vmem:[%s18540_s13 + $0x90c] sm:$0xf]  ;;  %v12181_v8 = vld [vmem:[%s18540_s13 + $0x718] sm:$0xf0]  ;;  %v12680_v18 = vor.u32 %v17166_v47, %v12677_v7 }
 0x494   : > { %10359 = vmatpush.bf16.msrb.mxu1 %v12072_v32  ;;  %v17262_v41 = vld [vmem:[%s18540_s13 + $0xdec] sm:$0xf]  ;;  %v12309_v0 = vld [vmem:[%s18540_s13 + $0x818] sm:$0xf0]  ;;  %v12440_v6 = vor.u32 %v17106_v43, %v12437_v9 }
 0x495   : > { %10383 = vmatpush.bf16.msra.mxu2 %v12360_v54  ;;  %v12056_v54 = vor.u32 %v17010_v53, %v12053_v20  ;;  %v17042_v15 = vld [vmem:[%s18540_s13 + $0x70c] sm:$0xf]  ;;  %v12661_v44 = vld [vmem:[%s18540_s13 + $0xad8] sm:$0xf0]  ;;  %v10104_v53 = vpop.f32.mrf.mxu3 }
 0x496   : > { %10370 = vmatpush.bf16.msra.mxu3 %v12232_v3  ;;  %v21133_v3 = vadd.f32 %v10128_v45, %v10116_v34  ;;  %v17074_v51 = vld [vmem:[%s18540_s13 + $0x80c] sm:$0xf]  ;;  %v12805_v40 = vld [vmem:[%s18540_s13 + $0xbf8] sm:$0xf0]  ;;  %v13064_v45 = vor.u32 %v17262_v41, %v13061_v49  ;;  %v12184_v1 = vor.u32 %v17042_v15, %v12181_v8 }
 0x497   : > { %10397 = vmatpush.bf16.msra.mxu0 %v12472_v19  ;;  %v17162_v19 = vld [vmem:[%s18540_s13 + $0xacc] sm:$0xf]  ;;  %v13045_v20 = vld [vmem:[%s18540_s13 + $0xdd8] sm:$0xf0]  ;;  %v12312_v34 = vor.u32 %v17074_v51, %v12309_v0 }
 0x498   : > { %v17198_v62 = vld [vmem:[%s18540_s13 + $0xbec] sm:$0xf]  ;;  %10360 = vmatpush.bf16.msrb.mxu1 %v12056_v54  ;;  %v12664_v46 = vor.u32 %v17162_v19, %v12661_v44  ;;  %v12789_v9 = vld [vmem:[%s18540_s13 + $0xbd8] sm:$0xf0]  ;;  %v10141_v53 = vpop.f32.mrf.mxu1 }
 0x499   : > { %10384 = vmatpush.bf16.msra.mxu2 %v12344_v14  ;;  %v17230_v32 = vld [vmem:[%s18540_s13 + $0xcec] sm:$0xf]  ;;  %v12808_v2 = vor.u32 %v17198_v62, %v12805_v40  ;;  %v12917_v49 = vld [vmem:[%s18540_s13 + $0xcd8] sm:$0xf0] }
 0x49a   : > { %10371 = vmatpush.bf16.msra.mxu3 %v12216_v61  ;;  %v12933_v61 = vld [vmem:[%s18540_s13 + $0xcf8] sm:$0xf0]  ;;  %v17258_v14 = vld [vmem:[%s18540_s13 + $0xdcc] sm:$0xf] }
 0x49b   : > { %10398 = vmatpush.bf16.msra.mxu0 %v12456_v24  ;;  %v17158_v47 = vld [vmem:[%s18540_s13 + $0xaac] sm:$0xf]  ;;  %v12645_v24 = vld [vmem:[%s18540_s13 + $0xab8] sm:$0xf0]  ;;  %10361 = vmatmul.bf16.vlgmr.msrb.gmra.mxu1 %v18720_v38  ;;  %v12936_v7 = vor.u32 %v17230_v32, %v12933_v61  ;;  %v13048_v41 = vor.u32 %v17258_v14, %v13045_v20  ;;  %v10142_v20 = vadd.f32 %v10141_v53, %v21133_v3 }
 0x49c   : > { %10405 = vmatpush.bf16.msra.mxu1 %v12680_v18  ;;  %v17194_v43 = vld [vmem:[%s18540_s13 + $0xbcc] sm:$0xf]  ;;  %v12648_v38 = vor.u32 %v17158_v47, %v12645_v24  ;;  %v12629_v51 = vld [vmem:[%s18540_s13 + $0xa98] sm:$0xf0] }
 0x49d   : > { %10385 = vmatpush.bf16.msra.mxu2 %v12328_v10  ;;  %v17226_v54 = vld [vmem:[%s18540_s13 + $0xccc] sm:$0xf]  ;;  %v13029_v10 = vld [vmem:[%s18540_s13 + $0xdb8] sm:$0xf0]  ;;  %v12792_v15 = vor.u32 %v17194_v43, %v12789_v9 }
 0x49e   : > { %10372 = vmatpush.bf16.msra.mxu3 %v12200_v50  ;;  %v17254_v50 = vld [vmem:[%s18540_s13 + $0xdac] sm:$0xf]  ;;  %v12920_v18 = vor.u32 %v17226_v54, %v12917_v49  ;;  %v12773_v19 = vld [vmem:[%s18540_s13 + $0xbb8] sm:$0xf0] }
 0x49f   : > { %10399 = vmatpush.bf16.msra.mxu0 %v12440_v6  ;;  %v17154_v8 = vld [vmem:[%s18540_s13 + $0xa8c] sm:$0xf]  ;;  %v13032_v6 = vor.u32 %v17254_v50, %v13029_v10  ;;  %v12901_v62 = vld [vmem:[%s18540_s13 + $0xcb8] sm:$0xf0] }
 0x4a0   : > { %10406 = vmatpush.bf16.msra.mxu1 %v12664_v46  ;;  %v17190_v0 = vld [vmem:[%s18540_s13 + $0xbac] sm:$0xf]  ;;  %v13013_v32 = vld [vmem:[%s18540_s13 + $0xd98] sm:$0xf0]  ;;  %v12632_v61 = vor.u32 %v17154_v8, %v12629_v51 }
 0x4a1   : > { %10386 = vmatpush.bf16.msra.mxu2 %v12312_v34  ;;  %v17222_v44 = vld [vmem:[%s18540_s13 + $0xcac] sm:$0xf]  ;;  %v12997_v24 = vld [vmem:[%s18540_s13 + $0xd78] sm:$0xf0] }
 0x4a2   : > { %10373 = vmatpush.bf16.msra.mxu3 %v12184_v1  ;;  %v17250_v40 = vld [vmem:[%s18540_s13 + $0xd8c] sm:$0xf]  ;;  %10400 = vmatmul.bf16.vlgmr.msra.gmra.mxu0 %v18806_v30  ;;  %v12904_v60 = vor.u32 %v17222_v44, %v12901_v62  ;;  %v12757_v1 = vld [vmem:[%s18540_s13 + $0xb98] sm:$0xf0] }
 0x4a3   : > { %10444 = vmatpush.bf16.msrb.mxu0 %v13064_v45  ;;  %v21169_v45 = vpop.f32.mrf.mxu0  ;;  %v17150_v14 = vld [vmem:[%s18540_s13 + $0xa6c] sm:$0xf]  ;;  %v13016_v46 = vor.u32 %v17250_v40, %v13013_v32  ;;  %v12597_v9 = vld [vmem:[%s18540_s13 + $0xa58] sm:$0xf0] }
 0x4a4   : > { %10387 = vmatmul.bf16.vlgmr.msra.gmra.mxu2 %v18799_v25  ;;  %10407 = vmatpush.bf16.msra.mxu1 %v12648_v38  ;;  %v12613_v25 = vld [vmem:[%s18540_s13 + $0xa78] sm:$0xf0]  ;;  %v17186_v30 = vld [vmem:[%s18540_s13 + $0xb8c] sm:$0xf] }
 0x4a5   : > { %10431 = vmatpush.bf16.msrb.mxu2 %v12936_v7  ;;  %10374 = vmatmul.bf16.vlgmr.msra.gmra.mxu3 %v18726_v42  ;;  %v12776_v42 = vor.u32 %v17190_v0, %v12773_v19  ;;  %v17218_v34 = vld [vmem:[%s18540_s13 + $0xc8c] sm:$0xf]  ;;  %v12616_v7 = vor.u32 %v17150_v14, %v12613_v25  ;;  %v12760_v43 = vor.u32 %v17186_v30, %v12757_v1  ;;  %v12741_v49 = vld [vmem:[%s18540_s13 + $0xb78] sm:$0xf0] }
 0x4a6   : > { %10418 = vmatpush.bf16.msrb.mxu3 %v12808_v2  ;;  %v12885_v2 = vld [vmem:[%s18540_s13 + $0xc98] sm:$0xf0]  ;;  %v17246_v47 = vld [vmem:[%s18540_s13 + $0xd6c] sm:$0xf] }
 0x4a7   : > { %10445 = vmatpush.bf16.msrb.mxu0 %v13048_v41  ;;  %v17146_v3 = vld [vmem:[%s18540_s13 + $0xa4c] sm:$0xf]  ;;  %v12888_v54 = vor.u32 %v17218_v34, %v12885_v2  ;;  %v13000_v10 = vor.u32 %v17246_v47, %v12997_v24  ;;  %v12869_v38 = vld [vmem:[%s18540_s13 + $0xc78] sm:$0xf0]  ;;  %v10180_v30 = vpop.f32.mrf.mxu2 }
 0x4a8   : > { %10408 = vmatpush.bf16.msra.mxu1 %v12632_v61  ;;  %v17182_v41 = vld [vmem:[%s18540_s13 + $0xb6c] sm:$0xf]  ;;  %v12981_v8 = vld [vmem:[%s18540_s13 + $0xd58] sm:$0xf0] }
 0x4a9   : > { %10432 = vmatpush.bf16.msrb.mxu2 %v12920_v18  ;;  %v17214_v50 = vld [vmem:[%s18540_s13 + $0xc6c] sm:$0xf]  ;;  %v12600_v18 = vor.u32 %v17146_v3, %v12597_v9  ;;  %v12744_v0 = vor.u32 %v17182_v41, %v12741_v49  ;;  %v12581_v44 = vld [vmem:[%s18540_s13 + $0xa38] sm:$0xf0] }
 0x4aa   : > { %10419 = vmatpush.bf16.msrb.mxu3 %v12792_v15  ;;  %v17242_v15 = vld [vmem:[%s18540_s13 + $0xd4c] sm:$0xf]  ;;  %v12872_v62 = vor.u32 %v17214_v50, %v12869_v38  ;;  %v12725_v32 = vld [vmem:[%s18540_s13 + $0xb58] sm:$0xf0] }
 0x4ab   : > { %10446 = vmatpush.bf16.msrb.mxu0 %v13032_v6  ;;  %v10169_v51 = vpop.f32.mrf.mxu0  ;;  %v17142_v19 = vld [vmem:[%s18540_s13 + $0xa2c] sm:$0xf]  ;;  %v10143_v6 = vpop.f32.mrf.mxu1  ;;  %v12984_v61 = vor.u32 %v17242_v15, %v12981_v8  ;;  %v12965_v25 = vld [vmem:[%s18540_s13 + $0xd38] sm:$0xf0] }
 0x4ac   : > { %10409 = vmatpush.bf16.msra.mxu1 %v12616_v7  ;;  %v17178_v40 = vld [vmem:[%s18540_s13 + $0xb4c] sm:$0xf]  ;;  %v12584_v34 = vor.u32 %v17142_v19, %v12581_v44  ;;  %v12565_v47 = vld [vmem:[%s18540_s13 + $0xa18] sm:$0xf0] }
 0x4ad   : > { %10433 = vmatpush.bf16.msrb.mxu2 %v12904_v60  ;;  %v17210_v53 = vld [vmem:[%s18540_s13 + $0xc4c] sm:$0xf]  ;;  %v10154_v60 = vpop.f32.mrf.mxu3  ;;  %v12837_v41 = vld [vmem:[%s18540_s13 + $0xc38] sm:$0xf0] }
 0x4ae   : > { %10420 = vmatpush.bf16.msrb.mxu3 %v12776_v42  ;;  %v12853_v42 = vld [vmem:[%s18540_s13 + $0xc58] sm:$0xf0]  ;;  %v17238_v14 = vld [vmem:[%s18540_s13 + $0xd2c] sm:$0xf]  ;;  %v10155_v1 = vadd.f32 %v10154_v60, %v10142_v20 }
 0x4af   : > { %10447 = vmatpush.bf16.msrb.mxu0 %v13016_v46  ;;  %v12728_v46 = vor.u32 %v17178_v40, %v12725_v32  ;;  %v17138_v2 = vld [vmem:[%s18540_s13 + $0xa0c] sm:$0xf]  ;;  %v12856_v24 = vor.u32 %v17210_v53, %v12853_v42  ;;  %v12968_v9 = vor.u32 %v17238_v14, %v12965_v25  ;;  %v13189_v49 = vld [vmem:[%s18540_s13 + $0xef8] sm:$0xf0] }
 0x4b0   : > { %10410 = vmatpush.bf16.msra.mxu1 %v12600_v18  ;;  %v17174_v7 = vld [vmem:[%s18540_s13 + $0xb2c] sm:$0xf]  ;;  %v12568_v15 = vor.u32 %v17138_v2, %v12565_v47  ;;  %v13573_v18 = vld [vmem:[%s18540_s13 + $0x11f8] sm:$0xf0] }
 0x4b1   : > { %10434 = vmatpush.bf16.msrb.mxu2 %v12888_v54  ;;  %v17206_v3 = vld [vmem:[%s18540_s13 + $0xc2c] sm:$0xf]  ;;  %v10168_v54 = vadd.f32 %v21169_v45, %v10155_v1  ;;  %v12693_v44 = vld [vmem:[%s18540_s13 + $0xb18] sm:$0xf0]  ;;  %v10182_v1 = vpop.f32.mrf.mxu2 }
 0x4b2   : > { %10421 = vmatpush.bf16.msrb.mxu3 %v12760_v43  ;;  %v12709_v43 = vld [vmem:[%s18540_s13 + $0xb38] sm:$0xf0]  ;;  %v17294_v20 = vld [vmem:[%s18540_s13 + $0xeec] sm:$0xf] }
 0x4b3   : > { %10448 = vmatpush.bf16.msrb.mxu0 %v13000_v10  ;;  %v17234_v50 = vld [vmem:[%s18540_s13 + $0xd0c] sm:$0xf]  ;;  %v12949_v10 = vld [vmem:[%s18540_s13 + $0xd18] sm:$0xf0]  ;;  %v21207_v38 = vadd.f32 %v10180_v30, %v10168_v54  ;;  %v12712_v8 = vor.u32 %v17174_v7, %v12709_v43  ;;  %v13192_v19 = vor.u32 %v17294_v20, %v13189_v49 }
 0x4b4   : > { %10411 = vmatpush.bf16.msra.mxu1 %v12584_v34  ;;  %v17170_v45 = vld [vmem:[%s18540_s13 + $0xb0c] sm:$0xf]  ;;  %v13173_v32 = vld [vmem:[%s18540_s13 + $0xed8] sm:$0xf0] }
 0x4b5   : > { %10435 = vmatpush.bf16.msrb.mxu2 %v12872_v62  ;;  %v17390_v51 = vld [vmem:[%s18540_s13 + $0x11ec] sm:$0xf]  ;;  %v12821_v62 = vld [vmem:[%s18540_s13 + $0xc18] sm:$0xf0]  ;;  %v10156_v30 = vpop.f32.mrf.mxu3  ;;  %v12696_v34 = vor.u32 %v17170_v45, %v12693_v44 }
 0x4b6   : > { %10422 = vmatpush.bf16.msrb.mxu3 %v12744_v0  ;;  %v12840_v0 = vor.u32 %v17206_v3, %v12837_v41  ;;  %v17202_v6 = vld [vmem:[%s18540_s13 + $0xc0c] sm:$0xf]  ;;  %v13317_v42 = vld [vmem:[%s18540_s13 + $0xff8] sm:$0xf0]  ;;  %v13576_v60 = vor.u32 %v17390_v51, %v13573_v18 }
 0x4b7   : > { %10449 = vmatpush.bf16.msrb.mxu0 %v12984_v61  ;;  %v17290_v40 = vld [vmem:[%s18540_s13 + $0xecc] sm:$0xf]  ;;  %v12952_v61 = vor.u32 %v17234_v50, %v12949_v10  ;;  %v13445_v25 = vld [vmem:[%s18540_s13 + $0x10f8] sm:$0xf0]  ;;  %v12824_v47 = vor.u32 %v17202_v6, %v12821_v62 }
 0x4b8   : > { %v17326_v53 = vld [vmem:[%s18540_s13 + $0xfec] sm:$0xf]  ;;  %10412 = vmatpush.bf16.msra.mxu1 %v12568_v15  ;;  %v13557_v2 = vld [vmem:[%s18540_s13 + $0x11d8] sm:$0xf0] }
 0x4b9   : > { %10436 = vmatpush.bf16.msrb.mxu2 %v12856_v24  ;;  %v17358_v14 = vld [vmem:[%s18540_s13 + $0x10ec] sm:$0xf]  ;;  %v13176_v24 = vor.u32 %v17290_v40, %v13173_v32  ;;  %v13320_v7 = vor.u32 %v17326_v53, %v13317_v42  ;;  %v13301_v41 = vld [vmem:[%s18540_s13 + $0xfd8] sm:$0xf0] }
 0x4ba   : > { %10423 = vmatpush.bf16.msrb.mxu3 %v12728_v46  ;;  %v17386_v46 = vld [vmem:[%s18540_s13 + $0x11cc] sm:$0xf]  ;;  %v13448_v43 = vor.u32 %v17358_v14, %v13445_v25  ;;  %v13429_v49 = vld [vmem:[%s18540_s13 + $0x10d8] sm:$0xf0]  ;;  %v10219_v14 = vpop.f32.mrf.mxu0 }
 0x4bb   : > { %10450 = vmatpush.bf16.msrb.mxu0 %v12968_v9  ;;  %v17286_v3 = vld [vmem:[%s18540_s13 + $0xeac] sm:$0xf]  ;;  %v13157_v9 = vld [vmem:[%s18540_s13 + $0xeb8] sm:$0xf0]  ;;  %10413 = vmatmul.bf16.vlgmr.msra.gmra.mxu1 %v18804_v29  ;;  %v13560_v50 = vor.u32 %v17386_v46, %v13557_v2 }
 0x4bc   : > { %10457 = vmatpush.bf16.msrb.mxu1 %v13192_v19  ;;  %v17322_v54 = vld [vmem:[%s18540_s13 + $0xfcc] sm:$0xf]  ;;  %v13541_v15 = vld [vmem:[%s18540_s13 + $0x11b8] sm:$0xf0] }
 0x4bd   : > { %10437 = vmatpush.bf16.msrb.mxu2 %v12840_v0  ;;  %v17354_v20 = vld [vmem:[%s18540_s13 + $0x10cc] sm:$0xf]  ;;  %v13304_v29 = vor.u32 %v17322_v54, %v13301_v41  ;;  %v13141_v18 = vld [vmem:[%s18540_s13 + $0xe98] sm:$0xf0] }
 0x4be   : > { %10424 = vmatpush.bf16.msrb.mxu3 %v12712_v8  ;;  %v17382_v10 = vld [vmem:[%s18540_s13 + $0x11ac] sm:$0xf]  ;;  %v13160_v8 = vor.u32 %v17286_v3, %v13157_v9  ;;  %v13432_v45 = vor.u32 %v17354_v20, %v13429_v49  ;;  %v13285_v19 = vld [vmem:[%s18540_s13 + $0xfb8] sm:$0xf0] }
 0x4bf   : > { %10451 = vmatpush.bf16.msrb.mxu0 %v12952_v61  ;;  %v17282_v51 = vld [vmem:[%s18540_s13 + $0xe8c] sm:$0xf]  ;;  %v13413_v6 = vld [vmem:[%s18540_s13 + $0x10b8] sm:$0xf0]  ;;  %v13544_v62 = vor.u32 %v17382_v10, %v13541_v15 }
 0x4c0   : > { %10458 = vmatpush.bf16.msrb.mxu1 %v13176_v24  ;;  %v17318_v0 = vld [vmem:[%s18540_s13 + $0xfac] sm:$0xf]  ;;  %v13525_v32 = vld [vmem:[%s18540_s13 + $0x1198] sm:$0xf0]  ;;  %v13144_v53 = vor.u32 %v17282_v51, %v13141_v18 }
 0x4c1   : > { %10438 = vmatpush.bf16.msrb.mxu2 %v12824_v47  ;;  %v17350_v44 = vld [vmem:[%s18540_s13 + $0x10ac] sm:$0xf]  ;;  %v13288_v61 = vor.u32 %v17318_v0, %v13285_v19  ;;  %v13269_v30 = vld [vmem:[%s18540_s13 + $0xf98] sm:$0xf0] }
 0x4c2   : > { %10425 = vmatpush.bf16.msrb.mxu3 %v12696_v34  ;;  %10452 = vmatmul.bf16.vlgmr.msrb.gmra.mxu0 %v18888_v31  ;;  %v17378_v40 = vld [vmem:[%s18540_s13 + $0x118c] sm:$0xf]  ;;  %v13416_v42 = vor.u32 %v17350_v44, %v13413_v6  ;;  %v13397_v34 = vld [vmem:[%s18540_s13 + $0x1098] sm:$0xf0] }
 0x4c3   : > { %10496 = vmatpush.bf16.msra.mxu0 %v13576_v60  ;;  %v17278_v25 = vld [vmem:[%s18540_s13 + $0xe6c] sm:$0xf]  ;;  %v13125_v60 = vld [vmem:[%s18540_s13 + $0xe78] sm:$0xf0]  ;;  %v13528_v46 = vor.u32 %v17378_v40, %v13525_v32 }
 0x4c4   : > { %10439 = vmatmul.bf16.vlgmr.msrb.gmra.mxu2 %v18881_v23  ;;  %10459 = vmatpush.bf16.msrb.mxu1 %v13160_v8  ;;  %v17314_v23 = vld [vmem:[%s18540_s13 + $0xf8c] sm:$0xf]  ;;  %v13509_v47 = vld [vmem:[%s18540_s13 + $0x1178] sm:$0xf0]  ;;  %v13128_v24 = vor.u32 %v17278_v25, %v13125_v60 }
 0x4c5   : > { %10483 = vmatpush.bf16.msra.mxu2 %v13448_v43  ;;  %10426 = vmatmul.bf16.vlgmr.msrb.gmra.mxu3 %v18810_v33  ;;  %v10193_v33 = vpop.f32.mrf.mxu1  ;;  %v17346_v1 = vld [vmem:[%s18540_s13 + $0x108c] sm:$0xf]  ;;  %v13109_v3 = vld [vmem:[%s18540_s13 + $0xe58] sm:$0xf0] }
 0x4c6   : > { %10470 = vmatpush.bf16.msra.mxu3 %v13320_v7  ;;  %v10194_v31 = vadd.f32 %v10193_v33, %v21207_v38  ;;  %v17374_v2 = vld [vmem:[%s18540_s13 + $0x116c] sm:$0xf]  ;;  %v13272_v7 = vor.u32 %v17314_v23, %v13269_v30  ;;  %v13400_v43 = vor.u32 %v17346_v1, %v13397_v34  ;;  %v13253_v54 = vld [vmem:[%s18540_s13 + $0xf78] sm:$0xf0] }
 0x4c7   : > { %10497 = vmatpush.bf16.msra.mxu0 %v13560_v50  ;;  %v17274_v38 = vld [vmem:[%s18540_s13 + $0xe4c] sm:$0xf]  ;;  %v13381_v20 = vld [vmem:[%s18540_s13 + $0x1078] sm:$0xf0]  ;;  %v13512_v49 = vor.u32 %v17374_v2, %v13509_v47  ;;  %v10232_v25 = vpop.f32.mrf.mxu2 }
 0x4c8   : > { %10460 = vmatpush.bf16.msrb.mxu1 %v13144_v53  ;;  %v17310_v9 = vld [vmem:[%s18540_s13 + $0xf6c] sm:$0xf]  ;;  %v13493_v10 = vld [vmem:[%s18540_s13 + $0x1158] sm:$0xf0]  ;;  %v13112_v15 = vor.u32 %v17274_v38, %v13109_v3  ;;  %v10206_v32 = vpop.f32.mrf.mxu3 }
 0x4c9   : > { %10484 = vmatpush.bf16.msra.mxu2 %v13432_v45  ;;  %v17342_v41 = vld [vmem:[%s18540_s13 + $0x106c] sm:$0xf]  ;;  %v13256_v8 = vor.u32 %v17310_v9, %v13253_v54  ;;  %v10221_v45 = vpop.f32.mrf.mxu0  ;;  %v13093_v18 = vld [vmem:[%s18540_s13 + $0xe38] sm:$0xf0] }
 0x4ca   : > { %10471 = vmatpush.bf16.msra.mxu3 %v13304_v29  ;;  %v17370_v50 = vld [vmem:[%s18540_s13 + $0x114c] sm:$0xf]  ;;  %v13384_v29 = vor.u32 %v17342_v41, %v13381_v20  ;;  %v13237_v44 = vld [vmem:[%s18540_s13 + $0xf58] sm:$0xf0] }
 0x4cb   : > { %10498 = vmatpush.bf16.msra.mxu0 %v13544_v62  ;;  %v17270_v51 = vld [vmem:[%s18540_s13 + $0xe2c] sm:$0xf]  ;;  %v13365_v62 = vld [vmem:[%s18540_s13 + $0x1058] sm:$0xf0]  ;;  %v13496_v40 = vor.u32 %v17370_v50, %v13493_v10 }
 0x4cc   : > { %10461 = vmatpush.bf16.msrb.mxu1 %v13128_v24  ;;  %v17306_v0 = vld [vmem:[%s18540_s13 + $0xf4c] sm:$0xf]  ;;  %v13477_v33 = vld [vmem:[%s18540_s13 + $0x1138] sm:$0xf0] }
 0x4cd   : > { %10485 = vmatpush.bf16.msra.mxu2 %v13416_v42  ;;  %v10195_v19 = vpop.f32.mrf.mxu1  ;;  %v17338_v6 = vld [vmem:[%s18540_s13 + $0x104c] sm:$0xf]  ;;  %v13096_v42 = vor.u32 %v17270_v51, %v13093_v18  ;;  %v13240_v23 = vor.u32 %v17306_v0, %v13237_v44  ;;  %v13077_v1 = vld [vmem:[%s18540_s13 + $0xe18] sm:$0xf0] }
 0x4ce   : > { %10472 = vmatpush.bf16.msra.mxu3 %v13288_v61  ;;  %v17366_v53 = vld [vmem:[%s18540_s13 + $0x112c] sm:$0xf]  ;;  %v10207_v61 = vadd.f32 %v10206_v32, %v10194_v31  ;;  %v13368_v30 = vor.u32 %v17338_v6, %v13365_v62  ;;  %v13349_v31 = vld [vmem:[%s18540_s13 + $0x1038] sm:$0xf0] }
 0x4cf   : > { %10499 = vmatpush.bf16.msra.mxu0 %v13528_v46  ;;  %v17266_v60 = vld [vmem:[%s18540_s13 + $0xe0c] sm:$0xf]  ;;  %v13221_v46 = vld [vmem:[%s18540_s13 + $0xf38] sm:$0xf0] }
 0x4d0   : > { %10462 = vmatpush.bf16.msrb.mxu1 %v13112_v15  ;;  %v17302_v34 = vld [vmem:[%s18540_s13 + $0xf2c] sm:$0xf]  ;;  %v10220_v2 = vadd.f32 %v10219_v14, %v10207_v61  ;;  %v13461_v3 = vld [vmem:[%s18540_s13 + $0x1118] sm:$0xf0]  ;;  %v13080_v54 = vor.u32 %v17266_v60, %v13077_v1  ;;  %v10234_v61 = vpop.f32.mrf.mxu2 }
 0x4d1   : > { %10486 = vmatpush.bf16.msra.mxu2 %v13400_v43  ;;  %v17334_v47 = vld [vmem:[%s18540_s13 + $0x102c] sm:$0xf]  ;;  %v13701_v43 = vld [vmem:[%s18540_s13 + $0x12f8] sm:$0xf0]  ;;  %v13224_v20 = vor.u32 %v17302_v34, %v13221_v46 }
 0x4d2   : > { %10473 = vmatpush.bf16.msra.mxu3 %v13272_v7  ;;  %v17422_v24 = vld [vmem:[%s18540_s13 + $0x12ec] sm:$0xf]  ;;  %v13480_v7 = vor.u32 %v17366_v53, %v13477_v33  ;;  %v21278_v9 = vadd.f32 %v10232_v25, %v10220_v2  ;;  %v14085_v14 = vld [vmem:[%s18540_s13 + $0x15f8] sm:$0xf0] }
 0x4d3   : > { %10500 = vmatpush.bf16.msra.mxu0 %v13512_v49  ;;  %v17362_v38 = vld [vmem:[%s18540_s13 + $0x110c] sm:$0xf]  ;;  %v13352_v49 = vor.u32 %v17334_v47, %v13349_v31  ;;  %v13205_v10 = vld [vmem:[%s18540_s13 + $0xf18] sm:$0xf0] }
 0x4d4   : > { %10463 = vmatpush.bf16.msrb.mxu1 %v13096_v42  ;;  %v17518_v41 = vld [vmem:[%s18540_s13 + $0x15ec] sm:$0xf]  ;;  %v13333_v45 = vld [vmem:[%s18540_s13 + $0x1018] sm:$0xf0]  ;;  %v13464_v0 = vor.u32 %v17362_v38, %v13461_v3 }
 0x4d5   : > { %10487 = vmatpush.bf16.msra.mxu2 %v13384_v29  ;;  %v17298_v50 = vld [vmem:[%s18540_s13 + $0xf0c] sm:$0xf]  ;;  %v13704_v29 = vor.u32 %v17422_v24, %v13701_v43  ;;  %v13685_v18 = vld [vmem:[%s18540_s13 + $0x12d8] sm:$0xf0]  ;;  %v14088_v62 = vor.u32 %v17518_v41, %v14085_v14 }
 0x4d6   : > { %10474 = vmatpush.bf16.msra.mxu3 %v13256_v8  ;;  %v17330_v15 = vld [vmem:[%s18540_s13 + $0x100c] sm:$0xf]  ;;  %v21285_v8 = vpop.f32.mrf.mxu0  ;;  %v13829_v44 = vld [vmem:[%s18540_s13 + $0x13f8] sm:$0xf0]  ;;  %v13208_v42 = vor.u32 %v17298_v50, %v13205_v10 }
 0x4d7   : > { %10501 = vmatpush.bf16.msra.mxu0 %v13496_v40  ;;  %v17418_v51 = vld [vmem:[%s18540_s13 + $0x12cc] sm:$0xf]  ;;  %v10208_v40 = vpop.f32.mrf.mxu3  ;;  %v13957_v32 = vld [vmem:[%s18540_s13 + $0x14f8] sm:$0xf0]  ;;  %v13336_v25 = vor.u32 %v17330_v15, %v13333_v45 }
 0x4d8   : > { %v17454_v19 = vld [vmem:[%s18540_s13 + $0x13ec] sm:$0xf]  ;;  %10464 = vmatpush.bf16.msrb.mxu1 %v13080_v54  ;;  %v14069_v33 = vld [vmem:[%s18540_s13 + $0x15d8] sm:$0xf0]  ;;  %v13688_v60 = vor.u32 %v17418_v51, %v13685_v18  ;;  %v10245_v18 = vpop.f32.mrf.mxu1 }
 0x4d9   : > { %10488 = vmatpush.bf16.msra.mxu2 %v13368_v30  ;;  %v17486_v6 = vld [vmem:[%s18540_s13 + $0x14ec] sm:$0xf]  ;;  %v13669_v1 = vld [vmem:[%s18540_s13 + $0x12b8] sm:$0xf0] }
 0x4da   : > { %10475 = vmatpush.bf16.msra.mxu3 %v13240_v23  ;;  %v17514_v53 = vld [vmem:[%s18540_s13 + $0x15cc] sm:$0xf]  ;;  %v13832_v23 = vor.u32 %v17454_v19, %v13829_v44  ;;  %v13960_v34 = vor.u32 %v17486_v6, %v13957_v32  ;;  %v13813_v2 = vld [vmem:[%s18540_s13 + $0x13d8] sm:$0xf0] }
 0x4db   : > { %10502 = vmatpush.bf16.msra.mxu0 %v13480_v7  ;;  %v17414_v30 = vld [vmem:[%s18540_s13 + $0x12ac] sm:$0xf]  ;;  %10465 = vmatmul.bf16.vlgmr.msrb.gmra.mxu1 %v18886_v28  ;;  %v14072_v31 = vor.u32 %v17514_v53, %v14069_v33  ;;  %v13941_v24 = vld [vmem:[%s18540_s13 + $0x14d8] sm:$0xf0] }
 0x4dc   : > { %10509 = vmatpush.bf16.msra.mxu1 %v13704_v29  ;;  %v17450_v46 = vld [vmem:[%s18540_s13 + $0x13cc] sm:$0xf]  ;;  %v14053_v43 = vld [vmem:[%s18540_s13 + $0x15b8] sm:$0xf0]  ;;  %v13672_v28 = vor.u32 %v17414_v30, %v13669_v1 }
 0x4dd   : > { %10489 = vmatpush.bf16.msra.mxu2 %v13352_v49  ;;  %v17482_v47 = vld [vmem:[%s18540_s13 + $0x14cc] sm:$0xf]  ;;  %v13816_v3 = vor.u32 %v17450_v46, %v13813_v2  ;;  %v13653_v41 = vld [vmem:[%s18540_s13 + $0x1298] sm:$0xf0] }
 0x4de   : > { %10476 = vmatpush.bf16.msra.mxu3 %v13224_v20  ;;  %v17510_v7 = vld [vmem:[%s18540_s13 + $0x15ac] sm:$0xf]  ;;  %v10273_v38 = vpop.f32.mrf.mxu0  ;;  %v13944_v14 = vor.u32 %v17482_v47, %v13941_v24  ;;  %v13797_v49 = vld [vmem:[%s18540_s13 + $0x13b8] sm:$0xf0] }
 0x4df   : > { %10503 = vmatpush.bf16.msra.mxu0 %v13464_v0  ;;  %v17410_v54 = vld [vmem:[%s18540_s13 + $0x128c] sm:$0xf]  ;;  %v14056_v10 = vor.u32 %v17510_v7, %v14053_v43  ;;  %v13925_v15 = vld [vmem:[%s18540_s13 + $0x14b8] sm:$0xf0] }
 0x4e0   : > { %10510 = vmatpush.bf16.msra.mxu1 %v13688_v60  ;;  %v17446_v20 = vld [vmem:[%s18540_s13 + $0x13ac] sm:$0xf]  ;;  %v14037_v45 = vld [vmem:[%s18540_s13 + $0x1598] sm:$0xf0]  ;;  %v13656_v0 = vor.u32 %v17410_v54, %v13653_v41  ;;  %v10247_v41 = vpop.f32.mrf.mxu1 }
 0x4e1   : > { %10490 = vmatpush.bf16.msra.mxu2 %v13336_v25  ;;  %v17478_v50 = vld [vmem:[%s18540_s13 + $0x14ac] sm:$0xf]  ;;  %v21840_v51 = vld [vmem:[#allocation11_spill] sm:$0xff]  ;;  %v13800_v19 = vor.u32 %v17446_v20, %v13797_v49 }
 0x4e2   : > { %10477 = vmatpush.bf16.msra.mxu3 %v13208_v42  ;;  %v17506_v29 = vld [vmem:[%s18540_s13 + $0x158c] sm:$0xf]  ;;  %10504 = vmatmul.bf16.vlgmr.msra.gmra.mxu0 %v21840_v51  ;;  %v13928_v6 = vor.u32 %v17478_v50, %v13925_v15  ;;  %v13781_v40 = vld [vmem:[%s18540_s13 + $0x1398] sm:$0xf0] }
 0x4e3   : > { %10548 = vmatpush.bf16.msrb.mxu0 %v14088_v62  ;;  %v17406_v44 = vld [vmem:[%s18540_s13 + $0x126c] sm:$0xf]  ;;  %v14040_v53 = vor.u32 %v17506_v29, %v14037_v45  ;;  %v13909_v33 = vld [vmem:[%s18540_s13 + $0x1498] sm:$0xf0] }
 0x4e4   : > { %10491 = vmatmul.bf16.vlgmr.msra.gmra.mxu2 %v18963_v37  ;;  %10511 = vmatpush.bf16.msra.mxu1 %v13672_v28  ;;  %v10246_v37 = vadd.f32 %v10245_v18, %v21278_v9  ;;  %v17442_v62 = vld [vmem:[%s18540_s13 + $0x138c] sm:$0xf]  ;;  %v14021_v42 = vld [vmem:[%s18540_s13 + $0x1578] sm:$0xf0] }
 0x4e5   : > { %10535 = vmatpush.bf16.msrb.mxu2 %v13960_v34  ;;  %10478 = vmatmul.bf16.vlgmr.msra.gmra.mxu3 %v18892_v35  ;;  %v13637_v35 = vld [vmem:[%s18540_s13 + $0x1278] sm:$0xf0]  ;;  %v17474_v32 = vld [vmem:[%s18540_s13 + $0x148c] sm:$0xf]  ;;  %v13784_v60 = vor.u32 %v17442_v62, %v13781_v40 }
 0x4e6   : > { %10522 = vmatpush.bf16.msrb.mxu3 %v13832_v23  ;;  %v17502_v61 = vld [vmem:[%s18540_s13 + $0x156c] sm:$0xf]  ;;  %v13640_v25 = vor.u32 %v17406_v44, %v13637_v35  ;;  %v13621_v23 = vld [vmem:[%s18540_s13 + $0x1258] sm:$0xf0]  ;;  %v10297_v30 = vpop.f32.mrf.mxu0  ;;  %v13912_v1 = vor.u32 %v17474_v32, %v13909_v33 }
 0x4e7   : > { %10549 = vmatpush.bf16.msrb.mxu0 %v14072_v31  ;;  %v17402_v9 = vld [vmem:[%s18540_s13 + $0x124c] sm:$0xf]  ;;  %v13765_v46 = vld [vmem:[%s18540_s13 + $0x1378] sm:$0xf0]  ;;  %v14024_v47 = vor.u32 %v17502_v61, %v14021_v42  ;;  %v10284_v62 = vpop.f32.mrf.mxu2 }
 0x4e8   : > { %10512 = vmatpush.bf16.msra.mxu1 %v13656_v0  ;;  %v17438_v34 = vld [vmem:[%s18540_s13 + $0x136c] sm:$0xf]  ;;  %v13893_v31 = vld [vmem:[%s18540_s13 + $0x1478] sm:$0xf0]  ;;  %v13624_v43 = vor.u32 %v17402_v9, %v13621_v23  ;;  %v10258_v18 = vpop.f32.mrf.mxu3 }
 0x4e9   : > { %10536 = vmatpush.bf16.msrb.mxu2 %v13944_v14  ;;  %v17470_v2 = vld [vmem:[%s18540_s13 + $0x146c] sm:$0xf]  ;;  %v14005_v7 = vld [vmem:[%s18540_s13 + $0x1558] sm:$0xf0]  ;;  %v13768_v38 = vor.u32 %v17438_v34, %v13765_v46  ;;  %v10259_v0 = vadd.f32 %v10258_v18, %v10246_v37 }
 0x4ea   : > { %10523 = vmatpush.bf16.msrb.mxu3 %v13816_v3  ;;  %v17498_v24 = vld [vmem:[%s18540_s13 + $0x154c] sm:$0xf]  ;;  %v13605_v3 = vld [vmem:[%s18540_s13 + $0x1238] sm:$0xf0]  ;;  %v13896_v14 = vor.u32 %v17470_v2, %v13893_v31 }
 0x4eb   : > { %10550 = vmatpush.bf16.msrb.mxu0 %v14056_v10  ;;  %v17398_v28 = vld [vmem:[%s18540_s13 + $0x122c] sm:$0xf]  ;;  %v13749_v20 = vld [vmem:[%s18540_s13 + $0x1358] sm:$0xf0]  ;;  %v14008_v50 = vor.u32 %v17498_v24, %v14005_v7  ;;  %v18259_v10 = vld [vmem:[%s18548_s22] sm:$0xf] }
 0x4ec   : > { %10513 = vmatpush.bf16.msra.mxu1 %v13640_v25  ;;  %v17434_v54 = vld [vmem:[%s18540_s13 + $0x134c] sm:$0xf]  ;;  %v1679_v15 = vperm.slane %v18259_v10, 3  ;;  %v13877_v29 = vld [vmem:[%s18540_s13 + $0x1458] sm:$0xf0]  ;;  %v21348_v25 = vadd.f32 %v21285_v8, %v10259_v0  ;;  %s11271_s22 = sshll.u32 %s18536_s7, 8 }
 0x4ed   : > { %10537 = vmatpush.bf16.msrb.mxu2 %v13928_v6  ;;  %v17466_v49 = vld [vmem:[%s18540_s13 + $0x144c] sm:$0xf]  ;;  %v13989_v51 = vld [vmem:[%s18540_s13 + $0x1538] sm:$0xf0]  ;;  %v13752_v44 = vor.u32 %v17434_v54, %v13749_v20  ;;  %s21717_s7 = scalar_lea.vmem [#allocation6], %s11271_s22 }
 0x4ee   : > { %10524 = vmatpush.bf16.msrb.mxu3 %v13800_v19  ;;  %v17494_v45 = vld [vmem:[%s18540_s13 + $0x152c] sm:$0xf]  ;;  %v13608_v19 = vor.u32 %v17398_v28, %v13605_v3  ;;  %v13589_v6 = vld [vmem:[%s18540_s13 + $0x1218] sm:$0xf0]  ;;  %v10299_v40 = vpop.f32.mrf.mxu0  ;;  %v13880_v32 = vor.u32 %v17466_v49, %v13877_v29  ;;  %v10285_v42 = vadd.f32 %v10284_v62, %v1679_v15 }
 0x4ef   : > { %10551 = vmatpush.bf16.msrb.mxu0 %v14040_v53  ;;  %v17394_v35 = vld [vmem:[%s18540_s13 + $0x120c] sm:$0xf]  ;;  %v13733_v33 = vld [vmem:[%s18540_s13 + $0x1338] sm:$0xf0]  ;;  %v13992_v37 = vor.u32 %v17494_v45, %v13989_v51  ;;  %v10286_v18 = vpop.f32.mrf.mxu2 }
 0x4f0   : > { %10514 = vmatpush.bf16.msra.mxu1 %v13624_v43  ;;  %v17430_v53 = vld [vmem:[%s18540_s13 + $0x132c] sm:$0xf]  ;;  %v14213_v23 = vld [vmem:[%s18540_s13 + $0x16f8] sm:$0xf0]  ;;  %v21355_v46 = vadd.f32 %v10297_v30, %v10285_v42  ;;  %v13592_v2 = vor.u32 %v17394_v35, %v13589_v6  ;;  %v10260_v15 = vpop.f32.mrf.mxu3 }
 0x4f1   : > { %10538 = vmatpush.bf16.msrb.mxu2 %v13912_v1  ;;  %v17462_v61 = vld [vmem:[%s18540_s13 + $0x142c] sm:$0xf]  ;;  %v13973_v34 = vld [vmem:[%s18540_s13 + $0x1518] sm:$0xf0] }
 0x4f2   : > { %10525 = vmatpush.bf16.msrb.mxu3 %v13784_v60  ;;  %v13861_v60 = vld [vmem:[%s18540_s13 + $0x1438] sm:$0xf0]  ;;  %v17550_v9 = vld [vmem:[%s18540_s13 + $0x16ec] sm:$0xf] }
 0x4f3   : > { %10552 = vmatpush.bf16.msrb.mxu0 %v14024_v47  ;;  %v17490_v1 = vld [vmem:[%s18540_s13 + $0x150c] sm:$0xf]  ;;  %v13736_v47 = vor.u32 %v17430_v53, %v13733_v33  ;;  %v14597_v24 = vld [vmem:[%s18540_s13 + $0x19f8] sm:$0xf0]  ;;  %v13864_v7 = vor.u32 %v17462_v61, %v13861_v60  ;;  %v14216_v43 = vor.u32 %v17550_v9, %v14213_v23 }
 0x4f4   : > { %10515 = vmatpush.bf16.msra.mxu1 %v13608_v19  ;;  %v17426_v8 = vld [vmem:[%s18540_s13 + $0x130c] sm:$0xf]  ;;  %v13845_v28 = vld [vmem:[%s18540_s13 + $0x1418] sm:$0xf0] }
 0x4f5   : > { %10539 = vmatpush.bf16.msrb.mxu2 %v13896_v14  ;;  %v17646_v31 = vld [vmem:[%s18540_s13 + $0x19ec] sm:$0xf]  ;;  %v14197_v54 = vld [vmem:[%s18540_s13 + $0x16d8] sm:$0xf0]  ;;  %v13976_v14 = vor.u32 %v17490_v1, %v13973_v34 }
 0x4f6   : > { %10526 = vmatpush.bf16.msrb.mxu3 %v13768_v38  ;;  %v13717_v38 = vld [vmem:[%s18540_s13 + $0x1318] sm:$0xf0]  ;;  %v17458_v30 = vld [vmem:[%s18540_s13 + $0x140c] sm:$0xf]  ;;  %v14600_v10 = vor.u32 %v17646_v31, %v14597_v24 }
 0x4f7   : > { %10553 = vmatpush.bf16.msrb.mxu0 %v14008_v50  ;;  %v17546_v3 = vld [vmem:[%s18540_s13 + $0x16cc] sm:$0xf]  ;;  %v14341_v20 = vld [vmem:[%s18540_s13 + $0x17f8] sm:$0xf0]  ;;  %v13720_v29 = vor.u32 %v17426_v8, %v13717_v38  ;;  %v13848_v0 = vor.u32 %v17458_v30, %v13845_v28  ;;  %v21842_v8 = vld [vmem:[#allocation12_spill] sm:$0xff] }
 0x4f8   : > { %v17582_v41 = vld [vmem:[%s18540_s13 + $0x17ec] sm:$0xf]  ;;  %v14469_v50 = vld [vmem:[%s18540_s13 + $0x18f8] sm:$0xf0]  ;;  %10516 = vmatpush.bf16.msra.mxu1 %v13592_v2  ;;  %v14200_v19 = vor.u32 %v17546_v3, %v14197_v54 }
 0x4f9   : > { %10540 = vmatpush.bf16.msrb.mxu2 %v13880_v32  ;;  %v17614_v49 = vld [vmem:[%s18540_s13 + $0x18ec] sm:$0xf]  ;;  %v14581_v51 = vld [vmem:[%s18540_s13 + $0x19d8] sm:$0xf0]  ;;  %v21841_v32 = vld [vmem:[#allocation10_spill] sm:$0xff] }
 0x4fa   : > { %10527 = vmatpush.bf16.msrb.mxu3 %v13752_v44  ;;  %v17642_v45 = vld [vmem:[%s18540_s13 + $0x19cc] sm:$0xf]  ;;  %v14344_v44 = vor.u32 %v17582_v41, %v14341_v20  ;;  %v14472_v35 = vor.u32 %v17614_v49, %v14469_v50  ;;  %v14181_v62 = vld [vmem:[%s18540_s13 + $0x16b8] sm:$0xf0]  ;;  %v10310_v49 = vpop.f32.mrf.mxu1 }
 0x4fb   : > { %10554 = vmatpush.bf16.msrb.mxu0 %v13992_v37  ;;  %v17542_v6 = vld [vmem:[%s18540_s13 + $0x16ac] sm:$0xf]  ;;  %10517 = vmatmul.bf16.vlgmr.msra.gmra.mxu1 %v21841_v32  ;;  %v14325_v53 = vld [vmem:[%s18540_s13 + $0x17d8] sm:$0xf0]  ;;  %v14584_v37 = vor.u32 %v17642_v45, %v14581_v51  ;;  %v10311_v15 = vadd.f32 %v10310_v49, %v21355_v46 }
 0x4fc   : > { %10561 = vmatpush.bf16.msrb.mxu1 %v14216_v43  ;;  %v17578_v40 = vld [vmem:[%s18540_s13 + $0x17cc] sm:$0xf]  ;;  %v14453_v61 = vld [vmem:[%s18540_s13 + $0x18d8] sm:$0xf0]  ;;  %v14184_v9 = vor.u32 %v17542_v6, %v14181_v62 }
 0x4fd   : > { %10541 = vmatpush.bf16.msrb.mxu2 %v13864_v7  ;;  %v17610_v33 = vld [vmem:[%s18540_s13 + $0x18cc] sm:$0xf]  ;;  %v14565_v60 = vld [vmem:[%s18540_s13 + $0x19b8] sm:$0xf0]  ;;  %v14328_v23 = vor.u32 %v17578_v40, %v14325_v53 }
 0x4fe   : > { %10528 = vmatpush.bf16.msrb.mxu3 %v13736_v47  ;;  %v17638_v42 = vld [vmem:[%s18540_s13 + $0x19ac] sm:$0xf]  ;;  %v14456_v1 = vor.u32 %v17610_v33, %v14453_v61  ;;  %v14165_v2 = vld [vmem:[%s18540_s13 + $0x1698] sm:$0xf0] }
 0x4ff   : > { %10555 = vmatpush.bf16.msrb.mxu0 %v13976_v14  ;;  %v17538_v34 = vld [vmem:[%s18540_s13 + $0x168c] sm:$0xf]  ;;  %v14309_v31 = vld [vmem:[%s18540_s13 + $0x17b8] sm:$0xf0]  ;;  %v14568_v43 = vor.u32 %v17638_v42, %v14565_v60  ;;  %v10349_v32 = vpop.f32.mrf.mxu0 }
 0x500   : > { %10562 = vmatpush.bf16.msrb.mxu1 %v14200_v19  ;;  %v17574_v47 = vld [vmem:[%s18540_s13 + $0x17ac] sm:$0xf]  ;;  %v14437_v7 = vld [vmem:[%s18540_s13 + $0x18b8] sm:$0xf0]  ;;  %v14168_v28 = vor.u32 %v17538_v34, %v14165_v2 }
 0x501   : > { %10542 = vmatpush.bf16.msrb.mxu2 %v13848_v0  ;;  %v17606_v24 = vld [vmem:[%s18540_s13 + $0x18ac] sm:$0xf]  ;;  %v14549_v30 = vld [vmem:[%s18540_s13 + $0x1998] sm:$0xf0]  ;;  %v14312_v3 = vor.u32 %v17574_v47, %v14309_v31 }
 0x502   : > { %10529 = vmatpush.bf16.msrb.mxu3 %v13720_v29  ;;  %10556 = vmatmul.bf16.vlgmr.msrb.gmra.mxu0 %v19055_v17  ;;  %v17634_v38 = vld [vmem:[%s18540_s13 + $0x198c] sm:$0xf]  ;;  %v14440_v54 = vor.u32 %v17606_v24, %v14437_v7  ;;  %v14149_v14 = vld [vmem:[%s18540_s13 + $0x1678] sm:$0xf0] }
 0x503   : > { %10600 = vmatpush.bf16.msra.mxu0 %v14600_v10  ;;  %v17534_v41 = vld [vmem:[%s18540_s13 + $0x166c] sm:$0xf]  ;;  %v14421_v50 = vld [vmem:[%s18540_s13 + $0x1898] sm:$0xf0]  ;;  %v14552_v10 = vor.u32 %v17634_v38, %v14549_v30 }
 0x504   : > { %10543 = vmatmul.bf16.vlgmr.msrb.gmra.mxu2 %v19048_v11  ;;  %10563 = vmatpush.bf16.msrb.mxu1 %v14184_v9  ;;  %v17570_v20 = vld [vmem:[%s18540_s13 + $0x178c] sm:$0xf]  ;;  %v14293_v11 = vld [vmem:[%s18540_s13 + $0x1798] sm:$0xf0]  ;;  %v14152_v51 = vor.u32 %v17534_v41, %v14149_v14 }
 0x505   : > { %10587 = vmatpush.bf16.msra.mxu2 %v14472_v35  ;;  %10530 = vmatmul.bf16.vlgmr.msrb.gmra.mxu3 %v21842_v8  ;;  %v17602_v17 = vld [vmem:[%s18540_s13 + $0x188c] sm:$0xf]  ;;  %v14533_v45 = vld [vmem:[%s18540_s13 + $0x1978] sm:$0xf0]  ;;  %v14296_v18 = vor.u32 %v17570_v20, %v14293_v11 }
 0x506   : > { %10574 = vmatpush.bf16.msra.mxu3 %v14344_v44  ;;  %v17630_v29 = vld [vmem:[%s18540_s13 + $0x196c] sm:$0xf]  ;;  %v14424_v0 = vor.u32 %v17602_v17, %v14421_v50  ;;  %v14133_v44 = vld [vmem:[%s18540_s13 + $0x1658] sm:$0xf0] }
 0x507   : > { %10601 = vmatpush.bf16.msra.mxu0 %v14584_v37  ;;  %v17530_v19 = vld [vmem:[%s18540_s13 + $0x164c] sm:$0xf]  ;;  %v14277_v6 = vld [vmem:[%s18540_s13 + $0x1778] sm:$0xf0]  ;;  %v14536_v40 = vor.u32 %v17630_v29, %v14533_v45 }
 0x508   : > { %10564 = vmatpush.bf16.msrb.mxu1 %v14168_v28  ;;  %v17566_v35 = vld [vmem:[%s18540_s13 + $0x176c] sm:$0xf]  ;;  %v14405_v46 = vld [vmem:[%s18540_s13 + $0x1878] sm:$0xf0]  ;;  %v14136_v61 = vor.u32 %v17530_v19, %v14133_v44  ;;  %v10323_v31 = vpop.f32.mrf.mxu3  ;;  %v10336_v28 = vpop.f32.mrf.mxu2 }
 0x509   : > { %10588 = vmatpush.bf16.msra.mxu2 %v14456_v1  ;;  %v17598_v62 = vld [vmem:[%s18540_s13 + $0x186c] sm:$0xf]  ;;  %v14517_v33 = vld [vmem:[%s18540_s13 + $0x1958] sm:$0xf0]  ;;  %v14280_v37 = vor.u32 %v17566_v35, %v14277_v6  ;;  %v10312_v1 = vpop.f32.mrf.mxu1  ;;  %v10324_v38 = vadd.f32 %v10323_v31, %v10311_v15  ;;  %v10351_v15 = vpop.f32.mrf.mxu0 }
 0x50a   : > { %10575 = vmatpush.bf16.msra.mxu3 %v14328_v23  ;;  %v17626_v53 = vld [vmem:[%s18540_s13 + $0x194c] sm:$0xf]  ;;  %v14408_v42 = vor.u32 %v17598_v62, %v14405_v46  ;;  %v14117_v9 = vld [vmem:[%s18540_s13 + $0x1638] sm:$0xf0] }
 0x50b   : > { %10602 = vmatpush.bf16.msra.mxu0 %v14568_v43  ;;  %v17526_v60 = vld [vmem:[%s18540_s13 + $0x162c] sm:$0xf]  ;;  %v14261_v34 = vld [vmem:[%s18540_s13 + $0x1758] sm:$0xf0]  ;;  %v14520_v8 = vor.u32 %v17626_v53, %v14517_v33  ;;  %v10337_v50 = vadd.f32 %v10336_v28, %v10324_v38 }
 0x50c   : > { %10565 = vmatpush.bf16.msrb.mxu1 %v14152_v51  ;;  %v17562_v23 = vld [vmem:[%s18540_s13 + $0x174c] sm:$0xf]  ;;  %v14389_v47 = vld [vmem:[%s18540_s13 + $0x1858] sm:$0xf0]  ;;  %v14120_v43 = vor.u32 %v17526_v60, %v14117_v9 }
 0x50d   : > { %10589 = vmatpush.bf16.msra.mxu2 %v14440_v54  ;;  %v17594_v2 = vld [vmem:[%s18540_s13 + $0x184c] sm:$0xf]  ;;  %v14501_v7 = vld [vmem:[%s18540_s13 + $0x1938] sm:$0xf0] }
 0x50e   : > { %10576 = vmatpush.bf16.msra.mxu3 %v14312_v3  ;;  %v17622_v24 = vld [vmem:[%s18540_s13 + $0x192c] sm:$0xf]  ;;  %v14264_v3 = vor.u32 %v17562_v23, %v14261_v34  ;;  %v14392_v54 = vor.u32 %v17594_v2, %v14389_v47  ;;  %v14101_v41 = vld [vmem:[%s18540_s13 + $0x1618] sm:$0xf0] }
 0x50f   : > { %10603 = vmatpush.bf16.msra.mxu0 %v14552_v10  ;;  %v17522_v30 = vld [vmem:[%s18540_s13 + $0x160c] sm:$0xf]  ;;  %v14245_v20 = vld [vmem:[%s18540_s13 + $0x1738] sm:$0xf0]  ;;  %v14504_v10 = vor.u32 %v17622_v24, %v14501_v7 }
 0x510   : > { %10566 = vmatpush.bf16.msrb.mxu1 %v14136_v61  ;;  %v17558_v14 = vld [vmem:[%s18540_s13 + $0x172c] sm:$0xf]  ;;  %v14373_v11 = vld [vmem:[%s18540_s13 + $0x1838] sm:$0xf0]  ;;  %v10325_v1 = vpop.f32.mrf.mxu3 }
 0x511   : > { %10590 = vmatpush.bf16.msra.mxu2 %v14424_v0  ;;  %v17590_v49 = vld [vmem:[%s18540_s13 + $0x182c] sm:$0xf]  ;;  %v14725_v29 = vld [vmem:[%s18540_s13 + $0x1af8] sm:$0xf0]  ;;  %v21426_v0 = vadd.f32 %v10349_v32, %v10337_v50  ;;  %v14248_v35 = vor.u32 %v17558_v14, %v14245_v20 }
 0x512   : > { %10577 = vmatpush.bf16.msra.mxu3 %v14296_v18  ;;  %v17678_v17 = vld [vmem:[%s18540_s13 + $0x1aec] sm:$0xf]  ;;  %v14485_v51 = vld [vmem:[%s18540_s13 + $0x1918] sm:$0xf0]  ;;  %v14104_v18 = vor.u32 %v17522_v30, %v14101_v41  ;;  %v14376_v6 = vor.u32 %v17590_v49, %v14373_v11 }
 0x513   : > { %10604 = vmatpush.bf16.msra.mxu0 %v14536_v40  ;;  %v17618_v45 = vld [vmem:[%s18540_s13 + $0x190c] sm:$0xf]  ;;  %v15109_v44 = vld [vmem:[%s18540_s13 + $0x1df8] sm:$0xf0]  ;;  %v14728_v53 = vor.u32 %v17678_v17, %v14725_v29 }
 0x514   : > { %10567 = vmatpush.bf16.msrb.mxu1 %v14120_v43  ;;  %v17774_v19 = vld [vmem:[%s18540_s13 + $0x1dec] sm:$0xf]  ;;  %v14229_v46 = vld [vmem:[%s18540_s13 + $0x1718] sm:$0xf0] }
 0x515   : > { %10591 = vmatpush.bf16.msra.mxu2 %v14408_v42  ;;  %v17554_v62 = vld [vmem:[%s18540_s13 + $0x170c] sm:$0xf]  ;;  %v14357_v33 = vld [vmem:[%s18540_s13 + $0x1818] sm:$0xf0]  ;;  %v15112_v23 = vor.u32 %v17774_v19, %v15109_v44 }
 0x516   : > { %10578 = vmatpush.bf16.msra.mxu3 %v14280_v37  ;;  %v17586_v40 = vld [vmem:[%s18540_s13 + $0x180c] sm:$0xf]  ;;  %v14709_v61 = vld [vmem:[%s18540_s13 + $0x1ad8] sm:$0xf0]  ;;  %v14488_v37 = vor.u32 %v17618_v45, %v14485_v51  ;;  %v14232_v31 = vor.u32 %v17554_v62, %v14229_v46 }
 0x517   : > { %10605 = vmatpush.bf16.msra.mxu0 %v14520_v8  ;;  %v17674_v32 = vld [vmem:[%s18540_s13 + $0x1acc] sm:$0xf]  ;;  %v14853_v60 = vld [vmem:[%s18540_s13 + $0x1bf8] sm:$0xf0]  ;;  %v10338_v8 = vpop.f32.mrf.mxu2  ;;  %v14360_v24 = vor.u32 %v17586_v40, %v14357_v33 }
 0x518   : > { %v17710_v42 = vld [vmem:[%s18540_s13 + $0x1bec] sm:$0xf]  ;;  %10568 = vmatpush.bf16.msrb.mxu1 %v14104_v18  ;;  %v14981_v34 = vld [vmem:[%s18540_s13 + $0x1cf8] sm:$0xf0]  ;;  %v14712_v7 = vor.u32 %v17674_v32, %v14709_v61 }
 0x519   : > { %10592 = vmatpush.bf16.msra.mxu2 %v14392_v54  ;;  %v17742_v9 = vld [vmem:[%s18540_s13 + $0x1cec] sm:$0xf]  ;;  %v15093_v47 = vld [vmem:[%s18540_s13 + $0x1dd8] sm:$0xf0]  ;;  %v14856_v43 = vor.u32 %v17710_v42, %v14853_v60 }
 0x51a   : > { %10579 = vmatpush.bf16.msra.mxu3 %v14264_v3  ;;  %v17770_v2 = vld [vmem:[%s18540_s13 + $0x1dcc] sm:$0xf]  ;;  %v14693_v30 = vld [vmem:[%s18540_s13 + $0x1ab8] sm:$0xf0]  ;;  %v14984_v28 = vor.u32 %v17742_v9, %v14981_v34 }
 0x51b   : > { %10606 = vmatpush.bf16.msra.mxu0 %v14504_v10  ;;  %v17670_v38 = vld [vmem:[%s18540_s13 + $0x1aac] sm:$0xf]  ;;  %10569 = vmatmul.bf16.vlgmr.msrb.gmra.mxu1 %v19053_v16  ;;  %v14837_v54 = vld [vmem:[%s18540_s13 + $0x1bd8] sm:$0xf0]  ;;  %v15096_v14 = vor.u32 %v17770_v2, %v15093_v47 }
 0x51c   : > { %10613 = vmatpush.bf16.msra.mxu1 %v14728_v53  ;;  %v17706_v3 = vld [vmem:[%s18540_s13 + $0x1bcc] sm:$0xf]  ;;  %v14965_v20 = vld [vmem:[%s18540_s13 + $0x1cd8] sm:$0xf0]  ;;  %v14696_v16 = vor.u32 %v17670_v38, %v14693_v30 }
 0x51d   : > { %10593 = vmatpush.bf16.msra.mxu2 %v14376_v6  ;;  %v17738_v41 = vld [vmem:[%s18540_s13 + $0x1ccc] sm:$0xf]  ;;  %v15077_v11 = vld [vmem:[%s18540_s13 + $0x1db8] sm:$0xf0]  ;;  %v14840_v17 = vor.u32 %v17706_v3, %v14837_v54  ;;  %v10362_v6 = vpop.f32.mrf.mxu1 }
 0x51e   : > { %10580 = vmatpush.bf16.msra.mxu3 %v14248_v35  ;;  %v17766_v49 = vld [vmem:[%s18540_s13 + $0x1dac] sm:$0xf]  ;;  %v14677_v10 = vld [vmem:[%s18540_s13 + $0x1a98] sm:$0xf0]  ;;  %v14968_v15 = vor.u32 %v17738_v41, %v14965_v20 }
 0x51f   : > { %10607 = vmatpush.bf16.msra.mxu0 %v14488_v37  ;;  %v17666_v50 = vld [vmem:[%s18540_s13 + $0x1a8c] sm:$0xf]  ;;  %v14821_v45 = vld [vmem:[%s18540_s13 + $0x1bb8] sm:$0xf0]  ;;  %v15080_v18 = vor.u32 %v17766_v49, %v15077_v11 }
 0x520   : > { %10614 = vmatpush.bf16.msra.mxu1 %v14712_v7  ;;  %v17702_v29 = vld [vmem:[%s18540_s13 + $0x1bac] sm:$0xf]  ;;  %v14949_v19 = vld [vmem:[%s18540_s13 + $0x1cb8] sm:$0xf0]  ;;  %v14680_v62 = vor.u32 %v17666_v50, %v14677_v10  ;;  %v10401_v7 = vpop.f32.mrf.mxu0 }
 0x521   : > { %10594 = vmatpush.bf16.msra.mxu2 %v14360_v24  ;;  %v17734_v51 = vld [vmem:[%s18540_s13 + $0x1cac] sm:$0xf]  ;;  %v15061_v35 = vld [vmem:[%s18540_s13 + $0x1d98] sm:$0xf0]  ;;  %v14824_v46 = vor.u32 %v17702_v29, %v14821_v45 }
 0x522   : > { %10581 = vmatpush.bf16.msra.mxu3 %v14232_v31  ;;  %v17762_v44 = vld [vmem:[%s18540_s13 + $0x1d8c] sm:$0xf]  ;;  %10608 = vmatmul.bf16.vlgmr.msra.gmra.mxu0 %v19140_v13  ;;  %v14952_v53 = vor.u32 %v17734_v51, %v14949_v19  ;;  %v14805_v13 = vld [vmem:[%s18540_s13 + $0x1b98] sm:$0xf0] }
 0x523   : > { %10652 = vmatpush.bf16.msrb.mxu0 %v15112_v23  ;;  %v17662_v40 = vld [vmem:[%s18540_s13 + $0x1a6c] sm:$0xf]  ;;  %v15064_v61 = vor.u32 %v17762_v44, %v15061_v35  ;;  %v14933_v37 = vld [vmem:[%s18540_s13 + $0x1c98] sm:$0xf0] }
 0x524   : > { %10595 = vmatmul.bf16.vlgmr.msra.gmra.mxu2 %v19133_v5  ;;  %10615 = vmatpush.bf16.msra.mxu1 %v14696_v16  ;;  %v10363_v5 = vadd.f32 %v10362_v6, %v21426_v0  ;;  %v17698_v33 = vld [vmem:[%s18540_s13 + $0x1b8c] sm:$0xf]  ;;  %v15045_v60 = vld [vmem:[%s18540_s13 + $0x1d78] sm:$0xf0] }
 0x525   : > { %10639 = vmatpush.bf16.msrb.mxu2 %v14984_v28  ;;  %10582 = vmatmul.bf16.vlgmr.msra.gmra.mxu3 %v19059_v22  ;;  %v14661_v22 = vld [vmem:[%s18540_s13 + $0x1a78] sm:$0xf0]  ;;  %v17730_v32 = vld [vmem:[%s18540_s13 + $0x1c8c] sm:$0xf]  ;;  %v14808_v23 = vor.u32 %v17698_v33, %v14805_v13  ;;  %v10364_v41 = vpop.f32.mrf.mxu1 }
 0x526   : > { %10626 = vmatpush.bf16.msrb.mxu3 %v14856_v43  ;;  %v17758_v42 = vld [vmem:[%s18540_s13 + $0x1d6c] sm:$0xf]  ;;  %v14664_v9 = vor.u32 %v17662_v40, %v14661_v22  ;;  %v14645_v1 = vld [vmem:[%s18540_s13 + $0x1a58] sm:$0xf0]  ;;  %v14936_v34 = vor.u32 %v17730_v32, %v14933_v37 }
 0x527   : > { %10653 = vmatpush.bf16.msrb.mxu0 %v15096_v14  ;;  %v17658_v0 = vld [vmem:[%s18540_s13 + $0x1a4c] sm:$0xf]  ;;  %v14789_v47 = vld [vmem:[%s18540_s13 + $0x1b78] sm:$0xf0]  ;;  %v15048_v31 = vor.u32 %v17758_v42, %v15045_v60  ;;  %v10388_v29 = vpop.f32.mrf.mxu2 }
 0x528   : > { %10616 = vmatpush.bf16.msra.mxu1 %v14680_v62  ;;  %v17694_v2 = vld [vmem:[%s18540_s13 + $0x1b6c] sm:$0xf]  ;;  %v14917_v24 = vld [vmem:[%s18540_s13 + $0x1c78] sm:$0xf0]  ;;  %v14648_v30 = vor.u32 %v17658_v0, %v14645_v1  ;;  %v10403_v13 = vpop.f32.mrf.mxu0 }
 0x529   : > { %10640 = vmatpush.bf16.msrb.mxu2 %v14968_v15  ;;  %v17726_v8 = vld [vmem:[%s18540_s13 + $0x1c6c] sm:$0xf]  ;;  %v15029_v38 = vld [vmem:[%s18540_s13 + $0x1d58] sm:$0xf0]  ;;  %v14792_v28 = vor.u32 %v17694_v2, %v14789_v47  ;;  %v10375_v15 = vpop.f32.mrf.mxu3 }
 0x52a   : > { %10627 = vmatpush.bf16.msrb.mxu3 %v14840_v17  ;;  %v17754_v43 = vld [vmem:[%s18540_s13 + $0x1d4c] sm:$0xf]  ;;  %v14629_v54 = vld [vmem:[%s18540_s13 + $0x1a38] sm:$0xf0]  ;;  %v14920_v14 = vor.u32 %v17726_v8, %v14917_v24  ;;  %v10376_v45 = vadd.f32 %v10375_v15, %v10363_v5 }
 0x52b   : > { %10654 = vmatpush.bf16.msrb.mxu0 %v15080_v18  ;;  %v17654_v3 = vld [vmem:[%s18540_s13 + $0x1a2c] sm:$0xf]  ;;  %v14773_v49 = vld [vmem:[%s18540_s13 + $0x1b58] sm:$0xf0]  ;;  %v15032_v16 = vor.u32 %v17754_v43, %v15029_v38 }
 0x52c   : > { %10617 = vmatpush.bf16.msra.mxu1 %v14664_v9  ;;  %v17690_v20 = vld [vmem:[%s18540_s13 + $0x1b4c] sm:$0xf]  ;;  %v14901_v17 = vld [vmem:[%s18540_s13 + $0x1c58] sm:$0xf0]  ;;  %v14632_v51 = vor.u32 %v17654_v3, %v14629_v54  ;;  %v10389_v22 = vadd.f32 %v10388_v29, %v10376_v45 }
 0x52d   : > { %10641 = vmatpush.bf16.msrb.mxu2 %v14952_v53  ;;  %v17722_v11 = vld [vmem:[%s18540_s13 + $0x1c4c] sm:$0xf]  ;;  %v15013_v10 = vld [vmem:[%s18540_s13 + $0x1d38] sm:$0xf0]  ;;  %v14776_v18 = vor.u32 %v17690_v20, %v14773_v49 }
 0x52e   : > { %10628 = vmatpush.bf16.msrb.mxu3 %v14824_v46  ;;  %v17750_v50 = vld [vmem:[%s18540_s13 + $0x1d2c] sm:$0xf]  ;;  %v14613_v44 = vld [vmem:[%s18540_s13 + $0x1a18] sm:$0xf0]  ;;  %v14904_v35 = vor.u32 %v17722_v11, %v14901_v17  ;;  %v21497_v37 = vadd.f32 %v10401_v7, %v10389_v22 }
 0x52f   : > { %10655 = vmatpush.bf16.msrb.mxu0 %v15064_v61  ;;  %v17650_v19 = vld [vmem:[%s18540_s13 + $0x1a0c] sm:$0xf]  ;;  %v14757_v62 = vld [vmem:[%s18540_s13 + $0x1b38] sm:$0xf0]  ;;  %v15016_v40 = vor.u32 %v17750_v50, %v15013_v10  ;;  %v10390_v41 = vpop.f32.mrf.mxu2 }
 0x530   : > { %10618 = vmatpush.bf16.msra.mxu1 %v14648_v30  ;;  %v17686_v6 = vld [vmem:[%s18540_s13 + $0x1b2c] sm:$0xf]  ;;  %v14885_v53 = vld [vmem:[%s18540_s13 + $0x1c38] sm:$0xf0]  ;;  %v14616_v42 = vor.u32 %v17650_v19, %v14613_v44 }
 0x531   : > { %10642 = vmatpush.bf16.msrb.mxu2 %v14936_v34  ;;  %v17718_v46 = vld [vmem:[%s18540_s13 + $0x1c2c] sm:$0xf]  ;;  %v15237_v5 = vld [vmem:[%s18540_s13 + $0x1ef8] sm:$0xf0]  ;;  %v14760_v60 = vor.u32 %v17686_v6, %v14757_v62  ;;  %v10377_v54 = vpop.f32.mrf.mxu3 }
 0x532   : > { %10629 = vmatpush.bf16.msrb.mxu3 %v14808_v23  ;;  %v17806_v33 = vld [vmem:[%s18540_s13 + $0x1eec] sm:$0xf]  ;;  %v14997_v61 = vld [vmem:[%s18540_s13 + $0x1d18] sm:$0xf0]  ;;  %v14888_v1 = vor.u32 %v17718_v46, %v14885_v53 }
 0x533   : > { %10656 = vmatpush.bf16.msrb.mxu0 %v15048_v31  ;;  %v17746_v32 = vld [vmem:[%s18540_s13 + $0x1d0c] sm:$0xf]  ;;  %v15621_v0 = vld [vmem:[%s18540_s13 + $0x21f8] sm:$0xf0]  ;;  %v15240_v34 = vor.u32 %v17806_v33, %v15237_v5 }
 0x534   : > { %10619 = vmatpush.bf16.msra.mxu1 %v14632_v51  ;;  %v17682_v9 = vld [vmem:[%s18540_s13 + $0x1b0c] sm:$0xf]  ;;  %v14741_v2 = vld [vmem:[%s18540_s13 + $0x1b18] sm:$0xf0]  ;;  %v15000_v43 = vor.u32 %v17746_v32, %v14997_v61 }
 0x535   : > { %10643 = vmatpush.bf16.msrb.mxu2 %v14920_v14  ;;  %v17902_v23 = vld [vmem:[%s18540_s13 + $0x21ec] sm:$0xf]  ;;  %v14869_v8 = vld [vmem:[%s18540_s13 + $0x1c18] sm:$0xf0]  ;;  %v14744_v14 = vor.u32 %v17682_v9, %v14741_v2 }
 0x536   : > { %10630 = vmatpush.bf16.msrb.mxu3 %v14792_v28  ;;  %v17714_v47 = vld [vmem:[%s18540_s13 + $0x1c0c] sm:$0xf]  ;;  %v15221_v24 = vld [vmem:[%s18540_s13 + $0x1ed8] sm:$0xf0]  ;;  %v15624_v3 = vor.u32 %v17902_v23, %v15621_v0 }
 0x537   : > { %10657 = vmatpush.bf16.msrb.mxu0 %v15032_v16  ;;  %v17802_v31 = vld [vmem:[%s18540_s13 + $0x1ecc] sm:$0xf]  ;;  %v15365_v38 = vld [vmem:[%s18540_s13 + $0x1ff8] sm:$0xf0]  ;;  %v14872_v11 = vor.u32 %v17714_v47, %v14869_v8 }
 0x538   : > { %v17838_v7 = vld [vmem:[%s18540_s13 + $0x1fec] sm:$0xf]  ;;  %v15493_v28 = vld [vmem:[%s18540_s13 + $0x20f8] sm:$0xf0]  ;;  %10620 = vmatpush.bf16.msra.mxu1 %v14616_v42  ;;  %v15224_v16 = vor.u32 %v17802_v31, %v15221_v24  ;;  %v10414_v42 = vpop.f32.mrf.mxu1 }
 0x539   : > { %10644 = vmatpush.bf16.msrb.mxu2 %v14904_v35  ;;  %v17870_v30 = vld [vmem:[%s18540_s13 + $0x20ec] sm:$0xf]  ;;  %v15605_v49 = vld [vmem:[%s18540_s13 + $0x21d8] sm:$0xf0]  ;;  %v15368_v17 = vor.u32 %v17838_v7, %v15365_v38 }
 0x53a   : > { %10631 = vmatpush.bf16.msrb.mxu3 %v14776_v18  ;;  %v17898_v20 = vld [vmem:[%s18540_s13 + $0x21cc] sm:$0xf]  ;;  %v15496_v50 = vor.u32 %v17870_v30, %v15493_v28  ;;  %v15205_v15 = vld [vmem:[%s18540_s13 + $0x1eb8] sm:$0xf0] }
 0x53b   : > { %10658 = vmatpush.bf16.msrb.mxu0 %v15016_v40  ;;  %v17798_v10 = vld [vmem:[%s18540_s13 + $0x1eac] sm:$0xf]  ;;  %10621 = vmatmul.bf16.vlgmr.msra.gmra.mxu1 %v19138_v12  ;;  %v15349_v45 = vld [vmem:[%s18540_s13 + $0x1fd8] sm:$0xf0]  ;;  %v15608_v19 = vor.u32 %v17898_v20, %v15605_v49 }
 0x53c   : > { %10665 = vmatpush.bf16.msrb.mxu1 %v15240_v34  ;;  %v17834_v29 = vld [vmem:[%s18540_s13 + $0x1fcc] sm:$0xf]  ;;  %v15477_v18 = vld [vmem:[%s18540_s13 + $0x20d8] sm:$0xf0]  ;;  %v15208_v6 = vor.u32 %v17798_v10, %v15205_v15 }
 0x53d   : > { %10645 = vmatpush.bf16.msrb.mxu2 %v14888_v1  ;;  %v17866_v51 = vld [vmem:[%s18540_s13 + $0x20cc] sm:$0xf]  ;;  %v15589_v35 = vld [vmem:[%s18540_s13 + $0x21b8] sm:$0xf0]  ;;  %v15352_v12 = vor.u32 %v17834_v29, %v15349_v45 }
 0x53e   : > { %10632 = vmatpush.bf16.msrb.mxu3 %v14760_v60  ;;  %v17894_v44 = vld [vmem:[%s18540_s13 + $0x21ac] sm:$0xf]  ;;  %v15480_v62 = vor.u32 %v17866_v51, %v15477_v18  ;;  %v15189_v40 = vld [vmem:[%s18540_s13 + $0x1e98] sm:$0xf0] }
 0x53f   : > { %10659 = vmatpush.bf16.msrb.mxu0 %v15000_v43  ;;  %v17794_v46 = vld [vmem:[%s18540_s13 + $0x1e8c] sm:$0xf]  ;;  %v15333_v53 = vld [vmem:[%s18540_s13 + $0x1fb8] sm:$0xf0]  ;;  %v15592_v13 = vor.u32 %v17894_v44, %v15589_v35 }
 0x540   : > { %10666 = vmatpush.bf16.msrb.mxu1 %v15224_v16  ;;  %v17830_v22 = vld [vmem:[%s18540_s13 + $0x1fac] sm:$0xf]  ;;  %v15461_v5 = vld [vmem:[%s18540_s13 + $0x20b8] sm:$0xf0]  ;;  %v10416_v29 = vpop.f32.mrf.mxu1 }
 0x541   : > { %10646 = vmatpush.bf16.msrb.mxu2 %v14872_v11  ;;  %v17862_v33 = vld [vmem:[%s18540_s13 + $0x20ac] sm:$0xf]  ;;  %v15573_v61 = vld [vmem:[%s18540_s13 + $0x2198] sm:$0xf0]  ;;  %v15336_v60 = vor.u32 %v17830_v22, %v15333_v53 }
 0x542   : > { %10633 = vmatpush.bf16.msrb.mxu3 %v14744_v14  ;;  %10660 = vmatmul.bf16.vlgmr.msrb.gmra.mxu0 %v19225_v39  ;;  %v17890_v32 = vld [vmem:[%s18540_s13 + $0x218c] sm:$0xf]  ;;  %v15464_v9 = vor.u32 %v17862_v33, %v15461_v5  ;;  %v15173_v0 = vld [vmem:[%s18540_s13 + $0x1e78] sm:$0xf0]  ;;  %v10415_v39 = vadd.f32 %v10414_v42, %v21497_v37  ;;  %v10453_v14 = vpop.f32.mrf.mxu0 }
 0x543   : > { %10704 = vmatpush.bf16.msra.mxu0 %v15624_v3  ;;  %v17790_v23 = vld [vmem:[%s18540_s13 + $0x1e6c] sm:$0xf]  ;;  %v15317_v1 = vld [vmem:[%s18540_s13 + $0x1f98] sm:$0xf0]  ;;  %v15576_v47 = vor.u32 %v17890_v32, %v15573_v61 }
 0x544   : > { %10647 = vmatmul.bf16.vlgmr.msrb.gmra.mxu2 %v19218_v26  ;;  %10667 = vmatpush.bf16.msrb.mxu1 %v15208_v6  ;;  %v17826_v26 = vld [vmem:[%s18540_s13 + $0x1f8c] sm:$0xf]  ;;  %v15445_v2 = vld [vmem:[%s18540_s13 + $0x2098] sm:$0xf0]  ;;  %v15176_v24 = vor.u32 %v17790_v23, %v15173_v0 }
 0x545   : > { %10691 = vmatpush.bf16.msra.mxu2 %v15496_v50  ;;  %10634 = vmatmul.bf16.vlgmr.msrb.gmra.mxu3 %v19144_v21  ;;  %v15192_v21 = vor.u32 %v17794_v46, %v15189_v40  ;;  %v17858_v34 = vld [vmem:[%s18540_s13 + $0x208c] sm:$0xf]  ;;  %v15557_v31 = vld [vmem:[%s18540_s13 + $0x2178] sm:$0xf0]  ;;  %v15320_v7 = vor.u32 %v17826_v26, %v15317_v1 }
 0x546   : > { %10678 = vmatpush.bf16.msra.mxu3 %v15368_v17  ;;  %v17886_v8 = vld [vmem:[%s18540_s13 + $0x216c] sm:$0xf]  ;;  %v15448_v43 = vor.u32 %v17858_v34, %v15445_v2  ;;  %v15157_v38 = vld [vmem:[%s18540_s13 + $0x1e58] sm:$0xf0] }
 0x547   : > { %10705 = vmatpush.bf16.msra.mxu0 %v15608_v19  ;;  %v17786_v37 = vld [vmem:[%s18540_s13 + $0x1e4c] sm:$0xf]  ;;  %v15301_v28 = vld [vmem:[%s18540_s13 + $0x1f78] sm:$0xf0]  ;;  %v15560_v41 = vor.u32 %v17886_v8, %v15557_v31 }
 0x548   : > { %10668 = vmatpush.bf16.msrb.mxu1 %v15192_v21  ;;  %v17822_v30 = vld [vmem:[%s18540_s13 + $0x1f6c] sm:$0xf]  ;;  %v15429_v54 = vld [vmem:[%s18540_s13 + $0x2078] sm:$0xf0]  ;;  %v15160_v11 = vor.u32 %v17786_v37, %v15157_v38  ;;  %v10427_v44 = vpop.f32.mrf.mxu3 }
 0x549   : > { %10692 = vmatpush.bf16.msra.mxu2 %v15480_v62  ;;  %v17854_v3 = vld [vmem:[%s18540_s13 + $0x206c] sm:$0xf]  ;;  %v15541_v49 = vld [vmem:[%s18540_s13 + $0x2158] sm:$0xf0]  ;;  %v15304_v16 = vor.u32 %v17822_v30, %v15301_v28  ;;  %v10440_v62 = vpop.f32.mrf.mxu2 }
 0x54a   : > { %10679 = vmatpush.bf16.msra.mxu3 %v15352_v12  ;;  %v17882_v20 = vld [vmem:[%s18540_s13 + $0x214c] sm:$0xf]  ;;  %v15432_v17 = vor.u32 %v17854_v3, %v15429_v54  ;;  %v15141_v10 = vld [vmem:[%s18540_s13 + $0x1e38] sm:$0xf0]  ;;  %v10428_v12 = vadd.f32 %v10427_v44, %v10415_v39 }
 0x54b   : > { %10706 = vmatpush.bf16.msra.mxu0 %v15592_v13  ;;  %v17782_v50 = vld [vmem:[%s18540_s13 + $0x1e2c] sm:$0xf]  ;;  %v15285_v45 = vld [vmem:[%s18540_s13 + $0x1f58] sm:$0xf0]  ;;  %v15544_v19 = vor.u32 %v17882_v20, %v15541_v49 }
 0x54c   : > { %10669 = vmatpush.bf16.msrb.mxu1 %v15176_v24  ;;  %v17818_v15 = vld [vmem:[%s18540_s13 + $0x1f4c] sm:$0xf]  ;;  %v15413_v18 = vld [vmem:[%s18540_s13 + $0x2058] sm:$0xf0]  ;;  %v15144_v46 = vor.u32 %v17782_v50, %v15141_v10  ;;  %v10441_v32 = vadd.f32 %v10440_v62, %v10428_v12 }
 0x54d   : > { %10693 = vmatpush.bf16.msra.mxu2 %v15464_v9  ;;  %v17850_v51 = vld [vmem:[%s18540_s13 + $0x204c] sm:$0xf]  ;;  %v15525_v6 = vld [vmem:[%s18540_s13 + $0x2138] sm:$0xf0]  ;;  %v15288_v22 = vor.u32 %v17818_v15, %v15285_v45  ;;  %v10455_v9 = vpop.f32.mrf.mxu0 }
 0x54e   : > { %10680 = vmatpush.bf16.msra.mxu3 %v15336_v60  ;;  %v17878_v35 = vld [vmem:[%s18540_s13 + $0x212c] sm:$0xf]  ;;  %v15416_v53 = vor.u32 %v17850_v51, %v15413_v18  ;;  %v15125_v33 = vld [vmem:[%s18540_s13 + $0x1e18] sm:$0xf0]  ;;  %v21568_v39 = vadd.f32 %v10453_v14, %v10441_v32 }
 0x54f   : > { %10707 = vmatpush.bf16.msra.mxu0 %v15576_v47  ;;  %v17778_v40 = vld [vmem:[%s18540_s13 + $0x1e0c] sm:$0xf]  ;;  %v15269_v13 = vld [vmem:[%s18540_s13 + $0x1f38] sm:$0xf0]  ;;  %v15528_v60 = vor.u32 %v17878_v35, %v15525_v6 }
 0x550   : > { %10670 = vmatpush.bf16.msrb.mxu1 %v15160_v11  ;;  %v17814_v5 = vld [vmem:[%s18540_s13 + $0x1f2c] sm:$0xf]  ;;  %v15397_v21 = vld [vmem:[%s18540_s13 + $0x2038] sm:$0xf0]  ;;  %v15128_v1 = vor.u32 %v17778_v40, %v15125_v33  ;;  %v10429_v20 = vpop.f32.mrf.mxu3 }
 0x551   : > { %10694 = vmatpush.bf16.msra.mxu2 %v15448_v43  ;;  %v17846_v61 = vld [vmem:[%s18540_s13 + $0x202c] sm:$0xf]  ;;  %v15749_v23 = vld [vmem:[%s18540_s13 + $0x22f8] sm:$0xf0]  ;;  %v15272_v47 = vor.u32 %v17814_v5, %v15269_v13 }
 0x552   : > { %10681 = vmatpush.bf16.msra.mxu3 %v15320_v7  ;;  %v17934_v42 = vld [vmem:[%s18540_s13 + $0x22ec] sm:$0xf]  ;;  %v15509_v26 = vld [vmem:[%s18540_s13 + $0x2118] sm:$0xf0]  ;;  %v15400_v8 = vor.u32 %v17846_v61, %v15397_v21 }
 0x553   : > { %10708 = vmatpush.bf16.msra.mxu0 %v15560_v41  ;;  %v17874_v0 = vld [vmem:[%s18540_s13 + $0x210c] sm:$0xf]  ;;  %v16133_v2 = vld [vmem:[%s18540_s13 + $0x25f8] sm:$0xf0]  ;;  %v15752_v43 = vor.u32 %v17934_v42, %v15749_v23 }
 0x554   : > { %10671 = vmatpush.bf16.msrb.mxu1 %v15144_v46  ;;  %v18030_v34 = vld [vmem:[%s18540_s13 + $0x25ec] sm:$0xf]  ;;  %v15253_v24 = vld [vmem:[%s18540_s13 + $0x1f18] sm:$0xf0]  ;;  %v15512_v28 = vor.u32 %v17874_v0, %v15509_v26 }
 0x555   : > { %10695 = vmatpush.bf16.msra.mxu2 %v15432_v17  ;;  %v17810_v31 = vld [vmem:[%s18540_s13 + $0x1f0c] sm:$0xf]  ;;  %v15381_v37 = vld [vmem:[%s18540_s13 + $0x2018] sm:$0xf0]  ;;  %v16136_v14 = vor.u32 %v18030_v34, %v16133_v2  ;;  %v10442_v17 = vpop.f32.mrf.mxu2 }
 0x556   : > { %10682 = vmatpush.bf16.msra.mxu3 %v15304_v16  ;;  %v17842_v7 = vld [vmem:[%s18540_s13 + $0x200c] sm:$0xf]  ;;  %v15733_v30 = vld [vmem:[%s18540_s13 + $0x22d8] sm:$0xf0]  ;;  %v15256_v50 = vor.u32 %v17810_v31, %v15253_v24 }
 0x557   : > { %10709 = vmatpush.bf16.msra.mxu0 %v15544_v19  ;;  %v17930_v38 = vld [vmem:[%s18540_s13 + $0x22cc] sm:$0xf]  ;;  %v15877_v54 = vld [vmem:[%s18540_s13 + $0x23f8] sm:$0xf0]  ;;  %v15384_v10 = vor.u32 %v17842_v7, %v15381_v37 }
 0x558   : > { %v17966_v3 = vld [vmem:[%s18540_s13 + $0x23ec] sm:$0xf]  ;;  %10672 = vmatpush.bf16.msrb.mxu1 %v15128_v1  ;;  %v16005_v49 = vld [vmem:[%s18540_s13 + $0x24f8] sm:$0xf0]  ;;  %v15736_v15 = vor.u32 %v17930_v38, %v15733_v30  ;;  %v10466_v9 = vpop.f32.mrf.mxu1 }
 0x559   : > { %10696 = vmatpush.bf16.msra.mxu2 %v15416_v53  ;;  %v17998_v41 = vld [vmem:[%s18540_s13 + $0x24ec] sm:$0xf]  ;;  %v16117_v16 = vld [vmem:[%s18540_s13 + $0x25d8] sm:$0xf0]  ;;  %v15880_v29 = vor.u32 %v17966_v3, %v15877_v54 }
 0x55a   : > { %10683 = vmatpush.bf16.msra.mxu3 %v15288_v22  ;;  %v18026_v11 = vld [vmem:[%s18540_s13 + $0x25cc] sm:$0xf]  ;;  %v15717_v51 = vld [vmem:[%s18540_s13 + $0x22b8] sm:$0xf0]  ;;  %v16008_v18 = vor.u32 %v17998_v41, %v16005_v49 }
 0x55b   : > { %10710 = vmatpush.bf16.msra.mxu0 %v15528_v60  ;;  %v17926_v45 = vld [vmem:[%s18540_s13 + $0x22ac] sm:$0xf]  ;;  %10673 = vmatmul.bf16.vlgmr.msrb.gmra.mxu1 %v19223_v36  ;;  %v15861_v44 = vld [vmem:[%s18540_s13 + $0x23d8] sm:$0xf0]  ;;  %v16120_v6 = vor.u32 %v18026_v11, %v16117_v16 }
 0x55c   : > { %10717 = vmatpush.bf16.msra.mxu1 %v15752_v43  ;;  %v17962_v19 = vld [vmem:[%s18540_s13 + $0x23cc] sm:$0xf]  ;;  %v15989_v12 = vld [vmem:[%s18540_s13 + $0x24d8] sm:$0xf0]  ;;  %v15720_v36 = vor.u32 %v17926_v45, %v15717_v51 }
 0x55d   : > { %10697 = vmatpush.bf16.msra.mxu2 %v15400_v8  ;;  %v17994_v35 = vld [vmem:[%s18540_s13 + $0x24cc] sm:$0xf]  ;;  %v16101_v46 = vld [vmem:[%s18540_s13 + $0x25b8] sm:$0xf0]  ;;  %v15864_v40 = vor.u32 %v17962_v19, %v15861_v44 }
 0x55e   : > { %10684 = vmatpush.bf16.msra.mxu3 %v15272_v47  ;;  %v18022_v62 = vld [vmem:[%s18540_s13 + $0x25ac] sm:$0xf]  ;;  %v15701_v53 = vld [vmem:[%s18540_s13 + $0x2298] sm:$0xf0]  ;;  %v15992_v33 = vor.u32 %v17994_v35, %v15989_v12 }
 0x55f   : > { %10711 = vmatpush.bf16.msra.mxu0 %v15512_v28  ;;  %v17922_v22 = vld [vmem:[%s18540_s13 + $0x228c] sm:$0xf]  ;;  %v15845_v13 = vld [vmem:[%s18540_s13 + $0x23b8] sm:$0xf0]  ;;  %v16104_v61 = vor.u32 %v18022_v62, %v16101_v46 }
 0x560   : > { %10718 = vmatpush.bf16.msra.mxu1 %v15736_v15  ;;  %v17958_v5 = vld [vmem:[%s18540_s13 + $0x23ac] sm:$0xf]  ;;  %v15973_v21 = vld [vmem:[%s18540_s13 + $0x24b8] sm:$0xf0]  ;;  %v15704_v23 = vor.u32 %v17922_v22, %v15701_v53 }
 0x561   : > { %10698 = vmatpush.bf16.msra.mxu2 %v15384_v10  ;;  %v17990_v32 = vld [vmem:[%s18540_s13 + $0x24ac] sm:$0xf]  ;;  %v16085_v60 = vld [vmem:[%s18540_s13 + $0x2598] sm:$0xf0]  ;;  %v15848_v0 = vor.u32 %v17958_v5, %v15845_v13  ;;  %v10468_v10 = vpop.f32.mrf.mxu1 }
 0x562   : > { %10685 = vmatpush.bf16.msra.mxu3 %v15256_v50  ;;  %v18018_v42 = vld [vmem:[%s18540_s13 + $0x258c] sm:$0xf]  ;;  %10712 = vmatmul.bf16.vlgmr.msra.gmra.mxu0 %v21835_v4  ;;  %v15976_v1 = vor.u32 %v17990_v32, %v15973_v21  ;;  %v15829_v4 = vld [vmem:[%s18540_s13 + $0x2398] sm:$0xf0] }
 0x563   : > { %10756 = vmatpush.bf16.msrb.mxu0 %v16136_v14  ;;  %v17918_v26 = vld [vmem:[%s18540_s13 + $0x226c] sm:$0xf]  ;;  %v16088_v47 = vor.u32 %v18018_v42, %v16085_v60  ;;  %v15957_v8 = vld [vmem:[%s18540_s13 + $0x2498] sm:$0xf0]  ;;  %v10505_v14 = vpop.f32.mrf.mxu0 }
 0x564   : > { %10699 = vmatmul.bf16.vlgmr.msra.gmra.mxu2 %v21834_v55  ;;  %10719 = vmatpush.bf16.msra.mxu1 %v15720_v36  ;;  %v10467_v55 = vadd.f32 %v10466_v9, %v21568_v39  ;;  %v17954_v34 = vld [vmem:[%s18540_s13 + $0x238c] sm:$0xf]  ;;  %v16069_v24 = vld [vmem:[%s18540_s13 + $0x2578] sm:$0xf0] }
 0x565   : > { %10743 = vmatpush.bf16.msrb.mxu2 %v16008_v18  ;;  %10686 = vmatmul.bf16.vlgmr.msra.gmra.mxu3 %v21826_v27  ;;  %v15685_v27 = vld [vmem:[%s18540_s13 + $0x2278] sm:$0xf0]  ;;  %v17986_v2 = vld [vmem:[%s18540_s13 + $0x248c] sm:$0xf]  ;;  %v15832_v43 = vor.u32 %v17954_v34, %v15829_v4 }
 0x566   : > { %10730 = vmatpush.bf16.msrb.mxu3 %v15880_v29  ;;  %v18014_v31 = vld [vmem:[%s18540_s13 + $0x256c] sm:$0xf]  ;;  %v15688_v7 = vor.u32 %v17918_v26, %v15685_v27  ;;  %v15669_v37 = vld [vmem:[%s18540_s13 + $0x2258] sm:$0xf0]  ;;  %v15960_v38 = vor.u32 %v17986_v2, %v15957_v8 }
 0x567   : > { %10757 = vmatpush.bf16.msrb.mxu0 %v16120_v6  ;;  %v17914_v39 = vld [vmem:[%s18540_s13 + $0x224c] sm:$0xf]  ;;  %v15813_v28 = vld [vmem:[%s18540_s13 + $0x2378] sm:$0xf0]  ;;  %v16072_v54 = vor.u32 %v18014_v31, %v16069_v24  ;;  %v10492_v12 = vpop.f32.mrf.mxu2 }
 0x568   : > { %10720 = vmatpush.bf16.msra.mxu1 %v15704_v23  ;;  %v17950_v30 = vld [vmem:[%s18540_s13 + $0x236c] sm:$0xf]  ;;  %v15941_v41 = vld [vmem:[%s18540_s13 + $0x2478] sm:$0xf0]  ;;  %v15672_v11 = vor.u32 %v17914_v39, %v15669_v37  ;;  %v10479_v6 = vpop.f32.mrf.mxu3 }
 0x569   : > { %10744 = vmatpush.bf16.msrb.mxu2 %v15992_v33  ;;  %v17982_v3 = vld [vmem:[%s18540_s13 + $0x246c] sm:$0xf]  ;;  %v16053_v49 = vld [vmem:[%s18540_s13 + $0x2558] sm:$0xf0]  ;;  %v15816_v16 = vor.u32 %v17950_v30, %v15813_v28  ;;  %v10480_v62 = vadd.f32 %v10479_v6, %v10467_v55 }
 0x56a   : > { %10731 = vmatpush.bf16.msrb.mxu3 %v15864_v40  ;;  %v18010_v20 = vld [vmem:[%s18540_s13 + $0x254c] sm:$0xf]  ;;  %v15653_v50 = vld [vmem:[%s18540_s13 + $0x2238] sm:$0xf0]  ;;  %v15944_v15 = vor.u32 %v17982_v3, %v15941_v41 }
 0x56b   : > { %10758 = vmatpush.bf16.msrb.mxu0 %v16104_v61  ;;  %v17910_v17 = vld [vmem:[%s18540_s13 + $0x222c] sm:$0xf]  ;;  %v15797_v45 = vld [vmem:[%s18540_s13 + $0x2358] sm:$0xf0]  ;;  %v16056_v18 = vor.u32 %v18010_v20, %v16053_v49  ;;  %v10493_v61 = vadd.f32 %v10492_v12, %v10480_v62  ;;  %v10507_v9 = vpop.f32.mrf.mxu0 }
 0x56c   : > { %10721 = vmatpush.bf16.msra.mxu1 %v15688_v7  ;;  %v17946_v29 = vld [vmem:[%s18540_s13 + $0x234c] sm:$0xf]  ;;  %v15925_v19 = vld [vmem:[%s18540_s13 + $0x2458] sm:$0xf0]  ;;  %v15656_v46 = vor.u32 %v17910_v17, %v15653_v50 }
 0x56d   : > { %10745 = vmatpush.bf16.msrb.mxu2 %v15976_v1  ;;  %v17978_v51 = vld [vmem:[%s18540_s13 + $0x244c] sm:$0xf]  ;;  %v16037_v35 = vld [vmem:[%s18540_s13 + $0x2538] sm:$0xf0]  ;;  %v15800_v36 = vor.u32 %v17946_v29, %v15797_v45  ;;  %v21639_v26 = vadd.f32 %v10505_v14, %v10493_v61 }
 0x56e   : > { %10732 = vmatpush.bf16.msrb.mxu3 %v15848_v0  ;;  %v18006_v44 = vld [vmem:[%s18540_s13 + $0x252c] sm:$0xf]  ;;  %v15637_v22 = vld [vmem:[%s18540_s13 + $0x2218] sm:$0xf0]  ;;  %v15928_v53 = vor.u32 %v17978_v51, %v15925_v19 }
 0x56f   : > { %10759 = vmatpush.bf16.msrb.mxu0 %v16088_v47  ;;  %v17906_v40 = vld [vmem:[%s18540_s13 + $0x220c] sm:$0xf]  ;;  %v15781_v5 = vld [vmem:[%s18540_s13 + $0x2338] sm:$0xf0]  ;;  %v16040_v32 = vor.u32 %v18006_v44, %v16037_v35  ;;  %v10494_v41 = vpop.f32.mrf.mxu2 }
 0x570   : > { %10722 = vmatpush.bf16.msra.mxu1 %v15672_v11  ;;  %v17942_v33 = vld [vmem:[%s18540_s13 + $0x232c] sm:$0xf]  ;;  %v15909_v21 = vld [vmem:[%s18540_s13 + $0x2438] sm:$0xf0]  ;;  %v15640_v27 = vor.u32 %v17906_v40, %v15637_v22 }
 0x571   : > { %10746 = vmatpush.bf16.msrb.mxu2 %v15960_v38  ;;  %v17974_v13 = vld [vmem:[%s18540_s13 + $0x242c] sm:$0xf]  ;;  %v16261_v60 = vld [vmem:[%s18540_s13 + $0x26f8] sm:$0xf0]  ;;  %v15784_v55 = vor.u32 %v17942_v33, %v15781_v5 }
 0x572   : > { %10733 = vmatpush.bf16.msrb.mxu3 %v15832_v43  ;;  %v18062_v42 = vld [vmem:[%s18540_s13 + $0x26ec] sm:$0xf]  ;;  %v16021_v0 = vld [vmem:[%s18540_s13 + $0x2518] sm:$0xf0]  ;;  %v15912_v2 = vor.u32 %v17974_v13, %v15909_v21 }
 0x573   : > { %10760 = vmatpush.bf16.msrb.mxu0 %v16072_v54  ;;  %v18002_v23 = vld [vmem:[%s18540_s13 + $0x250c] sm:$0xf]  ;;  %v16645_v4 = vld [vmem:[%s18540_s13 + $0x29f8] sm:$0xf0]  ;;  %v16264_v47 = vor.u32 %v18062_v42, %v16261_v60  ;;  %v10481_v54 = vpop.f32.mrf.mxu3 }
 0x574   : > { %10723 = vmatpush.bf16.msra.mxu1 %v15656_v46  ;;  %v17938_v1 = vld [vmem:[%s18540_s13 + $0x230c] sm:$0xf]  ;;  %v15765_v8 = vld [vmem:[%s18540_s13 + $0x2318] sm:$0xf0]  ;;  %v16024_v37 = vor.u32 %v18002_v23, %v16021_v0 }
 0x575   : > { %10747 = vmatpush.bf16.msrb.mxu2 %v15944_v15  ;;  %v18158_v34 = vld [vmem:[%s18540_s13 + $0x29ec] sm:$0xf]  ;;  %v15893_v24 = vld [vmem:[%s18540_s13 + $0x2418] sm:$0xf0]  ;;  %v15768_v14 = vor.u32 %v17938_v1, %v15765_v8 }
 0x576   : > { %10734 = vmatpush.bf16.msrb.mxu3 %v15816_v16  ;;  %v17970_v31 = vld [vmem:[%s18540_s13 + $0x240c] sm:$0xf]  ;;  %v16245_v43 = vld [vmem:[%s18540_s13 + $0x26d8] sm:$0xf0]  ;;  %v16648_v3 = vor.u32 %v18158_v34, %v16645_v4 }
 0x577   : > { %10761 = vmatpush.bf16.msrb.mxu0 %v16056_v18  ;;  %v18058_v7 = vld [vmem:[%s18540_s13 + $0x26cc] sm:$0xf]  ;;  %v16389_v38 = vld [vmem:[%s18540_s13 + $0x27f8] sm:$0xf0]  ;;  %v15896_v11 = vor.u32 %v17970_v31, %v15893_v24 }
 0x578   : > { %v18094_v39 = vld [vmem:[%s18540_s13 + $0x27ec] sm:$0xf]  ;;  %v16517_v28 = vld [vmem:[%s18540_s13 + $0x28f8] sm:$0xf0]  ;;  %10724 = vmatpush.bf16.msra.mxu1 %v15640_v27  ;;  %v16248_v16 = vor.u32 %v18058_v7, %v16245_v43  ;;  %v10518_v21 = vpop.f32.mrf.mxu1 }
 0x579   : > { %10748 = vmatpush.bf16.msrb.mxu2 %v15928_v53  ;;  %v18126_v30 = vld [vmem:[%s18540_s13 + $0x28ec] sm:$0xf]  ;;  %v16629_v49 = vld [vmem:[%s18540_s13 + $0x29d8] sm:$0xf0]  ;;  %v16392_v17 = vor.u32 %v18094_v39, %v16389_v38 }
 0x57a   : > { %10735 = vmatpush.bf16.msrb.mxu3 %v15800_v36  ;;  %v18154_v20 = vld [vmem:[%s18540_s13 + $0x29cc] sm:$0xf]  ;;  %v16520_v50 = vor.u32 %v18126_v30, %v16517_v28  ;;  %v16229_v15 = vld [vmem:[%s18540_s13 + $0x26b8] sm:$0xf0] }
 0x57b   : > { %10762 = vmatpush.bf16.msrb.mxu0 %v16040_v32  ;;  %v18054_v10 = vld [vmem:[%s18540_s13 + $0x26ac] sm:$0xf]  ;;  %10725 = vmatmul.bf16.vlgmr.msra.gmra.mxu1 %v21829_v56  ;;  %v16373_v45 = vld [vmem:[%s18540_s13 + $0x27d8] sm:$0xf0]  ;;  %v16632_v19 = vor.u32 %v18154_v20, %v16629_v49 }
 0x57c   : > { %10769 = vmatpush.bf16.msrb.mxu1 %v16264_v47  ;;  %v18090_v29 = vld [vmem:[%s18540_s13 + $0x27cc] sm:$0xf]  ;;  %v16501_v18 = vld [vmem:[%s18540_s13 + $0x28d8] sm:$0xf0]  ;;  %v16232_v6 = vor.u32 %v18054_v10, %v16229_v15 }
 0x57d   : > { %10749 = vmatpush.bf16.msrb.mxu2 %v15912_v2  ;;  %v18122_v51 = vld [vmem:[%s18540_s13 + $0x28cc] sm:$0xf]  ;;  %v16613_v35 = vld [vmem:[%s18540_s13 + $0x29b8] sm:$0xf0]  ;;  %v16376_v56 = vor.u32 %v18090_v29, %v16373_v45 }
 0x57e   : > { %10736 = vmatpush.bf16.msrb.mxu3 %v15784_v55  ;;  %v18150_v44 = vld [vmem:[%s18540_s13 + $0x29ac] sm:$0xf]  ;;  %v16504_v12 = vor.u32 %v18122_v51, %v16501_v18  ;;  %v16213_v46 = vld [vmem:[%s18540_s13 + $0x2698] sm:$0xf0] }
 0x57f   : > { %10763 = vmatpush.bf16.msrb.mxu0 %v16024_v37  ;;  %v18050_v62 = vld [vmem:[%s18540_s13 + $0x268c] sm:$0xf]  ;;  %v16357_v22 = vld [vmem:[%s18540_s13 + $0x27b8] sm:$0xf0]  ;;  %v16616_v5 = vor.u32 %v18150_v44, %v16613_v35  ;;  %v10557_v38 = vpop.f32.mrf.mxu0 }
 0x580   : > { %10770 = vmatpush.bf16.msrb.mxu1 %v16248_v16  ;;  %v18086_v36 = vld [vmem:[%s18540_s13 + $0x27ac] sm:$0xf]  ;;  %v16485_v33 = vld [vmem:[%s18540_s13 + $0x28b8] sm:$0xf0]  ;;  %v16216_v61 = vor.u32 %v18050_v62, %v16213_v46 }
 0x581   : > { %10750 = vmatpush.bf16.msrb.mxu2 %v15896_v11  ;;  %v21843_v40 = vld [vmem:[#allocation17_spill] sm:$0xff]  ;;  %v16597_v32 = vld [vmem:[%s18540_s13 + $0x2998] sm:$0xf0]  ;;  %v16360_v42 = vor.u32 %v18086_v36, %v16357_v22  ;;  %v10520_v11 = vpop.f32.mrf.mxu1 }
 0x582   : > { %10737 = vmatpush.bf16.msrb.mxu3 %v15768_v14  ;;  %v18118_v53 = vld [vmem:[%s18540_s13 + $0x28ac] sm:$0xf]  ;;  %10764 = vmatmul.bf16.vlgmr.msrb.gmra.mxu0 %v21838_v52  ;;  %v16197_v23 = vld [vmem:[%s18540_s13 + $0x2678] sm:$0xf0]  ;;  %v10519_v52 = vadd.f32 %v10518_v21, %v21639_v26 }
 0x583   : > { %10808 = vmatpush.bf16.msra.mxu0 %v16648_v3  ;;  %v18146_v13 = vld [vmem:[%s18540_s13 + $0x298c] sm:$0xf]  ;;  %v16488_v60 = vor.u32 %v18118_v53, %v16485_v33  ;;  %v16341_v0 = vld [vmem:[%s18540_s13 + $0x2798] sm:$0xf0] }
 0x584   : > { %10751 = vmatmul.bf16.vlgmr.msrb.gmra.mxu2 %v21837_v59  ;;  %10771 = vmatpush.bf16.msrb.mxu1 %v16232_v6  ;;  %v18046_v9 = vld [vmem:[%s18540_s13 + $0x266c] sm:$0xf]  ;;  %v16469_v55 = vld [vmem:[%s18540_s13 + $0x2898] sm:$0xf0]  ;;  %v16600_v1 = vor.u32 %v18146_v13, %v16597_v32 }
 0x585   : > { %10795 = vmatpush.bf16.msra.mxu2 %v16520_v50  ;;  %10738 = vmatmul.bf16.vlgmr.msrb.gmra.mxu3 %v21843_v40  ;;  %v18082_v59 = vld [vmem:[%s18540_s13 + $0x278c] sm:$0xf]  ;;  %v16581_v4 = vld [vmem:[%s18540_s13 + $0x2978] sm:$0xf0]  ;;  %v16200_v2 = vor.u32 %v18046_v9, %v16197_v23 }
 0x586   : > { %10782 = vmatpush.bf16.msra.mxu3 %v16392_v17  ;;  %v18114_v27 = vld [vmem:[%s18540_s13 + $0x288c] sm:$0xf]  ;;  %v16344_v47 = vor.u32 %v18082_v59, %v16341_v0  ;;  %v16181_v31 = vld [vmem:[%s18540_s13 + $0x2658] sm:$0xf0] }
 0x587   : > { %10809 = vmatpush.bf16.msra.mxu0 %v16632_v19  ;;  %v18142_v34 = vld [vmem:[%s18540_s13 + $0x296c] sm:$0xf]  ;;  %v16472_v8 = vor.u32 %v18114_v27, %v16469_v55  ;;  %v16325_v7 = vld [vmem:[%s18540_s13 + $0x2778] sm:$0xf0]  ;;  %v10544_v18 = vpop.f32.mrf.mxu2  ;;  %v10559_v33 = vpop.f32.mrf.mxu0 }
 0x588   : > { %10772 = vmatpush.bf16.msrb.mxu1 %v16216_v61  ;;  %v18042_v26 = vld [vmem:[%s18540_s13 + $0x264c] sm:$0xf]  ;;  %v16453_v39 = vld [vmem:[%s18540_s13 + $0x2878] sm:$0xf0]  ;;  %v16584_v37 = vor.u32 %v18142_v34, %v16581_v4  ;;  %v10531_v15 = vpop.f32.mrf.mxu3 }
 0x589   : > { %10796 = vmatpush.bf16.msra.mxu2 %v16504_v12  ;;  %v18078_v24 = vld [vmem:[%s18540_s13 + $0x276c] sm:$0xf]  ;;  %v16565_v28 = vld [vmem:[%s18540_s13 + $0x2958] sm:$0xf0]  ;;  %v16184_v3 = vor.u32 %v18042_v26, %v16181_v31  ;;  %v10532_v51 = vadd.f32 %v10531_v15, %v10519_v52  ;;  %v18176_v26 = vld [vmem:[%s21717_s7 + $0x38] sm:$0xff] }
 0x58a   : > { %10783 = vmatpush.bf16.msra.mxu3 %v16376_v56  ;;  %v18110_v43 = vld [vmem:[%s18540_s13 + $0x286c] sm:$0xf]  ;;  %v16328_v54 = vor.u32 %v18078_v24, %v16325_v7  ;;  %v16165_v20 = vld [vmem:[%s18540_s13 + $0x2638] sm:$0xf0]  ;;  %v18184_v31 = vld [vmem:[%s21717_s7 + $0x78] sm:$0xff] }
 0x58b   : > { %10810 = vmatpush.bf16.msra.mxu0 %v16616_v5  ;;  %v18138_v30 = vld [vmem:[%s18540_s13 + $0x294c] sm:$0xf]  ;;  %v16456_v41 = vor.u32 %v18110_v43, %v16453_v39  ;;  %v16309_v16 = vld [vmem:[%s18540_s13 + $0x2758] sm:$0xf0]  ;;  %v10545_v46 = vadd.f32 %v10544_v18, %v10532_v51  ;;  %v18192_v24 = vld [vmem:[%s21717_s7 + $0xb8] sm:$0xff] }
 0x58c   : > { %10773 = vmatpush.bf16.msrb.mxu1 %v16200_v2  ;;  %v18038_v14 = vld [vmem:[%s18540_s13 + $0x262c] sm:$0xf]  ;;  %v16437_v50 = vld [vmem:[%s18540_s13 + $0x2858] sm:$0xf0]  ;;  %v16568_v10 = vor.u32 %v18138_v30, %v16565_v28  ;;  %v18182_v30 = vld [vmem:[%s21717_s7 + $0x68] sm:$0xff] }
 0x58d   : > { %10797 = vmatpush.bf16.msra.mxu2 %v16488_v60  ;;  %v18074_v49 = vld [vmem:[%s18540_s13 + $0x274c] sm:$0xf]  ;;  %v16549_v45 = vld [vmem:[%s18540_s13 + $0x2938] sm:$0xf0]  ;;  %v16168_v19 = vor.u32 %v18038_v14, %v16165_v20  ;;  %v10558_v61 = vadd.f32 %v10557_v38, %v10545_v46  ;;  %v18190_v28 = vld [vmem:[%s21717_s7 + $0xa8] sm:$0xff] }
 0x58e   : > { %10784 = vmatpush.bf16.msra.mxu3 %v16360_v42  ;;  %v18106_v17 = vld [vmem:[%s18540_s13 + $0x284c] sm:$0xf]  ;;  %v16312_v35 = vor.u32 %v18074_v49, %v16309_v16  ;;  %v16149_v56 = vld [vmem:[%s18540_s13 + $0x2618] sm:$0xf0]  ;;  %v18180_v14 = vld [vmem:[%s21717_s7 + $0x58] sm:$0xff] }
 0x58f   : > { %10811 = vmatpush.bf16.msra.mxu0 %v16600_v1  ;;  %v18134_v29 = vld [vmem:[%s18540_s13 + $0x292c] sm:$0xf]  ;;  %v16440_v6 = vor.u32 %v18106_v17, %v16437_v50  ;;  %v16293_v62 = vld [vmem:[%s18540_s13 + $0x2738] sm:$0xf0]  ;;  %v10546_v4 = vpop.f32.mrf.mxu2  ;;  %v18188_v20 = vld [vmem:[%s21717_s7 + $0x98] sm:$0xff] }
 0x590   : > { %10774 = vmatpush.bf16.msrb.mxu1 %v16184_v3  ;;  %v18034_v44 = vld [vmem:[%s18540_s13 + $0x260c] sm:$0xf]  ;;  %v16421_v40 = vld [vmem:[%s18540_s13 + $0x2838] sm:$0xf0]  ;;  %v16552_v53 = vor.u32 %v18134_v29, %v16549_v45  ;;  %v10533_v34 = vpop.f32.mrf.mxu3  ;;  %v18170_v18 = vld [vmem:[%s21717_s7 + $0x8] sm:$0xff] }
 0x591   : > { %10798 = vmatpush.bf16.msra.mxu2 %v16472_v8  ;;  %v18070_v12 = vld [vmem:[%s18540_s13 + $0x272c] sm:$0xf]  ;;  %v16677_v5 = vld [vmem:[%s18540_s13 + $0x2a38] sm:$0xf0]  ;;  %v16152_v21 = vor.u32 %v18034_v44, %v16149_v56  ;;  %v18186_v44 = vld [vmem:[%s21717_s7 + $0x88] sm:$0xff] }
 0x592   : > { %10785 = vmatpush.bf16.msra.mxu3 %v16344_v47  ;;  %v18102_v36 = vld [vmem:[%s18540_s13 + $0x282c] sm:$0xf]  ;;  %v16533_v32 = vld [vmem:[%s18540_s13 + $0x2918] sm:$0xf0]  ;;  %v16296_v42 = vor.u32 %v18070_v12, %v16293_v62  ;;  %v21845_v12 = vld [vmem:[#allocation22_spill] sm:$0xff] }
 0x593   : > { %10812 = vmatpush.bf16.msra.mxu0 %v16584_v37  ;;  %v18166_v22 = vld [vmem:[%s18540_s13 + $0x2a2c] sm:$0xf]  ;;  %v16424_v60 = vor.u32 %v18102_v36, %v16421_v40  ;;  %v16277_v59 = vld [vmem:[%s18540_s13 + $0x2718] sm:$0xf0]  ;;  %v18174_v37 = vld [vmem:[%s21717_s7 + $0x28] sm:$0xff]  ;;  %v10834_v62 = vmax.f32 %v21845_v12, 0.0 }
 0x594   : > { %v18130_v13 = vld [vmem:[%s18540_s13 + $0x290c] sm:$0xf]  ;;  %10775 = vmatpush.bf16.msrb.mxu1 %v16168_v19  ;;  %v16680_v23 = vor.u32 %v18166_v22, %v16677_v5  ;;  %v16405_v0 = vld [vmem:[%s18540_s13 + $0x2818] sm:$0xf0]  ;;  %v18178_v19 = vld [vmem:[%s21717_s7 + $0x48] sm:$0xff] }
 0x595   : > { %10799 = vmatpush.bf16.msra.mxu2 %v16456_v41  ;;  %v18066_v9 = vld [vmem:[%s18540_s13 + $0x270c] sm:$0xf]  ;;  %v16536_v27 = vor.u32 %v18130_v13, %v16533_v32  ;;  %v16661_v1 = vld [vmem:[%s18540_s13 + $0x2a18] sm:$0xf0]  ;;  %v10838_v33 = vpack.c.bf16 %v10834_v62, %v10834_v62 }
 0x596   : > { %10786 = vmatpush.bf16.msra.mxu3 %v16328_v54  ;;  %v18098_v52 = vld [vmem:[%s18540_s13 + $0x280c] sm:$0xf]  ;;  %v16280_v2 = vor.u32 %v18066_v9, %v16277_v59  ;;  %v18175_v7 = vld [vmem:[%s21717_s7 + $0x30] sm:$0xff] }
 0x597   : > { %10813 = vmatpush.bf16.msra.mxu0 %v16568_v10  ;;  %v18162_v55 = vld [vmem:[%s18540_s13 + $0x2a0c] sm:$0xf]  ;;  %v16408_v47 = vor.u32 %v18098_v52, %v16405_v0  ;;  %v18183_v43 = vld [vmem:[%s21717_s7 + $0x70] sm:$0xff]  ;;  %s11272_s13 = sshll.u32 %s21852_s19, 3 }
 0x598   : > { %10776 = vmatpush.bf16.msrb.mxu1 %v16152_v21  ;;  %v16664_v8 = vor.u32 %v18162_v55, %v16661_v1  ;;  %v18191_v39 = vld [vmem:[%s21717_s7 + $0xb0] sm:$0xff]  ;;  %v18173_v3 = vld [vmem:[%s21717_s7 + $0x20] sm:$0xff]  ;;  %s298_s18 = scalar_lea.vmem %s21782_s4, %s11272_s13 }
 0x599   : > { %10800 = vmatpush.bf16.msra.mxu2 %v16440_v6  ;;  %v21844_v49 = vld [vmem:[#allocation21_spill] sm:$0xff]  ;;  %v18171_v50 = vld [vmem:[%s21717_s7 + $0x10] sm:$0xff] }
 0x59a   : > { %10787 = vmatpush.bf16.msra.mxu3 %v16312_v35  ;;  %v18179_v10 = vld [vmem:[%s21717_s7 + $0x50] sm:$0xff]  ;;  %v18169_v56 = vld [vmem:[%s21717_s7] sm:$0xff] }
 0x59b   : > { %10814 = vmatpush.bf16.msra.mxu0 %v16552_v53  ;;  %10777 = vmatmul.bf16.vlgmr.msrb.gmra.mxu1 %v19394_v63  ;;  %v10570_v63 = vpop.f32.mrf.mxu1  ;;  %v18187_v15 = vld [vmem:[%s21717_s7 + $0x90] sm:$0xff]  ;;  %v18177_v46 = vld [vmem:[%s21717_s7 + $0x40] sm:$0xff]  ;;  %v10836_v53 = vmax.f32 %v21348_v25, 0.0 }
 0x59c   : > { %10827 = vmatpush.bf16.msra.mxu1 %v16680_v23  ;;  %v10571_v38 = vadd.f32 %v10570_v63, %v10558_v61  ;;  %v18185_v36 = vld [vmem:[%s21717_s7 + $0x80] sm:$0xff] }
 0x59d   : > { %10801 = vmatpush.bf16.msra.mxu2 %v16424_v60  ;;  %v21846_v40 = vld [vmem:[#allocation13_spill] sm:$0xff]  ;;  %v10840_v13 = vpack.c.bf16 %v10836_v53, %v10836_v53 }
 0x59e   : > { %10788 = vmatpush.bf16.msra.mxu3 %v16296_v42  ;;  %v10835_v22 = vmax.f32 %v21846_v40, 0.0 }
 0x59f   : > { %10815 = vmatpush.bf16.msra.mxu0 %v16536_v27  ;;  %v10609_v54 = vpop.f32.mrf.mxu0 }
 0x5a0   : > { %10828 = vmatpush.bf16.msra.mxu1 %v16664_v8  ;;  %v10839_v5 = vpack.c.bf16 %v10835_v22, %v10835_v22 }
 0x5a1   : > { %10802 = vmatpush.bf16.msra.mxu2 %v16408_v47  ;;  %v18200_v47 = vld [vmem:[%s21717_s7 + $0xf8] sm:$0xff] }
 0x5a2   : > { %10789 = vmatpush.bf16.msra.mxu3 %v16280_v2  ;;  %10816 = vmatmul.bf16.vlgmr.msra.gmra.mxu0 %v19481_v58  ;;  %v18172_v58 = vld [vmem:[%s21717_s7 + $0x18] sm:$0xff] }
 0x5a3   : > { %v10572_v41 = vpop.f32.mrf.mxu1  ;;  %11137 = vmatpush.bf16.msrb.mxu0 %v18200_v47 }
 0x5a4   : > { %11111 = vmatpush.bf16.msrb.mxu1 %v18184_v31  ;;  %10803 = vmatmul.bf16.vlgmr.msra.gmra.mxu2 %v19479_v57  ;;  %v18189_v57 = vld [vmem:[%s21717_s7 + $0xa0] sm:$0xff] }
 0x5a5   : > { %11124 = vmatpush.bf16.msrb.mxu2 %v18192_v24  ;;  %10790 = vmatmul.bf16.vlgmr.msra.gmra.mxu3 %v21831_v48  ;;  %v18181_v48 = vld [vmem:[%s21717_s7 + $0x60] sm:$0xff] }
 0x5a6   : > { %11098 = vmatpush.bf16.msrb.mxu3 %v18176_v26  ;;  %v18199_v26 = vld [vmem:[%s21717_s7 + $0xf0] sm:$0xff]  ;;  %v18193_v41 = vld [vmem:[%s21717_s7 + $0xc0] sm:$0xff] }
 0x5a7   : > { %v10596_v16 = vpop.f32.mrf.mxu2  ;;  %v10611_v45 = vpop.f32.mrf.mxu0  ;;  %11138 = vmatpush.bf16.msrb.mxu0 %v18199_v26 }
 0x5a8   : > { %11112 = vmatpush.bf16.msrb.mxu1 %v18183_v43  ;;  %v10583_v11 = vpop.f32.mrf.mxu3  ;;  %v18197_v43 = vld [vmem:[%s21717_s7 + $0xe0] sm:$0xff] }
 0x5a9   : > { %11125 = vmatpush.bf16.msrb.mxu2 %v18191_v39  ;;  %v10584_v17 = vadd.f32 %v10583_v11, %v10571_v38 }
 0x5aa   : > { %11099 = vmatpush.bf16.msrb.mxu3 %v18175_v7  ;;  %v18198_v7 = vld [vmem:[%s21717_s7 + $0xe8] sm:$0xff] }
 0x5ab   : > { %16684 = vmatmul.msk.bf16.vlgmr.msra.gmra.mxu1 %vm8594_vm0, %v21844_v49  ;;  %v10597_v29 = vadd.f32 %v10596_v16, %v10584_v17  ;;  %11139 = vmatpush.bf16.msrb.mxu0 %v18198_v7 }
 0x5ac   : > { %11113 = vmatpush.bf16.msrb.mxu1 %v18182_v30  ;;  %v18195_v30 = vld [vmem:[%s21717_s7 + $0xd0] sm:$0xff] }
 0x5ad   : > { %11126 = vmatpush.bf16.msrb.mxu2 %v18190_v28  ;;  %v10610_v51 = vadd.f32 %v10609_v54, %v10597_v29 }
 0x5ae   : > { %11100 = vmatpush.bf16.msrb.mxu3 %v18174_v37  ;;  %v18196_v37 = vld [vmem:[%s21717_s7 + $0xd8] sm:$0xff] }
 0x5af   : > { %v10598_v6 = vpop.f32.mrf.mxu2  ;;  %11140 = vmatpush.bf16.msrb.mxu0 %v18197_v43 }
 0x5b0   : > { %11114 = vmatpush.bf16.msrb.mxu1 %v18181_v48  ;;  %v10585_v35 = vpop.f32.mrf.mxu3 }
 0x5b1   : > { %11127 = vmatpush.bf16.msrb.mxu2 %v18189_v57  ;;  %v18194_v57 = vld [vmem:[%s21717_s7 + $0xc8] sm:$0xff] }
 0x5b2   : > { %11101 = vmatpush.bf16.msrb.mxu3 %v18173_v3 }
 0x5b3   : > { %11141 = vmatpush.bf16.msrb.mxu0 %v18196_v37 }
 0x5b4   : > { %11115 = vmatpush.bf16.msrb.mxu1 %v18180_v14 }
 0x5b5   : > { %11128 = vmatpush.bf16.msrb.mxu2 %v18188_v20 }
 0x5b6   : > { %11102 = vmatpush.bf16.msrb.mxu3 %v18172_v58 }
 0x5b7   : > { %11142 = vmatpush.bf16.msrb.mxu0 %v18195_v30 }
 0x5b8   : > { %11116 = vmatpush.bf16.msrb.mxu1 %v18179_v10  ;;  %v10622_v32 = vpop.f32.mrf.mxu1 }
 0x5b9   : > { %11129 = vmatpush.bf16.msrb.mxu2 %v18187_v15  ;;  %v10623_v61 = vadd.f32 %v10622_v32, %v10610_v51 }
 0x5ba   : > { %11103 = vmatpush.bf16.msrb.mxu3 %v18171_v50 }
 0x5bb   : > { %11143 = vmatpush.bf16.msrb.mxu0 %v18194_v57 }
 0x5bc   : > { %11117 = vmatpush.bf16.msrb.mxu1 %v18178_v19 }
 0x5bd   : > { %11130 = vmatpush.bf16.msrb.mxu2 %v18186_v44 }
 0x5be   : > { %11104 = vmatpush.bf16.msrb.mxu3 %v18170_v18 }
 0x5bf   : > { %v10661_v21 = vpop.f32.mrf.mxu0  ;;  %11144 = vmatpush.bf16.msrb.mxu0 %v18193_v41 }
 0x5c0   : > { %11118 = vmatpush.bf16.msrb.mxu1 %v18177_v46  ;;  %v10624_v42 = vpop.f32.mrf.mxu1 }
 0x5c1   : > { %11131 = vmatpush.bf16.msrb.mxu2 %v18185_v36 }
 0x5c2   : > { %11105 = vmatpush.bf16.msrb.mxu3 %v18169_v56 }
 0x5c3   : > { %11119 = vmatmul.bf16.vlgmr.msrb.gmra.mxu1 %v10839_v5 }
 0x5c4   : > { %11132 = vmatmul.bf16.vlgmr.msrb.gmra.mxu2 %v10840_v13 }
 0x5c5   : > { %11106 = vmatmul.bf16.vlgmr.msrb.gmra.mxu3 %v10838_v33 }
 0x5c7   : > { %v10648_v23 = vpop.f32.mrf.mxu2  ;;  %v10663_v25 = vpop.f32.mrf.mxu0 }
 0x5c8   : > { %v10635_v60 = vpop.f32.mrf.mxu3 }
 0x5c9   : > { %v10636_v9 = vadd.f32 %v10635_v60, %v10623_v61 }
 0x5cb   : > { %v10649_v59 = vadd.f32 %v10648_v23, %v10636_v9 }
 0x5cd   : > { %v10662_v52 = vadd.f32 %v10661_v21, %v10649_v59 }
 0x5cf   : > { %v10650_v27 = vpop.f32.mrf.mxu2 }
 0x5d0   : > { %v10637_v0 = vpop.f32.mrf.mxu3 }
 0x5d8   : > { %v10674_v55 = vpop.f32.mrf.mxu1 }
 0x5d9   : > { %v10675_v54 = vadd.f32 %v10674_v55, %v10662_v52 }
 0x5df   : > { %v10713_v1 = vpop.f32.mrf.mxu0 }
 0x5e0   : > { %v10676_v34 = vpop.f32.mrf.mxu1 }
 0x5e7   : > { %v10700_v2 = vpop.f32.mrf.mxu2  ;;  %v10715_v8 = vpop.f32.mrf.mxu0 }
 0x5e8   : > { %v10687_v4 = vpop.f32.mrf.mxu3 }
 0x5e9   : > { %v10688_v58 = vadd.f32 %v10687_v4, %v10675_v54 }
 0x5eb   : > { %v10701_v49 = vadd.f32 %v10700_v2, %v10688_v58 }
 0x5ed   : > { %v10714_v11 = vadd.f32 %v10713_v1, %v10701_v49 }
 0x5ef   : > { %v10702_v24 = vpop.f32.mrf.mxu2 }
 0x5f0   : > { %v10689_v31 = vpop.f32.mrf.mxu3 }
 0x5f8   : > { %v10726_v39 = vpop.f32.mrf.mxu1 }
 0x5f9   : > { %v10727_v16 = vadd.f32 %v10726_v39, %v10714_v11 }
 0x5ff   : > { %v10765_v63 = vpop.f32.mrf.mxu0 }
 0x600   : > { %v10728_v38 = vpop.f32.mrf.mxu1 }
 0x607   : > { %v10752_v3 = vpop.f32.mrf.mxu2  ;;  %v10767_v48 = vpop.f32.mrf.mxu0 }
 0x608   : > { %v10739_v28 = vpop.f32.mrf.mxu3 }
 0x609   : > { %v10740_v17 = vadd.f32 %v10739_v28, %v10727_v16 }
 0x60b   : > { %v10753_v10 = vadd.f32 %v10752_v3, %v10740_v17 }
 0x60d   : > { %v10766_v29 = vadd.f32 %v10765_v63, %v10753_v10 }
 0x60f   : > { %v10754_v20 = vpop.f32.mrf.mxu2 }
 0x610   : > { %v10741_v14 = vpop.f32.mrf.mxu3 }
 0x618   : > { %v10778_v50 = vpop.f32.mrf.mxu1 }
 0x619   : > { %v10779_v51 = vadd.f32 %v10778_v50, %v10766_v29 }
 0x61f   : > { %v10817_v15 = vpop.f32.mrf.mxu0 }
 0x620   : > { %v10780_v45 = vpop.f32.mrf.mxu1 }
 0x627   : > { %v10804_v19 = vpop.f32.mrf.mxu2  ;;  %v10819_v6 = vpop.f32.mrf.mxu0 }
 0x628   : > { %v10791_v18 = vpop.f32.mrf.mxu3  ;;  %v10830_v12 = vpop.f32.mrf.mxu1 }
 0x629   : > { %v10792_v44 = vadd.f32 %v10791_v18, %v10779_v51 }
 0x62b   : > { %v10805_v35 = vadd.f32 %v10804_v19, %v10792_v44 }
 0x62d   : > { %v10818_v56 = vadd.f32 %v10817_v15, %v10805_v35 }
 0x62f   : > { %v10831_v62 = vadd.f32 %v10830_v12, %v10818_v56  ;;  %v10806_v36 = vpop.f32.mrf.mxu2 }
 0x630   : > { %v10793_v46 = vpop.f32.mrf.mxu3  ;;  %v10832_v53 = vpop.f32.mrf.mxu1 }
 0x631   : > { %v10837_v40 = vmax.f32 %v10831_v62, 0.0 }
 0x633   : > { %v10841_v22 = vpack.c.bf16 %v10837_v40, %v10837_v40 }
 0x635   : > { %11145 = vmatmul.bf16.vlgmr.msrb.gmra.mxu0 %v10841_v22 }
 0x640   : > { %v11120_v33 = vpop.f32.mrf.mxu1 }
 0x647   : > { %v11133_v32 = vpop.f32.mrf.mxu2 }
 0x648   : > { %v11107_v5 = vpop.f32.mrf.mxu3  ;;  %v11122_v21 = vpop.f32.mrf.mxu1 }
 0x649   : > { %v11121_v13 = vadd.f32 %v11120_v33, %v11107_v5 }
 0x64b   : > { %v11134_v61 = vadd.f32 %v11133_v32, %v11121_v13 }
 0x64f   : > { %v11135_v60 = vpop.f32.mrf.mxu2 }
 0x650   : > { %v11109_v42 = vpop.f32.mrf.mxu3 }
 0x6b2   : > { %v11146_v9 = vpop.f32.mrf.mxu0 }
 0x6b3   : > { %v11147_v23 = vadd.f32 %v11146_v9, %v11134_v61 }
 0x6b5   : > { %11150 = vst [vmem:[%s298_s18] sm:$0xff] %v11147_v23 }
 0x6ba   : > { %v11148_v59 = vpop.f32.mrf.mxu0 }
 0x6bb PF: > { %p17_p8 = scmp.ge.s32.totalorder %s18442_s20, 6   ;;  %s21847_s15 = smov %s18380_s16 }
 0x6bc   : > { %s21848_s16 = smov %s18384_s17  ;;  %s21849_s17 = smov %s18452_s23 }
 0x6bd   : > { %s21850_s18 = smov %s18442_s20  ;;  %19 = sbr.rel (!%p17_p8) target bundleno = 7 (0x7), region = 100 }
 0x6c2   :  { %11170 = vsyncpa [#allocation3], 1 }
 0x6c3   :  { %11172 = vsyncpa [#allocation3 + $0x1], 1 }
 0x6c4   :  { %11173 = vsyncpa [#allocation5], 1 }
 0x6c5   :  { %11175 = vsyncpa [#allocation5 + $0x1], 1 }

</bundles_post_ra>
